<compile_context>
chip_gen: v6e
topology: v6e:2x2x1
jax: 0.10.0
libtpu: 0.0.40
codegen_flags: <defaults>
</compile_context>

<pallas_src>
import jax
import jax.numpy as jnp
from jax import lax
from jax.experimental import pallas as pl
from jax.experimental.pallas import tpu as pltpu

# ---- fused-kernel geometry (all shapes uniform & (8,128)-aligned) ----
BATCH = 2
H_IMG = 40          # = W
C_IN = 3
ROWS = 128          # 2 images * 40 rows, padded 80 -> 128 sublanes
LANES = 256         # activation slab lane width (every layer's W*C <= 160 -> padded)
MAX_TAPS = 3        # kernel rows per layer (2-tap layers get a zero third tap)
N_LAYERS = 6        # conv1, conv2, avgpool, deconv1, deconv2, deconv3


# --------------------------------------------------------------------------
# host-side one-time weight packing (pre-pack at parameter-prep time, bf16)
# --------------------------------------------------------------------------

def _sel(n_in, n_out, stride, offset):
    """S[i, o] = 1.0 iff i == stride * o + offset (zero rows encode zero-padding)."""
    i = jnp.arange(n_in)[:, None]
    o = jnp.arange(n_out)[None, :]
    return (i == stride * o + offset).astype(jnp.float32)


def _conv_taps(w, hi, ho, stride, pad):
    """Conv2d (Co,Ci,kh,kw) -> per-kernel-row (R, M) with out2d = sum_ki R_ki @ A @ M_ki,
    where A[h, w*Ci+ci] = act[ci, h, w]."""
    co, ci, kh, kw = w.shape
    taps = []
    for ki in range(kh):
        r = _sel(hi, ho, stride, ki - pad).T                       # (Ho, Hi)
        m = jnp.zeros((hi * ci, ho * co), jnp.float32)
        for kj in range(kw):
            sw = _sel(hi, ho, stride, kj - pad)                    # (Wi, Wo)
            v = w[:, :, ki, kj].T                                  # (Ci, Co)
            m = m + jnp.einsum("wv,io->wivo", sw, v).reshape(hi * ci, ho * co)
        taps.append((r, m))
    return taps


def _deconv_taps(w, hi, ho, stride, pad, co_major=False):
    """ConvTranspose2d (Ci,Co,kh,kw), direct scatter: out[co,y,x] += w[ci,co,ki,kj]*in[ci,i,j]
    with y = s*i - p + ki, x = s*j - p + kj. co_major orders output columns (co, x) so the
    final layer lands channel-major (NCHW-ready) without an in-kernel transpose."""
    ci, co, kh, kw = w.shape
    taps = []
    for ki in range(kh):
        r = _sel(ho, hi, stride, ki - pad)                         # (Ho, Hi): [y, i]
        cols = co * ho if co_major else ho * co
        m = jnp.zeros((hi * ci, cols), jnp.float32)
        for kj in range(kw):
            scw = _sel(ho, hi, stride, kj - pad).T                 # (Wi, Wo): [j, x]
            v = w[:, :, ki, kj]                                    # (Ci, Co)
            if co_major:
                m = m + jnp.einsum("jx,io->jiox", scw, v).reshape(hi * ci, co * ho)
            else:
                m = m + jnp.einsum("jx,io->jixo", scw, v).reshape(hi * ci, ho * co)
        taps.append((r, m))
    return taps


def pack_params(params):
    """Pack all layers into uniform bf16 R / Mcat stacks + f32 instance-norm masks."""
    # AvgPool2d(2, 2) expressed as a conv with weight delta_{co,ci} / 4.
    pool_w = jnp.broadcast_to(jnp.eye(16, dtype=jnp.float32)[:, :, None, None],
                              (16, 16, 2, 2)) * 0.25
    layer_taps = [
        _conv_taps(params["conv1_w"], 40, 20, 2, 1),               # 3 taps
        _conv_taps(params["conv2_w"], 20, 10, 2, 1),               # 3 taps
        _conv_taps(pool_w, 10, 5, 2, 0),                           # 2 taps (avg-pool)
        _deconv_taps(params["deconv1_w"], 5, 10, 2, 0),            # 2 taps
        _deconv_taps(params["deconv2_w"], 10, 20, 2, 1),           # 3 taps
        _deconv_taps(params["deconv3_w"], 20, 40, 2, 1, co_major=True),  # 3 taps
    ]

    rmats = jnp.zeros((N_LAYERS * MAX_TAPS, ROWS, ROWS), jnp.float32)
    mcats = jnp.zeros((N_LAYERS, LANES, MAX_TAPS * LANES), jnp.float32)
    for li, taps in enumerate(layer_taps):
        for ti, (r, m) in enumerate(taps):
            ho, hi = r.shape
            for b in range(BATCH):   # per-image block-diagonal row mixing
                rmats = rmats.at[li * MAX_TAPS + ti,
                                 b * H_IMG: b * H_IMG + ho,
                                 b * H_IMG: b * H_IMG + hi].set(r)
            mr, mc = m.shape
            mcats = mcats.at[li, :mr, ti * LANES: ti * LANES + mc].set(m)

    # Instance-norm reduction/broadcast masks (exact 0/1; kept f32 for accurate stats).
    row = jnp.arange(ROWS)
    row_valid = row < BATCH * H_IMG
    rsum = ((row[:, None] // H_IMG == row[None, :] // H_IMG)
            & row_valid[:, None] & row_valid[None, :]).astype(jnp.float32)
    col = jnp.arange(LANES)
    col_valid = col < H_IMG * C_IN
    csum = ((col[:, None] % C_IN == col[None, :] % C_IN)
            & col_valid[:, None] & col_valid[None, :]).astype(jnp.float32)

    return {
        "rmats": rmats.astype(jnp.bfloat16),   # (18, 128, 128)
        "mcats": mcats.astype(jnp.bfloat16),   # (6, 256, 768)
        "rsum": rsum,                          # (128, 128) f32
        "csum": csum,                          # (256, 256) f32
    }


# --------------------------------------------------------------------------
# the fused Pallas kernel (single invocation, whole batch, all VMEM resident)
# --------------------------------------------------------------------------

def _vis_ae_kernel(x_ref, r_ref, m_ref, rsum_ref, csum_ref, out_ref, acc_ref):
    inv_n = 1.0 / float(H_IMG * H_IMG)        # 1 / 1600 pixels per (image, channel)

    # ---- encoder.instancenorm1 (affine=False, biased var, eps=1e-5), stats in f32 ----
    x = x_ref[...]                                                 # (128, 256) f32
    rs = rsum_ref[...]
    cs = csum_ref[...]
    mean = jnp.dot(jnp.dot(rs, x, preferred_element_type=jnp.float32), cs,
                   preferred_element_type=jnp.float32) * inv_n
    d = x - mean
    var = jnp.dot(jnp.dot(rs, d * d, preferred_element_type=jnp.float32), cs,
                  preferred_element_type=jnp.float32) * inv_n
    a = (d * lax.rsqrt(var + 1e-5)).astype(jnp.bfloat16)           # (128, 256) bf16

    # TODO(synk): encoder nn.Dropout layers are train-time randomness; eval-mode identity here.
    # encoder.flatten -> decoder.unflatten is an identity round trip (inner_linear=False).

    # ---- 6 layers: conv1+relu, conv2+relu, avgpool, deconv1+relu, deconv2+relu, deconv3+relu
    # Each layer: one wide bf16 A @ Mcat matmul, then MAX_TAPS uniform row-mix matmuls
    # accumulated in place in a VMEM scratch. Zero-padded rows/cols propagate as zeros.
    af = a.astype(jnp.float32)
    for li in range(N_LAYERS):
        b = jnp.dot(a, m_ref[li], preferred_element_type=jnp.float32)      # (128, 768) f32
        b16 = b.astype(jnp.bfloat16)
        for t in range(MAX_TAPS):
            v = jnp.dot(r_ref[li * MAX_TAPS + t],
                        b16[:, t * LANES:(t + 1) * LANES],
                        preferred_element_type=jnp.float32)                # (128, 256) f32
            if t == 0:
                acc_ref[...] = v
            else:
                acc_ref[...] += v
        # ReLU after every layer (the avg-pool input/weights are non-negative, so the
        # uniform ReLU is exact there too); elementwise math stays f32.
        af = jnp.maximum(acc_ref[...], 0.0)
        a = af.astype(jnp.bfloat16)

    # Single lane-dense store: (128, 128) slab, rows = img*40 + y, cols = co*40 + x.
    out_ref[...] = af[:, :128]


def vis_autoencoder_forward(x_nchw, packed):
    n, c, h, w = x_nchw.shape                      # (2, 3, 40, 40)
    # NCHW -> per-image NHWC 2-D slabs stacked along the sublane axis, zero padded to
    # a lane/sublane aligned (128, 256) block (pad columns are killed by zero M rows).
    slab = jnp.transpose(x_nchw, (0, 2, 3, 1)).reshape(n * h, w * c)       # (80, 120)
    slab = jnp.zeros((ROWS, LANES), jnp.float32).at[:n * h, :w * c].set(slab)

    rmats, mcats = packed["rmats"], packed["mcats"]
    rsum, csum = packed["rsum"], packed["csum"]

    y2d = pl.pallas_call(
        _vis_ae_kernel,
        out_shape=jax.ShapeDtypeStruct((ROWS, 128), jnp.float32),
        grid_spec=pltpu.PrefetchScalarGridSpec(
            num_scalar_prefetch=0,
            grid=(1,),                              # whole batch in one invocation
            in_specs=[
                pl.BlockSpec((ROWS, LANES), lambda i: (0, 0)),
                pl.BlockSpec(rmats.shape, lambda i: (0, 0, 0)),
                pl.BlockSpec(mcats.shape, lambda i: (0, 0, 0)),
                pl.BlockSpec(rsum.shape, lambda i: (0, 0)),
                pl.BlockSpec(csum.shape, lambda i: (0, 0)),
            ],
            out_specs=pl.BlockSpec((ROWS, 128), lambda i: (0, 0)),
            scratch_shapes=[pltpu.VMEM((ROWS, LANES), jnp.float32)],
        ),
        compiler_params=pltpu.CompilerParams(dimension_semantics=("arbitrary",)),
    )(slab, rmats, mcats, rsum, csum)

    # (128, 128) -> NCHW: keep the valid 80x120 region, split rows=(img,y), cols=(co,x).
    y = y2d[:n * h, :c * w].reshape(n, h, c, w)
    return jnp.transpose(y, (0, 2, 1, 3))


# --------------------------------------------------------------------------
# pure-JAX reference (same math as the PyTorch module) for a numerical self-check
# --------------------------------------------------------------------------

def _reference_forward(x, params, eps=1e-5):
    mean = x.mean(axis=(2, 3), keepdims=True)
    var = ((x - mean) ** 2).mean(axis=(2, 3), keepdims=True)
    y = (x - mean) * lax.rsqrt(var + eps)

    def conv(z, w, s, p):
        return lax.conv_general_dilated(z, w, (s, s), [(p, p), (p, p)],
                                        dimension_numbers=("NCHW", "OIHW", "NCHW"))

    def conv_t(z, wt, s, p, op):
        k = wt.shape[-1]
        wf = jnp.transpose(wt, (1, 0, 2, 3))[:, :, ::-1, ::-1]
        return lax.conv_general_dilated(
            z, wf, (1, 1), [(k - 1 - p, k - 1 - p + op)] * 2,
            lhs_dilation=(s, s), dimension_numbers=("NCHW", "OIHW", "NCHW"))

    y = jax.nn.relu(conv(y, params["conv1_w"], 2, 1))
    y = jax.nn.relu(conv(y, params["conv2_w"], 2, 1))
    nb, cb, hb, wb = y.shape
    y = y.reshape(nb, cb, hb // 2, 2, wb // 2, 2).mean(axis=(3, 5))     # AvgPool2d(2, 2)
    y = jax.nn.relu(conv_t(y, params["deconv1_w"], 2, 0, 0))
    y = jax.nn.relu(conv_t(y, params["deconv2_w"], 2, 1, 1))
    y = jax.nn.relu(conv_t(y, params["deconv3_w"], 2, 1, 1))
    return y


# --------------------------------------------------------------------------

if __name__ == "__main__":
    key = jax.random.PRNGKey(0)
    ks = jax.random.split(key, 6)
    params = {
        # PyTorch Conv2d weight layout: (C_out, C_in, kh, kw)
        "conv1_w": 0.1 * jax.random.normal(ks[0], (8, 3, 3, 3), jnp.float32),
        "conv2_w": 0.1 * jax.random.normal(ks[1], (16, 8, 3, 3), jnp.float32),
        # PyTorch ConvTranspose2d weight layout: (C_in, C_out, kh, kw)
        "deconv1_w": 0.1 * jax.random.normal(ks[2], (16, 16, 2, 2), jnp.float32),
        "deconv2_w": 0.1 * jax.random.normal(ks[3], (16, 8, 3, 3), jnp.float32),
        "deconv3_w": 0.1 * jax.random.normal(ks[4], (8, 3, 3, 3), jnp.float32),
    }
    x = jax.random.normal(ks[5], (2, 3, 40, 40), jnp.float32)

    packed = pack_params(params)                  # one-time host-side bf16 weight packing
    fwd = jax.jit(vis_autoencoder_forward)

    y = fwd(x, packed)
    jax.block_until_ready(y)

    assert y.shape == (2, 3, 40, 40), y.shape
    assert bool(jnp.all(jnp.isfinite(y)))

    y_ref = jax.jit(_reference_forward)(x, params)
    err = float(jnp.max(jnp.abs(y - y_ref)))
    assert err < 3e-2, f"max |pallas - reference| = {err}"

    print("KERNEL_OK")
</pallas_src>

<mosaic_0001>
module attributes {stable_mosaic.version = 11 : i64} {
  func.func @_vis_ae_kernel(%arg0: i32, %arg1: memref<128x256xf32, #tpu.memory_space<vmem>>, %arg2: memref<18x128x128xbf16, #tpu.memory_space<vmem>>, %arg3: memref<6x256x768xbf16, #tpu.memory_space<vmem>>, %arg4: memref<128x128xf32, #tpu.memory_space<vmem>>, %arg5: memref<256x256xf32, #tpu.memory_space<vmem>>, %arg6: memref<128x128xf32, #tpu.memory_space<vmem>>, %arg7: memref<128x256xf32, #tpu.memory_space<vmem>>) attributes {dimension_semantics = [#tpu.dimension_semantics<arbitrary>], iteration_bounds = array<i64: 1>, scalar_prefetch = 0 : i64, scratch_operands = 1 : i64, tpu.core_type = #tpu.core_type<tc>, window_params = [{pipeline_mode = #tpu.pipeline_mode<synchronous>, transform_indices = @transform_0, window_bounds = array<i64: 128, 256>}, {pipeline_mode = #tpu.pipeline_mode<synchronous>, transform_indices = @transform_1, window_bounds = array<i64: 18, 128, 128>}, {pipeline_mode = #tpu.pipeline_mode<synchronous>, transform_indices = @transform_2, window_bounds = array<i64: 6, 256, 768>}, {pipeline_mode = #tpu.pipeline_mode<synchronous>, transform_indices = @transform_3, window_bounds = array<i64: 128, 128>}, {pipeline_mode = #tpu.pipeline_mode<synchronous>, transform_indices = @transform_4, window_bounds = array<i64: 256, 256>}, {pipeline_mode = #tpu.pipeline_mode<synchronous>, transform_indices = @transform_5, window_bounds = array<i64: 128, 128>}]} {
    %c0 = arith.constant 0 : index
    %c0_0 = arith.constant 0 : index
    %0 = vector.load %arg1[%c0, %c0_0] : memref<128x256xf32, #tpu.memory_space<vmem>>, vector<128x256xf32>
    %c0_1 = arith.constant 0 : index
    %c0_2 = arith.constant 0 : index
    %1 = vector.load %arg4[%c0_1, %c0_2] : memref<128x128xf32, #tpu.memory_space<vmem>>, vector<128x128xf32>
    %c0_3 = arith.constant 0 : index
    %c0_4 = arith.constant 0 : index
    %2 = vector.load %arg5[%c0_3, %c0_4] : memref<256x256xf32, #tpu.memory_space<vmem>>, vector<256x256xf32>
    %cst = arith.constant dense<0.000000e+00> : vector<128x256xf32>
    %3 = tpu.matmul %1, %0, %cst {dimension_numbers = #tpu.dot_dimension_numbers<[1], [0], [0], [1], [0, 0, 1, 1], [], []>} : vector<128x128xf32>, vector<128x256xf32>, vector<128x256xf32> -> vector<128x256xf32>
    %cst_5 = arith.constant dense<0.000000e+00> : vector<128x256xf32>
    %4 = tpu.matmul %3, %2, %cst_5 {dimension_numbers = #tpu.dot_dimension_numbers<[1], [0], [0], [1], [0, 0, 1, 1], [], []>} : vector<128x256xf32>, vector<256x256xf32>, vector<128x256xf32> -> vector<128x256xf32>
    %cst_6 = arith.constant 6.250000e-04 : f32
    %5 = vector.broadcast %cst_6 : f32 to vector<128x256xf32>
    %6 = arith.mulf %4, %5 : vector<128x256xf32>
    %7 = arith.subf %0, %6 : vector<128x256xf32>
    %8 = arith.mulf %7, %7 : vector<128x256xf32>
    %cst_7 = arith.constant dense<0.000000e+00> : vector<128x256xf32>
    %9 = tpu.matmul %1, %8, %cst_7 {dimension_numbers = #tpu.dot_dimension_numbers<[1], [0], [0], [1], [0, 0, 1, 1], [], []>} : vector<128x128xf32>, vector<128x256xf32>, vector<128x256xf32> -> vector<128x256xf32>
    %cst_8 = arith.constant dense<0.000000e+00> : vector<128x256xf32>
    %10 = tpu.matmul %9, %2, %cst_8 {dimension_numbers = #tpu.dot_dimension_numbers<[1], [0], [0], [1], [0, 0, 1, 1], [], []>} : vector<128x256xf32>, vector<256x256xf32>, vector<128x256xf32> -> vector<128x256xf32>
    %cst_9 = arith.constant 6.250000e-04 : f32
    %11 = vector.broadcast %cst_9 : f32 to vector<128x256xf32>
    %12 = arith.mulf %10, %11 : vector<128x256xf32>
    %cst_10 = arith.constant 9.99999974E-6 : f32
    %13 = vector.broadcast %cst_10 : f32 to vector<128x256xf32>
    %14 = arith.addf %12, %13 : vector<128x256xf32>
    %15 = math.rsqrt %14 : vector<128x256xf32>
    %16 = arith.mulf %7, %15 : vector<128x256xf32>
    %17 = arith.truncf %16 : vector<128x256xf32> to vector<128x256xbf16>
    %c0_11 = arith.constant 0 : index
    %c0_12 = arith.constant 0 : index
    %c0_13 = arith.constant 0 : index
    %18 = vector.load %arg3[%c0_11, %c0_12, %c0_13] : memref<6x256x768xbf16, #tpu.memory_space<vmem>>, vector<1x256x768xbf16>
    %19 = vector.shape_cast %18 : vector<1x256x768xbf16> to vector<256x768xbf16>
    %cst_14 = arith.constant dense<0.000000e+00> : vector<128x768xf32>
    %20 = tpu.matmul %17, %19, %cst_14 {dimension_numbers = #tpu.dot_dimension_numbers<[1], [0], [0], [1], [0, 0, 1, 1], [], []>} : vector<128x256xbf16>, vector<256x768xbf16>, vector<128x768xf32> -> vector<128x768xf32>
    %21 = arith.truncf %20 : vector<128x768xf32> to vector<128x768xbf16>
    %c0_15 = arith.constant 0 : index
    %c0_16 = arith.constant 0 : index
    %c0_17 = arith.constant 0 : index
    %22 = vector.load %arg2[%c0_15, %c0_16, %c0_17] : memref<18x128x128xbf16, #tpu.memory_space<vmem>>, vector<1x128x128xbf16>
    %23 = vector.shape_cast %22 : vector<1x128x128xbf16> to vector<128x128xbf16>
    %24 = vector.extract_strided_slice %21 {offsets = [0, 0], sizes = [128, 256], strides = [1, 1]} : vector<128x768xbf16> to vector<128x256xbf16>
    %cst_18 = arith.constant dense<0.000000e+00> : vector<128x256xf32>
    %25 = tpu.matmul %23, %24, %cst_18 {dimension_numbers = #tpu.dot_dimension_numbers<[1], [0], [0], [1], [0, 0, 1, 1], [], []>} : vector<128x128xbf16>, vector<128x256xbf16>, vector<128x256xf32> -> vector<128x256xf32>
    %c0_19 = arith.constant 0 : index
    %c0_20 = arith.constant 0 : index
    %26 = vector.load %arg7[%c0_19, %c0_20] : memref<128x256xf32, #tpu.memory_space<vmem>>, vector<128x256xf32>
    tpu.vector_store %arg7[%c0_19, %c0_20], %25 {strides = array<i32>} : memref<128x256xf32, #tpu.memory_space<vmem>>, vector<128x256xf32>,
    %c1 = arith.constant 1 : index
    %c0_21 = arith.constant 0 : index
    %c0_22 = arith.constant 0 : index
    %27 = vector.load %arg2[%c1, %c0_21, %c0_22] : memref<18x128x128xbf16, #tpu.memory_space<vmem>>, vector<1x128x128xbf16>
    %28 = vector.shape_cast %27 : vector<1x128x128xbf16> to vector<128x128xbf16>
    %29 = vector.extract_strided_slice %21 {offsets = [0, 256], sizes = [128, 256], strides = [1, 1]} : vector<128x768xbf16> to vector<128x256xbf16>
    %cst_23 = arith.constant dense<0.000000e+00> : vector<128x256xf32>
    %30 = tpu.matmul %28, %29, %cst_23 {dimension_numbers = #tpu.dot_dimension_numbers<[1], [0], [0], [1], [0, 0, 1, 1], [], []>} : vector<128x128xbf16>, vector<128x256xbf16>, vector<128x256xf32> -> vector<128x256xf32>
    %c0_24 = arith.constant 0 : index
    %c0_25 = arith.constant 0 : index
    %31 = vector.load %arg7[%c0_24, %c0_25] : memref<128x256xf32, #tpu.memory_space<vmem>>, vector<128x256xf32>
    %32 = arith.addf %31, %30 : vector<128x256xf32>
    %c0_26 = arith.constant 0 : index
    %c0_27 = arith.constant 0 : index
    %33 = vector.load %arg7[%c0_26, %c0_27] : memref<128x256xf32, #tpu.memory_space<vmem>>, vector<128x256xf32>
    tpu.vector_store %arg7[%c0_26, %c0_27], %32 {strides = array<i32>} : memref<128x256xf32, #tpu.memory_space<vmem>>, vector<128x256xf32>,
    %c2 = arith.constant 2 : index
    %c0_28 = arith.constant 0 : index
    %c0_29 = arith.constant 0 : index
    %34 = vector.load %arg2[%c2, %c0_28, %c0_29] : memref<18x128x128xbf16, #tpu.memory_space<vmem>>, vector<1x128x128xbf16>
    %35 = vector.shape_cast %34 : vector<1x128x128xbf16> to vector<128x128xbf16>
    %36 = vector.extract_strided_slice %21 {offsets = [0, 512], sizes = [128, 256], strides = [1, 1]} : vector<128x768xbf16> to vector<128x256xbf16>
    %cst_30 = arith.constant dense<0.000000e+00> : vector<128x256xf32>
    %37 = tpu.matmul %35, %36, %cst_30 {dimension_numbers = #tpu.dot_dimension_numbers<[1], [0], [0], [1], [0, 0, 1, 1], [], []>} : vector<128x128xbf16>, vector<128x256xbf16>, vector<128x256xf32> -> vector<128x256xf32>
    %c0_31 = arith.constant 0 : index
    %c0_32 = arith.constant 0 : index
    %38 = vector.load %arg7[%c0_31, %c0_32] : memref<128x256xf32, #tpu.memory_space<vmem>>, vector<128x256xf32>
    %39 = arith.addf %38, %37 : vector<128x256xf32>
    %c0_33 = arith.constant 0 : index
    %c0_34 = arith.constant 0 : index
    %40 = vector.load %arg7[%c0_33, %c0_34] : memref<128x256xf32, #tpu.memory_space<vmem>>, vector<128x256xf32>
    tpu.vector_store %arg7[%c0_33, %c0_34], %39 {strides = array<i32>} : memref<128x256xf32, #tpu.memory_space<vmem>>, vector<128x256xf32>,
    %c0_35 = arith.constant 0 : index
    %c0_36 = arith.constant 0 : index
    %41 = vector.load %arg7[%c0_35, %c0_36] : memref<128x256xf32, #tpu.memory_space<vmem>>, vector<128x256xf32>
    %cst_37 = arith.constant 0.000000e+00 : f32
    %42 = vector.broadcast %cst_37 : f32 to vector<128x256xf32>
    %43 = arith.maximumf %41, %42 : vector<128x256xf32>
    %44 = arith.truncf %43 : vector<128x256xf32> to vector<128x256xbf16>
    %c1_38 = arith.constant 1 : index
    %c0_39 = arith.constant 0 : index
    %c0_40 = arith.constant 0 : index
    %45 = vector.load %arg3[%c1_38, %c0_39, %c0_40] : memref<6x256x768xbf16, #tpu.memory_space<vmem>>, vector<1x256x768xbf16>
    %46 = vector.shape_cast %45 : vector<1x256x768xbf16> to vector<256x768xbf16>
    %cst_41 = arith.constant dense<0.000000e+00> : vector<128x768xf32>
    %47 = tpu.matmul %44, %46, %cst_41 {dimension_numbers = #tpu.dot_dimension_numbers<[1], [0], [0], [1], [0, 0, 1, 1], [], []>} : vector<128x256xbf16>, vector<256x768xbf16>, vector<128x768xf32> -> vector<128x768xf32>
    %48 = arith.truncf %47 : vector<128x768xf32> to vector<128x768xbf16>
    %c3 = arith.constant 3 : index
    %c0_42 = arith.constant 0 : index
    %c0_43 = arith.constant 0 : index
    %49 = vector.load %arg2[%c3, %c0_42, %c0_43] : memref<18x128x128xbf16, #tpu.memory_space<vmem>>, vector<1x128x128xbf16>
    %50 = vector.shape_cast %49 : vector<1x128x128xbf16> to vector<128x128xbf16>
    %51 = vector.extract_strided_slice %48 {offsets = [0, 0], sizes = [128, 256], strides = [1, 1]} : vector<128x768xbf16> to vector<128x256xbf16>
    %cst_44 = arith.constant dense<0.000000e+00> : vector<128x256xf32>
    %52 = tpu.matmul %50, %51, %cst_44 {dimension_numbers = #tpu.dot_dimension_numbers<[1], [0], [0], [1], [0, 0, 1, 1], [], []>} : vector<128x128xbf16>, vector<128x256xbf16>, vector<128x256xf32> -> vector<128x256xf32>
    %c0_45 = arith.constant 0 : index
    %c0_46 = arith.constant 0 : index
    %53 = vector.load %arg7[%c0_45, %c0_46] : memref<128x256xf32, #tpu.memory_space<vmem>>, vector<128x256xf32>
    tpu.vector_store %arg7[%c0_45, %c0_46], %52 {strides = array<i32>} : memref<128x256xf32, #tpu.memory_space<vmem>>, vector<128x256xf32>,
    %c4 = arith.constant 4 : index
    %c0_47 = arith.constant 0 : index
    %c0_48 = arith.constant 0 : index
    %54 = vector.load %arg2[%c4, %c0_47, %c0_48] : memref<18x128x128xbf16, #tpu.memory_space<vmem>>, vector<1x128x128xbf16>
    %55 = vector.shape_cast %54 : vector<1x128x128xbf16> to vector<128x128xbf16>
    %56 = vector.extract_strided_slice %48 {offsets = [0, 256], sizes = [128, 256], strides = [1, 1]} : vector<128x768xbf16> to vector<128x256xbf16>
    %cst_49 = arith.constant dense<0.000000e+00> : vector<128x256xf32>
    %57 = tpu.matmul %55, %56, %cst_49 {dimension_numbers = #tpu.dot_dimension_numbers<[1], [0], [0], [1], [0, 0, 1, 1], [], []>} : vector<128x128xbf16>, vector<128x256xbf16>, vector<128x256xf32> -> vector<128x256xf32>
    %c0_50 = arith.constant 0 : index
    %c0_51 = arith.constant 0 : index
    %58 = vector.load %arg7[%c0_50, %c0_51] : memref<128x256xf32, #tpu.memory_space<vmem>>, vector<128x256xf32>
    %59 = arith.addf %58, %57 : vector<128x256xf32>
    %c0_52 = arith.constant 0 : index
    %c0_53 = arith.constant 0 : index
    %60 = vector.load %arg7[%c0_52, %c0_53] : memref<128x256xf32, #tpu.memory_space<vmem>>, vector<128x256xf32>
    tpu.vector_store %arg7[%c0_52, %c0_53], %59 {strides = array<i32>} : memref<128x256xf32, #tpu.memory_space<vmem>>, vector<128x256xf32>,
    %c5 = arith.constant 5 : index
    %c0_54 = arith.constant 0 : index
    %c0_55 = arith.constant 0 : index
    %61 = vector.load %arg2[%c5, %c0_54, %c0_55] : memref<18x128x128xbf16, #tpu.memory_space<vmem>>, vector<1x128x128xbf16>
    %62 = vector.shape_cast %61 : vector<1x128x128xbf16> to vector<128x128xbf16>
    %63 = vector.extract_strided_slice %48 {offsets = [0, 512], sizes = [128, 256], strides = [1, 1]} : vector<128x768xbf16> to vector<128x256xbf16>
    %cst_56 = arith.constant dense<0.000000e+00> : vector<128x256xf32>
    %64 = tpu.matmul %62, %63, %cst_56 {dimension_numbers = #tpu.dot_dimension_numbers<[1], [0], [0], [1], [0, 0, 1, 1], [], []>} : vector<128x128xbf16>, vector<128x256xbf16>, vector<128x256xf32> -> vector<128x256xf32>
    %c0_57 = arith.constant 0 : index
    %c0_58 = arith.constant 0 : index
    %65 = vector.load %arg7[%c0_57, %c0_58] : memref<128x256xf32, #tpu.memory_space<vmem>>, vector<128x256xf32>
    %66 = arith.addf %65, %64 : vector<128x256xf32>
    %c0_59 = arith.constant 0 : index
    %c0_60 = arith.constant 0 : index
    %67 = vector.load %arg7[%c0_59, %c0_60] : memref<128x256xf32, #tpu.memory_space<vmem>>, vector<128x256xf32>
    tpu.vector_store %arg7[%c0_59, %c0_60], %66 {strides = array<i32>} : memref<128x256xf32, #tpu.memory_space<vmem>>, vector<128x256xf32>,
    %c0_61 = arith.constant 0 : index
    %c0_62 = arith.constant 0 : index
    %68 = vector.load %arg7[%c0_61, %c0_62] : memref<128x256xf32, #tpu.memory_space<vmem>>, vector<128x256xf32>
    %cst_63 = arith.constant 0.000000e+00 : f32
    %69 = vector.broadcast %cst_63 : f32 to vector<128x256xf32>
    %70 = arith.maximumf %68, %69 : vector<128x256xf32>
    %71 = arith.truncf %70 : vector<128x256xf32> to vector<128x256xbf16>
    %c2_64 = arith.constant 2 : index
    %c0_65 = arith.constant 0 : index
    %c0_66 = arith.constant 0 : index
    %72 = vector.load %arg3[%c2_64, %c0_65, %c0_66] : memref<6x256x768xbf16, #tpu.memory_space<vmem>>, vector<1x256x768xbf16>
    %73 = vector.shape_cast %72 : vector<1x256x768xbf16> to vector<256x768xbf16>
    %cst_67 = arith.constant dense<0.000000e+00> : vector<128x768xf32>
    %74 = tpu.matmul %71, %73, %cst_67 {dimension_numbers = #tpu.dot_dimension_numbers<[1], [0], [0], [1], [0, 0, 1, 1], [], []>} : vector<128x256xbf16>, vector<256x768xbf16>, vector<128x768xf32> -> vector<128x768xf32>
    %75 = arith.truncf %74 : vector<128x768xf32> to vector<128x768xbf16>
    %c6 = arith.constant 6 : index
    %c0_68 = arith.constant 0 : index
    %c0_69 = arith.constant 0 : index
    %76 = vector.load %arg2[%c6, %c0_68, %c0_69] : memref<18x128x128xbf16, #tpu.memory_space<vmem>>, vector<1x128x128xbf16>
    %77 = vector.shape_cast %76 : vector<1x128x128xbf16> to vector<128x128xbf16>
    %78 = vector.extract_strided_slice %75 {offsets = [0, 0], sizes = [128, 256], strides = [1, 1]} : vector<128x768xbf16> to vector<128x256xbf16>
    %cst_70 = arith.constant dense<0.000000e+00> : vector<128x256xf32>
    %79 = tpu.matmul %77, %78, %cst_70 {dimension_numbers = #tpu.dot_dimension_numbers<[1], [0], [0], [1], [0, 0, 1, 1], [], []>} : vector<128x128xbf16>, vector<128x256xbf16>, vector<128x256xf32> -> vector<128x256xf32>
    %c0_71 = arith.constant 0 : index
    %c0_72 = arith.constant 0 : index
    %80 = vector.load %arg7[%c0_71, %c0_72] : memref<128x256xf32, #tpu.memory_space<vmem>>, vector<128x256xf32>
    tpu.vector_store %arg7[%c0_71, %c0_72], %79 {strides = array<i32>} : memref<128x256xf32, #tpu.memory_space<vmem>>, vector<128x256xf32>,
    %c7 = arith.constant 7 : index
    %c0_73 = arith.constant 0 : index
    %c0_74 = arith.constant 0 : index
    %81 = vector.load %arg2[%c7, %c0_73, %c0_74] : memref<18x128x128xbf16, #tpu.memory_space<vmem>>, vector<1x128x128xbf16>
    %82 = vector.shape_cast %81 : vector<1x128x128xbf16> to vector<128x128xbf16>
    %83 = vector.extract_strided_slice %75 {offsets = [0, 256], sizes = [128, 256], strides = [1, 1]} : vector<128x768xbf16> to vector<128x256xbf16>
    %cst_75 = arith.constant dense<0.000000e+00> : vector<128x256xf32>
    %84 = tpu.matmul %82, %83, %cst_75 {dimension_numbers = #tpu.dot_dimension_numbers<[1], [0], [0], [1], [0, 0, 1, 1], [], []>} : vector<128x128xbf16>, vector<128x256xbf16>, vector<128x256xf32> -> vector<128x256xf32>
    %c0_76 = arith.constant 0 : index
    %c0_77 = arith.constant 0 : index
    %85 = vector.load %arg7[%c0_76, %c0_77] : memref<128x256xf32, #tpu.memory_space<vmem>>, vector<128x256xf32>
    %86 = arith.addf %85, %84 : vector<128x256xf32>
    %c0_78 = arith.constant 0 : index
    %c0_79 = arith.constant 0 : index
    %87 = vector.load %arg7[%c0_78, %c0_79] : memref<128x256xf32, #tpu.memory_space<vmem>>, vector<128x256xf32>
    tpu.vector_store %arg7[%c0_78, %c0_79], %86 {strides = array<i32>} : memref<128x256xf32, #tpu.memory_space<vmem>>, vector<128x256xf32>,
    %c8 = arith.constant 8 : index
    %c0_80 = arith.constant 0 : index
    %c0_81 = arith.constant 0 : index
    %88 = vector.load %arg2[%c8, %c0_80, %c0_81] : memref<18x128x128xbf16, #tpu.memory_space<vmem>>, vector<1x128x128xbf16>
    %89 = vector.shape_cast %88 : vector<1x128x128xbf16> to vector<128x128xbf16>
    %90 = vector.extract_strided_slice %75 {offsets = [0, 512], sizes = [128, 256], strides = [1, 1]} : vector<128x768xbf16> to vector<128x256xbf16>
    %cst_82 = arith.constant dense<0.000000e+00> : vector<128x256xf32>
    %91 = tpu.matmul %89, %90, %cst_82 {dimension_numbers = #tpu.dot_dimension_numbers<[1], [0], [0], [1], [0, 0, 1, 1], [], []>} : vector<128x128xbf16>, vector<128x256xbf16>, vector<128x256xf32> -> vector<128x256xf32>
    %c0_83 = arith.constant 0 : index
    %c0_84 = arith.constant 0 : index
    %92 = vector.load %arg7[%c0_83, %c0_84] : memref<128x256xf32, #tpu.memory_space<vmem>>, vector<128x256xf32>
    %93 = arith.addf %92, %91 : vector<128x256xf32>
    %c0_85 = arith.constant 0 : index
    %c0_86 = arith.constant 0 : index
    %94 = vector.load %arg7[%c0_85, %c0_86] : memref<128x256xf32, #tpu.memory_space<vmem>>, vector<128x256xf32>
    tpu.vector_store %arg7[%c0_85, %c0_86], %93 {strides = array<i32>} : memref<128x256xf32, #tpu.memory_space<vmem>>, vector<128x256xf32>,
    %c0_87 = arith.constant 0 : index
    %c0_88 = arith.constant 0 : index
    %95 = vector.load %arg7[%c0_87, %c0_88] : memref<128x256xf32, #tpu.memory_space<vmem>>, vector<128x256xf32>
    %cst_89 = arith.constant 0.000000e+00 : f32
    %96 = vector.broadcast %cst_89 : f32 to vector<128x256xf32>
    %97 = arith.maximumf %95, %96 : vector<128x256xf32>
    %98 = arith.truncf %97 : vector<128x256xf32> to vector<128x256xbf16>
    %c3_90 = arith.constant 3 : index
    %c0_91 = arith.constant 0 : index
    %c0_92 = arith.constant 0 : index
    %99 = vector.load %arg3[%c3_90, %c0_91, %c0_92] : memref<6x256x768xbf16, #tpu.memory_space<vmem>>, vector<1x256x768xbf16>
    %100 = vector.shape_cast %99 : vector<1x256x768xbf16> to vector<256x768xbf16>
    %cst_93 = arith.constant dense<0.000000e+00> : vector<128x768xf32>
    %101 = tpu.matmul %98, %100, %cst_93 {dimension_numbers = #tpu.dot_dimension_numbers<[1], [0], [0], [1], [0, 0, 1, 1], [], []>} : vector<128x256xbf16>, vector<256x768xbf16>, vector<128x768xf32> -> vector<128x768xf32>
    %102 = arith.truncf %101 : vector<128x768xf32> to vector<128x768xbf16>
    %c9 = arith.constant 9 : index
    %c0_94 = arith.constant 0 : index
    %c0_95 = arith.constant 0 : index
    %103 = vector.load %arg2[%c9, %c0_94, %c0_95] : memref<18x128x128xbf16, #tpu.memory_space<vmem>>, vector<1x128x128xbf16>
    %104 = vector.shape_cast %103 : vector<1x128x128xbf16> to vector<128x128xbf16>
    %105 = vector.extract_strided_slice %102 {offsets = [0, 0], sizes = [128, 256], strides = [1, 1]} : vector<128x768xbf16> to vector<128x256xbf16>
    %cst_96 = arith.constant dense<0.000000e+00> : vector<128x256xf32>
    %106 = tpu.matmul %104, %105, %cst_96 {dimension_numbers = #tpu.dot_dimension_numbers<[1], [0], [0], [1], [0, 0, 1, 1], [], []>} : vector<128x128xbf16>, vector<128x256xbf16>, vector<128x256xf32> -> vector<128x256xf32>
    %c0_97 = arith.constant 0 : index
    %c0_98 = arith.constant 0 : index
    %107 = vector.load %arg7[%c0_97, %c0_98] : memref<128x256xf32, #tpu.memory_space<vmem>>, vector<128x256xf32>
    tpu.vector_store %arg7[%c0_97, %c0_98], %106 {strides = array<i32>} : memref<128x256xf32, #tpu.memory_space<vmem>>, vector<128x256xf32>,
    %c10 = arith.constant 10 : index
    %c0_99 = arith.constant 0 : index
    %c0_100 = arith.constant 0 : index
    %108 = vector.load %arg2[%c10, %c0_99, %c0_100] : memref<18x128x128xbf16, #tpu.memory_space<vmem>>, vector<1x128x128xbf16>
    %109 = vector.shape_cast %108 : vector<1x128x128xbf16> to vector<128x128xbf16>
    %110 = vector.extract_strided_slice %102 {offsets = [0, 256], sizes = [128, 256], strides = [1, 1]} : vector<128x768xbf16> to vector<128x256xbf16>
    %cst_101 = arith.constant dense<0.000000e+00> : vector<128x256xf32>
    %111 = tpu.matmul %109, %110, %cst_101 {dimension_numbers = #tpu.dot_dimension_numbers<[1], [0], [0], [1], [0, 0, 1, 1], [], []>} : vector<128x128xbf16>, vector<128x256xbf16>, vector<128x256xf32> -> vector<128x256xf32>
    %c0_102 = arith.constant 0 : index
    %c0_103 = arith.constant 0 : index
    %112 = vector.load %arg7[%c0_102, %c0_103] : memref<128x256xf32, #tpu.memory_space<vmem>>, vector<128x256xf32>
    %113 = arith.addf %112, %111 : vector<128x256xf32>
    %c0_104 = arith.constant 0 : index
    %c0_105 = arith.constant 0 : index
    %114 = vector.load %arg7[%c0_104, %c0_105] : memref<128x256xf32, #tpu.memory_space<vmem>>, vector<128x256xf32>
    tpu.vector_store %arg7[%c0_104, %c0_105], %113 {strides = array<i32>} : memref<128x256xf32, #tpu.memory_space<vmem>>, vector<128x256xf32>,
    %c11 = arith.constant 11 : index
    %c0_106 = arith.constant 0 : index
    %c0_107 = arith.constant 0 : index
    %115 = vector.load %arg2[%c11, %c0_106, %c0_107] : memref<18x128x128xbf16, #tpu.memory_space<vmem>>, vector<1x128x128xbf16>
    %116 = vector.shape_cast %115 : vector<1x128x128xbf16> to vector<128x128xbf16>
    %117 = vector.extract_strided_slice %102 {offsets = [0, 512], sizes = [128, 256], strides = [1, 1]} : vector<128x768xbf16> to vector<128x256xbf16>
    %cst_108 = arith.constant dense<0.000000e+00> : vector<128x256xf32>
    %118 = tpu.matmul %116, %117, %cst_108 {dimension_numbers = #tpu.dot_dimension_numbers<[1], [0], [0], [1], [0, 0, 1, 1], [], []>} : vector<128x128xbf16>, vector<128x256xbf16>, vector<128x256xf32> -> vector<128x256xf32>
    %c0_109 = arith.constant 0 : index
    %c0_110 = arith.constant 0 : index
    %119 = vector.load %arg7[%c0_109, %c0_110] : memref<128x256xf32, #tpu.memory_space<vmem>>, vector<128x256xf32>
    %120 = arith.addf %119, %118 : vector<128x256xf32>
    %c0_111 = arith.constant 0 : index
    %c0_112 = arith.constant 0 : index
    %121 = vector.load %arg7[%c0_111, %c0_112] : memref<128x256xf32, #tpu.memory_space<vmem>>, vector<128x256xf32>
    tpu.vector_store %arg7[%c0_111, %c0_112], %120 {strides = array<i32>} : memref<128x256xf32, #tpu.memory_space<vmem>>, vector<128x256xf32>,
    %c0_113 = arith.constant 0 : index
    %c0_114 = arith.constant 0 : index
    %122 = vector.load %arg7[%c0_113, %c0_114] : memref<128x256xf32, #tpu.memory_space<vmem>>, vector<128x256xf32>
    %cst_115 = arith.constant 0.000000e+00 : f32
    %123 = vector.broadcast %cst_115 : f32 to vector<128x256xf32>
    %124 = arith.maximumf %122, %123 : vector<128x256xf32>
    %125 = arith.truncf %124 : vector<128x256xf32> to vector<128x256xbf16>
    %c4_116 = arith.constant 4 : index
    %c0_117 = arith.constant 0 : index
    %c0_118 = arith.constant 0 : index
    %126 = vector.load %arg3[%c4_116, %c0_117, %c0_118] : memref<6x256x768xbf16, #tpu.memory_space<vmem>>, vector<1x256x768xbf16>
    %127 = vector.shape_cast %126 : vector<1x256x768xbf16> to vector<256x768xbf16>
    %cst_119 = arith.constant dense<0.000000e+00> : vector<128x768xf32>
    %128 = tpu.matmul %125, %127, %cst_119 {dimension_numbers = #tpu.dot_dimension_numbers<[1], [0], [0], [1], [0, 0, 1, 1], [], []>} : vector<128x256xbf16>, vector<256x768xbf16>, vector<128x768xf32> -> vector<128x768xf32>
    %129 = arith.truncf %128 : vector<128x768xf32> to vector<128x768xbf16>
    %c12 = arith.constant 12 : index
    %c0_120 = arith.constant 0 : index
    %c0_121 = arith.constant 0 : index
    %130 = vector.load %arg2[%c12, %c0_120, %c0_121] : memref<18x128x128xbf16, #tpu.memory_space<vmem>>, vector<1x128x128xbf16>
    %131 = vector.shape_cast %130 : vector<1x128x128xbf16> to vector<128x128xbf16>
    %132 = vector.extract_strided_slice %129 {offsets = [0, 0], sizes = [128, 256], strides = [1, 1]} : vector<128x768xbf16> to vector<128x256xbf16>
    %cst_122 = arith.constant dense<0.000000e+00> : vector<128x256xf32>
    %133 = tpu.matmul %131, %132, %cst_122 {dimension_numbers = #tpu.dot_dimension_numbers<[1], [0], [0], [1], [0, 0, 1, 1], [], []>} : vector<128x128xbf16>, vector<128x256xbf16>, vector<128x256xf32> -> vector<128x256xf32>
    %c0_123 = arith.constant 0 : index
    %c0_124 = arith.constant 0 : index
    %134 = vector.load %arg7[%c0_123, %c0_124] : memref<128x256xf32, #tpu.memory_space<vmem>>, vector<128x256xf32>
    tpu.vector_store %arg7[%c0_123, %c0_124], %133 {strides = array<i32>} : memref<128x256xf32, #tpu.memory_space<vmem>>, vector<128x256xf32>,
    %c13 = arith.constant 13 : index
    %c0_125 = arith.constant 0 : index
    %c0_126 = arith.constant 0 : index
    %135 = vector.load %arg2[%c13, %c0_125, %c0_126] : memref<18x128x128xbf16, #tpu.memory_space<vmem>>, vector<1x128x128xbf16>
    %136 = vector.shape_cast %135 : vector<1x128x128xbf16> to vector<128x128xbf16>
    %137 = vector.extract_strided_slice %129 {offsets = [0, 256], sizes = [128, 256], strides = [1, 1]} : vector<128x768xbf16> to vector<128x256xbf16>
    %cst_127 = arith.constant dense<0.000000e+00> : vector<128x256xf32>
    %138 = tpu.matmul %136, %137, %cst_127 {dimension_numbers = #tpu.dot_dimension_numbers<[1], [0], [0], [1], [0, 0, 1, 1], [], []>} : vector<128x128xbf16>, vector<128x256xbf16>, vector<128x256xf32> -> vector<128x256xf32>
    %c0_128 = arith.constant 0 : index
    %c0_129 = arith.constant 0 : index
    %139 = vector.load %arg7[%c0_128, %c0_129] : memref<128x256xf32, #tpu.memory_space<vmem>>, vector<128x256xf32>
    %140 = arith.addf %139, %138 : vector<128x256xf32>
    %c0_130 = arith.constant 0 : index
    %c0_131 = arith.constant 0 : index
    %141 = vector.load %arg7[%c0_130, %c0_131] : memref<128x256xf32, #tpu.memory_space<vmem>>, vector<128x256xf32>
    tpu.vector_store %arg7[%c0_130, %c0_131], %140 {strides = array<i32>} : memref<128x256xf32, #tpu.memory_space<vmem>>, vector<128x256xf32>,
    %c14 = arith.constant 14 : index
    %c0_132 = arith.constant 0 : index
    %c0_133 = arith.constant 0 : index
    %142 = vector.load %arg2[%c14, %c0_132, %c0_133] : memref<18x128x128xbf16, #tpu.memory_space<vmem>>, vector<1x128x128xbf16>
    %143 = vector.shape_cast %142 : vector<1x128x128xbf16> to vector<128x128xbf16>
    %144 = vector.extract_strided_slice %129 {offsets = [0, 512], sizes = [128, 256], strides = [1, 1]} : vector<128x768xbf16> to vector<128x256xbf16>
    %cst_134 = arith.constant dense<0.000000e+00> : vector<128x256xf32>
    %145 = tpu.matmul %143, %144, %cst_134 {dimension_numbers = #tpu.dot_dimension_numbers<[1], [0], [0], [1], [0, 0, 1, 1], [], []>} : vector<128x128xbf16>, vector<128x256xbf16>, vector<128x256xf32> -> vector<128x256xf32>
    %c0_135 = arith.constant 0 : index
    %c0_136 = arith.constant 0 : index
    %146 = vector.load %arg7[%c0_135, %c0_136] : memref<128x256xf32, #tpu.memory_space<vmem>>, vector<128x256xf32>
    %147 = arith.addf %146, %145 : vector<128x256xf32>
    %c0_137 = arith.constant 0 : index
    %c0_138 = arith.constant 0 : index
    %148 = vector.load %arg7[%c0_137, %c0_138] : memref<128x256xf32, #tpu.memory_space<vmem>>, vector<128x256xf32>
    tpu.vector_store %arg7[%c0_137, %c0_138], %147 {strides = array<i32>} : memref<128x256xf32, #tpu.memory_space<vmem>>, vector<128x256xf32>,
    %c0_139 = arith.constant 0 : index
    %c0_140 = arith.constant 0 : index
    %149 = vector.load %arg7[%c0_139, %c0_140] : memref<128x256xf32, #tpu.memory_space<vmem>>, vector<128x256xf32>
    %cst_141 = arith.constant 0.000000e+00 : f32
    %150 = vector.broadcast %cst_141 : f32 to vector<128x256xf32>
    %151 = arith.maximumf %149, %150 : vector<128x256xf32>
    %152 = arith.truncf %151 : vector<128x256xf32> to vector<128x256xbf16>
    %c5_142 = arith.constant 5 : index
    %c0_143 = arith.constant 0 : index
    %c0_144 = arith.constant 0 : index
    %153 = vector.load %arg3[%c5_142, %c0_143, %c0_144] : memref<6x256x768xbf16, #tpu.memory_space<vmem>>, vector<1x256x768xbf16>
    %154 = vector.shape_cast %153 : vector<1x256x768xbf16> to vector<256x768xbf16>
    %cst_145 = arith.constant dense<0.000000e+00> : vector<128x768xf32>
    %155 = tpu.matmul %152, %154, %cst_145 {dimension_numbers = #tpu.dot_dimension_numbers<[1], [0], [0], [1], [0, 0, 1, 1], [], []>} : vector<128x256xbf16>, vector<256x768xbf16>, vector<128x768xf32> -> vector<128x768xf32>
    %156 = arith.truncf %155 : vector<128x768xf32> to vector<128x768xbf16>
    %c15 = arith.constant 15 : index
    %c0_146 = arith.constant 0 : index
    %c0_147 = arith.constant 0 : index
    %157 = vector.load %arg2[%c15, %c0_146, %c0_147] : memref<18x128x128xbf16, #tpu.memory_space<vmem>>, vector<1x128x128xbf16>
    %158 = vector.shape_cast %157 : vector<1x128x128xbf16> to vector<128x128xbf16>
    %159 = vector.extract_strided_slice %156 {offsets = [0, 0], sizes = [128, 256], strides = [1, 1]} : vector<128x768xbf16> to vector<128x256xbf16>
    %cst_148 = arith.constant dense<0.000000e+00> : vector<128x256xf32>
    %160 = tpu.matmul %158, %159, %cst_148 {dimension_numbers = #tpu.dot_dimension_numbers<[1], [0], [0], [1], [0, 0, 1, 1], [], []>} : vector<128x128xbf16>, vector<128x256xbf16>, vector<128x256xf32> -> vector<128x256xf32>
    %c0_149 = arith.constant 0 : index
    %c0_150 = arith.constant 0 : index
    %161 = vector.load %arg7[%c0_149, %c0_150] : memref<128x256xf32, #tpu.memory_space<vmem>>, vector<128x256xf32>
    tpu.vector_store %arg7[%c0_149, %c0_150], %160 {strides = array<i32>} : memref<128x256xf32, #tpu.memory_space<vmem>>, vector<128x256xf32>,
    %c16 = arith.constant 16 : index
    %c0_151 = arith.constant 0 : index
    %c0_152 = arith.constant 0 : index
    %162 = vector.load %arg2[%c16, %c0_151, %c0_152] : memref<18x128x128xbf16, #tpu.memory_space<vmem>>, vector<1x128x128xbf16>
    %163 = vector.shape_cast %162 : vector<1x128x128xbf16> to vector<128x128xbf16>
    %164 = vector.extract_strided_slice %156 {offsets = [0, 256], sizes = [128, 256], strides = [1, 1]} : vector<128x768xbf16> to vector<128x256xbf16>
    %cst_153 = arith.constant dense<0.000000e+00> : vector<128x256xf32>
    %165 = tpu.matmul %163, %164, %cst_153 {dimension_numbers = #tpu.dot_dimension_numbers<[1], [0], [0], [1], [0, 0, 1, 1], [], []>} : vector<128x128xbf16>, vector<128x256xbf16>, vector<128x256xf32> -> vector<128x256xf32>
    %c0_154 = arith.constant 0 : index
    %c0_155 = arith.constant 0 : index
    %166 = vector.load %arg7[%c0_154, %c0_155] : memref<128x256xf32, #tpu.memory_space<vmem>>, vector<128x256xf32>
    %167 = arith.addf %166, %165 : vector<128x256xf32>
    %c0_156 = arith.constant 0 : index
    %c0_157 = arith.constant 0 : index
    %168 = vector.load %arg7[%c0_156, %c0_157] : memref<128x256xf32, #tpu.memory_space<vmem>>, vector<128x256xf32>
    tpu.vector_store %arg7[%c0_156, %c0_157], %167 {strides = array<i32>} : memref<128x256xf32, #tpu.memory_space<vmem>>, vector<128x256xf32>,
    %c17 = arith.constant 17 : index
    %c0_158 = arith.constant 0 : index
    %c0_159 = arith.constant 0 : index
    %169 = vector.load %arg2[%c17, %c0_158, %c0_159] : memref<18x128x128xbf16, #tpu.memory_space<vmem>>, vector<1x128x128xbf16>
    %170 = vector.shape_cast %169 : vector<1x128x128xbf16> to vector<128x128xbf16>
    %171 = vector.extract_strided_slice %156 {offsets = [0, 512], sizes = [128, 256], strides = [1, 1]} : vector<128x768xbf16> to vector<128x256xbf16>
    %cst_160 = arith.constant dense<0.000000e+00> : vector<128x256xf32>
    %172 = tpu.matmul %170, %171, %cst_160 {dimension_numbers = #tpu.dot_dimension_numbers<[1], [0], [0], [1], [0, 0, 1, 1], [], []>} : vector<128x128xbf16>, vector<128x256xbf16>, vector<128x256xf32> -> vector<128x256xf32>
    %c0_161 = arith.constant 0 : index
    %c0_162 = arith.constant 0 : index
    %173 = vector.load %arg7[%c0_161, %c0_162] : memref<128x256xf32, #tpu.memory_space<vmem>>, vector<128x256xf32>
    %174 = arith.addf %173, %172 : vector<128x256xf32>
    %c0_163 = arith.constant 0 : index
    %c0_164 = arith.constant 0 : index
    %175 = vector.load %arg7[%c0_163, %c0_164] : memref<128x256xf32, #tpu.memory_space<vmem>>, vector<128x256xf32>
    tpu.vector_store %arg7[%c0_163, %c0_164], %174 {strides = array<i32>} : memref<128x256xf32, #tpu.memory_space<vmem>>, vector<128x256xf32>,
    %c0_165 = arith.constant 0 : index
    %c0_166 = arith.constant 0 : index
    %176 = vector.load %arg7[%c0_165, %c0_166] : memref<128x256xf32, #tpu.memory_space<vmem>>, vector<128x256xf32>
    %cst_167 = arith.constant 0.000000e+00 : f32
    %177 = vector.broadcast %cst_167 : f32 to vector<128x256xf32>
    %178 = arith.maximumf %176, %177 : vector<128x256xf32>
    %179 = vector.extract_strided_slice %178 {offsets = [0, 0], sizes = [128, 128], strides = [1, 1]} : vector<128x256xf32> to vector<128x128xf32>
    %c0_168 = arith.constant 0 : index
    %c0_169 = arith.constant 0 : index
    %180 = vector.load %arg6[%c0_168, %c0_169] : memref<128x128xf32, #tpu.memory_space<vmem>>, vector<128x128xf32>
    tpu.vector_store %arg6[%c0_168, %c0_169], %179 {strides = array<i32>} : memref<128x128xf32, #tpu.memory_space<vmem>>, vector<128x128xf32>,
    return
  }
  func.func @transform_0(%arg0: i32) -> (i32, i32) {
    %c0_i32 = arith.constant 0 : i32
    %c0_i32_0 = arith.constant 0 : i32
    %c0_i32_1 = arith.constant 0 : i32
    return %c0_i32, %c0_i32_0 : i32, i32
  }
  func.func @transform_1(%arg0: i32) -> (i32, i32, i32) {
    %c0_i32 = arith.constant 0 : i32
    %c0_i32_0 = arith.constant 0 : i32
    %c0_i32_1 = arith.constant 0 : i32
    %c0_i32_2 = arith.constant 0 : i32
    return %c0_i32, %c0_i32_0, %c0_i32_1 : i32, i32, i32
  }
  func.func @transform_2(%arg0: i32) -> (i32, i32, i32) {
    %c0_i32 = arith.constant 0 : i32
    %c0_i32_0 = arith.constant 0 : i32
    %c0_i32_1 = arith.constant 0 : i32
    %c0_i32_2 = arith.constant 0 : i32
    return %c0_i32, %c0_i32_0, %c0_i32_1 : i32, i32, i32
  }
  func.func @transform_3(%arg0: i32) -> (i32, i32) {
    %c0_i32 = arith.constant 0 : i32
    %c0_i32_0 = arith.constant 0 : i32
    %c0_i32_1 = arith.constant 0 : i32
    return %c0_i32, %c0_i32_0 : i32, i32
  }
  func.func @transform_4(%arg0: i32) -> (i32, i32) {
    %c0_i32 = arith.constant 0 : i32
    %c0_i32_0 = arith.constant 0 : i32
    %c0_i32_1 = arith.constant 0 : i32
    return %c0_i32, %c0_i32_0 : i32, i32
  }
  func.func @transform_5(%arg0: i32) -> (i32, i32) {
    %c0_i32 = arith.constant 0 : i32
    %c0_i32_0 = arith.constant 0 : i32
    %c0_i32_1 = arith.constant 0 : i32
    return %c0_i32, %c0_i32_0 : i32, i32
  }
}

</mosaic_0001>

<bundles_post_ra>
// kernel: vis_autoencoder_forward.1
= control target key start
LH: loop header
LB: loop body
LE: loop exit
PB: predicated region body
PF: predicated region fallthrough
CT: control target
= control target key end

     0   :  { %10 = vsyncpa [#allocation4], 0  ;;  %s16775_s0 = inlined_call_operand.vmem [shape: f32[128,256], index: 0, kind: input, shape index: {}]   ;;  %s16776_s1 = inlined_call_operand.hbm [shape: bf16[18,128,128], index: 1, kind: input, shape index: {}]   ;;  %s16777_s2 = inlined_call_operand.hbm [shape: bf16[6,256,768], index: 2, kind: input, shape index: {}]   ;;  %s16778_s3 = inlined_call_operand.hbm [shape: f32[128,128], index: 3, kind: input, shape index: {}]   ;;  %s16779_s4 = inlined_call_operand.hbm [shape: f32[256,256], index: 4, kind: input, shape index: {}]   ;;  %s16780_s5 = inlined_call_operand.vmem [shape: f32[128,128], index: 5, kind: output, shape index: {}]  }
   0x1   :  { %11 = vsyncpa [#allocation6], 0 }
   0x2   :  { %12 = vsyncpa [#allocation9], 0  ;;  %s13876_s18 = smov [#allocation5]  }
   0x3   :  { %s32_s19 = sshll.u32 %s13876_s18, 4  ;;  %s33_s19 = int_to_ptr.vmem [resolvable:$true] %s32_s19 }
   0x4   :  { %s13798_s20 = scalar_lea.vmem %s33_s19, 73728  ;;  %p13803_p1 = scmp.lt.s32.totalorder %s33_s19, %s33_s19 }
   0x5   :  { %p13799_p0 = scmp.ne.s32.totalorder %s33_s19, %s13798_s20  ;;  %p13804_p2 = scmp.lt.s32.totalorder %s13798_s20, %s13798_s20 }
   0x7   :  { %p13805_p3 = por %p13804_p2, %p13803_p1 }
   0x9   :  { %p13806_p4 = pnand %p13805_p3, %p13799_p0 }
   0xb   :  { %13809 = shalt.err (!%p13806_p4)
}
   0xc   :  { %s13877_s21 = smov 384   ;;  %s13878_s22 = smov 24  }
   0xd   :  { %38 = dma.hbm_to_vmem [thread:$0]  %s16777_s2, 73728, %s33_s19, [#allocation6], %s13877_s21, %s13877_s21, %s13878_s22  }
   0xe   :  { %s13879_s25 = smov [#allocation3]  }
   0xf   :  { %s20_s26 = sshll.u32 %s13879_s25, 4  ;;  %s21_s26 = int_to_ptr.vmem [resolvable:$true] %s20_s26 }
  0x10   :  { %s13818_s27 = scalar_lea.vmem %s21_s26, 18432  ;;  %p13823_p6 = scmp.lt.s32.totalorder %s21_s26, %s21_s26 }
  0x11   :  { %p13819_p5 = scmp.ne.s32.totalorder %s21_s26, %s13818_s27  ;;  %p13824_p7 = scmp.lt.s32.totalorder %s13818_s27, %s13818_s27 }
  0x13   :  { %p13825_p8 = por %p13824_p7, %p13823_p6 }
  0x15   :  { %p13826_p9 = pnand %p13825_p8, %p13819_p5 }
  0x17   :  { %13829 = shalt.err (!%p13826_p9)
}
  0x18   :  { %s13880_s28 = smov 64   ;;  %s13881_s29 = smov 4  }
  0x19   :  { %26 = dma.hbm_to_vmem [thread:$0]  %s16776_s1, 18432, %s21_s26, [#allocation4], %s13880_s28, %s13880_s28, %s13881_s29  }
  0x1a   :  { %s13882_s7 = smov [#allocation7]  }
  0x1b   :  { %s44_s8 = sshll.u32 %s13882_s7, 4  ;;  %s45_s8 = int_to_ptr.vmem [resolvable:$true] %s44_s8 }
  0x1c   :  { %s13838_s2 = scalar_lea.vmem %s45_s8, 2048  ;;  %p13843_p11 = scmp.lt.s32.totalorder %s45_s8, %s45_s8 }
  0x1d   :  { %p13839_p10 = scmp.ne.s32.totalorder %s45_s8, %s13838_s2  ;;  %p13844_p12 = scmp.lt.s32.totalorder %s13838_s2, %s13838_s2 }
  0x1f   :  { %p13845_p13 = por %p13844_p12, %p13843_p11 }
  0x21   :  { %p13846_p0 = pnand %p13845_p13, %p13839_p10 }
  0x23   :  { %13849 = shalt.err (!%p13846_p0)
}
  0x24   :  { %s13883_s9 = smov 128   ;;  %s13884_s10 = smov 8  }
  0x25   :  { %50 = dma.hbm_to_vmem [thread:$0]  %s16778_s3, 2048, %s45_s8, [#allocation6], %s13883_s9, %s13883_s9, %s13884_s10  }
  0x26   :  { %s13885_s13 = smov [#allocation8]  }
  0x27   :  { %s56_s14 = sshll.u32 %s13885_s13, 4  ;;  %s57_s14 = int_to_ptr.vmem [resolvable:$true] %s56_s14 }
  0x28   :  { %s13858_s1 = scalar_lea.vmem %s57_s14, 8192  ;;  %p13863_p2 = scmp.lt.s32.totalorder %s57_s14, %s57_s14 }
  0x29   :  { %p13859_p1 = scmp.ne.s32.totalorder %s57_s14, %s13858_s1  ;;  %p13864_p3 = scmp.lt.s32.totalorder %s13858_s1, %s13858_s1 }
  0x2b   :  { %p13865_p4 = por %p13864_p3, %p13863_p2 }
  0x2d   :  { %p13866_p5 = pnand %p13865_p4, %p13859_p1 }
  0x2f   :  { %13869 = shalt.err (!%p13866_p5)
}
  0x30   :  { %s13886_s15 = smov 256   ;;  %s13887_s16 = smov 16  }
  0x31   :  { %62 = dma.hbm_to_vmem [thread:$0]  %s16779_s4, 8192, %s57_s14, [#allocation9], %s13886_s15, %s13886_s15, %s13887_s16  }
  0x32   :  { %13870 = dma.done.wait [#allocation4], 18432  }
  0x33   :  { %13871 = vsyncadd [#allocation4], 4294948864 }
  0x34   :  { %13872 = dma.done.wait [#allocation6], 75776  }
  0x35   :  { %13873 = vsyncadd [#allocation6], 4294891520 }
  0x36   :  { %13874 = dma.done.wait [#allocation9], 8192  }
  0x37   :  { %13875 = vsyncadd [#allocation9], 4294959104  ;;  %v13888_v0 = vmov 0.0   ;;  %v107_v1 = vld [vmem:[%s16775_s0 + $0xf8] sm:$0xff]  ;;  %v106_v2 = vld [vmem:[%s16775_s0 + $0xf0] sm:$0xff] }
  0x38   :  { %252 = vmatprep.mubr.f32.mxu0 %v13888_v0  ;;  %v105_v3 = vld [vmem:[%s16775_s0 + $0xe8] sm:$0xff]  ;;  %188 = vmatprep.subr.mxu0 %v107_v1  ;;  %v104_v4 = vld [vmem:[%s16775_s0 + $0xe0] sm:$0xff]  ;;  %v103_v5 = vld [vmem:[%s16775_s0 + $0xd8] sm:$0xff] }
  0x39   :  { %189 = vmatpush1.msra.mxu0 %v106_v2  ;;  %v102_v6 = vld [vmem:[%s16775_s0 + $0xd0] sm:$0xff]  ;;  %v101_v7 = vld [vmem:[%s16775_s0 + $0xc8] sm:$0xff]  ;;  %v100_v8 = vld [vmem:[%s16775_s0 + $0xc0] sm:$0xff] }
  0x3a   :  { %190 = vmatprep.subr.mxu0 %v105_v3  ;;  %v99_v9 = vld [vmem:[%s16775_s0 + $0xb8] sm:$0xff]  ;;  %v98_v10 = vld [vmem:[%s16775_s0 + $0xb0] sm:$0xff]  ;;  %v97_v11 = vld [vmem:[%s16775_s0 + $0xa8] sm:$0xff] }
  0x3b   :  { %191 = vmatpush1.msra.mxu0 %v104_v4  ;;  %v96_v12 = vld [vmem:[%s16775_s0 + $0xa0] sm:$0xff]  ;;  %v95_v13 = vld [vmem:[%s16775_s0 + $0x98] sm:$0xff]  ;;  %v94_v14 = vld [vmem:[%s16775_s0 + $0x90] sm:$0xff] }
  0x3c   :  { %192 = vmatprep.subr.mxu0 %v103_v5  ;;  %v93_v15 = vld [vmem:[%s16775_s0 + $0x88] sm:$0xff]  ;;  %v92_v16 = vld [vmem:[%s16775_s0 + $0x80] sm:$0xff]  ;;  %v91_v17 = vld [vmem:[%s16775_s0 + $0x78] sm:$0xff] }
  0x3d   :  { %193 = vmatpush1.msra.mxu0 %v102_v6  ;;  %v90_v18 = vld [vmem:[%s16775_s0 + $0x70] sm:$0xff]  ;;  %v89_v19 = vld [vmem:[%s16775_s0 + $0x68] sm:$0xff]  ;;  %v13990_v20 = vld [vmem:[#allocation8 + $0xf8] sm:$0xff] }
  0x3e   :  { %194 = vmatprep.subr.mxu0 %v101_v7  ;;  %v154_v21 = vld [vmem:[#allocation8 + $0xf0] sm:$0xff]  ;;  %v153_v22 = vld [vmem:[#allocation8 + $0xe8] sm:$0xff]  ;;  %v88_v23 = vld [vmem:[%s16775_s0 + $0x60] sm:$0xff]  ;;  %349 = vmatprep.subr.mxu1 %v13990_v20 }
  0x3f   :  { %195 = vmatpush1.msra.mxu0 %v100_v8  ;;  %v152_v24 = vld [vmem:[#allocation8 + $0xe0] sm:$0xff]  ;;  %v87_v25 = vld [vmem:[%s16775_s0 + $0x58] sm:$0xff]  ;;  %350 = vmatpush1.msra.mxu1 %v154_v21  ;;  %v86_v27 = vld [vmem:[%s16775_s0 + $0x50] sm:$0xff] }
  0x40   :  { %196 = vmatprep.subr.mxu0 %v99_v9  ;;  %v151_v26 = vld [vmem:[#allocation8 + $0xd8] sm:$0xff]  ;;  %351 = vmatprep.subr.mxu1 %v153_v22  ;;  %v150_v28 = vld [vmem:[#allocation8 + $0xd0] sm:$0xff]  ;;  %v85_v29 = vld [vmem:[%s16775_s0 + $0x48] sm:$0xff] }
  0x41   :  { %197 = vmatpush1.msra.mxu0 %v98_v10  ;;  %352 = vmatpush1.msra.mxu1 %v152_v24  ;;  %v149_v30 = vld [vmem:[#allocation8 + $0xc8] sm:$0xff]  ;;  %v84_v31 = vld [vmem:[%s16775_s0 + $0x40] sm:$0xff]  ;;  %v83_v33 = vld [vmem:[%s16775_s0 + $0x38] sm:$0xff] }
  0x42   :  { %198 = vmatprep.subr.mxu0 %v97_v11  ;;  %353 = vmatprep.subr.mxu1 %v151_v26  ;;  %v148_v32 = vld [vmem:[#allocation8 + $0xc0] sm:$0xff]  ;;  %v147_v34 = vld [vmem:[#allocation8 + $0xb8] sm:$0xff]  ;;  %v82_v35 = vld [vmem:[%s16775_s0 + $0x30] sm:$0xff] }
  0x43   :  { %199 = vmatpush1.msra.mxu0 %v96_v12  ;;  %354 = vmatpush1.msra.mxu1 %v150_v28  ;;  %v146_v36 = vld [vmem:[#allocation8 + $0xb0] sm:$0xff]  ;;  %v81_v37 = vld [vmem:[%s16775_s0 + $0x28] sm:$0xff]  ;;  %v80_v39 = vld [vmem:[%s16775_s0 + $0x20] sm:$0xff] }
  0x44   :  { %200 = vmatprep.subr.mxu0 %v95_v13  ;;  %355 = vmatprep.subr.mxu1 %v149_v30  ;;  %v145_v38 = vld [vmem:[#allocation8 + $0xa8] sm:$0xff]  ;;  %v144_v40 = vld [vmem:[#allocation8 + $0xa0] sm:$0xff]  ;;  %v79_v41 = vld [vmem:[%s16775_s0 + $0x18] sm:$0xff] }
  0x45   :  { %201 = vmatpush1.msra.mxu0 %v94_v14  ;;  %356 = vmatpush1.msra.mxu1 %v148_v32  ;;  %v143_v42 = vld [vmem:[#allocation8 + $0x98] sm:$0xff]  ;;  %v78_v43 = vld [vmem:[%s16775_s0 + $0x10] sm:$0xff]  ;;  %v77_v45 = vld [vmem:[%s16775_s0 + $0x8] sm:$0xff] }
  0x46   :  { %202 = vmatprep.subr.mxu0 %v93_v15  ;;  %357 = vmatprep.subr.mxu1 %v147_v34  ;;  %v142_v44 = vld [vmem:[#allocation8 + $0x90] sm:$0xff]  ;;  %v141_v46 = vld [vmem:[#allocation8 + $0x88] sm:$0xff]  ;;  %v76_v47 = vld [vmem:[%s16775_s0] sm:$0xff] }
  0x47   :  { %203 = vmatpush1.msra.mxu0 %v92_v16  ;;  %358 = vmatpush1.msra.mxu1 %v146_v36  ;;  %v140_v48 = vld [vmem:[#allocation8 + $0x80] sm:$0xff]  ;;  %v139_v50 = vld [vmem:[#allocation8 + $0x78] sm:$0xff]  ;;  %v138_v51 = vld [vmem:[#allocation8 + $0x70] sm:$0xff] }
  0x48   :  { %204 = vmatprep.subr.mxu0 %v91_v17  ;;  %359 = vmatprep.subr.mxu1 %v145_v38  ;;  %v108_v49 = vld [vmem:[#allocation7] sm:$0xff]  ;;  %v137_v52 = vld [vmem:[#allocation8 + $0x68] sm:$0xff]  ;;  %v135_v55 = vld [vmem:[#allocation8 + $0x58] sm:$0xff] }
  0x49   :  { %205 = vmatpush1.msra.mxu0 %v90_v18  ;;  %360 = vmatpush1.msra.mxu1 %v144_v40  ;;  %v136_v53 = vld [vmem:[#allocation8 + $0x60] sm:$0xff]  ;;  %v109_v54 = vld [vmem:[#allocation7 + $0x8] sm:$0xff]  ;;  %v134_v56 = vld [vmem:[#allocation8 + $0x50] sm:$0xff] }
  0x4a   :  { %206 = vmatprep.subr.mxu0 %v89_v19  ;;  %361 = vmatprep.subr.mxu1 %v143_v42  ;;  %v133_v57 = vld [vmem:[#allocation8 + $0x48] sm:$0xff]  ;;  %v132_v58 = vld [vmem:[#allocation8 + $0x40] sm:$0xff]  ;;  %v110_v59 = vld [vmem:[#allocation7 + $0x10] sm:$0xff] }
  0x4b   :  { %207 = vmatpush1.msra.mxu0 %v88_v23  ;;  %362 = vmatpush1.msra.mxu1 %v142_v44  ;;  %v131_v60 = vld [vmem:[#allocation8 + $0x38] sm:$0xff]  ;;  %v130_v61 = vld [vmem:[#allocation8 + $0x30] sm:$0xff]  ;;  %v129_v62 = vld [vmem:[#allocation8 + $0x28] sm:$0xff] }
  0x4c   :  { %208 = vmatprep.subr.mxu0 %v87_v25  ;;  %363 = vmatprep.subr.mxu1 %v141_v46  ;;  %v128_v63 = vld [vmem:[#allocation8 + $0x20] sm:$0xff]  ;;  %v111_v1 = vld [vmem:[#allocation7 + $0x18] sm:$0xff]  ;;  %v126_v3 = vld [vmem:[#allocation8 + $0x10] sm:$0xff] }
  0x4d   :  { %209 = vmatpush1.msra.mxu0 %v86_v27  ;;  %364 = vmatpush1.msra.mxu1 %v140_v48  ;;  %v127_v2 = vld [vmem:[#allocation8 + $0x18] sm:$0xff]  ;;  %v125_v4 = vld [vmem:[#allocation8 + $0x8] sm:$0xff]  ;;  %v124_v5 = vld [vmem:[#allocation8] sm:$0xff] }
  0x4e   :  { %210 = vmatprep.subr.mxu0 %v85_v29  ;;  %365 = vmatprep.subr.mxu1 %v139_v50  ;;  %v112_v6 = vld [vmem:[#allocation7 + $0x20] sm:$0xff]  ;;  %v187_v7 = vld [vmem:[#allocation8 + $0x1f8] sm:$0xff]  ;;  %v186_v8 = vld [vmem:[#allocation8 + $0x1f0] sm:$0xff] }
  0x4f   :  { %211 = vmatpush1.msra.mxu0 %v84_v31  ;;  %366 = vmatpush1.msra.mxu1 %v138_v51  ;;  %v185_v9 = vld [vmem:[#allocation8 + $0x1e8] sm:$0xff]  ;;  %v184_v10 = vld [vmem:[#allocation8 + $0x1e0] sm:$0xff]  ;;  %v183_v12 = vld [vmem:[#allocation8 + $0x1d8] sm:$0xff] }
  0x50   :  { %212 = vmatprep.subr.mxu0 %v83_v33  ;;  %367 = vmatprep.subr.mxu1 %v137_v52  ;;  %v113_v11 = vld [vmem:[#allocation7 + $0x28] sm:$0xff]  ;;  %v182_v13 = vld [vmem:[#allocation8 + $0x1d0] sm:$0xff]  ;;  %v180_v15 = vld [vmem:[#allocation8 + $0x1c0] sm:$0xff] }
  0x51   :  { %213 = vmatpush1.msra.mxu0 %v82_v35  ;;  %368 = vmatpush1.msra.mxu1 %v136_v53  ;;  %v181_v14 = vld [vmem:[#allocation8 + $0x1c8] sm:$0xff]  ;;  %v114_v16 = vld [vmem:[#allocation7 + $0x30] sm:$0xff]  ;;  %v179_v17 = vld [vmem:[#allocation8 + $0x1b8] sm:$0xff] }
  0x52   :  { %214 = vmatprep.subr.mxu0 %v81_v37  ;;  %369 = vmatprep.subr.mxu1 %v135_v55  ;;  %v178_v18 = vld [vmem:[#allocation8 + $0x1b0] sm:$0xff]  ;;  %v177_v19 = vld [vmem:[#allocation8 + $0x1a8] sm:$0xff]  ;;  %v176_v21 = vld [vmem:[#allocation8 + $0x1a0] sm:$0xff] }
  0x53   :  { %215 = vmatpush1.msra.mxu0 %v80_v39  ;;  %370 = vmatpush1.msra.mxu1 %v134_v56  ;;  %v115_v22 = vld [vmem:[#allocation7 + $0x38] sm:$0xff]  ;;  %v174_v24 = vld [vmem:[#allocation8 + $0x190] sm:$0xff]  ;;  %v173_v25 = vld [vmem:[#allocation8 + $0x188] sm:$0xff] }
  0x54   :  { %216 = vmatprep.subr.mxu0 %v79_v41  ;;  %371 = vmatprep.subr.mxu1 %v133_v57  ;;  %v175_v23 = vld [vmem:[#allocation8 + $0x198] sm:$0xff]  ;;  %v172_v26 = vld [vmem:[#allocation8 + $0x180] sm:$0xff]  ;;  %v170_v29 = vld [vmem:[#allocation8 + $0x170] sm:$0xff] }
  0x55   :  { %217 = vmatpush1.msra.mxu0 %v78_v43  ;;  %372 = vmatpush1.msra.mxu1 %v132_v58  ;;  %v116_v27 = vld [vmem:[#allocation7 + $0x40] sm:$0xff]  ;;  %v171_v28 = vld [vmem:[#allocation8 + $0x178] sm:$0xff]  ;;  %v169_v30 = vld [vmem:[#allocation8 + $0x168] sm:$0xff] }
  0x56   :  { %218 = vmatprep.subr.mxu0 %v77_v45  ;;  %373 = vmatprep.subr.mxu1 %v131_v60  ;;  %v168_v31 = vld [vmem:[#allocation8 + $0x160] sm:$0xff]  ;;  %v117_v32 = vld [vmem:[#allocation7 + $0x48] sm:$0xff]  ;;  %v167_v33 = vld [vmem:[#allocation8 + $0x158] sm:$0xff] }
  0x57   :  { %219 = vmatpush1.msra.mxu0 %v76_v47  ;;  %374 = vmatpush1.msra.mxu1 %v130_v61  ;;  %v166_v34 = vld [vmem:[#allocation8 + $0x150] sm:$0xff]  ;;  %v165_v35 = vld [vmem:[#allocation8 + $0x148] sm:$0xff]  ;;  %v164_v36 = vld [vmem:[#allocation8 + $0x140] sm:$0xff] }
  0x58   :  { %253 = vmatmul.mubr.f32.vlgmr.msra.gmra.mxu0 %v108_v49  ;;  %375 = vmatprep.subr.mxu1 %v129_v62  ;;  %v118_v37 = vld [vmem:[#allocation7 + $0x50] sm:$0xff]  ;;  %v163_v38 = vld [vmem:[#allocation8 + $0x138] sm:$0xff]  ;;  %v161_v40 = vld [vmem:[#allocation8 + $0x128] sm:$0xff] }
  0x59   :  { %258 = vmatprep.mubr.f32.mxu0 %v13888_v0  ;;  %376 = vmatpush1.msra.mxu1 %v128_v63  ;;  %v162_v39 = vld [vmem:[#allocation8 + $0x130] sm:$0xff]  ;;  %v160_v41 = vld [vmem:[#allocation8 + $0x120] sm:$0xff]  ;;  %v119_v42 = vld [vmem:[#allocation7 + $0x58] sm:$0xff] }
  0x5a   :  { %377 = vmatprep.subr.mxu1 %v127_v2  ;;  %v120_v43 = vld [vmem:[#allocation7 + $0x60] sm:$0xff]  ;;  %v121_v44 = vld [vmem:[#allocation7 + $0x68] sm:$0xff]  ;;  %v122_v45 = vld [vmem:[#allocation7 + $0x70] sm:$0xff] }
  0x5b   :  { %378 = vmatpush1.msra.mxu1 %v126_v3  ;;  %v123_v46 = vld [vmem:[#allocation7 + $0x78] sm:$0xff]  ;;  %v158_v48 = vld [vmem:[#allocation8 + $0x110] sm:$0xff]  ;;  %v157_v49 = vld [vmem:[#allocation8 + $0x108] sm:$0xff] }
  0x5c   :  { %259 = vmatmul.mubr.f32.gmra.mxu0 %v109_v54  ;;  %379 = vmatprep.subr.mxu1 %v125_v4  ;;  %v159_v47 = vld [vmem:[#allocation8 + $0x118] sm:$0xff]  ;;  %v156_v50 = vld [vmem:[#allocation8 + $0x100] sm:$0xff]  ;;  %v13679_v54 = vld [vmem:[#allocation8 + $0xf0] sm:$0xff] }
  0x5d   :  { %264 = vmatprep.mubr.f32.mxu0 %v13888_v0  ;;  %380 = vmatpush1.msra.mxu1 %v124_v5  ;;  %v13680_v56 = vld [vmem:[#allocation8 + $0xe8] sm:$0xff]  ;;  %v13681_v57 = vld [vmem:[#allocation8 + $0xe0] sm:$0xff]  ;;  %v13683_v60 = vld [vmem:[#allocation8 + $0xd0] sm:$0xff] }
  0x5e   :  { %381 = vmatprep.subr.mxu1 %v187_v7  ;;  %v13684_v61 = vld [vmem:[#allocation8 + $0xc8] sm:$0xff]  ;;  %v13685_v62 = vld [vmem:[#allocation8 + $0xc0] sm:$0xff]  ;;  %v13687_v2 = vld [vmem:[#allocation8 + $0xb0] sm:$0xff] }
  0x5f   :  { %382 = vmatpush2.msra.mxu1 %v186_v8  ;;  %v13688_v4 = vld [vmem:[#allocation8 + $0xa8] sm:$0xff]  ;;  %v13689_v5 = vld [vmem:[#allocation8 + $0xa0] sm:$0xff]  ;;  %v13690_v7 = vld [vmem:[#allocation8 + $0x98] sm:$0xff] }
  0x60   :  { %265 = vmatmul.mubr.f32.gmra.mxu0 %v110_v59  ;;  %383 = vmatprep.subr.mxu1 %v185_v9  ;;  %v13682_v59 = vld [vmem:[#allocation8 + $0xd8] sm:$0xff]  ;;  %v13691_v8 = vld [vmem:[#allocation8 + $0x90] sm:$0xff] }
  0x61   :  { %270 = vmatprep.mubr.f32.mxu0 %v13888_v0  ;;  %384 = vmatpush2.msra.mxu1 %v184_v10  ;;  %v13692_v10 = vld [vmem:[#allocation8 + $0x88] sm:$0xff] }
  0x62   :  { %385 = vmatprep.subr.mxu1 %v183_v12 }
  0x63   :  { %386 = vmatpush2.msra.mxu1 %v182_v13  ;;  %v13694_v13 = vld [vmem:[#allocation8 + $0x78] sm:$0xff] }
  0x64   :  { %271 = vmatmul.mubr.f32.gmra.mxu0 %v111_v1  ;;  %387 = vmatprep.subr.mxu1 %v181_v14  ;;  %v13686_v1 = vld [vmem:[#allocation8 + $0xb8] sm:$0xff]  ;;  %v13695_v14 = vld [vmem:[#allocation8 + $0x70] sm:$0xff] }
  0x65   :  { %276 = vmatprep.mubr.f32.mxu0 %v13888_v0  ;;  %388 = vmatpush2.msra.mxu1 %v180_v15 }
  0x66   :  { %389 = vmatprep.subr.mxu1 %v179_v17  ;;  %v13697_v17 = vld [vmem:[#allocation8 + $0x60] sm:$0xff] }
  0x67   :  { %390 = vmatpush2.msra.mxu1 %v178_v18 }
  0x68   :  { %277 = vmatmul.mubr.f32.gmra.mxu0 %v112_v6  ;;  %391 = vmatprep.subr.mxu1 %v177_v19  ;;  %v13698_v19 = vld [vmem:[#allocation8 + $0x58] sm:$0xff] }
  0x69   :  { %282 = vmatprep.mubr.f32.mxu0 %v13888_v0  ;;  %392 = vmatpush2.msra.mxu1 %v176_v21  ;;  %v13699_v21 = vld [vmem:[#allocation8 + $0x50] sm:$0xff] }
  0x6a   :  { %393 = vmatprep.subr.mxu1 %v175_v23  ;;  %v13700_v23 = vld [vmem:[#allocation8 + $0x48] sm:$0xff] }
  0x6b   :  { %394 = vmatpush2.msra.mxu1 %v174_v24  ;;  %v13701_v24 = vld [vmem:[#allocation8 + $0x40] sm:$0xff] }
  0x6c   :  { %283 = vmatmul.mubr.f32.gmra.mxu0 %v113_v11  ;;  %395 = vmatprep.subr.mxu1 %v173_v25  ;;  %v13693_v11 = vld [vmem:[#allocation8 + $0x80] sm:$0xff] }
  0x6d   :  { %288 = vmatprep.mubr.f32.mxu0 %v13888_v0  ;;  %396 = vmatpush2.msra.mxu1 %v172_v26  ;;  %v13702_v26 = vld [vmem:[#allocation8 + $0x38] sm:$0xff] }
  0x6e   :  { %397 = vmatprep.subr.mxu1 %v171_v28 }
  0x6f   :  { %398 = vmatpush2.msra.mxu1 %v170_v29  ;;  %v13704_v29 = vld [vmem:[#allocation8 + $0x28] sm:$0xff] }
  0x70   :  { %289 = vmatmul.mubr.f32.gmra.mxu0 %v114_v16  ;;  %399 = vmatprep.subr.mxu1 %v169_v30  ;;  %v13696_v16 = vld [vmem:[#allocation8 + $0x68] sm:$0xff]  ;;  %v13705_v30 = vld [vmem:[#allocation8 + $0x20] sm:$0xff] }
  0x71   :  { %294 = vmatprep.mubr.f32.mxu0 %v13888_v0  ;;  %400 = vmatpush2.msra.mxu1 %v168_v31 }
  0x72   :  { %401 = vmatprep.subr.mxu1 %v167_v33  ;;  %v13707_v33 = vld [vmem:[#allocation8 + $0x10] sm:$0xff] }
  0x73   :  { %402 = vmatpush2.msra.mxu1 %v166_v34 }
  0x74   :  { %295 = vmatmul.mubr.f32.gmra.mxu0 %v115_v22  ;;  %403 = vmatprep.subr.mxu1 %v165_v35  ;;  %v13708_v35 = vld [vmem:[#allocation8 + $0x8] sm:$0xff] }
  0x75   :  { %300 = vmatprep.mubr.f32.mxu0 %v13888_v0  ;;  %404 = vmatpush2.msra.mxu1 %v164_v36  ;;  %v13709_v36 = vld [vmem:[#allocation8] sm:$0xff] }
  0x76   :  { %405 = vmatprep.subr.mxu1 %v163_v38  ;;  %v13710_v38 = vld [vmem:[#allocation8 + $0x1f8] sm:$0xff] }
  0x77   :  { %406 = vmatpush2.msra.mxu1 %v162_v39  ;;  %v13711_v39 = vld [vmem:[#allocation8 + $0x1f0] sm:$0xff] }
  0x78   :  { %301 = vmatmul.mubr.f32.gmra.mxu0 %v116_v27  ;;  %407 = vmatprep.subr.mxu1 %v161_v40  ;;  %v13703_v27 = vld [vmem:[#allocation8 + $0x30] sm:$0xff] }
  0x79   :  { %306 = vmatprep.mubr.f32.mxu0 %v13888_v0  ;;  %408 = vmatpush2.msra.mxu1 %v160_v41  ;;  %v13712_v41 = vld [vmem:[#allocation8 + $0x1e8] sm:$0xff] }
  0x7a   :  { %409 = vmatprep.subr.mxu1 %v159_v47  ;;  %v13716_v47 = vld [vmem:[#allocation8 + $0x1c8] sm:$0xff] }
  0x7b   :  { %410 = vmatpush2.msra.mxu1 %v158_v48  ;;  %v13717_v48 = vld [vmem:[#allocation8 + $0x1c0] sm:$0xff] }
  0x7c   :  { %307 = vmatmul.mubr.f32.gmra.mxu0 %v117_v32  ;;  %411 = vmatprep.subr.mxu1 %v157_v49  ;;  %v13706_v32 = vld [vmem:[#allocation8 + $0x18] sm:$0xff] }
  0x7d   :  { %312 = vmatprep.mubr.f32.mxu0 %v13888_v0  ;;  %412 = vmatpush2.msra.mxu1 %v156_v50  ;;  %v13718_v50 = vld [vmem:[#allocation8 + $0x1b8] sm:$0xff] }
  0x7e   :  { %767 = vmatprep.subr.mxu1 %v13990_v20 }
  0x80   :  { %313 = vmatmul.mubr.f32.gmra.mxu0 %v118_v37 }
  0x81   :  { %318 = vmatprep.mubr.f32.mxu0 %v13888_v0 }
  0x84   :  { %319 = vmatmul.mubr.f32.gmra.mxu0 %v119_v42  ;;  %v13713_v42 = vld [vmem:[#allocation8 + $0x1e0] sm:$0xff] }
  0x85   :  { %324 = vmatprep.mubr.f32.mxu0 %v13888_v0 }
  0x88   :  { %325 = vmatmul.mubr.f32.gmra.mxu0 %v120_v43 }
  0x89   :  { %330 = vmatprep.mubr.f32.mxu0 %v13888_v0 }
  0x8c   :  { %331 = vmatmul.mubr.f32.gmra.mxu0 %v121_v44  ;;  %v13714_v44 = vld [vmem:[#allocation8 + $0x1d8] sm:$0xff] }
  0x8d   :  { %336 = vmatprep.mubr.f32.mxu0 %v13888_v0 }
  0x90   :  { %337 = vmatmul.mubr.f32.gmra.mxu0 %v122_v45  ;;  %v13715_v45 = vld [vmem:[#allocation8 + $0x1d0] sm:$0xff] }
  0x91   :  { %342 = vmatprep.mubr.f32.mxu0 %v13888_v0 }
  0x94   :  { %343 = vmatmul.mubr.f32.gmra.mxu0 %v123_v46 }
  0x95   :  { %670 = vmatprep.mubr.f32.mxu0 %v13888_v0 }
 0x118   :  { %v254_v51 = vpop.f32.mrf.mxu0 }
 0x11a   :  { %v256_v52 = vpop.f32.mrf.mxu0 }
 0x11b   :  { %413 = vmatprep.mubr.f32.mxu1 %v256_v52 }
 0x11c   :  { %v260_v53 = vpop.f32.mrf.mxu0  ;;  %414 = vmatmul.mubr.f32.vlgmr.msra.gmra.mxu1 %v254_v51  ;;  %v13719_v51 = vld [vmem:[#allocation8 + $0x1b0] sm:$0xff] }
 0x11d   :  { %768 = vmatpush1.msra.mxu1 %v13679_v54  ;;  %v13721_v54 = vld [vmem:[#allocation8 + $0x1a0] sm:$0xff] }
 0x11e   :  { %v262_v55 = vpop.f32.mrf.mxu0  ;;  %769 = vmatprep.subr.mxu1 %v13680_v56  ;;  %v13722_v56 = vld [vmem:[#allocation8 + $0x198] sm:$0xff] }
 0x11f   :  { %419 = vmatprep.mubr.f32.mxu1 %v262_v55  ;;  %770 = vmatpush1.msra.mxu1 %v13681_v57  ;;  %v13723_v57 = vld [vmem:[#allocation8 + $0x190] sm:$0xff] }
 0x120   :  { %v266_v58 = vpop.f32.mrf.mxu0  ;;  %420 = vmatmul.mubr.f32.gmra.mxu1 %v260_v53  ;;  %771 = vmatprep.subr.mxu1 %v13682_v59  ;;  %v13720_v53 = vld [vmem:[#allocation8 + $0x1a8] sm:$0xff] }
 0x121   :  { %772 = vmatpush1.msra.mxu1 %v13683_v60  ;;  %v13724_v59 = vld [vmem:[#allocation8 + $0x188] sm:$0xff]  ;;  %v13725_v60 = vld [vmem:[#allocation8 + $0x180] sm:$0xff] }
 0x122   :  { %v268_v20 = vpop.f32.mrf.mxu0  ;;  %773 = vmatprep.subr.mxu1 %v13684_v61  ;;  %v13726_v61 = vld [vmem:[#allocation8 + $0x178] sm:$0xff] }
 0x123   :  { %425 = vmatprep.mubr.f32.mxu1 %v268_v20  ;;  %774 = vmatpush1.msra.mxu1 %v13685_v62  ;;  %v13727_v62 = vld [vmem:[#allocation8 + $0x170] sm:$0xff] }
 0x124   :  { %v272_v63 = vpop.f32.mrf.mxu0  ;;  %426 = vmatmul.mubr.f32.gmra.mxu1 %v266_v58  ;;  %775 = vmatprep.subr.mxu1 %v13686_v1  ;;  %v13728_v1 = vld [vmem:[#allocation8 + $0x168] sm:$0xff] }
 0x125   :  { %776 = vmatpush1.msra.mxu1 %v13687_v2  ;;  %v13729_v2 = vld [vmem:[#allocation8 + $0x160] sm:$0xff] }
 0x126   :  { %v274_v3 = vpop.f32.mrf.mxu0  ;;  %777 = vmatprep.subr.mxu1 %v13688_v4  ;;  %v13730_v4 = vld [vmem:[#allocation8 + $0x158] sm:$0xff] }
 0x127   :  { %431 = vmatprep.mubr.f32.mxu1 %v274_v3  ;;  %778 = vmatpush1.msra.mxu1 %v13689_v5  ;;  %v13731_v5 = vld [vmem:[#allocation8 + $0x150] sm:$0xff] }
 0x128   :  { %v278_v6 = vpop.f32.mrf.mxu0  ;;  %432 = vmatmul.mubr.f32.gmra.mxu1 %v272_v63  ;;  %779 = vmatprep.subr.mxu1 %v13690_v7  ;;  %v13732_v7 = vld [vmem:[#allocation8 + $0x148] sm:$0xff] }
 0x129   :  { %780 = vmatpush1.msra.mxu1 %v13691_v8  ;;  %v13733_v8 = vld [vmem:[#allocation8 + $0x140] sm:$0xff] }
 0x12a   :  { %v280_v9 = vpop.f32.mrf.mxu0  ;;  %781 = vmatprep.subr.mxu1 %v13692_v10  ;;  %v13734_v10 = vld [vmem:[#allocation8 + $0x138] sm:$0xff] }
 0x12b   :  { %437 = vmatprep.mubr.f32.mxu1 %v280_v9  ;;  %782 = vmatpush1.msra.mxu1 %v13693_v11  ;;  %v13735_v11 = vld [vmem:[#allocation8 + $0x130] sm:$0xff] }
 0x12c   :  { %v284_v12 = vpop.f32.mrf.mxu0  ;;  %438 = vmatmul.mubr.f32.gmra.mxu1 %v278_v6  ;;  %783 = vmatprep.subr.mxu1 %v13694_v13  ;;  %v13736_v13 = vld [vmem:[#allocation8 + $0x128] sm:$0xff] }
 0x12d   :  { %784 = vmatpush1.msra.mxu1 %v13695_v14  ;;  %v13737_v14 = vld [vmem:[#allocation8 + $0x120] sm:$0xff] }
 0x12e   :  { %v286_v15 = vpop.f32.mrf.mxu0  ;;  %785 = vmatprep.subr.mxu1 %v13696_v16  ;;  %v13739_v16 = vld [vmem:[#allocation8 + $0x110] sm:$0xff] }
 0x12f   :  { %443 = vmatprep.mubr.f32.mxu1 %v286_v15  ;;  %786 = vmatpush1.msra.mxu1 %v13697_v17  ;;  %v13738_v15 = vld [vmem:[#allocation8 + $0x118] sm:$0xff]  ;;  %v13740_v17 = vld [vmem:[#allocation8 + $0x108] sm:$0xff] }
 0x130   :  { %v290_v18 = vpop.f32.mrf.mxu0  ;;  %444 = vmatmul.mubr.f32.gmra.mxu1 %v284_v12  ;;  %787 = vmatprep.subr.mxu1 %v13698_v19 }
 0x131   :  { %788 = vmatpush1.msra.mxu1 %v13699_v21 }
 0x132   :  { %v292_v22 = vpop.f32.mrf.mxu0  ;;  %789 = vmatprep.subr.mxu1 %v13700_v23 }
 0x133   :  { %449 = vmatprep.mubr.f32.mxu1 %v292_v22  ;;  %790 = vmatpush1.msra.mxu1 %v13701_v24 }
 0x134   :  { %v296_v25 = vpop.f32.mrf.mxu0  ;;  %450 = vmatmul.mubr.f32.gmra.mxu1 %v290_v18  ;;  %791 = vmatprep.subr.mxu1 %v13702_v26  ;;  %v13741_v18 = vld [vmem:[#allocation8 + $0x100] sm:$0xff] }
 0x135   :  { %792 = vmatpush1.msra.mxu1 %v13703_v27 }
 0x136   :  { %v298_v28 = vpop.f32.mrf.mxu0  ;;  %793 = vmatprep.subr.mxu1 %v13704_v29 }
 0x137   :  { %455 = vmatprep.mubr.f32.mxu1 %v298_v28  ;;  %794 = vmatpush1.msra.mxu1 %v13705_v30 }
 0x138   :  { %v302_v31 = vpop.f32.mrf.mxu0  ;;  %456 = vmatmul.mubr.f32.gmra.mxu1 %v296_v25  ;;  %795 = vmatprep.subr.mxu1 %v13706_v32 }
 0x139   :  { %796 = vmatpush1.msra.mxu1 %v13707_v33 }
 0x13a   :  { %v304_v34 = vpop.f32.mrf.mxu0  ;;  %797 = vmatprep.subr.mxu1 %v13708_v35 }
 0x13b   :  { %461 = vmatprep.mubr.f32.mxu1 %v304_v34  ;;  %798 = vmatpush1.msra.mxu1 %v13709_v36 }
 0x13c   :  { %v308_v37 = vpop.f32.mrf.mxu0  ;;  %462 = vmatmul.mubr.f32.gmra.mxu1 %v302_v31  ;;  %799 = vmatprep.subr.mxu1 %v13710_v38 }
 0x13d   :  { %800 = vmatpush2.msra.mxu1 %v13711_v39 }
 0x13e   :  { %v310_v40 = vpop.f32.mrf.mxu0  ;;  %801 = vmatprep.subr.mxu1 %v13712_v41 }
 0x13f   :  { %467 = vmatprep.mubr.f32.mxu1 %v310_v40  ;;  %802 = vmatpush2.msra.mxu1 %v13713_v42 }
 0x140   :  { %v314_v43 = vpop.f32.mrf.mxu0  ;;  %468 = vmatmul.mubr.f32.gmra.mxu1 %v308_v37  ;;  %803 = vmatprep.subr.mxu1 %v13714_v44 }
 0x141   :  { %804 = vmatpush2.msra.mxu1 %v13715_v45 }
 0x142   :  { %v316_v46 = vpop.f32.mrf.mxu0  ;;  %805 = vmatprep.subr.mxu1 %v13716_v47 }
 0x143   :  { %473 = vmatprep.mubr.f32.mxu1 %v316_v46  ;;  %806 = vmatpush2.msra.mxu1 %v13717_v48 }
 0x144   :  { %v320_v49 = vpop.f32.mrf.mxu0  ;;  %474 = vmatmul.mubr.f32.gmra.mxu1 %v314_v43  ;;  %807 = vmatprep.subr.mxu1 %v13718_v50 }
 0x145   :  { %808 = vmatpush2.msra.mxu1 %v13719_v51 }
 0x146   :  { %v322_v52 = vpop.f32.mrf.mxu0  ;;  %809 = vmatprep.subr.mxu1 %v13720_v53 }
 0x147   :  { %479 = vmatprep.mubr.f32.mxu1 %v322_v52  ;;  %810 = vmatpush2.msra.mxu1 %v13721_v54 }
 0x148   :  { %v326_v55 = vpop.f32.mrf.mxu0  ;;  %480 = vmatmul.mubr.f32.gmra.mxu1 %v320_v49  ;;  %811 = vmatprep.subr.mxu1 %v13722_v56 }
 0x149   :  { %812 = vmatpush2.msra.mxu1 %v13723_v57 }
 0x14a   :  { %v328_v58 = vpop.f32.mrf.mxu0  ;;  %813 = vmatprep.subr.mxu1 %v13724_v59 }
 0x14b   :  { %485 = vmatprep.mubr.f32.mxu1 %v328_v58  ;;  %814 = vmatpush2.msra.mxu1 %v13725_v60  ;;  %v13742_v58 = vld [vmem:[%s16775_s0 + $0xf0] sm:$0xff] }
 0x14c   :  { %v332_v20 = vpop.f32.mrf.mxu0  ;;  %486 = vmatmul.mubr.f32.gmra.mxu1 %v326_v55  ;;  %815 = vmatprep.subr.mxu1 %v13726_v61 }
 0x14d   :  { %816 = vmatpush2.msra.mxu1 %v13727_v62  ;;  %v13744_v62 = vld [vmem:[%s16775_s0 + $0xf8] sm:$0xff] }
 0x14e   :  { %v334_v63 = vpop.f32.mrf.mxu0  ;;  %817 = vmatprep.subr.mxu1 %v13728_v1 }
 0x14f   :  { %491 = vmatprep.mubr.f32.mxu1 %v334_v63  ;;  %818 = vmatpush2.msra.mxu1 %v13729_v2  ;;  %v13745_v2 = vld [vmem:[%s16775_s0 + $0xe0] sm:$0xff] }
 0x150   :  { %v338_v3 = vpop.f32.mrf.mxu0  ;;  %492 = vmatmul.mubr.f32.gmra.mxu1 %v332_v20  ;;  %819 = vmatprep.subr.mxu1 %v13730_v4  ;;  %v13743_v20 = vld [vmem:[%s16775_s0 + $0xe8] sm:$0xff] }
 0x151   :  { %820 = vmatpush2.msra.mxu1 %v13731_v5  ;;  %v13746_v5 = vld [vmem:[%s16775_s0 + $0xd8] sm:$0xff] }
 0x152   :  { %v340_v6 = vpop.f32.mrf.mxu0  ;;  %821 = vmatprep.subr.mxu1 %v13732_v7 }
 0x153   :  { %497 = vmatprep.mubr.f32.mxu1 %v340_v6  ;;  %822 = vmatpush2.msra.mxu1 %v13733_v8 }
 0x154   :  { %v344_v9 = vpop.f32.mrf.mxu0  ;;  %498 = vmatmul.mubr.f32.gmra.mxu1 %v338_v3  ;;  %823 = vmatprep.subr.mxu1 %v13734_v10 }
 0x155   :  { %824 = vmatpush2.msra.mxu1 %v13735_v11 }
 0x156   :  { %v346_v12 = vpop.f32.mrf.mxu0  ;;  %825 = vmatprep.subr.mxu1 %v13736_v13  ;;  %v13748_v13 = vld [vmem:[%s16775_s0 + $0xc8] sm:$0xff] }
 0x157   :  { %503 = vmatprep.mubr.f32.mxu1 %v346_v12  ;;  %826 = vmatpush2.msra.mxu1 %v13737_v14 }
 0x158   :  { %504 = vmatmul.mubr.f32.gmra.mxu1 %v344_v9  ;;  %827 = vmatprep.subr.mxu1 %v13738_v15  ;;  %v13747_v9 = vld [vmem:[%s16775_s0 + $0xd0] sm:$0xff] }
 0x159   :  { %828 = vmatpush2.msra.mxu1 %v13739_v16 }
 0x15a   :  { %829 = vmatprep.subr.mxu1 %v13740_v17  ;;  %v13749_v17 = vld [vmem:[%s16775_s0 + $0xc0] sm:$0xff] }
 0x15b   :  { %830 = vmatpush2.msra.mxu1 %v13741_v18 }
 0x1dc   :  { %v14049_v19 = vpop.f32.mrf.mxu1 }
 0x1de   :  { %v14051_v21 = vpop.f32.mrf.mxu1 }
 0x1e0   :  { %v14053_v22 = vpop.f32.mrf.mxu1 }
 0x1e2   :  { %v14055_v23 = vpop.f32.mrf.mxu1 }
 0x1e4   :  { %v14057_v24 = vpop.f32.mrf.mxu1 }
 0x1e6   :  { %v14059_v25 = vpop.f32.mrf.mxu1 }
 0x1e8   :  { %v14061_v26 = vpop.f32.mrf.mxu1 }
 0x1ea   :  { %v14063_v27 = vpop.f32.mrf.mxu1 }
 0x1ec   :  { %v14065_v28 = vpop.f32.mrf.mxu1 }
 0x1ee   :  { %v14067_v29 = vpop.f32.mrf.mxu1 }
 0x1f0   :  { %v14069_v30 = vpop.f32.mrf.mxu1 }
 0x1f2   :  { %v14071_v31 = vpop.f32.mrf.mxu1 }
 0x1f4   :  { %v14073_v32 = vpop.f32.mrf.mxu1 }
 0x1f6   :  { %v14075_v33 = vpop.f32.mrf.mxu1 }
 0x1f8   :  { %v14077_v34 = vpop.f32.mrf.mxu1 }
 0x1fa   :  { %v14079_v35 = vpop.f32.mrf.mxu1 }
 0x1fc   :  { %v14081_v36 = vpop.f32.mrf.mxu1 }
 0x1fe   :  { %v465_v37 = vpop.f32.mrf.mxu1 }
 0x200   :  { %v469_v38 = vpop.f32.mrf.mxu1 }
 0x202   :  { %v471_v39 = vpop.f32.mrf.mxu1 }
 0x204   :  { %v475_v40 = vpop.f32.mrf.mxu1 }
 0x205   :  { %v530_v16 = vmul.f32 0.000625, %v475_v40 }
 0x206   :  { %v477_v41 = vpop.f32.mrf.mxu1 }
 0x207   :  { %v531_v12 = vmul.f32 0.000625, %v477_v41 }
 0x208   :  { %v481_v42 = vpop.f32.mrf.mxu1 }
 0x209   :  { %v532_v8 = vmul.f32 0.000625, %v481_v42  ;;  %v529_v42 = vmul.f32 0.000625, %v471_v39 }
 0x20a   :  { %v483_v43 = vpop.f32.mrf.mxu1 }
 0x20b   :  { %v533_v4 = vmul.f32 0.000625, %v483_v43  ;;  %v13750_v43 = vld [vmem:[%s16775_s0 + $0xb8] sm:$0xff] }
 0x20c   :  { %v487_v44 = vpop.f32.mrf.mxu1 }
 0x20d   :  { %v534_v1 = vmul.f32 0.000625, %v487_v44  ;;  %v14134_v44 = vsub.f32 %v13750_v43, %v533_v4  ;;  %v13757_v4 = vld [vmem:[%s16775_s0 + $0x80] sm:$0xff] }
 0x20e   :  { %v489_v45 = vpop.f32.mrf.mxu1 }
 0x20f   :  { %v535_v60 = vmul.f32 0.000625, %v489_v45  ;;  %v14127_v18 = vsub.f32 %v13749_v17, %v534_v1  ;;  %v528_v45 = vmul.f32 0.000625, %v469_v38 }
 0x210   :  { %v493_v46 = vpop.f32.mrf.mxu1 }
 0x211   :  { %v536_v57 = vmul.f32 0.000625, %v493_v46  ;;  %v14120_v14 = vsub.f32 %v13748_v13, %v535_v60  ;;  %v13751_v46 = vld [vmem:[%s16775_s0 + $0xb0] sm:$0xff] }
 0x212   :  { %v495_v47 = vpop.f32.mrf.mxu1 }
 0x213   :  { %v537_v55 = vmul.f32 0.000625, %v495_v47  ;;  %v14113_v10 = vsub.f32 %v13747_v9, %v536_v57  ;;  %v14141_v47 = vsub.f32 %v13751_v46, %v532_v8  ;;  %v599_v38 = vmul.f32 %v14120_v14, %v14120_v14  ;;  %v13758_v8 = vld [vmem:[%s16775_s0 + $0x78] sm:$0xff] }
 0x214   :  { %v499_v48 = vpop.f32.mrf.mxu1  ;;  %v524_v57 = vmul.f32 0.000625, %v14077_v34 }
 0x215   :  { %v538_v53 = vmul.f32 0.000625, %v499_v48  ;;  %v14106_v6 = vsub.f32 %v13746_v5, %v537_v55  ;;  %v600_v39 = vmul.f32 %v14113_v10, %v14113_v10  ;;  %v527_v48 = vmul.f32 0.000625, %v465_v37  ;;  %v13754_v55 = vld [vmem:[%s16775_s0 + $0x98] sm:$0xff] }
 0x216   :  { %v501_v49 = vpop.f32.mrf.mxu1  ;;  %v598_v37 = vmul.f32 %v14127_v18, %v14127_v18 }
 0x217   :  { %v539_v51 = vmul.f32 0.000625, %v501_v49  ;;  %v14101_v3 = vsub.f32 %v13745_v2, %v538_v53  ;;  %v601_v40 = vmul.f32 %v14106_v6, %v14106_v6  ;;  %v13752_v49 = vld [vmem:[%s16775_s0 + $0xa8] sm:$0xff]  ;;  %v522_v2 = vmul.f32 0.000625, %v14073_v32 }
 0x218   :  { %v505_v50 = vpop.f32.mrf.mxu1 }
 0x219   :  { %v540_v52 = vmul.f32 0.000625, %v505_v50  ;;  %v14091_v61 = vsub.f32 %v13743_v20, %v539_v51  ;;  %v602_v41 = vmul.f32 %v14101_v3, %v14101_v3  ;;  %v14148_v50 = vsub.f32 %v13752_v49, %v531_v12  ;;  %v13759_v12 = vld [vmem:[%s16775_s0 + $0x70] sm:$0xff] }
 0x21a   :  { %v507_v54 = vpop.f32.mrf.mxu1  ;;  %v526_v51 = vmul.f32 0.000625, %v14081_v36  ;;  %v597_v36 = vmul.f32 %v14134_v44, %v14134_v44  ;;  %v523_v20 = vmul.f32 0.000625, %v14075_v33  ;;  %v14204_v13 = vsub.f32 %v13759_v12, %v524_v57  ;;  %v13766_v57 = vld [vmem:[%s16775_s0 + $0x38] sm:$0xff]  ;;  %v13771_v12 = vld [vmem:[%s16775_s0 + $0x10] sm:$0xff] }
 0x21b   :  { %v541_v56 = vmul.f32 0.000625, %v507_v54  ;;  %v14086_v59 = vsub.f32 %v13742_v58, %v540_v52  ;;  %v603_v15 = vmul.f32 %v14091_v61, %v14091_v61  ;;  %v13753_v52 = vld [vmem:[%s16775_s0 + $0xa0] sm:$0xff]  ;;  %v525_v54 = vmul.f32 0.000625, %v14079_v35  ;;  %v13755_v58 = vld [vmem:[%s16775_s0 + $0x90] sm:$0xff] }
 0x21c   :  { %v14156_v53 = vsub.f32 %v13753_v52, %v530_v16  ;;  %v14172_v60 = vsub.f32 %v13755_v58, %v528_v45  ;;  %v596_v35 = vmul.f32 %v14141_v47, %v14141_v47  ;;  %v595_v34 = vmul.f32 %v14148_v50, %v14148_v50  ;;  %v13760_v16 = vld [vmem:[%s16775_s0 + $0x68] sm:$0xff]  ;;  %v13762_v45 = vld [vmem:[%s16775_s0 + $0x58] sm:$0xff] }
 0x21d   :  { %v14096_v63 = vsub.f32 %v13744_v62, %v541_v56  ;;  %v604_v11 = vmul.f32 %v14086_v59, %v14086_v59  ;;  %v14164_v56 = vsub.f32 %v13754_v55, %v529_v42  ;;  %v13756_v62 = vld [vmem:[%s16775_s0 + $0x88] sm:$0xff]  ;;  %v14188_v5 = vsub.f32 %v13757_v4, %v526_v51  ;;  %v13761_v42 = vld [vmem:[%s16775_s0 + $0x60] sm:$0xff] }
 0x21e   :  { %v14180_v1 = vsub.f32 %v13756_v62, %v527_v48  ;;  %v594_v33 = vmul.f32 %v14156_v53, %v14156_v53  ;;  %v14196_v9 = vsub.f32 %v13758_v8, %v525_v54  ;;  %v14212_v17 = vsub.f32 %v13760_v16, %v523_v20  ;;  %v13763_v48 = vld [vmem:[%s16775_s0 + $0x50] sm:$0xff]  ;;  %v13764_v51 = vld [vmem:[%s16775_s0 + $0x48] sm:$0xff]  ;;  %v13765_v54 = vld [vmem:[%s16775_s0 + $0x40] sm:$0xff] }
 0x21f   :  { %v605_v7 = vmul.f32 %v14096_v63, %v14096_v63  ;;  %v593_v32 = vmul.f32 %v14164_v56, %v14164_v56  ;;  %v14220_v43 = vsub.f32 %v13761_v42, %v522_v2  ;;  %v13767_v20 = vld [vmem:[%s16775_s0 + $0x30] sm:$0xff]  ;;  %v13768_v2 = vld [vmem:[%s16775_s0 + $0x28] sm:$0xff]  ;;  %v13773_v42 = vld [vmem:[%s16775_s0] sm:$0xff] }
 0x220   :  { %v13772_v16 = vld [vmem:[%s16775_s0 + $0x8] sm:$0xff] }
 0x221   :  { %606 = vmatprep.subr.mxu0 %v605_v7  ;;  %v521_v7 = vmul.f32 0.000625, %v14071_v31  ;;  %v592_v31 = vmul.f32 %v14172_v60, %v14172_v60 }
 0x222   :  { %607 = vmatpush1.msra.mxu0 %v604_v11  ;;  %v520_v11 = vmul.f32 0.000625, %v14069_v30  ;;  %v591_v30 = vmul.f32 %v14180_v1, %v14180_v1 }
 0x223   :  { %608 = vmatprep.subr.mxu0 %v603_v15  ;;  %v519_v15 = vmul.f32 0.000625, %v14067_v29  ;;  %v590_v29 = vmul.f32 %v14188_v5, %v14188_v5  ;;  %v14228_v46 = vsub.f32 %v13762_v45, %v521_v7  ;;  %v13769_v7 = vld [vmem:[%s16775_s0 + $0x20] sm:$0xff] }
 0x224   :  { %609 = vmatpush1.msra.mxu0 %v602_v41  ;;  %v518_v41 = vmul.f32 0.000625, %v14065_v28  ;;  %v589_v28 = vmul.f32 %v14196_v9, %v14196_v9  ;;  %v14236_v49 = vsub.f32 %v13763_v48, %v520_v11 }
 0x225   :  { %610 = vmatprep.subr.mxu0 %v601_v40  ;;  %v517_v40 = vmul.f32 0.000625, %v14063_v27  ;;  %v588_v27 = vmul.f32 %v14204_v13, %v14204_v13  ;;  %v14244_v52 = vsub.f32 %v13764_v51, %v519_v15  ;;  %v13776_v51 = vld [vmem:[#allocation7 + $0x10] sm:$0xff] }
 0x226   :  { %611 = vmatpush1.msra.mxu0 %v600_v39  ;;  %v516_v39 = vmul.f32 0.000625, %v14061_v26  ;;  %v587_v26 = vmul.f32 %v14212_v17, %v14212_v17  ;;  %v14252_v55 = vsub.f32 %v13765_v54, %v518_v41  ;;  %v13779_v54 = vld [vmem:[#allocation7 + $0x28] sm:$0xff] }
 0x227   :  { %612 = vmatprep.subr.mxu0 %v599_v38  ;;  %v515_v38 = vmul.f32 0.000625, %v14059_v25  ;;  %v586_v25 = vmul.f32 %v14220_v43, %v14220_v43  ;;  %v14260_v58 = vsub.f32 %v13766_v57, %v517_v40  ;;  %v13782_v57 = vld [vmem:[#allocation7 + $0x40] sm:$0xff] }
 0x228   :  { %613 = vmatpush1.msra.mxu0 %v598_v37  ;;  %v514_v37 = vmul.f32 0.000625, %v14057_v24  ;;  %v585_v24 = vmul.f32 %v14228_v46, %v14228_v46  ;;  %v14268_v62 = vsub.f32 %v13767_v20, %v516_v39  ;;  %v13785_v20 = vld [vmem:[#allocation7 + $0x58] sm:$0xff] }
 0x229   :  { %614 = vmatprep.subr.mxu0 %v597_v36  ;;  %v513_v36 = vmul.f32 0.000625, %v14055_v23  ;;  %v584_v23 = vmul.f32 %v14236_v49, %v14236_v49  ;;  %v14276_v4 = vsub.f32 %v13768_v2, %v515_v38  ;;  %v13775_v38 = vld [vmem:[#allocation7 + $0x8] sm:$0xff]  ;;  %v13788_v2 = vld [vmem:[#allocation7 + $0x70] sm:$0xff] }
 0x22a   :  { %615 = vmatpush1.msra.mxu0 %v596_v35  ;;  %v512_v35 = vmul.f32 0.000625, %v14053_v22  ;;  %v583_v22 = vmul.f32 %v14244_v52, %v14244_v52  ;;  %v14284_v8 = vsub.f32 %v13769_v7, %v514_v37  ;;  %v580_v15 = vmul.f32 %v14268_v62, %v14268_v62  ;;  %v13778_v37 = vld [vmem:[#allocation7 + $0x20] sm:$0xff]  ;;  %v12609_v7 = vld [vmem:[#allocation5 + $0x154] ss:$24 sps:$4 sm:$0xff]  }
 0x22b   :  { %616 = vmatprep.subr.mxu0 %v595_v34  ;;  %v511_v34 = vmul.f32 0.000625, %v14051_v21  ;;  %v582_v21 = vmul.f32 %v14252_v55, %v14252_v55  ;;  %v579_v41 = vmul.f32 %v14276_v4, %v14276_v4 }
 0x22c   :  { %617 = vmatpush1.msra.mxu0 %v594_v33  ;;  %v510_v33 = vmul.f32 0.000625, %v14049_v19  ;;  %v581_v19 = vmul.f32 %v14260_v58, %v14260_v58  ;;  %v578_v40 = vmul.f32 %v14284_v8, %v14284_v8 }
 0x22d   :  { %618 = vmatprep.subr.mxu0 %v593_v32  ;;  %v13770_v32 = vld [vmem:[%s16775_s0 + $0x18] sm:$0xff] }
 0x22e   :  { %619 = vmatpush1.msra.mxu0 %v592_v31  ;;  %v14291_v11 = vsub.f32 %v13770_v32, %v513_v36  ;;  %v14298_v31 = vsub.f32 %v13771_v12, %v512_v35  ;;  %v13781_v36 = vld [vmem:[#allocation7 + $0x38] sm:$0xff]  ;;  %v13784_v35 = vld [vmem:[#allocation7 + $0x50] sm:$0xff] }
 0x22f   :  { %620 = vmatprep.subr.mxu0 %v591_v30  ;;  %v14305_v30 = vsub.f32 %v13772_v16, %v511_v34  ;;  %v13787_v34 = vld [vmem:[#allocation7 + $0x68] sm:$0xff]  ;;  %v12615_v32 = vld [vmem:[#allocation5 + $0x124] ss:$24 sps:$4 sm:$0xff]  }
 0x230   :  { %621 = vmatpush1.msra.mxu0 %v590_v29  ;;  %v14312_v29 = vsub.f32 %v13773_v42, %v510_v33  ;;  %v577_v45 = vmul.f32 %v14291_v11, %v14291_v11  ;;  %v12607_v33 = vld [vmem:[#allocation5 + $0x150] ss:$24 sps:$4 sm:$0xff]   ;;  %v12621_v12 = vld [vmem:[#allocation5 + $0xf4] ss:$24 sps:$4 sm:$0xff]   ;;  %v12627_v16 = vld [vmem:[#allocation5 + $0xc4] ss:$24 sps:$4 sm:$0xff]  }
 0x231   :  { %622 = vmatprep.subr.mxu0 %v589_v28  ;;  %v576_v28 = vmul.f32 %v14298_v31, %v14298_v31  ;;  %v575_v39 = vmul.f32 %v14305_v30, %v14305_v30  ;;  %v12631_v42 = vld [vmem:[#allocation5 + $0x90] ss:$24 sps:$4 sm:$0xff]  }
 0x232   :  { %623 = vmatpush1.msra.mxu0 %v588_v27  ;;  %v574_v48 = vmul.f32 %v14312_v29, %v14312_v29  ;;  %v13774_v27 = vld [vmem:[#allocation7] sm:$0xff] }
 0x233   :  { %624 = vmatprep.subr.mxu0 %v587_v26  ;;  %v13777_v26 = vld [vmem:[#allocation7 + $0x18] sm:$0xff] }
 0x234   :  { %625 = vmatpush1.msra.mxu0 %v586_v25  ;;  %v13780_v25 = vld [vmem:[#allocation7 + $0x30] sm:$0xff] }
 0x235   :  { %626 = vmatprep.subr.mxu0 %v585_v24  ;;  %v13783_v24 = vld [vmem:[#allocation7 + $0x48] sm:$0xff] }
 0x236   :  { %627 = vmatpush1.msra.mxu0 %v584_v23  ;;  %v13786_v23 = vld [vmem:[#allocation7 + $0x60] sm:$0xff] }
 0x237   :  { %628 = vmatprep.subr.mxu0 %v583_v22  ;;  %v13789_v22 = vld [vmem:[#allocation7 + $0x78] sm:$0xff] }
 0x238   :  { %629 = vmatpush1.msra.mxu0 %v582_v21  ;;  %v12612_v21 = vld [vmem:[#allocation5 + $0x15c] ss:$24 sps:$4 sm:$0xff]  }
 0x239   :  { %630 = vmatprep.subr.mxu0 %v581_v19  ;;  %1761 = vmatprep.subr.bf16.mxu1 %v12612_v21  ;;  %v12613_v19 = vld [vmem:[#allocation5 + $0x120] ss:$24 sps:$4 sm:$0xff]   ;;  %v12636_v21 = vld [vmem:[#allocation5 + $0x9c] ss:$24 sps:$4 sm:$0xff]  }
 0x23a   :  { %631 = vmatpush1.msra.mxu0 %v580_v15  ;;  %v12619_v15 = vld [vmem:[#allocation5 + $0xf0] ss:$24 sps:$4 sm:$0xff]  }
 0x23b   :  { %632 = vmatprep.subr.mxu0 %v579_v41  ;;  %v12625_v41 = vld [vmem:[#allocation5 + $0xc0] ss:$24 sps:$4 sm:$0xff]  }
 0x23c   :  { %633 = vmatpush1.msra.mxu0 %v578_v40  ;;  %v12639_v40 = vld [vmem:[#allocation5 + $0x64] ss:$24 sps:$4 sm:$0xff]  }
 0x23d   :  { %634 = vmatprep.subr.mxu0 %v577_v45  ;;  %v12637_v45 = vld [vmem:[#allocation5 + $0x60] ss:$24 sps:$4 sm:$0xff]  }
 0x23e   :  { %635 = vmatpush1.msra.mxu0 %v576_v28  ;;  %v12645_v28 = vld [vmem:[#allocation5 + $0x34] ss:$24 sps:$4 sm:$0xff]  }
 0x23f   :  { %636 = vmatprep.subr.mxu0 %v575_v39  ;;  %v12643_v39 = vld [vmem:[#allocation5 + $0x30] ss:$24 sps:$4 sm:$0xff]  }
 0x240   :  { %637 = vmatpush1.msra.mxu0 %v574_v48  ;;  %v12651_v48 = vld [vmem:[#allocation5 + $0x4] ss:$24 sps:$4 sm:$0xff]  }
 0x241   :  { %671 = vmatmul.mubr.f32.vlgmr.msra.gmra.mxu0 %v13774_v27  ;;  %1648 = vmatprep.subr.bf16.mxu0 %v12609_v7  ;;  %v12649_v27 = vld [vmem:[#allocation5] ss:$24 sps:$4 sm:$0xff]  }
 0x242   :  { %676 = vmatprep.mubr.f32.mxu0 %v13888_v0  ;;  %1649 = vmatpush1.bf16.msra.mxu0 %v12607_v33  ;;  %v12628_v33 = vld [vmem:[#allocation5 + $0xc8] ss:$24 sps:$4 sm:$0xff]  }
 0x243   :  { %1650 = vmatprep.subr.bf16.mxu0 %v12615_v32 }
 0x245   :  { %677 = vmatmul.mubr.f32.gmra.mxu0 %v13775_v38  ;;  %v12657_v38 = vld [vmem:[#allocation5 + $0x2d4] ss:$24 sps:$4 sm:$0xff]  }
 0x246   :  { %682 = vmatprep.mubr.f32.mxu0 %v13888_v0  ;;  %1651 = vmatpush1.bf16.msra.mxu0 %v12613_v19  ;;  %v12634_v19 = vld [vmem:[#allocation5 + $0x98] ss:$24 sps:$4 sm:$0xff]  }
 0x247   :  { %1652 = vmatprep.subr.bf16.mxu0 %v12621_v12 }
 0x249   :  { %683 = vmatmul.mubr.f32.gmra.mxu0 %v13776_v51  ;;  %v12655_v51 = vld [vmem:[#allocation5 + $0x2d0] ss:$24 sps:$4 sm:$0xff]  }
 0x24a   :  { %688 = vmatprep.mubr.f32.mxu0 %v13888_v0  ;;  %1653 = vmatpush1.bf16.msra.mxu0 %v12619_v15  ;;  %v12642_v15 = vld [vmem:[#allocation5 + $0x6c] ss:$24 sps:$4 sm:$0xff]  }
 0x24b   :  { %1654 = vmatprep.subr.bf16.mxu0 %v12627_v16 }
 0x24d   :  { %689 = vmatmul.mubr.f32.gmra.mxu0 %v13777_v26 }
 0x24e   :  { %694 = vmatprep.mubr.f32.mxu0 %v13888_v0  ;;  %1655 = vmatpush1.bf16.msra.mxu0 %v12625_v41  ;;  %v12640_v41 = vld [vmem:[#allocation5 + $0x68] ss:$24 sps:$4 sm:$0xff]  }
 0x251   :  { %695 = vmatmul.mubr.f32.gmra.mxu0 %v13778_v37  ;;  %v12610_v37 = vld [vmem:[#allocation5 + $0x158] ss:$24 sps:$4 sm:$0xff]  }
 0x252   :  { %700 = vmatprep.mubr.f32.mxu0 %v13888_v0 }
 0x255   :  { %701 = vmatmul.mubr.f32.gmra.mxu0 %v13779_v54 }
 0x256   :  { %706 = vmatprep.mubr.f32.mxu0 %v13888_v0 }
 0x259   :  { %707 = vmatmul.mubr.f32.gmra.mxu0 %v13780_v25  ;;  %v12618_v25 = vld [vmem:[#allocation5 + $0x12c] ss:$24 sps:$4 sm:$0xff]  }
 0x25a   :  { %712 = vmatprep.mubr.f32.mxu0 %v13888_v0 }
 0x25d   :  { %713 = vmatmul.mubr.f32.gmra.mxu0 %v13781_v36 }
 0x25e   :  { %718 = vmatprep.mubr.f32.mxu0 %v13888_v0 }
 0x261   :  { %719 = vmatmul.mubr.f32.gmra.mxu0 %v13782_v57  ;;  %v12616_v57 = vld [vmem:[#allocation5 + $0x128] ss:$24 sps:$4 sm:$0xff]  }
 0x262   :  { %724 = vmatprep.mubr.f32.mxu0 %v13888_v0 }
 0x265   :  { %725 = vmatmul.mubr.f32.gmra.mxu0 %v13783_v24 }
 0x266   :  { %730 = vmatprep.mubr.f32.mxu0 %v13888_v0 }
 0x269   :  { %731 = vmatmul.mubr.f32.gmra.mxu0 %v13784_v35  ;;  %v12624_v35 = vld [vmem:[#allocation5 + $0xfc] ss:$24 sps:$4 sm:$0xff]  }
 0x26a   :  { %736 = vmatprep.mubr.f32.mxu0 %v13888_v0 }
 0x26d   :  { %737 = vmatmul.mubr.f32.gmra.mxu0 %v13785_v20 }
 0x26e   :  { %742 = vmatprep.mubr.f32.mxu0 %v13888_v0 }
 0x271   :  { %743 = vmatmul.mubr.f32.gmra.mxu0 %v13786_v23  ;;  %v12622_v23 = vld [vmem:[#allocation5 + $0xf8] ss:$24 sps:$4 sm:$0xff]  }
 0x272   :  { %748 = vmatprep.mubr.f32.mxu0 %v13888_v0 }
 0x275   :  { %749 = vmatmul.mubr.f32.gmra.mxu0 %v13787_v34 }
 0x276   :  { %754 = vmatprep.mubr.f32.mxu0 %v13888_v0 }
 0x279   :  { %755 = vmatmul.mubr.f32.gmra.mxu0 %v13788_v2  ;;  %v12630_v2 = vld [vmem:[#allocation5 + $0xcc] ss:$24 sps:$4 sm:$0xff]  }
 0x27a   :  { %760 = vmatprep.mubr.f32.mxu0 %v13888_v0  ;;  %v12633_v0 = vld [vmem:[#allocation5 + $0x94] ss:$24 sps:$4 sm:$0xff]  }
 0x27b   :  { %1656 = vmatprep.subr.bf16.mxu0 %v12633_v0 }
 0x27c   :  { %1657 = vmatpush1.bf16.msra.mxu0 %v12631_v42  ;;  %v12648_v42 = vld [vmem:[#allocation5 + $0x3c] ss:$24 sps:$4 sm:$0xff]  }
 0x27d   :  { %761 = vmatmul.mubr.f32.gmra.mxu0 %v13789_v22  ;;  %1658 = vmatprep.subr.bf16.mxu0 %v12639_v40 }
 0x280   :  { %1659 = vmatpush1.bf16.msra.mxu0 %v12637_v45  ;;  %v12646_v45 = vld [vmem:[#allocation5 + $0x38] ss:$24 sps:$4 sm:$0xff]  }
 0x281   :  { %1660 = vmatprep.subr.bf16.mxu0 %v12645_v28 }
 0x284   :  { %1661 = vmatpush1.bf16.msra.mxu0 %v12643_v39  ;;  %v12654_v39 = vld [vmem:[#allocation5 + $0xc] ss:$24 sps:$4 sm:$0xff]  }
 0x285   :  { %1662 = vmatprep.subr.bf16.mxu0 %v12651_v48 }
 0x288   :  { %1663 = vmatpush1.bf16.msra.mxu0 %v12649_v27  ;;  %v12652_v27 = vld [vmem:[#allocation5 + $0x8] ss:$24 sps:$4 sm:$0xff]  }
 0x289   :  { %1664 = vmatprep.subr.bf16.mxu0 %v12657_v38 }
 0x28c   :  { %1665 = vmatpush2.bf16.msra.mxu0 %v12655_v51  ;;  %v12660_v51 = vld [vmem:[#allocation5 + $0x2dc] ss:$24 sps:$4 sm:$0xff]  }
 0x301   :  { %v672_v26 = vpop.f32.mrf.mxu0 }
 0x303   :  { %v674_v54 = vpop.f32.mrf.mxu0 }
 0x304   :  { %831 = vmatprep.mubr.f32.mxu1 %v674_v54 }
 0x305   :  { %v678_v36 = vpop.f32.mrf.mxu0  ;;  %832 = vmatmul.mubr.f32.vlgmr.msra.gmra.mxu1 %v672_v26 }
 0x306   :  { %1762 = vmatpush1.bf16.msra.mxu1 %v12610_v37  ;;  %v12658_v37 = vld [vmem:[#allocation5 + $0x2d8] ss:$24 sps:$4 sm:$0xff]  }
 0x307   :  { %v680_v24 = vpop.f32.mrf.mxu0  ;;  %1763 = vmatprep.subr.bf16.mxu1 %v12618_v25 }
 0x308   :  { %837 = vmatprep.mubr.f32.mxu1 %v680_v24 }
 0x309   :  { %v684_v20 = vpop.f32.mrf.mxu0  ;;  %838 = vmatmul.mubr.f32.gmra.mxu1 %v678_v36 }
 0x30a   :  { %1764 = vmatpush1.bf16.msra.mxu1 %v12616_v57 }
 0x30b   :  { %v686_v34 = vpop.f32.mrf.mxu0  ;;  %1765 = vmatprep.subr.bf16.mxu1 %v12624_v35 }
 0x30c   :  { %843 = vmatprep.mubr.f32.mxu1 %v686_v34 }
 0x30d   :  { %v690_v22 = vpop.f32.mrf.mxu0  ;;  %844 = vmatmul.mubr.f32.gmra.mxu1 %v684_v20 }
 0x30e   :  { %1766 = vmatpush1.bf16.msra.mxu1 %v12622_v23 }
 0x30f   :  { %v692_v7 = vpop.f32.mrf.mxu0  ;;  %1767 = vmatprep.subr.bf16.mxu1 %v12630_v2 }
 0x310   :  { %849 = vmatprep.mubr.f32.mxu1 %v692_v7 }
 0x311   :  { %v696_v32 = vpop.f32.mrf.mxu0  ;;  %850 = vmatmul.mubr.f32.gmra.mxu1 %v690_v22 }
 0x312   :  { %1768 = vmatpush1.bf16.msra.mxu1 %v12628_v33 }
 0x313   :  { %v698_v12 = vpop.f32.mrf.mxu0  ;;  %1769 = vmatprep.subr.bf16.mxu1 %v12636_v21 }
 0x314   :  { %855 = vmatprep.mubr.f32.mxu1 %v698_v12  ;;  %v12666_v12 = vld [vmem:[#allocation5 + $0x2ac] ss:$24 sps:$4 sm:$0xff]  }
 0x315   :  { %v702_v16 = vpop.f32.mrf.mxu0  ;;  %856 = vmatmul.mubr.f32.gmra.mxu1 %v696_v32 }
 0x316   :  { %1770 = vmatpush1.bf16.msra.mxu1 %v12634_v19  ;;  %v12663_v19 = vld [vmem:[#allocation5 + $0x2a4] ss:$24 sps:$4 sm:$0xff]  }
 0x317   :  { %v704_v0 = vpop.f32.mrf.mxu0  ;;  %1771 = vmatprep.subr.bf16.mxu1 %v12642_v15  ;;  %v12661_v15 = vld [vmem:[#allocation5 + $0x2a0] ss:$24 sps:$4 sm:$0xff]   ;;  %1666 = vmatprep.subr.bf16.mxu0 %v12663_v19 }
 0x318   :  { %861 = vmatprep.mubr.f32.mxu1 %v704_v0  ;;  %1667 = vmatpush2.bf16.msra.mxu0 %v12661_v15  ;;  %v12672_v0 = vld [vmem:[#allocation5 + $0x27c] ss:$24 sps:$4 sm:$0xff]  }
 0x319   :  { %v708_v40 = vpop.f32.mrf.mxu0  ;;  %862 = vmatmul.mubr.f32.gmra.mxu1 %v702_v16  ;;  %v12664_v16 = vld [vmem:[#allocation5 + $0x2a8] ss:$24 sps:$4 sm:$0xff]  }
 0x31a   :  { %1772 = vmatpush1.bf16.msra.mxu1 %v12640_v41  ;;  %v12669_v41 = vld [vmem:[#allocation5 + $0x274] ss:$24 sps:$4 sm:$0xff]  }
 0x31b   :  { %v710_v28 = vpop.f32.mrf.mxu0  ;;  %1773 = vmatprep.subr.bf16.mxu1 %v12648_v42  ;;  %v12667_v42 = vld [vmem:[#allocation5 + $0x270] ss:$24 sps:$4 sm:$0xff]   ;;  %1668 = vmatprep.subr.bf16.mxu0 %v12669_v41 }
 0x31c   :  { %867 = vmatprep.mubr.f32.mxu1 %v710_v28  ;;  %1669 = vmatpush2.bf16.msra.mxu0 %v12667_v42  ;;  %v12678_v28 = vld [vmem:[#allocation5 + $0x24c] ss:$24 sps:$4 sm:$0xff]  }
 0x31d   :  { %v714_v48 = vpop.f32.mrf.mxu0  ;;  %868 = vmatmul.mubr.f32.gmra.mxu1 %v708_v40  ;;  %v12670_v40 = vld [vmem:[#allocation5 + $0x278] ss:$24 sps:$4 sm:$0xff]  }
 0x31e   :  { %1774 = vmatpush1.bf16.msra.mxu1 %v12646_v45  ;;  %v12675_v45 = vld [vmem:[#allocation5 + $0x244] ss:$24 sps:$4 sm:$0xff]  }
 0x31f   :  { %v716_v38 = vpop.f32.mrf.mxu0  ;;  %1775 = vmatprep.subr.bf16.mxu1 %v12654_v39  ;;  %v12673_v39 = vld [vmem:[#allocation5 + $0x240] ss:$24 sps:$4 sm:$0xff]   ;;  %1670 = vmatprep.subr.bf16.mxu0 %v12675_v45 }
 0x320   :  { %873 = vmatprep.mubr.f32.mxu1 %v716_v38  ;;  %1671 = vmatpush2.bf16.msra.mxu0 %v12673_v39  ;;  %v12684_v38 = vld [vmem:[#allocation5 + $0x21c] ss:$24 sps:$4 sm:$0xff]  }
 0x321   :  { %v720_v26 = vpop.f32.mrf.mxu0  ;;  %874 = vmatmul.mubr.f32.gmra.mxu1 %v714_v48  ;;  %v12676_v48 = vld [vmem:[#allocation5 + $0x248] ss:$24 sps:$4 sm:$0xff]  }
 0x322   :  { %1776 = vmatpush1.bf16.msra.mxu1 %v12652_v27  ;;  %v12681_v27 = vld [vmem:[#allocation5 + $0x214] ss:$24 sps:$4 sm:$0xff]  }
 0x323   :  { %v722_v54 = vpop.f32.mrf.mxu0  ;;  %1777 = vmatprep.subr.bf16.mxu1 %v12660_v51  ;;  %v12679_v51 = vld [vmem:[#allocation5 + $0x210] ss:$24 sps:$4 sm:$0xff]   ;;  %1672 = vmatprep.subr.bf16.mxu0 %v12681_v27 }
 0x324   :  { %879 = vmatprep.mubr.f32.mxu1 %v722_v54  ;;  %1673 = vmatpush2.bf16.msra.mxu0 %v12679_v51  ;;  %v12690_v54 = vld [vmem:[#allocation5 + $0x1ec] ss:$24 sps:$4 sm:$0xff]  }
 0x325   :  { %v726_v25 = vpop.f32.mrf.mxu0  ;;  %880 = vmatmul.mubr.f32.gmra.mxu1 %v720_v26  ;;  %v12682_v26 = vld [vmem:[#allocation5 + $0x218] ss:$24 sps:$4 sm:$0xff]  }
 0x326   :  { %1778 = vmatpush2.bf16.msra.mxu1 %v12658_v37  ;;  %v12687_v37 = vld [vmem:[#allocation5 + $0x1e4] ss:$24 sps:$4 sm:$0xff]  }
 0x327   :  { %v728_v36 = vpop.f32.mrf.mxu0  ;;  %1779 = vmatprep.subr.bf16.mxu1 %v12666_v12  ;;  %1674 = vmatprep.subr.bf16.mxu0 %v12687_v37 }
 0x328   :  { %885 = vmatprep.mubr.f32.mxu1 %v728_v36  ;;  %v12688_v36 = vld [vmem:[#allocation5 + $0x1e8] ss:$24 sps:$4 sm:$0xff]  }
 0x329   :  { %v732_v57 = vpop.f32.mrf.mxu0  ;;  %886 = vmatmul.mubr.f32.gmra.mxu1 %v726_v25  ;;  %v12685_v25 = vld [vmem:[#allocation5 + $0x1e0] ss:$24 sps:$4 sm:$0xff]  }
 0x32a   :  { %1780 = vmatpush2.bf16.msra.mxu1 %v12664_v16  ;;  %1675 = vmatpush2.bf16.msra.mxu0 %v12685_v25 }
 0x32b   :  { %v734_v24 = vpop.f32.mrf.mxu0  ;;  %1781 = vmatprep.subr.bf16.mxu1 %v12672_v0 }
 0x32c   :  { %891 = vmatprep.mubr.f32.mxu1 %v734_v24  ;;  %v12696_v24 = vld [vmem:[#allocation5 + $0x1bc] ss:$24 sps:$4 sm:$0xff]  }
 0x32d   :  { %v738_v35 = vpop.f32.mrf.mxu0  ;;  %892 = vmatmul.mubr.f32.gmra.mxu1 %v732_v57  ;;  %v12693_v57 = vld [vmem:[#allocation5 + $0x1b4] ss:$24 sps:$4 sm:$0xff]  }
 0x32e   :  { %1782 = vmatpush2.bf16.msra.mxu1 %v12670_v40  ;;  %1676 = vmatprep.subr.bf16.mxu0 %v12693_v57 }
 0x32f   :  { %v740_v20 = vpop.f32.mrf.mxu0  ;;  %1783 = vmatprep.subr.bf16.mxu1 %v12678_v28 }
 0x330   :  { %897 = vmatprep.mubr.f32.mxu1 %v740_v20  ;;  %v12694_v20 = vld [vmem:[#allocation5 + $0x1b8] ss:$24 sps:$4 sm:$0xff]  }
 0x331   :  { %v744_v23 = vpop.f32.mrf.mxu0  ;;  %898 = vmatmul.mubr.f32.gmra.mxu1 %v738_v35  ;;  %v12691_v35 = vld [vmem:[#allocation5 + $0x1b0] ss:$24 sps:$4 sm:$0xff]  }
 0x332   :  { %1784 = vmatpush2.bf16.msra.mxu1 %v12676_v48  ;;  %1677 = vmatpush2.bf16.msra.mxu0 %v12691_v35 }
 0x333   :  { %v746_v34 = vpop.f32.mrf.mxu0  ;;  %1785 = vmatprep.subr.bf16.mxu1 %v12684_v38 }
 0x334   :  { %903 = vmatprep.mubr.f32.mxu1 %v746_v34  ;;  %v12702_v34 = vld [vmem:[#allocation5 + $0x18c] ss:$24 sps:$4 sm:$0xff]  }
 0x335   :  { %v750_v2 = vpop.f32.mrf.mxu0  ;;  %904 = vmatmul.mubr.f32.gmra.mxu1 %v744_v23  ;;  %v12699_v23 = vld [vmem:[#allocation5 + $0x184] ss:$24 sps:$4 sm:$0xff]  }
 0x336   :  { %1786 = vmatpush2.bf16.msra.mxu1 %v12682_v26  ;;  %1678 = vmatprep.subr.bf16.mxu0 %v12699_v23 }
 0x337   :  { %v752_v22 = vpop.f32.mrf.mxu0  ;;  %1787 = vmatprep.subr.bf16.mxu1 %v12690_v54 }
 0x338   :  { %909 = vmatprep.mubr.f32.mxu1 %v752_v22  ;;  %v12700_v22 = vld [vmem:[#allocation5 + $0x188] ss:$24 sps:$4 sm:$0xff]  }
 0x339   :  { %v756_v33 = vpop.f32.mrf.mxu0  ;;  %910 = vmatmul.mubr.f32.gmra.mxu1 %v750_v2  ;;  %v12697_v2 = vld [vmem:[#allocation5 + $0x180] ss:$24 sps:$4 sm:$0xff]  }
 0x33a   :  { %1788 = vmatpush2.bf16.msra.mxu1 %v12688_v36  ;;  %1679 = vmatpush2.bf16.msra.mxu0 %v12697_v2 }
 0x33b   :  { %v758_v7 = vpop.f32.mrf.mxu0  ;;  %1789 = vmatprep.subr.bf16.mxu1 %v12696_v24 }
 0x33c   :  { %915 = vmatprep.mubr.f32.mxu1 %v758_v7 }
 0x33d   :  { %v762_v21 = vpop.f32.mrf.mxu0  ;;  %916 = vmatmul.mubr.f32.gmra.mxu1 %v756_v33  ;;  %v12705_v33 = vld [vmem:[#allocation5 + $0x164] ss:$24 sps:$4 sm:$0xff]  }
 0x33e   :  { %1790 = vmatpush2.bf16.msra.mxu1 %v12694_v20  ;;  %1874 = vmatprep.subr.bf16.mxu0 %v12705_v33 }
 0x33f   :  { %v764_v32 = vpop.f32.mrf.mxu0  ;;  %1791 = vmatprep.subr.bf16.mxu1 %v12702_v34 }
 0x340   :  { %921 = vmatprep.mubr.f32.mxu1 %v764_v32 }
 0x341   :  { %922 = vmatmul.mubr.f32.gmra.mxu1 %v762_v21 }
 0x342   :  { %1792 = vmatpush2.bf16.msra.mxu1 %v12700_v22 }
 0x3c5   :  { %v833_v7 = vpop.f32.mrf.mxu1 }
 0x3c6   :  { %v928_v21 = vmul.f32 0.000625, %v833_v7 }
 0x3c7   :  { %v835_v32 = vpop.f32.mrf.mxu1 }
 0x3c8   :  { %v929_v19 = vmul.f32 0.000625, %v835_v32  ;;  %v960_v41 = vadd.f32 1e-05, %v928_v21 }
 0x3c9   :  { %v839_v12 = vpop.f32.mrf.mxu1 }
 0x3ca   :  { %v961_v15 = vadd.f32 1e-05, %v929_v19  ;;  %v930_v16 = vmul.f32 0.000625, %v839_v12 }
 0x3cb   :  { %v841_v0 = vpop.f32.mrf.mxu1 }
 0x3cc   :  { %v962_v42 = vadd.f32 1e-05, %v930_v16  ;;  %v931_v40 = vmul.f32 0.000625, %v841_v0  ;;  %13615 = vrsqrt.f32 %v961_v15 }
 0x3cd   :  { %v845_v45 = vpop.f32.mrf.mxu1 }
 0x3ce   :  { %13617 = vrsqrt.f32 %v962_v42  ;;  %v963_v28 = vadd.f32 1e-05, %v931_v40  ;;  %v932_v39 = vmul.f32 0.000625, %v845_v45 }
 0x3cf   :  { %13619 = vrsqrt.f32 %v960_v41  ;;  %v847_v48 = vpop.f32.mrf.mxu1 }
 0x3d0   :  { %13621 = vrsqrt.f32 %v963_v28  ;;  %v933_v27 = vmul.f32 0.000625, %v847_v48  ;;  %v964_v37 = vadd.f32 1e-05, %v932_v39 }
 0x3d1   :  { %v851_v38 = vpop.f32.mrf.mxu1 }
 0x3d2   :  { %v965_v51 = vadd.f32 1e-05, %v933_v27  ;;  %v934_v26 = vmul.f32 0.000625, %v851_v38 }
 0x3d3   :  { %v853_v54 = vpop.f32.mrf.mxu1 }
 0x3d4   :  { %v966_v25 = vadd.f32 1e-05, %v934_v26  ;;  %v935_v36 = vmul.f32 0.000625, %v853_v54  ;;  %13623 = vrsqrt.f32 %v965_v51  ;;  %v12703_v51 = vld [vmem:[#allocation5 + $0x160] ss:$24 sps:$4 sm:$0xff]  }
 0x3d5   :  { %v857_v57 = vpop.f32.mrf.mxu1 }
 0x3d6   :  { %13625 = vrsqrt.f32 %v966_v25  ;;  %v967_v24 = vadd.f32 1e-05, %v935_v36  ;;  %v936_v35 = vmul.f32 0.000625, %v857_v57 }
 0x3d7   :  { %13627 = vrsqrt.f32 %v964_v37  ;;  %v859_v20 = vpop.f32.mrf.mxu1 }
 0x3d8   :  { %13629 = vrsqrt.f32 %v967_v24  ;;  %v937_v23 = vmul.f32 0.000625, %v859_v20  ;;  %v968_v21 = vadd.f32 1e-05, %v936_v35  ;;  %v12706_v20 = vld [vmem:[#allocation5 + $0x130] ss:$24 sps:$4 sm:$0xff]  }
 0x3d9   :  { %v863_v34 = vpop.f32.mrf.mxu1  ;;  %v13616_v2 = vpop.eup %13615 }
 0x3da   :  { %v969_v22 = vadd.f32 1e-05, %v937_v23  ;;  %v938_v33 = vmul.f32 0.000625, %v863_v34  ;;  %v1025_v40 = vmul.f32 %v13616_v2, %v14305_v30 }
 0x3db   :  { %v13618_v7 = vpop.eup %13617  ;;  %v865_v32 = vpop.f32.mrf.mxu1 }
 0x3dc   :  { %v13620_v19 = vpop.eup %13619  ;;  %v970_v12 = vadd.f32 1e-05, %v938_v33  ;;  %v939_v15 = vmul.f32 0.000625, %v865_v32  ;;  %13631 = vrsqrt.f32 %v969_v22  ;;  %v1026_v0 = vmul.f32 %v13618_v7, %v14298_v31  ;;  %v12708_v31 = vld [vmem:[#allocation5 + $0x134] ss:$24 sps:$4 sm:$0xff]  }
 0x3dd   :  { %v13622_v16 = vpop.eup %13621  ;;  %v869_v41 = vpop.f32.mrf.mxu1  ;;  %v1024_v48 = vmul.f32 %v13620_v19, %v14312_v29  ;;  %v12711_v22 = vld [vmem:[#allocation5 + $0x104] ss:$24 sps:$4 sm:$0xff]  }
 0x3de   :  { %13633 = vrsqrt.f32 %v970_v12  ;;  %v971_v42 = vadd.f32 1e-05, %v939_v15  ;;  %v1027_v45 = vmul.f32 %v13622_v16, %v14291_v11  ;;  %v940_v28 = vmul.f32 0.000625, %v869_v41  ;;  %v12709_v41 = vld [vmem:[#allocation5 + $0x100] ss:$24 sps:$4 sm:$0xff]  }
 0x3df   :  { %13635 = vrsqrt.f32 %v968_v21  ;;  %v871_v39 = vpop.f32.mrf.mxu1  ;;  %v14345_v37 = vpack.c.bf16 %v1026_v0, %v1024_v48 }
 0x3e0   :  { %13637 = vrsqrt.f32 %v971_v42  ;;  %v941_v27 = vmul.f32 0.000625, %v871_v39  ;;  %v14343_v38 = vpack.c.bf16 %v1027_v45, %v1025_v40  ;;  %v972_v30 = vadd.f32 1e-05, %v940_v28  ;;  %v12714_v42 = vld [vmem:[#allocation5 + $0xd4] ss:$24 sps:$4 sm:$0xff]  }
 0x3e1   :  { %v875_v26 = vpop.f32.mrf.mxu1  ;;  %v13624_v54 = vpop.eup %13623 }
 0x3e2   :  { %v973_v25 = vadd.f32 1e-05, %v941_v27  ;;  %v942_v36 = vmul.f32 0.000625, %v875_v26  ;;  %1680 = vmatprep.mubr.bf16.mxu0 %v14343_v38  ;;  %1793 = vmatprep.mubr.bf16.mxu1 %v14343_v38  ;;  %v1029_v7 = vmul.f32 %v13624_v54, %v14276_v4 }
 0x3e3   :  { %v13626_v11 = vpop.eup %13625  ;;  %v877_v57 = vpop.f32.mrf.mxu1  ;;  %1681 = vmatmul.mubr.bf16.vlgmr.msra.gmra.mxu0 %v14345_v37  ;;  %1794 = vmatmul.mubr.bf16.vlgmr.msra.gmra.mxu1 %v14345_v37 }
 0x3e4   :  { %v13628_v29 = vpop.eup %13627  ;;  %v974_v24 = vadd.f32 1e-05, %v942_v36  ;;  %v943_v35 = vmul.f32 0.000625, %v877_v57  ;;  %1875 = vmatpush1.bf16.msra.mxu0 %v12703_v51  ;;  %13639 = vrsqrt.f32 %v973_v25  ;;  %v1030_v2 = vmul.f32 %v13626_v11, %v14268_v62  ;;  %v12712_v51 = vld [vmem:[#allocation5 + $0xd0] ss:$24 sps:$4 sm:$0xff]  }
 0x3e5   :  { %v13630_v23 = vpop.eup %13629  ;;  %v881_v34 = vpop.f32.mrf.mxu1  ;;  %1876 = vmatprep.subr.bf16.mxu0 %v12708_v31  ;;  %v1028_v12 = vmul.f32 %v13628_v29, %v14284_v8  ;;  %v12717_v25 = vld [vmem:[#allocation5 + $0xa4] ss:$24 sps:$4 sm:$0xff]  }
 0x3e6   :  { %13641 = vrsqrt.f32 %v974_v24  ;;  %v975_v33 = vadd.f32 1e-05, %v943_v35  ;;  %v1031_v21 = vmul.f32 %v13630_v23, %v14260_v58  ;;  %v944_v32 = vmul.f32 0.000625, %v881_v34  ;;  %v12715_v23 = vld [vmem:[#allocation5 + $0xa0] ss:$24 sps:$4 sm:$0xff]  }
 0x3e7   :  { %13643 = vrsqrt.f32 %v972_v30  ;;  %v883_v19 = vpop.f32.mrf.mxu1  ;;  %v14357_v62 = vpack.c.bf16 %v1030_v2, %v1028_v12  ;;  %v12720_v2 = vld [vmem:[#allocation5 + $0x74] ss:$24 sps:$4 sm:$0xff]   ;;  %v12718_v12 = vld [vmem:[#allocation5 + $0x70] ss:$24 sps:$4 sm:$0xff]  }
 0x3e8   :  { %13645 = vrsqrt.f32 %v975_v33  ;;  %v945_v15 = vmul.f32 0.000625, %v883_v19  ;;  %1877 = vmatpush1.bf16.msra.mxu0 %v12706_v20  ;;  %v14355_v16 = vpack.c.bf16 %v1031_v21, %v1029_v7  ;;  %v976_v8 = vadd.f32 1e-05, %v944_v32 }
 0x3e9   :  { %v887_v0 = vpop.f32.mrf.mxu1  ;;  %1878 = vmatprep.subr.bf16.mxu0 %v12711_v22  ;;  %v13632_v40 = vpop.eup %13631 }
 0x3ea   :  { %v977_v4 = vadd.f32 1e-05, %v945_v15  ;;  %v946_v45 = vmul.f32 0.000625, %v887_v0  ;;  %1690 = vmatprep.mubr.bf16.mxu0 %v14355_v16  ;;  %1803 = vmatprep.mubr.bf16.mxu1 %v14355_v16  ;;  %v1033_v11 = vmul.f32 %v13632_v40, %v14244_v52 }
 0x3eb   :  { %v13634_v58 = vpop.eup %13633  ;;  %v889_v28 = vpop.f32.mrf.mxu1  ;;  %1691 = vmatmul.mubr.bf16.gmra.mxu0 %v14357_v62  ;;  %1804 = vmatmul.mubr.bf16.gmra.mxu1 %v14357_v62 }
 0x3ec   :  { %v13636_v39 = vpop.eup %13635  ;;  %v978_v48 = vadd.f32 1e-05, %v946_v45  ;;  %v947_v27 = vmul.f32 0.000625, %v889_v28  ;;  %1879 = vmatpush1.bf16.msra.mxu0 %v12709_v41  ;;  %13647 = vrsqrt.f32 %v977_v4  ;;  %v1034_v54 = vmul.f32 %v13634_v58, %v14236_v49 }
 0x3ed   :  { %v13638_v26 = vpop.eup %13637  ;;  %v893_v31 = vpop.f32.mrf.mxu1  ;;  %1880 = vmatprep.subr.bf16.mxu0 %v12714_v42  ;;  %v1032_v24 = vmul.f32 %v13636_v39, %v14252_v55  ;;  %v12723_v42 = vld [vmem:[#allocation5 + $0x44] ss:$24 sps:$4 sm:$0xff]  }
 0x3ee   :  { %13649 = vrsqrt.f32 %v978_v48  ;;  %v979_v36 = vadd.f32 1e-05, %v947_v27  ;;  %v1035_v30 = vmul.f32 %v13638_v26, %v14228_v46  ;;  %v948_v57 = vmul.f32 0.000625, %v893_v31  ;;  %v12721_v27 = vld [vmem:[#allocation5 + $0x40] ss:$24 sps:$4 sm:$0xff]  }
 0x3ef   :  { %13651 = vrsqrt.f32 %v976_v8  ;;  %v895_v29 = vpop.f32.mrf.mxu1  ;;  %v14369_v49 = vpack.c.bf16 %v1034_v54, %v1032_v24  ;;  %v12726_v26 = vld [vmem:[#allocation5 + $0x14] ss:$24 sps:$4 sm:$0xff]  }
 0x3f0   :  { %13653 = vrsqrt.f32 %v979_v36  ;;  %v949_v35 = vmul.f32 0.000625, %v895_v29  ;;  %1881 = vmatpush1.bf16.msra.mxu0 %v12712_v51  ;;  %v14367_v20 = vpack.c.bf16 %v1035_v30, %v1033_v11  ;;  %v980_v55 = vadd.f32 1e-05, %v948_v57  ;;  %v12724_v57 = vld [vmem:[#allocation5 + $0x10] ss:$24 sps:$4 sm:$0xff]  }
 0x3f1   :  { %v899_v34 = vpop.f32.mrf.mxu1  ;;  %1882 = vmatprep.subr.bf16.mxu0 %v12717_v25  ;;  %v13640_v22 = vpop.eup %13639 }
 0x3f2   :  { %v981_v52 = vadd.f32 1e-05, %v949_v35  ;;  %v950_v33 = vmul.f32 0.000625, %v899_v34  ;;  %1700 = vmatprep.mubr.bf16.mxu0 %v14367_v20  ;;  %1813 = vmatprep.mubr.bf16.mxu1 %v14367_v20  ;;  %v1037_v4 = vmul.f32 %v13640_v22, %v14212_v17 }
 0x3f3   :  { %v13642_v46 = vpop.eup %13641  ;;  %v901_v7 = vpop.f32.mrf.mxu1  ;;  %1701 = vmatmul.mubr.bf16.gmra.mxu0 %v14369_v49  ;;  %1814 = vmatmul.mubr.bf16.gmra.mxu1 %v14369_v49 }
 0x3f4   :  { %v13644_v21 = vpop.eup %13643  ;;  %v982_v32 = vadd.f32 1e-05, %v950_v33  ;;  %v951_v19 = vmul.f32 0.000625, %v901_v7  ;;  %1883 = vmatpush1.bf16.msra.mxu0 %v12715_v23  ;;  %13655 = vrsqrt.f32 %v981_v52  ;;  %v1038_v0 = vmul.f32 %v13642_v46, %v14204_v13  ;;  %v12729_v23 = vld [vmem:[#allocation5 + $0x2e4] ss:$24 sps:$4 sm:$0xff]  }
 0x3f5   :  { %v13646_v15 = vpop.eup %13645  ;;  %v905_v41 = vpop.f32.mrf.mxu1  ;;  %1884 = vmatprep.subr.bf16.mxu0 %v12720_v2  ;;  %v1036_v28 = vmul.f32 %v13644_v21, %v14220_v43  ;;  %v12727_v21 = vld [vmem:[#allocation5 + $0x2e0] ss:$24 sps:$4 sm:$0xff]  }
 0x3f6   :  { %13657 = vrsqrt.f32 %v982_v32  ;;  %v983_v40 = vadd.f32 1e-05, %v951_v19  ;;  %v1039_v45 = vmul.f32 %v13646_v15, %v14196_v9  ;;  %v952_v58 = vmul.f32 0.000625, %v905_v41  ;;  %v12732_v19 = vld [vmem:[#allocation5 + $0x2b4] ss:$24 sps:$4 sm:$0xff]  }
 0x3f7   :  { %13659 = vrsqrt.f32 %v980_v55  ;;  %v907_v8 = vpop.f32.mrf.mxu1  ;;  %v14381_v13 = vpack.c.bf16 %v1038_v0, %v1036_v28 }
 0x3f8   :  { %13661 = vrsqrt.f32 %v983_v40  ;;  %v953_v39 = vmul.f32 0.000625, %v907_v8  ;;  %1885 = vmatpush1.bf16.msra.mxu0 %v12718_v12  ;;  %v14379_v48 = vpack.c.bf16 %v1039_v45, %v1037_v4  ;;  %v984_v43 = vadd.f32 1e-05, %v952_v58  ;;  %v12730_v4 = vld [vmem:[#allocation5 + $0x2b0] ss:$24 sps:$4 sm:$0xff]  }
 0x3f9   :  { %v911_v51 = vpop.f32.mrf.mxu1  ;;  %1886 = vmatprep.subr.bf16.mxu0 %v12723_v42  ;;  %v13648_v31 = vpop.eup %13647  ;;  %v12735_v8 = vld [vmem:[#allocation5 + $0x284] ss:$24 sps:$4 sm:$0xff]  }
 0x3fa   :  { %v985_v17 = vadd.f32 1e-05, %v953_v39  ;;  %v954_v54 = vmul.f32 0.000625, %v911_v51  ;;  %1710 = vmatprep.mubr.bf16.mxu0 %v14379_v48  ;;  %1823 = vmatprep.mubr.bf16.mxu1 %v14379_v48  ;;  %v1041_v2 = vmul.f32 %v13648_v31, %v14180_v1  ;;  %v12733_v31 = vld [vmem:[#allocation5 + $0x280] ss:$24 sps:$4 sm:$0xff]  }
 0x3fb   :  { %v13650_v9 = vpop.eup %13649  ;;  %v913_v25 = vpop.f32.mrf.mxu1  ;;  %1711 = vmatmul.mubr.bf16.gmra.mxu0 %v14381_v13  ;;  %1824 = vmatmul.mubr.bf16.gmra.mxu1 %v14381_v13 }
 0x3fc   :  { %v13652_v36 = vpop.eup %13651  ;;  %v986_v11 = vadd.f32 1e-05, %v954_v54  ;;  %v955_v30 = vmul.f32 0.000625, %v913_v25  ;;  %1887 = vmatpush1.bf16.msra.mxu0 %v12721_v27  ;;  %13663 = vrsqrt.f32 %v985_v17  ;;  %v1042_v35 = vmul.f32 %v13650_v9, %v14172_v60  ;;  %v12738_v54 = vld [vmem:[#allocation5 + $0x254] ss:$24 sps:$4 sm:$0xff]  }
 0x3fd   :  { %v13654_v29 = vpop.eup %13653  ;;  %v917_v24 = vpop.f32.mrf.mxu1  ;;  %1888 = vmatprep.subr.bf16.mxu0 %v12726_v26  ;;  %v1040_v46 = vmul.f32 %v13652_v36, %v14188_v5  ;;  %v12741_v25 = vld [vmem:[#allocation5 + $0x224] ss:$24 sps:$4 sm:$0xff]  }
 0x3fe   :  { %13665 = vrsqrt.f32 %v986_v11  ;;  %v987_v34 = vadd.f32 1e-05, %v955_v30  ;;  %v1043_v22 = vmul.f32 %v13654_v29, %v14164_v56  ;;  %v956_v52 = vmul.f32 0.000625, %v917_v24  ;;  %v12739_v29 = vld [vmem:[#allocation5 + $0x220] ss:$24 sps:$4 sm:$0xff]  }
 0x3ff   :  { %13667 = vrsqrt.f32 %v984_v43  ;;  %v919_v33 = vpop.f32.mrf.mxu1  ;;  %v14393_v60 = vpack.c.bf16 %v1042_v35, %v1040_v46  ;;  %v12744_v35 = vld [vmem:[#allocation5 + $0x1f4] ss:$24 sps:$4 sm:$0xff]  }
 0x400   :  { %13669 = vrsqrt.f32 %v987_v34  ;;  %v957_v55 = vmul.f32 0.000625, %v919_v33  ;;  %1889 = vmatpush1.bf16.msra.mxu0 %v12724_v57  ;;  %v14391_v7 = vpack.c.bf16 %v1043_v22, %v1041_v2  ;;  %v988_v5 = vadd.f32 1e-05, %v956_v52  ;;  %v12742_v2 = vld [vmem:[#allocation5 + $0x1f0] ss:$24 sps:$4 sm:$0xff]  }
 0x401   :  { %v923_v32 = vpop.f32.mrf.mxu1  ;;  %1890 = vmatprep.subr.bf16.mxu0 %v12729_v23  ;;  %v13656_v12 = vpop.eup %13655 }
 0x402   :  { %v989_v1 = vadd.f32 1e-05, %v957_v55  ;;  %v958_v15 = vmul.f32 0.000625, %v923_v32  ;;  %1720 = vmatprep.mubr.bf16.mxu0 %v14391_v7  ;;  %1833 = vmatprep.mubr.bf16.mxu1 %v14391_v7  ;;  %v1045_v39 = vmul.f32 %v13656_v12, %v14148_v50  ;;  %v12745_v55 = vld [vmem:[#allocation5 + $0x1c0] ss:$24 sps:$4 sm:$0xff]  }
 0x403   :  { %v13658_v56 = vpop.eup %13657  ;;  %v925_v41 = vpop.f32.mrf.mxu1  ;;  %1721 = vmatmul.mubr.bf16.gmra.mxu0 %v14393_v60  ;;  %1834 = vmatmul.mubr.bf16.gmra.mxu1 %v14393_v60  ;;  %v12750_v32 = vld [vmem:[#allocation5 + $0x194] ss:$24 sps:$4 sm:$0xff]  }
 0x404   :  { %v13660_v0 = vpop.eup %13659  ;;  %v990_v42 = vadd.f32 1e-05, %v958_v15  ;;  %v959_v40 = vmul.f32 0.000625, %v925_v41  ;;  %1891 = vmatpush2.bf16.msra.mxu0 %v12727_v21  ;;  %13671 = vrsqrt.f32 %v989_v1  ;;  %v1046_v58 = vmul.f32 %v13658_v56, %v14141_v47 }
 0x405   :  { %v13662_v45 = vpop.eup %13661  ;;  %1892 = vmatprep.subr.bf16.mxu0 %v12732_v19  ;;  %v1044_v51 = vmul.f32 %v13660_v0, %v14156_v53  ;;  %v12736_v53 = vld [vmem:[#allocation5 + $0x250] ss:$24 sps:$4 sm:$0xff]  }
 0x406   :  { %13673 = vrsqrt.f32 %v990_v42  ;;  %v991_v28 = vadd.f32 1e-05, %v959_v40  ;;  %v1047_v27 = vmul.f32 %v13662_v45, %v14134_v44 }
 0x407   :  { %13675 = vrsqrt.f32 %v988_v5  ;;  %v14405_v17 = vpack.c.bf16 %v1046_v58, %v1044_v51 }
 0x408   :  { %13677 = vrsqrt.f32 %v991_v28  ;;  %1893 = vmatpush2.bf16.msra.mxu0 %v12730_v4  ;;  %v14403_v26 = vpack.c.bf16 %v1047_v27, %v1045_v39 }
 0x409   :  { %1894 = vmatprep.subr.bf16.mxu0 %v12735_v8  ;;  %v13664_v47 = vpop.eup %13663 }
 0x40a   :  { %1730 = vmatprep.mubr.bf16.mxu0 %v14403_v26  ;;  %1843 = vmatprep.mubr.bf16.mxu1 %v14403_v26  ;;  %v1049_v36 = vmul.f32 %v13664_v47, %v14120_v14 }
 0x40b   :  { %v13666_v50 = vpop.eup %13665  ;;  %1731 = vmatmul.mubr.bf16.gmra.mxu0 %v14405_v17  ;;  %1844 = vmatmul.mubr.bf16.gmra.mxu1 %v14405_v17 }
 0x40c   :  { %v13668_v44 = vpop.eup %13667  ;;  %1895 = vmatpush2.bf16.msra.mxu0 %v12733_v31  ;;  %v1050_v43 = vmul.f32 %v13666_v50, %v14113_v10 }
 0x40d   :  { %v13670_v9 = vpop.eup %13669  ;;  %1896 = vmatprep.subr.bf16.mxu0 %v12738_v54  ;;  %v1048_v30 = vmul.f32 %v13668_v44, %v14127_v18  ;;  %v12747_v18 = vld [vmem:[#allocation5 + $0x1c4] ss:$24 sps:$4 sm:$0xff]  }
 0x40e   :  { %v1051_v11 = vmul.f32 %v13670_v9, %v14106_v6 }
 0x40f   :  { %v1068_v24 = vpack.c.bf16 %v1050_v43, %v1048_v30 }
 0x410   :  { %1897 = vmatpush2.bf16.msra.mxu0 %v12736_v53  ;;  %v1069_v57 = vpack.c.bf16 %v1051_v11, %v1049_v36 }
 0x411   :  { %1898 = vmatprep.subr.bf16.mxu0 %v12741_v25  ;;  %v13672_v23 = vpop.eup %13671 }
 0x412   :  { %1740 = vmatprep.mubr.bf16.mxu0 %v1069_v57  ;;  %1853 = vmatprep.mubr.bf16.mxu1 %v1069_v57  ;;  %v1053_v22 = vmul.f32 %v13672_v23, %v14091_v61  ;;  %v16781_v61 = vmov 0  }
 0x413   :  { %v13674_v34 = vpop.eup %13673  ;;  %1741 = vmatmul.mubr.bf16.gmra.mxu0 %v1068_v24  ;;  %1854 = vmatmul.mubr.bf16.gmra.mxu1 %v1068_v24 }
 0x414   :  { %v13676_v10 = vpop.eup %13675  ;;  %1899 = vmatpush2.bf16.msra.mxu0 %v12739_v29  ;;  %v1054_v6 = vmul.f32 %v13674_v34, %v14086_v59  ;;  %v12748_v59 = vld [vmem:[#allocation5 + $0x190] ss:$24 sps:$4 sm:$0xff]  }
 0x415   :  { %v13678_v14 = vpop.eup %13677  ;;  %1900 = vmatprep.subr.bf16.mxu0 %v12744_v35  ;;  %v1052_v33 = vmul.f32 %v13676_v10, %v14101_v3 }
 0x416   :  { %v1055_v52 = vmul.f32 %v13678_v14, %v14096_v63 }
 0x417   :  { %v1070_v21 = vpack.c.bf16 %v1054_v6, %v1052_v33 }
 0x418   :  { %1901 = vmatpush2.bf16.msra.mxu0 %v12742_v2  ;;  %v1071_v46 = vpack.c.bf16 %v1055_v52, %v1053_v22 }
 0x419   :  { %1902 = vmatprep.subr.bf16.mxu0 %v12747_v18 }
 0x41a   :  { %1750 = vmatprep.mubr.bf16.mxu0 %v1071_v46  ;;  %1863 = vmatprep.mubr.bf16.mxu1 %v1071_v46 }
 0x41b   :  { %1751 = vmatmul.mubr.bf16.gmra.mxu0 %v1070_v21  ;;  %1864 = vmatmul.mubr.bf16.gmra.mxu1 %v1070_v21 }
 0x41c   :  { %1903 = vmatpush2.bf16.msra.mxu0 %v12745_v55  ;;  %1906 = vmatprep.mubr.bf16.mxu0 %v14343_v38 }
 0x41d   :  { %1904 = vmatprep.subr.bf16.mxu0 %v12750_v32  ;;  %2131 = vmatprep.mubr.bf16.mxu1 %v16781_v61 }
 0x420   :  { %1905 = vmatpush2.bf16.msra.mxu0 %v12748_v59 }
 0x423   :  { %1907 = vmatmul.mubr.bf16.vlgmr.msra.gmra.mxu0 %v14345_v37 }
 0x424   :  { %1916 = vmatprep.mubr.bf16.mxu0 %v14355_v16 }
 0x42b   :  { %1917 = vmatmul.mubr.bf16.gmra.mxu0 %v14357_v62 }
 0x42c   :  { %1926 = vmatprep.mubr.bf16.mxu0 %v14367_v20 }
 0x433   :  { %1927 = vmatmul.mubr.bf16.gmra.mxu0 %v14369_v49 }
 0x434   :  { %1936 = vmatprep.mubr.bf16.mxu0 %v14379_v48 }
 0x43b   :  { %1937 = vmatmul.mubr.bf16.gmra.mxu0 %v14381_v13 }
 0x43c   :  { %1946 = vmatprep.mubr.bf16.mxu0 %v14391_v7 }
 0x443   :  { %1947 = vmatmul.mubr.bf16.gmra.mxu0 %v14393_v60 }
 0x444   :  { %1956 = vmatprep.mubr.bf16.mxu0 %v14403_v26 }
 0x44b   :  { %1957 = vmatmul.mubr.bf16.gmra.mxu0 %v14405_v17 }
 0x44c   :  { %1966 = vmatprep.mubr.bf16.mxu0 %v1069_v57 }
 0x453   :  { %1967 = vmatmul.mubr.bf16.gmra.mxu0 %v1068_v24 }
 0x454   :  { %1976 = vmatprep.mubr.bf16.mxu0 %v1071_v46 }
 0x45b   :  { %1977 = vmatmul.mubr.bf16.gmra.mxu0 %v1070_v21 }
 0x45c   :  { %2341 = vmatprep.mubr.bf16.mxu0 %v16781_v61 }
 0x4a3   :  { %v14433_v63 = vpop.f32.mrf.mxu0  ;;  %v14435_v3 = vpop.f32.mrf.mxu1 }
 0x4a4   :  { %16847 = vst [vmem:[#allocation13_spill] sm:$0xff] %v14433_v63  ;;  %16848 = vst [vmem:[#allocation14_spill] sm:$0xff] %v14435_v3 }
 0x4a5   :  { %v14437_v38 = vpop.f32.mrf.mxu0  ;;  %v14439_v37 = vpop.f32.mrf.mxu1 }
 0x4a6   :  { %16849 = vst [vmem:[#allocation15_spill] sm:$0xff] %v14439_v37 }
 0x4a7   :  { %v14441_v16 = vpop.f32.mrf.mxu0  ;;  %v14443_v62 = vpop.f32.mrf.mxu1 }
 0x4a8   :  { %16850 = vst [vmem:[#allocation16_spill] sm:$0xff] %v14441_v16  ;;  %16851 = vst [vmem:[#allocation17_spill] sm:$0xff] %v14443_v62 }
 0x4a9   :  { %v14449_v48 = vpop.f32.mrf.mxu0  ;;  %v14451_v13 = vpop.f32.mrf.mxu1 }
 0x4aa   :  { %16852 = vst [vmem:[#allocation18_spill] sm:$0xff] %v14449_v48  ;;  %16853 = vst [vmem:[#allocation19_spill] sm:$0xff] %v14451_v13 }
 0x4ab   :  { %v14453_v7 = vpop.f32.mrf.mxu0  ;;  %v14455_v60 = vpop.f32.mrf.mxu1 }
 0x4ac   :  { %16854 = vst [vmem:[#allocation20_spill] sm:$0xff] %v14453_v7  ;;  %16855 = vst [vmem:[#allocation21_spill] sm:$0xff] %v14455_v60 }
 0x4ad   :  { %v14457_v19 = vpop.f32.mrf.mxu0  ;;  %v14459_v12 = vpop.f32.mrf.mxu1 }
 0x4af   :  { %v14461_v1 = vpop.f32.mrf.mxu0  ;;  %v14463_v15 = vpop.f32.mrf.mxu1 }
 0x4b0   :  { %16856 = vst [vmem:[#allocation22_spill] sm:$0xff] %v14461_v1  ;;  %16857 = vst [vmem:[#allocation23_spill] sm:$0xff] %v14463_v15 }
 0x4b1   :  { %v14469_v41 = vpop.f32.mrf.mxu0  ;;  %v14471_v0 = vpop.f32.mrf.mxu1 }
 0x4b3   :  { %v14473_v42 = vpop.f32.mrf.mxu0  ;;  %v14475_v40 = vpop.f32.mrf.mxu1 }
 0x4b5   :  { %v14477_v4 = vpop.f32.mrf.mxu0  ;;  %v14479_v45 = vpop.f32.mrf.mxu1 }
 0x4b7   :  { %v14481_v58 = vpop.f32.mrf.mxu0  ;;  %v14483_v8 = vpop.f32.mrf.mxu1 }
 0x4b9   :  { %v14485_v28 = vpop.f32.mrf.mxu0  ;;  %v14487_v39 = vpop.f32.mrf.mxu1 }
 0x4bb   :  { %v14489_v27 = vpop.f32.mrf.mxu0  ;;  %v14491_v51 = vpop.f32.mrf.mxu1 }
 0x4bd   :  { %v14493_v26 = vpop.f32.mrf.mxu0  ;;  %v14495_v31 = vpop.f32.mrf.mxu1 }
 0x4bf   :  { %v14497_v17 = vpop.f32.mrf.mxu0  ;;  %v14499_v54 = vpop.f32.mrf.mxu1 }
 0x4c1   :  { %v14501_v47 = vpop.f32.mrf.mxu0  ;;  %v14503_v50 = vpop.f32.mrf.mxu1 }
 0x4c3   :  { %v14505_v44 = vpop.f32.mrf.mxu0  ;;  %v14507_v53 = vpop.f32.mrf.mxu1 }
 0x4c5   :  { %v14509_v9 = vpop.f32.mrf.mxu0  ;;  %v14511_v43 = vpop.f32.mrf.mxu1 }
 0x4c7   :  { %v14513_v25 = vpop.f32.mrf.mxu0  ;;  %v14515_v36 = vpop.f32.mrf.mxu1 }
 0x4c9   :  { %v1728_v11 = vpop.f32.mrf.mxu0  ;;  %v1841_v30 = vpop.f32.mrf.mxu1 }
 0x4cb   :  { %v1732_v57 = vpop.f32.mrf.mxu0  ;;  %v1845_v29 = vpop.f32.mrf.mxu1 }
 0x4cd   :  { %v1734_v24 = vpop.f32.mrf.mxu0  ;;  %v1847_v35 = vpop.f32.mrf.mxu1 }
 0x4cf   :  { %v1736_v23 = vpop.f32.mrf.mxu0  ;;  %v1849_v34 = vpop.f32.mrf.mxu1 }
 0x4d1   :  { %v1738_v10 = vpop.f32.mrf.mxu0  ;;  %v1851_v2 = vpop.f32.mrf.mxu1 }
 0x4d3   :  { %v1742_v14 = vpop.f32.mrf.mxu0  ;;  %v1855_v6 = vpop.f32.mrf.mxu1 }
 0x4d5   :  { %v1744_v18 = vpop.f32.mrf.mxu0  ;;  %v1857_v22 = vpop.f32.mrf.mxu1 }
 0x4d7   :  { %v1746_v52 = vpop.f32.mrf.mxu0  ;;  %v1859_v33 = vpop.f32.mrf.mxu1 }
 0x4d8   :  { %v2023_v13 = vpack.c.bf16 %v1746_v52, %v1742_v14  ;;  %v2025_v37 = vpack.c.bf16 %v1859_v33, %v1855_v6  ;;  %v16871_v14 = vld [vmem:[#allocation14_spill] sm:$0xff]  ;;  %v16873_v52 = vmov 0  }
 0x4d9   :  { %v1748_v46 = vpop.f32.mrf.mxu0  ;;  %v1861_v55 = vpop.f32.mrf.mxu1 }
 0x4da   :  { %v2024_v15 = vpack.c.bf16 %v1748_v46, %v1744_v18  ;;  %v2026_v7 = vpack.c.bf16 %v1861_v55, %v1857_v22  ;;  %v12753_v46 = vld [vmem:[#allocation3 + $0x8] sm:$0xff]  }
 0x4db   :  { %v1752_v21 = vpop.f32.mrf.mxu0  ;;  %v1865_v32 = vpop.f32.mrf.mxu1  ;;  %v12754_v55 = vld [vmem:[#allocation3 + $0x48] sm:$0xff]  }
 0x4dd   :  { %v1754_v59 = vpop.f32.mrf.mxu0  ;;  %v1867_v61 = vpop.f32.mrf.mxu1 }
 0x4df   :  { %v1756_v49 = vpop.f32.mrf.mxu0  ;;  %v1869_v20 = vpop.f32.mrf.mxu1 }
 0x4e0   :  { %v2029_v63 = vpack.c.bf16 %v1756_v49, %v1752_v21  ;;  %v2031_v16 = vpack.c.bf16 %v1869_v20, %v1865_v32 }
 0x4e1   :  { %v1758_v5 = vpop.f32.mrf.mxu0  ;;  %v1871_v56 = vpop.f32.mrf.mxu1 }
 0x4e2   :  { %v2030_v3 = vpack.c.bf16 %v1758_v5, %v1754_v59  ;;  %v2032_v62 = vpack.c.bf16 %v1871_v56, %v1867_v61  ;;  %v2018_v5 = vpack.c.bf16 %v1738_v10, %v1734_v24  ;;  %v2020_v61 = vpack.c.bf16 %v1851_v2, %v1847_v35  ;;  %v12751_v24 = vld [vmem:[#allocation3] sm:$0xff]  }
 0x4e3   :  { %v14517_v60 = vpop.f32.mrf.mxu0  ;;  %v12752_v35 = vld [vmem:[#allocation3 + $0x40] sm:$0xff]  }
 0x4e4   :  { %2099 = vmatprep.subr.bf16.mxu1 %v2030_v3  ;;  %2309 = vmatprep.subr.bf16.mxu0 %v2032_v62  ;;  %v2017_v3 = vpack.c.bf16 %v1736_v23, %v1732_v57  ;;  %v2012_v62 = vpack.c.bf16 %v1728_v11, %v14509_v9  ;;  %v2006_v57 = vpack.c.bf16 %v14501_v47, %v14493_v26  ;;  %v16867_v23 = vld [vmem:[#allocation16_spill] sm:$0xff]  ;;  %v16870_v2 = vld [vmem:[#allocation17_spill] sm:$0xff] }
 0x4e5   :  { %v14519_v1 = vpop.f32.mrf.mxu0  ;;  %2100 = vmatpush1.bf16.msra.mxu1 %v2029_v63  ;;  %2310 = vmatpush1.bf16.msra.mxu0 %v2031_v16  ;;  %v2019_v63 = vpack.c.bf16 %v1849_v34, %v1845_v29  ;;  %v2008_v9 = vpack.c.bf16 %v14503_v50, %v14495_v31  ;;  %v2000_v26 = vpack.c.bf16 %v14485_v28, %v14477_v4  ;;  %v16868_v34 = vld [vmem:[#allocation13_spill] sm:$0xff] }
 0x4e6   :  { %2101 = vmatprep.subr.bf16.mxu1 %v2024_v15  ;;  %2311 = vmatprep.subr.bf16.mxu0 %v2026_v7  ;;  %v2014_v7 = vpack.c.bf16 %v1841_v30, %v14511_v43  ;;  %v2002_v31 = vpack.c.bf16 %v14487_v39, %v14479_v45  ;;  %v1994_v4 = vpack.c.bf16 %v14469_v41, %v14457_v19  ;;  %v16861_v19 = vld [vmem:[#allocation22_spill] sm:$0xff]  ;;  %v16862_v41 = vld [vmem:[#allocation20_spill] sm:$0xff] }
 0x4e7   :  { %v14521_v48 = vpop.f32.mrf.mxu0  ;;  %v1996_v45 = vpack.c.bf16 %v14471_v0, %v14459_v12  ;;  %v16864_v12 = vld [vmem:[#allocation23_spill] sm:$0xff]  ;;  %v16865_v0 = vld [vmem:[#allocation21_spill] sm:$0xff]  ;;  %v16869_v10 = vpack.c.bf16 %v16867_v23, %v16868_v34  ;;  %v16872_v6 = vpack.c.bf16 %v16870_v2, %v16871_v14 }
 0x4e8   :  { %v1991_v20 = vpack.c.bf16 %v14521_v48, %v14517_v60  ;;  %v16866_v30 = vpack.c.bf16 %v16864_v12, %v16865_v0  ;;  %v12763_v12 = vld [vmem:[#allocation3 + $0x30] sm:$0xff]   ;;  %v12786_v48 = vld [vmem:[#allocation5 + $0x42c] ss:$24 sps:$4 sm:$0xff]   ;;  %v12781_v60 = vld [vmem:[#allocation5 + $0x420] ss:$24 sps:$4 sm:$0xff]  }
 0x4e9   :  { %v14525_v49 = vpop.f32.mrf.mxu0  ;;  %2102 = vmatpush1.bf16.msra.mxu1 %v2023_v13  ;;  %2312 = vmatpush1.bf16.msra.mxu0 %v2025_v37  ;;  %v2011_v13 = vpack.c.bf16 %v14513_v25, %v14505_v44  ;;  %v2013_v37 = vpack.c.bf16 %v14515_v36, %v14507_v53  ;;  %v2005_v44 = vpack.c.bf16 %v14497_v17, %v14489_v27  ;;  %v12764_v0 = vld [vmem:[#allocation3 + $0x70] sm:$0xff]   ;;  %v12795_v2 = vld [vmem:[#allocation5 + $0x3c4] ss:$24 sps:$4 sm:$0xff]  }
 0x4ea   :  { %2103 = vmatprep.subr.bf16.mxu1 %v2018_v5  ;;  %2313 = vmatprep.subr.bf16.mxu0 %v2020_v61  ;;  %v2007_v53 = vpack.c.bf16 %v14499_v54, %v14491_v51  ;;  %v1999_v27 = vpack.c.bf16 %v14481_v58, %v14473_v42  ;;  %v2001_v51 = vpack.c.bf16 %v14483_v8, %v14475_v40  ;;  %v16858_v42 = vld [vmem:[#allocation18_spill] sm:$0xff]  ;;  %v16859_v40 = vld [vmem:[#allocation15_spill] sm:$0xff] }
 0x4eb   :  { %v14527_v16 = vpop.f32.mrf.mxu0  ;;  %v1988_v58 = vpack.c.bf16 %v16858_v42, %v14437_v38  ;;  %v16860_v8 = vld [vmem:[#allocation19_spill] sm:$0xff]  ;;  %v16863_v36 = vpack.c.bf16 %v16861_v19, %v16862_v41  ;;  %v12798_v14 = vld [vmem:[#allocation5 + $0x3cc] ss:$24 sps:$4 sm:$0xff]  }
 0x4ec   :  { %v1990_v54 = vpack.c.bf16 %v16860_v8, %v16859_v40  ;;  %v12755_v61 = vld [vmem:[#allocation3 + $0x10] sm:$0xff]   ;;  %v12761_v40 = vld [vmem:[#allocation3 + $0x28] sm:$0xff]  }
 0x4ed   :  { %v14531_v15 = vpop.f32.mrf.mxu0  ;;  %2104 = vmatpush1.bf16.msra.mxu1 %v2017_v3  ;;  %2314 = vmatpush1.bf16.msra.mxu0 %v2019_v63  ;;  %v12756_v3 = vld [vmem:[#allocation3 + $0x50] sm:$0xff]   ;;  %v12762_v8 = vld [vmem:[#allocation3 + $0x68] sm:$0xff]  }
 0x4ee   :  { %2105 = vmatprep.subr.bf16.mxu1 %v2012_v62  ;;  %2315 = vmatprep.subr.bf16.mxu0 %v2014_v7 }
 0x4ef   :  { %v14537_v56 = vpop.f32.mrf.mxu0 }
 0x4f0   :  { %v1997_v43 = vpack.c.bf16 %v14537_v56, %v14527_v16  ;;  %v12783_v16 = vld [vmem:[#allocation5 + $0x424] ss:$24 sps:$4 sm:$0xff]  }
 0x4f1   :  { %v14545_v11 = vpop.f32.mrf.mxu0  ;;  %2106 = vmatpush1.bf16.msra.mxu1 %v2011_v13  ;;  %2316 = vmatpush1.bf16.msra.mxu0 %v2013_v37  ;;  %v12757_v37 = vld [vmem:[#allocation3 + $0x18] sm:$0xff]  }
 0x4f2   :  { %2107 = vmatprep.subr.bf16.mxu1 %v2006_v57  ;;  %2317 = vmatprep.subr.bf16.mxu0 %v2008_v9  ;;  %v12758_v57 = vld [vmem:[#allocation3 + $0x58] sm:$0xff]   ;;  %v1998_v34 = vpack.c.bf16 %v14545_v11, %v14531_v15  ;;  %v12768_v15 = vld [vmem:[#allocation3 + $0x88] sm:$0xff]  }
 0x4f3   :  { %v14551_v25 = vpop.f32.mrf.mxu0  ;;  %v12780_v11 = vld [vmem:[#allocation5 + $0x45c] ss:$24 sps:$4 sm:$0xff]  }
 0x4f4   :  { %v12770_v56 = vld [vmem:[#allocation3 + $0x98] sm:$0xff]  }
 0x4f5   :  { %v14557_v47 = vpop.f32.mrf.mxu0  ;;  %2108 = vmatpush1.bf16.msra.mxu1 %v2005_v44  ;;  %2318 = vmatpush1.bf16.msra.mxu0 %v2007_v53 }
 0x4f6   :  { %2109 = vmatprep.subr.bf16.mxu1 %v2000_v26  ;;  %2319 = vmatprep.subr.bf16.mxu0 %v2002_v31  ;;  %v12759_v31 = vld [vmem:[#allocation3 + $0x20] sm:$0xff]  }
 0x4f7   :  { %v14563_v17 = vpop.f32.mrf.mxu0 }
 0x4f8   :  { %v2003_v23 = vpack.c.bf16 %v14563_v17, %v14551_v25  ;;  %v12767_v25 = vld [vmem:[#allocation3 + $0x80] sm:$0xff]   ;;  %v12775_v17 = vld [vmem:[#allocation5 + $0x450] ss:$24 sps:$4 sm:$0xff]  }
 0x4f9   :  { %v14569_v28 = vpop.f32.mrf.mxu0  ;;  %2110 = vmatpush1.bf16.msra.mxu1 %v1999_v27  ;;  %2320 = vmatpush1.bf16.msra.mxu0 %v2001_v51  ;;  %v12760_v27 = vld [vmem:[#allocation3 + $0x60] sm:$0xff]  }
 0x4fa   :  { %2111 = vmatprep.subr.bf16.mxu1 %v1994_v4  ;;  %2321 = vmatprep.subr.bf16.mxu0 %v1996_v45 }
 0x4fb   :  { %v14571_v39 = vpop.f32.mrf.mxu0 }
 0x4fd   :  { %v14577_v50 = vpop.f32.mrf.mxu0  ;;  %2112 = vmatpush1.bf16.msra.mxu1 %v16863_v36  ;;  %2322 = vmatpush1.bf16.msra.mxu0 %v16866_v30 }
 0x4fe   :  { %2113 = vmatprep.subr.bf16.mxu1 %v1988_v58  ;;  %2323 = vmatprep.subr.bf16.mxu0 %v1990_v54 }
 0x4ff   :  { %v14585_v29 = vpop.f32.mrf.mxu0 }
 0x501   :  { %v14587_v38 = vpop.f32.mrf.mxu0  ;;  %2114 = vmatpush1.bf16.msra.mxu1 %v16869_v10  ;;  %2324 = vmatpush1.bf16.msra.mxu0 %v16872_v6  ;;  %v12790_v10 = vld [vmem:[#allocation5 + $0x3f8] ss:$24 sps:$4 sm:$0xff]  }
 0x502   :  { %v2010_v30 = vpack.c.bf16 %v14587_v38, %v14577_v50  ;;  %v12765_v50 = vld [vmem:[#allocation3 + $0x38] sm:$0xff]  }
 0x503   :  { %v14595_v18 = vpop.f32.mrf.mxu0  ;;  %v12766_v38 = vld [vmem:[#allocation3 + $0x78] sm:$0xff]  }
 0x504   :  { %2132 = vmatmul.mubr.bf16.vlgmr.msra.gmra.mxu1 %v12751_v24  ;;  %2342 = vmatmul.mubr.bf16.vlgmr.msra.gmra.mxu0 %v12752_v35  ;;  %v2009_v24 = vpack.c.bf16 %v14585_v29, %v14571_v39  ;;  %v2004_v35 = vpack.c.bf16 %v14569_v28, %v14557_v47  ;;  %v1992_v47 = vpack.c.bf16 %v14525_v49, %v14519_v1  ;;  %v12769_v1 = vld [vmem:[#allocation3 + $0x90] sm:$0xff]   ;;  %v12793_v6 = vld [vmem:[#allocation5 + $0x3c0] ss:$24 sps:$4 sm:$0xff]  }
 0x505   :  { %v1950_v22 = vpop.f32.mrf.mxu0  ;;  %2141 = vmatprep.mubr.bf16.mxu1 %v16873_v52  ;;  %2351 = vmatprep.mubr.bf16.mxu0 %v16873_v52  ;;  %v12777_v49 = vld [vmem:[#allocation5 + $0x454] ss:$24 sps:$4 sm:$0xff]   ;;  %v12778_v28 = vld [vmem:[#allocation5 + $0x458] ss:$24 sps:$4 sm:$0xff]  }
 0x506   :  { %3449 = vmatprep.subr.bf16.mxu0 %v12777_v49  ;;  %v12792_v39 = vld [vmem:[#allocation5 + $0x3fc] ss:$24 sps:$4 sm:$0xff]   ;;  %v12787_v29 = vld [vmem:[#allocation5 + $0x3f0] ss:$24 sps:$4 sm:$0xff]  }
 0x507   :  { %v1952_v33 = vpop.f32.mrf.mxu0  ;;  %3450 = vmatpush1.bf16.msra.mxu0 %v12775_v17  ;;  %v12859_v49 = vld [vmem:[#allocation5 + $0x4b0] ss:$24 sps:$4 sm:$0xff]   ;;  %v12867_v17 = vld [vmem:[#allocation5 + $0x484] ss:$24 sps:$4 sm:$0xff]  }
 0x508   :  { %v2015_v36 = vpack.c.bf16 %v1952_v33, %v14595_v18  ;;  %3451 = vmatprep.subr.bf16.mxu0 %v12783_v16  ;;  %v12796_v18 = vld [vmem:[#allocation5 + $0x3c8] ss:$24 sps:$4 sm:$0xff]   ;;  %v12801_v33 = vld [vmem:[#allocation5 + $0x394] ss:$24 sps:$4 sm:$0xff]  }
 0x509   :  { %v1954_v21 = vpop.f32.mrf.mxu0  ;;  %v12865_v16 = vld [vmem:[#allocation5 + $0x480] ss:$24 sps:$4 sm:$0xff]  }
 0x50a   :  { %v2016_v41 = vpack.c.bf16 %v1954_v21, %v1950_v22  ;;  %v12771_v22 = vld [vmem:[#allocation3 + $0xa0] sm:$0xff]   ;;  %v12802_v21 = vld [vmem:[#allocation5 + $0x398] ss:$24 sps:$4 sm:$0xff]  }
 0x50b   :  { %v1958_v32 = vpop.f32.mrf.mxu0  ;;  %3452 = vmatpush1.bf16.msra.mxu0 %v12781_v60  ;;  %v12873_v60 = vld [vmem:[#allocation5 + $0x464] ss:$24 sps:$4 sm:$0xff]  }
 0x50c   :  { %2142 = vmatmul.mubr.bf16.gmra.mxu1 %v12753_v46  ;;  %2352 = vmatmul.mubr.bf16.gmra.mxu0 %v12754_v55  ;;  %v12804_v46 = vld [vmem:[#allocation5 + $0x39c] ss:$24 sps:$4 sm:$0xff]   ;;  %v12799_v55 = vld [vmem:[#allocation5 + $0x390] ss:$24 sps:$4 sm:$0xff]  }
 0x50d   :  { %v1960_v59 = vpop.f32.mrf.mxu0  ;;  %2151 = vmatprep.mubr.bf16.mxu1 %v16873_v52  ;;  %2361 = vmatprep.mubr.bf16.mxu0 %v16873_v52 }
 0x50f   :  { %v1962_v5 = vpop.f32.mrf.mxu0 }
 0x510   :  { %v2021_v19 = vpack.c.bf16 %v1962_v5, %v1958_v32  ;;  %v12807_v32 = vld [vmem:[#allocation5 + $0x364] ss:$24 sps:$4 sm:$0xff]   ;;  %v12805_v5 = vld [vmem:[#allocation5 + $0x360] ss:$24 sps:$4 sm:$0xff]  }
 0x511   :  { %v1964_v63 = vpop.f32.mrf.mxu0 }
 0x512   :  { %v2022_v54 = vpack.c.bf16 %v1964_v63, %v1960_v59  ;;  %v12810_v59 = vld [vmem:[#allocation5 + $0x36c] ss:$24 sps:$4 sm:$0xff]  }
 0x513   :  { %v1968_v62 = vpop.f32.mrf.mxu0  ;;  %v12813_v63 = vld [vmem:[#allocation5 + $0x334] ss:$24 sps:$4 sm:$0xff]  }
 0x514   :  { %2152 = vmatmul.mubr.bf16.gmra.mxu1 %v12755_v61  ;;  %2362 = vmatmul.mubr.bf16.gmra.mxu0 %v12756_v3  ;;  %v12808_v61 = vld [vmem:[#allocation5 + $0x368] ss:$24 sps:$4 sm:$0xff]  }
 0x515   :  { %v1970_v7 = vpop.f32.mrf.mxu0  ;;  %2161 = vmatprep.mubr.bf16.mxu1 %v16873_v52  ;;  %2371 = vmatprep.mubr.bf16.mxu0 %v16873_v52  ;;  %v12772_v3 = vld [vmem:[#allocation3 + $0xa8] sm:$0xff]  }
 0x517   :  { %v1972_v13 = vpop.f32.mrf.mxu0 }
 0x518   :  { %v2027_v58 = vpack.c.bf16 %v1972_v13, %v1968_v62  ;;  %v12816_v62 = vld [vmem:[#allocation5 + $0x33c] ss:$24 sps:$4 sm:$0xff]   ;;  %v12814_v13 = vld [vmem:[#allocation5 + $0x338] ss:$24 sps:$4 sm:$0xff]  }
 0x519   :  { %v1974_v9 = vpop.f32.mrf.mxu0 }
 0x51a   :  { %v2028_v42 = vpack.c.bf16 %v1974_v9, %v1970_v7  ;;  %v12811_v7 = vld [vmem:[#allocation5 + $0x330] ss:$24 sps:$4 sm:$0xff]   ;;  %v12817_v9 = vld [vmem:[#allocation5 + $0x300] ss:$24 sps:$4 sm:$0xff]  }
 0x51b   :  { %v1978_v44 = vpop.f32.mrf.mxu0 }
 0x51c   :  { %2162 = vmatmul.mubr.bf16.gmra.mxu1 %v12757_v37  ;;  %2372 = vmatmul.mubr.bf16.gmra.mxu0 %v12758_v57  ;;  %v12819_v37 = vld [vmem:[#allocation5 + $0x304] ss:$24 sps:$4 sm:$0xff]  }
 0x51d   :  { %v1980_v53 = vpop.f32.mrf.mxu0  ;;  %2171 = vmatprep.mubr.bf16.mxu1 %v16873_v52  ;;  %2381 = vmatprep.mubr.bf16.mxu0 %v16873_v52  ;;  %v12822_v57 = vld [vmem:[#allocation5 + $0x30c] ss:$24 sps:$4 sm:$0xff]  }
 0x51f   :  { %v1982_v26 = vpop.f32.mrf.mxu0 }
 0x520   :  { %v2033_v45 = vpack.c.bf16 %v1982_v26, %v1978_v44  ;;  %v12820_v44 = vld [vmem:[#allocation5 + $0x308] ss:$24 sps:$4 sm:$0xff]   ;;  %v12825_v26 = vld [vmem:[#allocation5 + $0x5d4] ss:$24 sps:$4 sm:$0xff]  }
 0x521   :  { %v1984_v51 = vpop.f32.mrf.mxu0 }
 0x522   :  { %v2034_v4 = vpack.c.bf16 %v1984_v51, %v1980_v53  ;;  %v12773_v53 = vld [vmem:[#allocation3 + $0xb0] sm:$0xff]  }
 0x523   :  { %v12826_v51 = vld [vmem:[#allocation5 + $0x5d8] ss:$24 sps:$4 sm:$0xff]  }
 0x524   :  { %2172 = vmatmul.mubr.bf16.gmra.mxu1 %v12759_v31  ;;  %2382 = vmatmul.mubr.bf16.gmra.mxu0 %v12760_v27  ;;  %v12828_v31 = vld [vmem:[#allocation5 + $0x5dc] ss:$24 sps:$4 sm:$0xff]   ;;  %v12823_v27 = vld [vmem:[#allocation5 + $0x5d0] ss:$24 sps:$4 sm:$0xff]  }
 0x525   :  { %2583 = vmatprep.subr.bf16.mxu1 %v2034_v4  ;;  %2181 = vmatprep.mubr.bf16.mxu1 %v16873_v52  ;;  %v12831_v4 = vld [vmem:[#allocation5 + $0x5a4] ss:$24 sps:$4 sm:$0xff]  }
 0x526   :  { %2584 = vmatpush1.bf16.msra.mxu1 %v2033_v45  ;;  %2391 = vmatprep.mubr.bf16.mxu0 %v16873_v52  ;;  %v12834_v45 = vld [vmem:[#allocation5 + $0x5ac] ss:$24 sps:$4 sm:$0xff]  }
 0x527   :  { %2585 = vmatprep.subr.bf16.mxu1 %v2028_v42  ;;  %v12829_v42 = vld [vmem:[#allocation5 + $0x5a0] ss:$24 sps:$4 sm:$0xff]  }
 0x52a   :  { %2586 = vmatpush1.bf16.msra.mxu1 %v2027_v58  ;;  %v12832_v58 = vld [vmem:[#allocation5 + $0x5a8] ss:$24 sps:$4 sm:$0xff]  }
 0x52b   :  { %2587 = vmatprep.subr.bf16.mxu1 %v2022_v54  ;;  %v12840_v54 = vld [vmem:[#allocation5 + $0x57c] ss:$24 sps:$4 sm:$0xff]  }
 0x52c   :  { %2182 = vmatmul.mubr.bf16.gmra.mxu1 %v12761_v40  ;;  %2392 = vmatmul.mubr.bf16.gmra.mxu0 %v12762_v8  ;;  %v12774_v40 = vld [vmem:[#allocation3 + $0xb8] sm:$0xff]   ;;  %v12837_v8 = vld [vmem:[#allocation5 + $0x574] ss:$24 sps:$4 sm:$0xff]  }
 0x52d   :  { %2191 = vmatprep.mubr.bf16.mxu1 %v16873_v52  ;;  %2401 = vmatprep.mubr.bf16.mxu0 %v16873_v52 }
 0x52e   :  { %2588 = vmatpush1.bf16.msra.mxu1 %v2021_v19  ;;  %v12835_v19 = vld [vmem:[#allocation5 + $0x570] ss:$24 sps:$4 sm:$0xff]  }
 0x52f   :  { %2589 = vmatprep.subr.bf16.mxu1 %v2016_v41  ;;  %v12838_v41 = vld [vmem:[#allocation5 + $0x578] ss:$24 sps:$4 sm:$0xff]  }
 0x532   :  { %2590 = vmatpush1.bf16.msra.mxu1 %v2015_v36  ;;  %v12843_v36 = vld [vmem:[#allocation5 + $0x544] ss:$24 sps:$4 sm:$0xff]  }
 0x533   :  { %2591 = vmatprep.subr.bf16.mxu1 %v2010_v30  ;;  %v12844_v30 = vld [vmem:[#allocation5 + $0x548] ss:$24 sps:$4 sm:$0xff]  }
 0x534   :  { %2192 = vmatmul.mubr.bf16.gmra.mxu1 %v12763_v12  ;;  %2402 = vmatmul.mubr.bf16.gmra.mxu0 %v12764_v0  ;;  %v12846_v12 = vld [vmem:[#allocation5 + $0x54c] ss:$24 sps:$4 sm:$0xff]   ;;  %v12841_v0 = vld [vmem:[#allocation5 + $0x540] ss:$24 sps:$4 sm:$0xff]  }
 0x535   :  { %2201 = vmatprep.mubr.bf16.mxu1 %v16873_v52  ;;  %2411 = vmatprep.mubr.bf16.mxu0 %v16873_v52 }
 0x536   :  { %2592 = vmatpush1.bf16.msra.mxu1 %v2009_v24  ;;  %v12849_v24 = vld [vmem:[#allocation5 + $0x514] ss:$24 sps:$4 sm:$0xff]  }
 0x537   :  { %2593 = vmatprep.subr.bf16.mxu1 %v2004_v35  ;;  %v12852_v35 = vld [vmem:[#allocation5 + $0x51c] ss:$24 sps:$4 sm:$0xff]  }
 0x53a   :  { %2594 = vmatpush1.bf16.msra.mxu1 %v2003_v23  ;;  %v12847_v23 = vld [vmem:[#allocation5 + $0x510] ss:$24 sps:$4 sm:$0xff]  }
 0x53b   :  { %2595 = vmatprep.subr.bf16.mxu1 %v1998_v34  ;;  %v12858_v34 = vld [vmem:[#allocation5 + $0x4ec] ss:$24 sps:$4 sm:$0xff]  }
 0x53c   :  { %2202 = vmatmul.mubr.bf16.gmra.mxu1 %v12765_v50  ;;  %2412 = vmatmul.mubr.bf16.gmra.mxu0 %v12766_v38  ;;  %v12850_v50 = vld [vmem:[#allocation5 + $0x518] ss:$24 sps:$4 sm:$0xff]   ;;  %v12855_v38 = vld [vmem:[#allocation5 + $0x4e4] ss:$24 sps:$4 sm:$0xff]  }
 0x53d   :  { %2615 = vmatprep.mubr.bf16.mxu1 %v16873_v52 }
 0x53e   :  { %2596 = vmatpush1.bf16.msra.mxu1 %v1997_v43  ;;  %v12789_v43 = vld [vmem:[#allocation5 + $0x3f4] ss:$24 sps:$4 sm:$0xff]  }
 0x53f   :  { %2597 = vmatprep.subr.bf16.mxu1 %v1992_v47  ;;  %3453 = vmatprep.subr.bf16.mxu0 %v12789_v43  ;;  %v12853_v47 = vld [vmem:[#allocation5 + $0x4e0] ss:$24 sps:$4 sm:$0xff]  }
 0x540   :  { %3454 = vmatpush1.bf16.msra.mxu0 %v12787_v29 }
 0x541   :  { %3455 = vmatprep.subr.bf16.mxu0 %v12795_v2 }
 0x542   :  { %2598 = vmatpush1.bf16.msra.mxu1 %v1991_v20  ;;  %v12784_v20 = vld [vmem:[#allocation5 + $0x428] ss:$24 sps:$4 sm:$0xff]  }
 0x543   :  { %3562 = vmatprep.subr.bf16.mxu1 %v12780_v11  ;;  %v12862_v11 = vld [vmem:[#allocation5 + $0x4b8] ss:$24 sps:$4 sm:$0xff]  }
 0x544   :  { %3456 = vmatpush1.bf16.msra.mxu0 %v12793_v6 }
 0x545   :  { %2616 = vmatmul.mubr.bf16.vlgmr.msra.gmra.mxu1 %v12767_v25  ;;  %3457 = vmatprep.subr.bf16.mxu0 %v12801_v33  ;;  %v12856_v25 = vld [vmem:[#allocation5 + $0x4e8] ss:$24 sps:$4 sm:$0xff]  }
 0x546   :  { %2625 = vmatprep.mubr.bf16.mxu1 %v16873_v52  ;;  %3563 = vmatpush1.bf16.msra.mxu1 %v12778_v28  ;;  %v12870_v28 = vld [vmem:[#allocation5 + $0x48c] ss:$24 sps:$4 sm:$0xff]  }
 0x547   :  { %3564 = vmatprep.subr.bf16.mxu1 %v12786_v48  ;;  %v12868_v48 = vld [vmem:[#allocation5 + $0x488] ss:$24 sps:$4 sm:$0xff]  }
 0x548   :  { %3458 = vmatpush1.bf16.msra.mxu0 %v12799_v55 }
 0x549   :  { %3459 = vmatprep.subr.bf16.mxu0 %v12807_v32 }
 0x54a   :  { %3565 = vmatpush1.bf16.msra.mxu1 %v12784_v20 }
 0x54b   :  { %3566 = vmatprep.subr.bf16.mxu1 %v12792_v39 }
 0x54c   :  { %3460 = vmatpush1.bf16.msra.mxu0 %v12805_v5 }
 0x54d   :  { %2626 = vmatmul.mubr.bf16.gmra.mxu1 %v12768_v15  ;;  %3461 = vmatprep.subr.bf16.mxu0 %v12813_v63  ;;  %v12861_v15 = vld [vmem:[#allocation5 + $0x4b4] ss:$24 sps:$4 sm:$0xff]  }
 0x54e   :  { %2635 = vmatprep.mubr.bf16.mxu1 %v16873_v52  ;;  %3567 = vmatpush1.bf16.msra.mxu1 %v12790_v10 }
 0x54f   :  { %3568 = vmatprep.subr.bf16.mxu1 %v12798_v14 }
 0x550   :  { %3462 = vmatpush1.bf16.msra.mxu0 %v12811_v7 }
 0x551   :  { %3463 = vmatprep.subr.bf16.mxu0 %v12819_v37 }
 0x552   :  { %3569 = vmatpush1.bf16.msra.mxu1 %v12796_v18 }
 0x553   :  { %3570 = vmatprep.subr.bf16.mxu1 %v12804_v46 }
 0x554   :  { %3464 = vmatpush1.bf16.msra.mxu0 %v12817_v9 }
 0x555   :  { %2636 = vmatmul.mubr.bf16.gmra.mxu1 %v12769_v1  ;;  %3465 = vmatprep.subr.bf16.mxu0 %v12825_v26  ;;  %v12864_v1 = vld [vmem:[#allocation5 + $0x4bc] ss:$24 sps:$4 sm:$0xff]  }
 0x556   :  { %2645 = vmatprep.mubr.bf16.mxu1 %v16873_v52  ;;  %3571 = vmatpush1.bf16.msra.mxu1 %v12802_v21 }
 0x557   :  { %3572 = vmatprep.subr.bf16.mxu1 %v12810_v59 }
 0x558   :  { %3466 = vmatpush2.bf16.msra.mxu0 %v12823_v27 }
 0x559   :  { %3467 = vmatprep.subr.bf16.mxu0 %v12831_v4 }
 0x55a   :  { %3573 = vmatpush1.bf16.msra.mxu1 %v12808_v61 }
 0x55b   :  { %3574 = vmatprep.subr.bf16.mxu1 %v12816_v62 }
 0x55c   :  { %3468 = vmatpush2.bf16.msra.mxu0 %v12829_v42 }
 0x55d   :  { %2646 = vmatmul.mubr.bf16.gmra.mxu1 %v12770_v56  ;;  %3469 = vmatprep.subr.bf16.mxu0 %v12837_v8 }
 0x55e   :  { %2655 = vmatprep.mubr.bf16.mxu1 %v16873_v52  ;;  %3575 = vmatpush1.bf16.msra.mxu1 %v12814_v13 }
 0x55f   :  { %3576 = vmatprep.subr.bf16.mxu1 %v12822_v57 }
 0x560   :  { %3470 = vmatpush2.bf16.msra.mxu0 %v12835_v19 }
 0x561   :  { %3471 = vmatprep.subr.bf16.mxu0 %v12843_v36 }
 0x562   :  { %3577 = vmatpush1.bf16.msra.mxu1 %v12820_v44 }
 0x563   :  { %3578 = vmatprep.subr.bf16.mxu1 %v12828_v31 }
 0x564   :  { %3472 = vmatpush2.bf16.msra.mxu0 %v12841_v0 }
 0x565   :  { %2656 = vmatmul.mubr.bf16.gmra.mxu1 %v12771_v22  ;;  %3473 = vmatprep.subr.bf16.mxu0 %v12849_v24 }
 0x566   :  { %2665 = vmatprep.mubr.bf16.mxu1 %v16873_v52  ;;  %3579 = vmatpush2.bf16.msra.mxu1 %v12826_v51 }
 0x567   :  { %3580 = vmatprep.subr.bf16.mxu1 %v12834_v45 }
 0x568   :  { %3474 = vmatpush2.bf16.msra.mxu0 %v12847_v23 }
 0x569   :  { %3475 = vmatprep.subr.bf16.mxu0 %v12855_v38 }
 0x56a   :  { %3581 = vmatpush2.bf16.msra.mxu1 %v12832_v58 }
 0x56b   :  { %3582 = vmatprep.subr.bf16.mxu1 %v12840_v54 }
 0x56c   :  { %3476 = vmatpush2.bf16.msra.mxu0 %v12853_v47 }
 0x56d   :  { %2666 = vmatmul.mubr.bf16.gmra.mxu1 %v12772_v3  ;;  %3477 = vmatprep.subr.bf16.mxu0 %v12861_v15 }
 0x56e   :  { %2675 = vmatprep.mubr.bf16.mxu1 %v16873_v52  ;;  %3583 = vmatpush2.bf16.msra.mxu1 %v12838_v41 }
 0x56f   :  { %3584 = vmatprep.subr.bf16.mxu1 %v12846_v12 }
 0x570   :  { %3478 = vmatpush2.bf16.msra.mxu0 %v12859_v49 }
 0x571   :  { %3479 = vmatprep.subr.bf16.mxu0 %v12867_v17 }
 0x572   :  { %3585 = vmatpush2.bf16.msra.mxu1 %v12844_v30 }
 0x573   :  { %3586 = vmatprep.subr.bf16.mxu1 %v12852_v35 }
 0x574   :  { %3480 = vmatpush2.bf16.msra.mxu0 %v12865_v16 }
 0x575   :  { %2676 = vmatmul.mubr.bf16.gmra.mxu1 %v12773_v53  ;;  %3675 = vmatprep.subr.bf16.mxu0 %v12873_v60 }
 0x576   :  { %2685 = vmatprep.mubr.bf16.mxu1 %v16873_v52  ;;  %3587 = vmatpush2.bf16.msra.mxu1 %v12850_v50 }
 0x577   :  { %3588 = vmatprep.subr.bf16.mxu1 %v12858_v34 }
 0x57a   :  { %3589 = vmatpush2.bf16.msra.mxu1 %v12856_v25 }
 0x57b   :  { %3590 = vmatprep.subr.bf16.mxu1 %v12864_v1 }
 0x57d   :  { %2686 = vmatmul.mubr.bf16.gmra.mxu1 %v12774_v40 }
 0x57e   :  { %3591 = vmatpush2.bf16.msra.mxu1 %v12862_v11 }
 0x57f   :  { %3592 = vmatprep.subr.bf16.mxu1 %v12870_v28 }
 0x582   :  { %3593 = vmatpush2.bf16.msra.mxu1 %v12868_v48 }
 0x5c4   :  { %v2133_v20 = vpop.f32.mrf.mxu1  ;;  %v2343_v56 = vpop.f32.mrf.mxu0 }
 0x5c5   :  { %v2454_v38 = vadd.f32 %v2343_v56, %v2133_v20 }
 0x5c6   :  { %v2135_v43 = vpop.f32.mrf.mxu1  ;;  %v2345_v39 = vpop.f32.mrf.mxu0 }
 0x5c7   :  { %v2455_v25 = vadd.f32 %v2345_v39, %v2135_v43 }
 0x5c8   :  { %v2137_v29 = vpop.f32.mrf.mxu1  ;;  %v2347_v2 = vpop.f32.mrf.mxu0 }
 0x5c9   :  { %v2456_v15 = vadd.f32 %v2347_v2, %v2137_v29 }
 0x5ca   :  { %v2139_v10 = vpop.f32.mrf.mxu1  ;;  %v2349_v18 = vpop.f32.mrf.mxu0 }
 0x5cb   :  { %v2457_v11 = vadd.f32 %v2349_v18, %v2139_v10  ;;  %v12871_v18 = vld [vmem:[#allocation5 + $0x460] ss:$24 sps:$4 sm:$0xff]  }
 0x5cc   :  { %v2143_v14 = vpop.f32.mrf.mxu1  ;;  %v2353_v46 = vpop.f32.mrf.mxu0 }
 0x5ce   :  { %v14638_v6 = vpop.f32.mrf.mxu1  ;;  %v2355_v32 = vpop.f32.mrf.mxu0 }
 0x5cf   :  { %v2459_v39 = vadd.f32 %v2355_v32, %v14638_v6 }
 0x5d0   :  { %v14640_v22 = vpop.f32.mrf.mxu1  ;;  %v2357_v61 = vpop.f32.mrf.mxu0 }
 0x5d1   :  { %v2460_v29 = vadd.f32 %v2357_v61, %v14640_v22  ;;  %v12874_v61 = vld [vmem:[#allocation5 + $0x430] ss:$24 sps:$4 sm:$0xff]  }
 0x5d2   :  { %v14642_v33 = vpop.f32.mrf.mxu1  ;;  %v2359_v62 = vpop.f32.mrf.mxu0 }
 0x5d4   :  { %v14644_v55 = vpop.f32.mrf.mxu1  ;;  %v14660_v37 = vpop.f32.mrf.mxu0 }
 0x5d6   :  { %v14646_v21 = vpop.f32.mrf.mxu1  ;;  %v14666_v44 = vpop.f32.mrf.mxu0 }
 0x5d8   :  { %v14648_v59 = vpop.f32.mrf.mxu1  ;;  %v14672_v31 = vpop.f32.mrf.mxu0 }
 0x5da   :  { %v14650_v5 = vpop.f32.mrf.mxu1  ;;  %v14678_v4 = vpop.f32.mrf.mxu0 }
 0x5dc   :  { %v14652_v3 = vpop.f32.mrf.mxu1  ;;  %v14684_v58 = vpop.f32.mrf.mxu0 }
 0x5de   :  { %v14654_v63 = vpop.f32.mrf.mxu1  ;;  %v14690_v54 = vpop.f32.mrf.mxu0 }
 0x5e0   :  { %v14656_v7 = vpop.f32.mrf.mxu1  ;;  %v14696_v36 = vpop.f32.mrf.mxu0 }
 0x5e2   :  { %v14658_v13 = vpop.f32.mrf.mxu1  ;;  %v14702_v30 = vpop.f32.mrf.mxu0 }
 0x5e4   :  { %v14662_v57 = vpop.f32.mrf.mxu1  ;;  %v14708_v23 = vpop.f32.mrf.mxu0 }
 0x5e6   :  { %v14664_v9 = vpop.f32.mrf.mxu1  ;;  %v14710_v34 = vpop.f32.mrf.mxu0 }
 0x5e8   :  { %v14668_v53 = vpop.f32.mrf.mxu1  ;;  %v14712_v16 = vpop.f32.mrf.mxu0 }
 0x5ea   :  { %v14670_v26 = vpop.f32.mrf.mxu1 }
 0x5ec   :  { %v14674_v27 = vpop.f32.mrf.mxu1 }
 0x5ee   :  { %v14676_v51 = vpop.f32.mrf.mxu1 }
 0x5f0   :  { %v14680_v45 = vpop.f32.mrf.mxu1 }
 0x5f2   :  { %v14682_v42 = vpop.f32.mrf.mxu1 }
 0x5f4   :  { %v14686_v40 = vpop.f32.mrf.mxu1 }
 0x5f6   :  { %v14688_v8 = vpop.f32.mrf.mxu1 }
 0x5f8   :  { %v14692_v19 = vpop.f32.mrf.mxu1 }
 0x5fa   :  { %v14694_v41 = vpop.f32.mrf.mxu1 }
 0x5fb   :  { %16874 = vst [vmem:[#allocation18_spill] sm:$0xff] %v14694_v41  ;;  %v14716_v41 = vpop.f32.mrf.mxu0 }
 0x5fc   :  { %v14698_v12 = vpop.f32.mrf.mxu1 }
 0x5fd   :  { %16875 = vst [vmem:[#allocation15_spill] sm:$0xff] %v14698_v12 }
 0x5fe   :  { %v14700_v0 = vpop.f32.mrf.mxu1 }
 0x5ff   :  { %16876 = vst [vmem:[#allocation19_spill] sm:$0xff] %v14700_v0  ;;  %v2458_v0 = vadd.f32 %v2353_v46, %v2143_v14 }
 0x600   :  { %v14704_v24 = vpop.f32.mrf.mxu1 }
 0x601   :  { %16877 = vst [vmem:[#allocation22_spill] sm:$0xff] %v14704_v24 }
 0x602   :  { %v14706_v35 = vpop.f32.mrf.mxu1 }
 0x603   :  { %16878 = vst [vmem:[#allocation20_spill] sm:$0xff] %v14706_v35 }
 0x605   :  { %v2617_v50 = vpop.f32.mrf.mxu1 }
 0x606   :  { %v2728_v1 = vadd.f32 %v2617_v50, %v2454_v38  ;;  %v12876_v38 = vld [vmem:[#allocation5 + $0x434] ss:$24 sps:$4 sm:$0xff]  }
 0x607   :  { %v2619_v47 = vpop.f32.mrf.mxu1 }
 0x608   :  { %v2729_v17 = vadd.f32 %v2619_v47, %v2455_v25  ;;  %v2824_v60 = vmax.f32 %v2728_v1, 0.0  ;;  %v2461_v47 = vadd.f32 %v2359_v62, %v14642_v33  ;;  %v12879_v33 = vld [vmem:[#allocation5 + $0x404] ss:$24 sps:$4 sm:$0xff]   ;;  %v2462_v62 = vadd.f32 %v14660_v37, %v14644_v55  ;;  %v12882_v55 = vld [vmem:[#allocation5 + $0x3d4] ss:$24 sps:$4 sm:$0xff]  }
 0x609   :  { %v2621_v49 = vpop.f32.mrf.mxu1  ;;  %v2465_v37 = vadd.f32 %v14678_v4, %v14650_v5  ;;  %v12885_v5 = vld [vmem:[#allocation5 + $0x3a4] ss:$24 sps:$4 sm:$0xff]   ;;  %v2466_v4 = vadd.f32 %v14684_v58, %v14652_v3  ;;  %v12888_v3 = vld [vmem:[#allocation5 + $0x374] ss:$24 sps:$4 sm:$0xff]   ;;  %v2469_v58 = vadd.f32 %v14702_v30, %v14658_v13  ;;  %v2470_v30 = vadd.f32 %v14708_v23, %v14662_v57 }
 0x60a   :  { %v2730_v28 = vadd.f32 %v2621_v49, %v2456_v15  ;;  %v2825_v12 = vmax.f32 %v2729_v17, 0.0  ;;  %v2463_v49 = vadd.f32 %v14666_v44, %v14646_v21  ;;  %v12891_v13 = vld [vmem:[#allocation5 + $0x344] ss:$24 sps:$4 sm:$0xff]   ;;  %v12894_v57 = vld [vmem:[#allocation5 + $0x314] ss:$24 sps:$4 sm:$0xff]   ;;  %v2473_v23 = vadd.f32 %v14716_v41, %v14670_v26 }
 0x60b   :  { %v2623_v48 = vpop.f32.mrf.mxu1  ;;  %v12897_v26 = vld [vmem:[#allocation5 + $0x5e4] ss:$24 sps:$4 sm:$0xff]  }
 0x60c   :  { %v2826_v52 = vmax.f32 %v2730_v28, 0.0  ;;  %v2731_v35 = vadd.f32 %v2623_v48, %v2457_v11  ;;  %v2464_v11 = vadd.f32 %v14672_v31, %v14648_v59  ;;  %v12877_v48 = vld [vmem:[#allocation5 + $0x400] ss:$24 sps:$4 sm:$0xff]  }
 0x60d   :  { %v2627_v24 = vpop.f32.mrf.mxu1 }
 0x60e   :  { %v14714_v20 = vpack.c.bf16 %v2826_v52, %v2824_v60  ;;  %v2827_v56 = vmax.f32 %v2731_v35, 0.0  ;;  %v2732_v10 = vadd.f32 %v2627_v24, %v2458_v0  ;;  %v14725_v52 = vpop.f32.mrf.mxu0 }
 0x60f   :  { %v2629_v43 = vpop.f32.mrf.mxu1  ;;  %v2474_v41 = vadd.f32 %v14725_v52, %v14674_v27  ;;  %v12900_v27 = vld [vmem:[#allocation5 + $0x5b4] ss:$24 sps:$4 sm:$0xff]  }
 0x610   :  { %v14720_v2 = vpack.c.bf16 %v2827_v56, %v2825_v12  ;;  %v2733_v14 = vadd.f32 %v2629_v43, %v2459_v39  ;;  %v2828_v6 = vmax.f32 %v2732_v10, 0.0  ;;  %v14733_v15 = vpop.f32.mrf.mxu0 }
 0x611   :  { %v2631_v50 = vpop.f32.mrf.mxu1 }
 0x612   :  { %v2734_v46 = vadd.f32 %v2631_v50, %v2460_v29  ;;  %3481 = vmatprep.mubr.bf16.mxu0 %v14720_v2  ;;  %3594 = vmatprep.mubr.bf16.mxu1 %v14720_v2  ;;  %v2829_v0 = vmax.f32 %v2733_v14, 0.0  ;;  %v14745_v21 = vpop.f32.mrf.mxu0  ;;  %v12880_v29 = vld [vmem:[#allocation5 + $0x3d0] ss:$24 sps:$4 sm:$0xff]  }
 0x613   :  { %v2633_v35 = vpop.f32.mrf.mxu1  ;;  %3482 = vmatmul.mubr.bf16.vlgmr.msra.gmra.mxu0 %v14714_v20  ;;  %3595 = vmatmul.mubr.bf16.vlgmr.msra.gmra.mxu1 %v14714_v20 }
 0x614   :  { %v2830_v22 = vmax.f32 %v2734_v46, 0.0  ;;  %v2735_v32 = vadd.f32 %v2633_v35, %v2461_v47  ;;  %3676 = vmatpush1.bf16.msra.mxu0 %v12871_v18  ;;  %v14753_v47 = vpop.f32.mrf.mxu0  ;;  %v2467_v46 = vadd.f32 %v14690_v54, %v14654_v63  ;;  %v2468_v35 = vadd.f32 %v14696_v36, %v14656_v7 }
 0x615   :  { %v2637_v12 = vpop.f32.mrf.mxu1  ;;  %3677 = vmatprep.subr.bf16.mxu0 %v12876_v38  ;;  %v2477_v52 = vadd.f32 %v14753_v47, %v14682_v42  ;;  %v12903_v42 = vld [vmem:[#allocation5 + $0x584] ss:$24 sps:$4 sm:$0xff]  }
 0x616   :  { %v14731_v24 = vpack.c.bf16 %v2830_v22, %v2828_v6  ;;  %v2831_v25 = vmax.f32 %v2735_v32, 0.0  ;;  %v2736_v17 = vadd.f32 %v2637_v12, %v2462_v62  ;;  %v12883_v32 = vld [vmem:[#allocation5 + $0x3a0] ss:$24 sps:$4 sm:$0xff]   ;;  %v14765_v63 = vpop.f32.mrf.mxu0 }
 0x617   :  { %v2639_v1 = vpop.f32.mrf.mxu1  ;;  %v2478_v47 = vadd.f32 %v14765_v63, %v14686_v40  ;;  %v16879_v40 = vld [vmem:[#allocation18_spill] sm:$0xff] }
 0x618   :  { %3678 = vmatpush1.bf16.msra.mxu0 %v12874_v61  ;;  %v14739_v28 = vpack.c.bf16 %v2831_v25, %v2829_v0  ;;  %v2737_v56 = vadd.f32 %v2639_v1, %v2463_v49  ;;  %v2832_v44 = vmax.f32 %v2736_v17, 0.0  ;;  %v12886_v0 = vld [vmem:[#allocation5 + $0x370] ss:$24 sps:$4 sm:$0xff]   ;;  %v14773_v17 = vpop.f32.mrf.mxu0 }
 0x619   :  { %v2641_v60 = vpop.f32.mrf.mxu1  ;;  %3679 = vmatprep.subr.bf16.mxu0 %v12879_v33 }
 0x61a   :  { %v2738_v43 = vadd.f32 %v2641_v60, %v2464_v11  ;;  %3491 = vmatprep.mubr.bf16.mxu0 %v14739_v28  ;;  %3604 = vmatprep.mubr.bf16.mxu1 %v14739_v28  ;;  %v2833_v18 = vmax.f32 %v2737_v56, 0.0  ;;  %v2471_v60 = vadd.f32 %v14710_v34, %v14664_v9  ;;  %v2407_v9 = vpop.f32.mrf.mxu0 }
 0x61b   :  { %v2643_v59 = vpop.f32.mrf.mxu1  ;;  %3492 = vmatmul.mubr.bf16.gmra.mxu0 %v14731_v24  ;;  %3605 = vmatmul.mubr.bf16.gmra.mxu1 %v14731_v24 }
 0x61c   :  { %v2834_v31 = vmax.f32 %v2738_v43, 0.0  ;;  %v2739_v39 = vadd.f32 %v2643_v59, %v2465_v37  ;;  %3680 = vmatpush1.bf16.msra.mxu0 %v12877_v48  ;;  %v12889_v43 = vld [vmem:[#allocation5 + $0x340] ss:$24 sps:$4 sm:$0xff]  }
 0x61d   :  { %v2647_v10 = vpop.f32.mrf.mxu1  ;;  %3681 = vmatprep.subr.bf16.mxu0 %v12882_v55  ;;  %v2472_v55 = vadd.f32 %v14712_v16, %v14668_v53 }
 0x61e   :  { %v14751_v50 = vpack.c.bf16 %v2834_v31, %v2832_v44  ;;  %v2835_v38 = vmax.f32 %v2739_v39, 0.0  ;;  %v2740_v6 = vadd.f32 %v2647_v10, %v2466_v4 }
 0x61f   :  { %v2649_v14 = vpop.f32.mrf.mxu1 }
 0x620   :  { %3682 = vmatpush1.bf16.msra.mxu0 %v12880_v29  ;;  %v14759_v22 = vpack.c.bf16 %v2835_v38, %v2833_v18  ;;  %v2741_v12 = vadd.f32 %v2649_v14, %v2467_v46  ;;  %v2836_v54 = vmax.f32 %v2740_v6, 0.0  ;;  %v12892_v29 = vld [vmem:[#allocation5 + $0x310] ss:$24 sps:$4 sm:$0xff]   ;;  %v2409_v38 = vpop.f32.mrf.mxu0  ;;  %v2475_v46 = vadd.f32 %v14733_v15, %v14676_v51 }
 0x621   :  { %v2651_v61 = vpop.f32.mrf.mxu1  ;;  %3683 = vmatprep.subr.bf16.mxu0 %v12885_v5  ;;  %v2481_v63 = vadd.f32 %v2409_v38, %v16879_v40 }
 0x622   :  { %v2742_v33 = vadd.f32 %v2651_v61, %v2468_v35  ;;  %3501 = vmatprep.mubr.bf16.mxu0 %v14759_v22  ;;  %3614 = vmatprep.mubr.bf16.mxu1 %v14759_v22  ;;  %v2837_v1 = vmax.f32 %v2741_v12, 0.0  ;;  %v2476_v35 = vadd.f32 %v14745_v21, %v14680_v45  ;;  %v12895_v61 = vld [vmem:[#allocation5 + $0x5e0] ss:$24 sps:$4 sm:$0xff]   ;;  %v2413_v51 = vpop.f32.mrf.mxu0 }
 0x623   :  { %v2653_v7 = vpop.f32.mrf.mxu1  ;;  %3502 = vmatmul.mubr.bf16.gmra.mxu0 %v14751_v50  ;;  %3615 = vmatmul.mubr.bf16.gmra.mxu1 %v14751_v50 }
 0x624   :  { %v2838_v36 = vmax.f32 %v2742_v33, 0.0  ;;  %v2743_v62 = vadd.f32 %v2653_v7, %v2469_v58  ;;  %3684 = vmatpush1.bf16.msra.mxu0 %v12883_v32  ;;  %v12898_v7 = vld [vmem:[#allocation5 + $0x5b0] ss:$24 sps:$4 sm:$0xff]  }
 0x625   :  { %v2657_v25 = vpop.f32.mrf.mxu1  ;;  %3685 = vmatprep.subr.bf16.mxu0 %v12888_v3 }
 0x626   :  { %v14771_v49 = vpack.c.bf16 %v2838_v36, %v2836_v54  ;;  %v2839_v11 = vmax.f32 %v2743_v62, 0.0  ;;  %v2744_v37 = vadd.f32 %v2657_v25, %v2470_v30  ;;  %v2415_v25 = vpop.f32.mrf.mxu0  ;;  %v2479_v30 = vadd.f32 %v14773_v17, %v14688_v8 }
 0x627   :  { %v2659_v48 = vpop.f32.mrf.mxu1 }
 0x628   :  { %3686 = vmatpush1.bf16.msra.mxu0 %v12886_v0  ;;  %v14779_v56 = vpack.c.bf16 %v2839_v11, %v2837_v1  ;;  %v2745_v44 = vadd.f32 %v2659_v48, %v2471_v60  ;;  %v2840_v53 = vmax.f32 %v2744_v37, 0.0  ;;  %v2480_v1 = vadd.f32 %v2407_v9, %v14692_v19  ;;  %v12901_v60 = vld [vmem:[#allocation5 + $0x580] ss:$24 sps:$4 sm:$0xff]   ;;  %v12906_v37 = vld [vmem:[#allocation5 + $0x554] ss:$24 sps:$4 sm:$0xff]  }
 0x629   :  { %v2661_v59 = vpop.f32.mrf.mxu1  ;;  %3687 = vmatprep.subr.bf16.mxu0 %v12891_v13  ;;  %v12909_v9 = vld [vmem:[#allocation5 + $0x524] ss:$24 sps:$4 sm:$0xff]  }
 0x62a   :  { %v2746_v31 = vadd.f32 %v2661_v59, %v2472_v55  ;;  %3511 = vmatprep.mubr.bf16.mxu0 %v14779_v56  ;;  %3624 = vmatprep.mubr.bf16.mxu1 %v14779_v56  ;;  %v2841_v5 = vmax.f32 %v2745_v44, 0.0  ;;  %v12904_v44 = vld [vmem:[#allocation5 + $0x550] ss:$24 sps:$4 sm:$0xff]  }
 0x62b   :  { %v2663_v34 = vpop.f32.mrf.mxu1  ;;  %3512 = vmatmul.mubr.bf16.gmra.mxu0 %v14771_v49  ;;  %3625 = vmatmul.mubr.bf16.gmra.mxu1 %v14771_v49 }
 0x62c   :  { %v2842_v16 = vmax.f32 %v2746_v31, 0.0  ;;  %v2747_v39 = vadd.f32 %v2663_v34, %v2473_v23  ;;  %3688 = vmatpush1.bf16.msra.mxu0 %v12889_v43  ;;  %v16880_v34 = vld [vmem:[#allocation15_spill] sm:$0xff] }
 0x62d   :  { %v2667_v10 = vpop.f32.mrf.mxu1  ;;  %3689 = vmatprep.subr.bf16.mxu0 %v12894_v57  ;;  %v2417_v57 = vpop.f32.mrf.mxu0 }
 0x62e   :  { %v14789_v4 = vpack.c.bf16 %v2842_v16, %v2840_v53  ;;  %v2843_v18 = vmax.f32 %v2747_v39, 0.0  ;;  %v2748_v6 = vadd.f32 %v2667_v10, %v2474_v41  ;;  %v2482_v53 = vadd.f32 %v2413_v51, %v16880_v34  ;;  %v16881_v41 = vld [vmem:[#allocation19_spill] sm:$0xff] }
 0x62f   :  { %v2669_v14 = vpop.f32.mrf.mxu1  ;;  %v2419_v10 = vpop.f32.mrf.mxu0 }
 0x630   :  { %3690 = vmatpush1.bf16.msra.mxu0 %v12892_v29  ;;  %v14795_v32 = vpack.c.bf16 %v2843_v18, %v2841_v5  ;;  %v2749_v58 = vadd.f32 %v2669_v14, %v2475_v46  ;;  %v2844_v45 = vmax.f32 %v2748_v6, 0.0  ;;  %v2483_v5 = vadd.f32 %v2415_v25, %v16881_v41  ;;  %v16882_v18 = vld [vmem:[#allocation22_spill] sm:$0xff] }
 0x631   :  { %v2671_v3 = vpop.f32.mrf.mxu1  ;;  %3691 = vmatprep.subr.bf16.mxu0 %v12897_v26  ;;  %v2484_v38 = vadd.f32 %v2417_v57, %v16882_v18  ;;  %v12916_v25 = vld [vmem:[#allocation5 + $0x490] ss:$24 sps:$4 sm:$0xff]  }
 0x632   :  { %v2750_v12 = vadd.f32 %v2671_v3, %v2476_v35  ;;  %3521 = vmatprep.mubr.bf16.mxu0 %v14795_v32  ;;  %3634 = vmatprep.mubr.bf16.mxu1 %v14795_v32  ;;  %v2845_v36 = vmax.f32 %v2749_v58, 0.0  ;;  %v12907_v35 = vld [vmem:[#allocation5 + $0x520] ss:$24 sps:$4 sm:$0xff]  }
 0x633   :  { %v2673_v15 = vpop.f32.mrf.mxu1  ;;  %3522 = vmatmul.mubr.bf16.gmra.mxu0 %v14789_v4  ;;  %3635 = vmatmul.mubr.bf16.gmra.mxu1 %v14789_v4  ;;  %v16883_v3 = vld [vmem:[#allocation20_spill] sm:$0xff] }
 0x634   :  { %v2846_v21 = vmax.f32 %v2750_v12, 0.0  ;;  %v2751_v33 = vadd.f32 %v2673_v15, %v2477_v52  ;;  %3692 = vmatpush2.bf16.msra.mxu0 %v12895_v61  ;;  %v12912_v61 = vld [vmem:[#allocation5 + $0x4f4] ss:$24 sps:$4 sm:$0xff]  }
 0x635   :  { %v2677_v54 = vpop.f32.mrf.mxu1  ;;  %3693 = vmatprep.subr.bf16.mxu0 %v12900_v27  ;;  %v2485_v27 = vadd.f32 %v2419_v10, %v16883_v3 }
 0x636   :  { %v14805_v62 = vpack.c.bf16 %v2846_v21, %v2844_v45  ;;  %v2847_v0 = vmax.f32 %v2751_v33, 0.0  ;;  %v2752_v11 = vadd.f32 %v2677_v54, %v2478_v47  ;;  %v12910_v21 = vld [vmem:[#allocation5 + $0x4f0] ss:$24 sps:$4 sm:$0xff]   ;;  %v12915_v33 = vld [vmem:[#allocation5 + $0x4c4] ss:$24 sps:$4 sm:$0xff]  }
 0x637   :  { %v2679_v13 = vpop.f32.mrf.mxu1 }
 0x638   :  { %3694 = vmatpush2.bf16.msra.mxu0 %v12898_v7  ;;  %v14810_v48 = vpack.c.bf16 %v2847_v0, %v2845_v36  ;;  %v2753_v43 = vadd.f32 %v2679_v13, %v2479_v30  ;;  %v2848_v19 = vmax.f32 %v2752_v11, 0.0  ;;  %v12913_v36 = vld [vmem:[#allocation5 + $0x4c0] ss:$24 sps:$4 sm:$0xff]   ;;  %v12918_v0 = vld [vmem:[#allocation5 + $0x494] ss:$24 sps:$4 sm:$0xff]   ;;  %v16884_v13 = vmov 0  }
 0x639   :  { %v2681_v55 = vpop.f32.mrf.mxu1  ;;  %3695 = vmatprep.subr.bf16.mxu0 %v12903_v42 }
 0x63a   :  { %v2754_v59 = vadd.f32 %v2681_v55, %v2480_v1  ;;  %3531 = vmatprep.mubr.bf16.mxu0 %v14810_v48  ;;  %3644 = vmatprep.mubr.bf16.mxu1 %v14810_v48  ;;  %v2849_v16 = vmax.f32 %v2753_v43, 0.0 }
 0x63b   :  { %v2683_v8 = vpop.f32.mrf.mxu1  ;;  %3532 = vmatmul.mubr.bf16.gmra.mxu0 %v14805_v62  ;;  %3645 = vmatmul.mubr.bf16.gmra.mxu1 %v14805_v62 }
 0x63c   :  { %v2850_v17 = vmax.f32 %v2754_v59, 0.0  ;;  %v2755_v23 = vadd.f32 %v2683_v8, %v2481_v63  ;;  %3696 = vmatpush2.bf16.msra.mxu0 %v12901_v60 }
 0x63d   :  { %v2687_v31 = vpop.f32.mrf.mxu1  ;;  %3697 = vmatprep.subr.bf16.mxu0 %v12906_v37 }
 0x63e   :  { %v2868_v39 = vpack.c.bf16 %v2850_v17, %v2848_v19  ;;  %v2851_v29 = vmax.f32 %v2755_v23, 0.0  ;;  %v2756_v14 = vadd.f32 %v2687_v31, %v2482_v53 }
 0x63f   :  { %v2689_v26 = vpop.f32.mrf.mxu1 }
 0x640   :  { %3698 = vmatpush2.bf16.msra.mxu0 %v12904_v44  ;;  %v2869_v46 = vpack.c.bf16 %v2851_v29, %v2849_v16  ;;  %v2757_v52 = vadd.f32 %v2689_v26, %v2483_v5  ;;  %v2852_v51 = vmax.f32 %v2756_v14, 0.0 }
 0x641   :  { %v2691_v6 = vpop.f32.mrf.mxu1  ;;  %3699 = vmatprep.subr.bf16.mxu0 %v12909_v9 }
 0x642   :  { %v2758_v58 = vadd.f32 %v2691_v6, %v2484_v38  ;;  %3541 = vmatprep.mubr.bf16.mxu0 %v2869_v46  ;;  %3654 = vmatprep.mubr.bf16.mxu1 %v2869_v46  ;;  %v2853_v7 = vmax.f32 %v2757_v52, 0.0 }
 0x643   :  { %v2693_v12 = vpop.f32.mrf.mxu1  ;;  %3542 = vmatmul.mubr.bf16.gmra.mxu0 %v2868_v39  ;;  %3655 = vmatmul.mubr.bf16.gmra.mxu1 %v2868_v39 }
 0x644   :  { %v2854_v15 = vmax.f32 %v2758_v58, 0.0  ;;  %v2759_v45 = vadd.f32 %v2693_v12, %v2485_v27  ;;  %3700 = vmatpush2.bf16.msra.mxu0 %v12907_v35 }
 0x645   :  { %3701 = vmatprep.subr.bf16.mxu0 %v12912_v61 }
 0x646   :  { %v2870_v54 = vpack.c.bf16 %v2854_v15, %v2852_v51  ;;  %v2855_v42 = vmax.f32 %v2759_v45, 0.0 }
 0x648   :  { %3702 = vmatpush2.bf16.msra.mxu0 %v12910_v21  ;;  %v2871_v47 = vpack.c.bf16 %v2855_v42, %v2853_v7 }
 0x649   :  { %3703 = vmatprep.subr.bf16.mxu0 %v12915_v33 }
 0x64a   :  { %3551 = vmatprep.mubr.bf16.mxu0 %v2871_v47  ;;  %3664 = vmatprep.mubr.bf16.mxu1 %v2871_v47 }
 0x64b   :  { %3552 = vmatmul.mubr.bf16.gmra.mxu0 %v2870_v54  ;;  %3665 = vmatmul.mubr.bf16.gmra.mxu1 %v2870_v54 }
 0x64c   :  { %3704 = vmatpush2.bf16.msra.mxu0 %v12913_v36  ;;  %3707 = vmatprep.mubr.bf16.mxu0 %v14720_v2 }
 0x64d   :  { %3705 = vmatprep.subr.bf16.mxu0 %v12918_v0  ;;  %3933 = vmatprep.mubr.bf16.mxu1 %v16884_v13 }
 0x650   :  { %3706 = vmatpush2.bf16.msra.mxu0 %v12916_v25 }
 0x653   :  { %3708 = vmatmul.mubr.bf16.vlgmr.msra.gmra.mxu0 %v14714_v20 }
 0x654   :  { %3717 = vmatprep.mubr.bf16.mxu0 %v14739_v28 }
 0x65b   :  { %3718 = vmatmul.mubr.bf16.gmra.mxu0 %v14731_v24 }
 0x65c   :  { %3727 = vmatprep.mubr.bf16.mxu0 %v14759_v22 }
 0x663   :  { %3728 = vmatmul.mubr.bf16.gmra.mxu0 %v14751_v50 }
 0x664   :  { %3737 = vmatprep.mubr.bf16.mxu0 %v14779_v56 }
 0x66b   :  { %3738 = vmatmul.mubr.bf16.gmra.mxu0 %v14771_v49 }
 0x66c   :  { %3747 = vmatprep.mubr.bf16.mxu0 %v14795_v32 }
 0x673   :  { %3748 = vmatmul.mubr.bf16.gmra.mxu0 %v14789_v4 }
 0x674   :  { %3757 = vmatprep.mubr.bf16.mxu0 %v14810_v48 }
 0x67b   :  { %3758 = vmatmul.mubr.bf16.gmra.mxu0 %v14805_v62 }
 0x67c   :  { %3767 = vmatprep.mubr.bf16.mxu0 %v2869_v46 }
 0x683   :  { %3768 = vmatmul.mubr.bf16.gmra.mxu0 %v2868_v39 }
 0x684   :  { %3777 = vmatprep.mubr.bf16.mxu0 %v2871_v47 }
 0x68b   :  { %3778 = vmatmul.mubr.bf16.gmra.mxu0 %v2870_v54 }
 0x68c   :  { %4143 = vmatprep.mubr.bf16.mxu0 %v16884_v13 }
 0x6d3   :  { %v14835_v20 = vpop.f32.mrf.mxu0  ;;  %v14837_v2 = vpop.f32.mrf.mxu1 }
 0x6d4   :  { %16885 = vst [vmem:[#allocation23_spill] sm:$0xff] %v14835_v20  ;;  %16886 = vst [vmem:[#allocation21_spill] sm:$0xff] %v14837_v2 }
 0x6d5   :  { %v14839_v24 = vpop.f32.mrf.mxu0  ;;  %v14841_v28 = vpop.f32.mrf.mxu1 }
 0x6d6   :  { %16887 = vst [vmem:[#allocation16_spill] sm:$0xff] %v14841_v28 }
 0x6d7   :  { %v14843_v50 = vpop.f32.mrf.mxu0  ;;  %v14845_v22 = vpop.f32.mrf.mxu1 }
 0x6d8   :  { %16888 = vst [vmem:[#allocation13_spill] sm:$0xff] %v14843_v50  ;;  %16889 = vst [vmem:[#allocation17_spill] sm:$0xff] %v14845_v22 }
 0x6d9   :  { %v14851_v4 = vpop.f32.mrf.mxu0  ;;  %v14853_v32 = vpop.f32.mrf.mxu1 }
 0x6da   :  { %16890 = vst [vmem:[#allocation14_spill] sm:$0xff] %v14851_v4  ;;  %16891 = vst [vmem:[#allocation18_spill] sm:$0xff] %v14853_v32 }
 0x6db   :  { %v14855_v62 = vpop.f32.mrf.mxu0  ;;  %v14857_v30 = vpop.f32.mrf.mxu1 }
 0x6dc   :  { %16892 = vst [vmem:[#allocation15_spill] sm:$0xff] %v14855_v62  ;;  %16893 = vst [vmem:[#allocation19_spill] sm:$0xff] %v14857_v30 }
 0x6dd   :  { %v14859_v1 = vpop.f32.mrf.mxu0  ;;  %v14861_v11 = vpop.f32.mrf.mxu1 }
 0x6df   :  { %v14863_v48 = vpop.f32.mrf.mxu0  ;;  %v14865_v60 = vpop.f32.mrf.mxu1 }
 0x6e0   :  { %16894 = vst [vmem:[#allocation22_spill] sm:$0xff] %v14863_v48  ;;  %16895 = vst [vmem:[#allocation20_spill] sm:$0xff] %v14865_v60 }
 0x6e1   :  { %v14871_v40 = vpop.f32.mrf.mxu0  ;;  %v14873_v63 = vpop.f32.mrf.mxu1 }
 0x6e3   :  { %v14875_v43 = vpop.f32.mrf.mxu0  ;;  %v14877_v59 = vpop.f32.mrf.mxu1 }
 0x6e5   :  { %v14879_v57 = vpop.f32.mrf.mxu0  ;;  %v14881_v8 = vpop.f32.mrf.mxu1 }
 0x6e7   :  { %v14883_v19 = vpop.f32.mrf.mxu0  ;;  %v14885_v17 = vpop.f32.mrf.mxu1 }
 0x6e9   :  { %v14887_v23 = vpop.f32.mrf.mxu0  ;;  %v14889_v44 = vpop.f32.mrf.mxu1 }
 0x6eb   :  { %v14891_v31 = vpop.f32.mrf.mxu0  ;;  %v14893_v9 = vpop.f32.mrf.mxu1 }
 0x6ed   :  { %v14895_v34 = vpop.f32.mrf.mxu0  ;;  %v14897_v53 = vpop.f32.mrf.mxu1 }
 0x6ef   :  { %v14899_v16 = vpop.f32.mrf.mxu0  ;;  %v14901_v39 = vpop.f32.mrf.mxu1 }
 0x6f1   :  { %v14903_v29 = vpop.f32.mrf.mxu0  ;;  %v14905_v10 = vpop.f32.mrf.mxu1 }
 0x6f3   :  { %v14907_v26 = vpop.f32.mrf.mxu0  ;;  %v14909_v41 = vpop.f32.mrf.mxu1 }
 0x6f5   :  { %v14911_v5 = vpop.f32.mrf.mxu0  ;;  %v14913_v18 = vpop.f32.mrf.mxu1 }
 0x6f7   :  { %v14915_v38 = vpop.f32.mrf.mxu0  ;;  %v14917_v14 = vpop.f32.mrf.mxu1 }
 0x6f9   :  { %v3529_v46 = vpop.f32.mrf.mxu0  ;;  %v3642_v35 = vpop.f32.mrf.mxu1 }
 0x6fb   :  { %v3533_v6 = vpop.f32.mrf.mxu0  ;;  %v3646_v61 = vpop.f32.mrf.mxu1 }
 0x6fd   :  { %v3535_v3 = vpop.f32.mrf.mxu0  ;;  %v3648_v27 = vpop.f32.mrf.mxu1 }
 0x6ff   :  { %v3537_v52 = vpop.f32.mrf.mxu0  ;;  %v3650_v58 = vpop.f32.mrf.mxu1 }
 0x701   :  { %v3539_v12 = vpop.f32.mrf.mxu0  ;;  %v3652_v51 = vpop.f32.mrf.mxu1 }
 0x703   :  { %v3543_v15 = vpop.f32.mrf.mxu0  ;;  %v3656_v45 = vpop.f32.mrf.mxu1 }
 0x705   :  { %v3545_v21 = vpop.f32.mrf.mxu0  ;;  %v3658_v33 = vpop.f32.mrf.mxu1 }
 0x707   :  { %v3547_v7 = vpop.f32.mrf.mxu0  ;;  %v3660_v54 = vpop.f32.mrf.mxu1 }
 0x708   :  { %v3824_v32 = vpack.c.bf16 %v3547_v7, %v3543_v15  ;;  %v3826_v28 = vpack.c.bf16 %v3660_v54, %v3656_v45  ;;  %v16909_v15 = vld [vmem:[#allocation21_spill] sm:$0xff]  ;;  %v16911_v7 = vmov 0  }
 0x709   :  { %v3549_v42 = vpop.f32.mrf.mxu0  ;;  %v3662_v47 = vpop.f32.mrf.mxu1 }
 0x70a   :  { %v3825_v60 = vpack.c.bf16 %v3549_v42, %v3545_v21  ;;  %v3827_v62 = vpack.c.bf16 %v3662_v47, %v3658_v33  ;;  %v12921_v42 = vld [vmem:[#allocation3 + $0xc8] sm:$0xff]  }
 0x70b   :  { %v3553_v36 = vpop.f32.mrf.mxu0  ;;  %v3666_v0 = vpop.f32.mrf.mxu1  ;;  %v12922_v47 = vld [vmem:[#allocation3 + $0x108] sm:$0xff]  }
 0x70d   :  { %v3555_v25 = vpop.f32.mrf.mxu0  ;;  %v3668_v56 = vpop.f32.mrf.mxu1 }
 0x70f   :  { %v3557_v49 = vpop.f32.mrf.mxu0  ;;  %v3670_v37 = vpop.f32.mrf.mxu1 }
 0x710   :  { %v3830_v20 = vpack.c.bf16 %v3557_v49, %v3553_v36  ;;  %v3832_v50 = vpack.c.bf16 %v3670_v37, %v3666_v0 }
 0x711   :  { %v3559_v55 = vpop.f32.mrf.mxu0  ;;  %v3672_v13 = vpop.f32.mrf.mxu1 }
 0x712   :  { %v3831_v2 = vpack.c.bf16 %v3559_v55, %v3555_v25  ;;  %v3833_v22 = vpack.c.bf16 %v3672_v13, %v3668_v56  ;;  %v3819_v55 = vpack.c.bf16 %v3539_v12, %v3535_v3  ;;  %v3821_v13 = vpack.c.bf16 %v3652_v51, %v3648_v27  ;;  %v12919_v3 = vld [vmem:[#allocation3 + $0xc0] sm:$0xff]  }
 0x713   :  { %v14919_v30 = vpop.f32.mrf.mxu0  ;;  %v12920_v27 = vld [vmem:[#allocation3 + $0x100] sm:$0xff]  }
 0x714   :  { %3901 = vmatprep.subr.bf16.mxu1 %v3831_v2  ;;  %4111 = vmatprep.subr.bf16.mxu0 %v3833_v22  ;;  %v3818_v2 = vpack.c.bf16 %v3537_v52, %v3533_v6  ;;  %v3813_v22 = vpack.c.bf16 %v3529_v46, %v14911_v5  ;;  %v3807_v6 = vpack.c.bf16 %v14903_v29, %v14895_v34  ;;  %v16905_v52 = vld [vmem:[#allocation13_spill] sm:$0xff] }
 0x715   :  { %v14921_v48 = vpop.f32.mrf.mxu0  ;;  %3902 = vmatpush1.bf16.msra.mxu1 %v3830_v20  ;;  %4112 = vmatpush1.bf16.msra.mxu0 %v3832_v50  ;;  %v3820_v20 = vpack.c.bf16 %v3650_v58, %v3646_v61  ;;  %v3809_v5 = vpack.c.bf16 %v14905_v10, %v14897_v53  ;;  %v3801_v34 = vpack.c.bf16 %v14887_v23, %v14879_v57  ;;  %v16906_v58 = vld [vmem:[#allocation23_spill] sm:$0xff]  ;;  %v16908_v51 = vld [vmem:[#allocation17_spill] sm:$0xff] }
 0x716   :  { %3903 = vmatprep.subr.bf16.mxu1 %v3825_v60  ;;  %4113 = vmatprep.subr.bf16.mxu0 %v3827_v62  ;;  %v3815_v62 = vpack.c.bf16 %v3642_v35, %v14913_v18  ;;  %v3803_v53 = vpack.c.bf16 %v14889_v44, %v14881_v8  ;;  %v3795_v57 = vpack.c.bf16 %v14871_v40, %v14859_v1  ;;  %v16899_v1 = vld [vmem:[#allocation22_spill] sm:$0xff]  ;;  %v16900_v40 = vld [vmem:[#allocation15_spill] sm:$0xff] }
 0x717   :  { %v14923_v4 = vpop.f32.mrf.mxu0  ;;  %v3797_v8 = vpack.c.bf16 %v14873_v63, %v14861_v11  ;;  %v16902_v11 = vld [vmem:[#allocation20_spill] sm:$0xff]  ;;  %v16903_v63 = vld [vmem:[#allocation19_spill] sm:$0xff]  ;;  %v16907_v12 = vpack.c.bf16 %v16905_v52, %v16906_v58  ;;  %v16910_v45 = vpack.c.bf16 %v16908_v51, %v16909_v15  ;;  %v12966_v15 = vld [vmem:[#allocation5 + $0x6cc] ss:$24 sps:$4 sm:$0xff]  }
 0x718   :  { %v3792_v49 = vpack.c.bf16 %v14923_v4, %v14919_v30  ;;  %v16904_v35 = vpack.c.bf16 %v16902_v11, %v16903_v63  ;;  %v12931_v11 = vld [vmem:[#allocation3 + $0xf0] sm:$0xff]   ;;  %v12954_v4 = vld [vmem:[#allocation5 + $0x72c] ss:$24 sps:$4 sm:$0xff]   ;;  %v12949_v30 = vld [vmem:[#allocation5 + $0x720] ss:$24 sps:$4 sm:$0xff]  }
 0x719   :  { %v14927_v56 = vpop.f32.mrf.mxu0  ;;  %3904 = vmatpush1.bf16.msra.mxu1 %v3824_v32  ;;  %4114 = vmatpush1.bf16.msra.mxu0 %v3826_v28  ;;  %v3812_v32 = vpack.c.bf16 %v14915_v38, %v14907_v26  ;;  %v3814_v28 = vpack.c.bf16 %v14917_v14, %v14909_v41  ;;  %v3806_v26 = vpack.c.bf16 %v14899_v16, %v14891_v31  ;;  %v12932_v63 = vld [vmem:[#allocation3 + $0x130] sm:$0xff]   ;;  %v12963_v51 = vld [vmem:[#allocation5 + $0x6c4] ss:$24 sps:$4 sm:$0xff]  }
 0x71a   :  { %3905 = vmatprep.subr.bf16.mxu1 %v3819_v55  ;;  %4115 = vmatprep.subr.bf16.mxu0 %v3821_v13  ;;  %v3808_v41 = vpack.c.bf16 %v14901_v39, %v14893_v9  ;;  %v3800_v31 = vpack.c.bf16 %v14883_v19, %v14875_v43  ;;  %v3802_v9 = vpack.c.bf16 %v14885_v17, %v14877_v59  ;;  %v16896_v43 = vld [vmem:[#allocation14_spill] sm:$0xff]  ;;  %v16897_v59 = vld [vmem:[#allocation16_spill] sm:$0xff]  ;;  %v12923_v13 = vld [vmem:[#allocation3 + $0xd0] sm:$0xff]  }
 0x71b   :  { %v14929_v50 = vpop.f32.mrf.mxu0  ;;  %v3789_v19 = vpack.c.bf16 %v16896_v43, %v14839_v24  ;;  %v16898_v17 = vld [vmem:[#allocation18_spill] sm:$0xff]  ;;  %v16901_v14 = vpack.c.bf16 %v16899_v1, %v16900_v40 }
 0x71c   :  { %v3791_v39 = vpack.c.bf16 %v16898_v17, %v16897_v59  ;;  %v12929_v59 = vld [vmem:[#allocation3 + $0xe8] sm:$0xff]  }
 0x71d   :  { %v14933_v60 = vpop.f32.mrf.mxu0  ;;  %3906 = vmatpush1.bf16.msra.mxu1 %v3818_v2  ;;  %4116 = vmatpush1.bf16.msra.mxu0 %v3820_v20  ;;  %v12924_v2 = vld [vmem:[#allocation3 + $0x110] sm:$0xff]   ;;  %v12930_v17 = vld [vmem:[#allocation3 + $0x128] sm:$0xff]  }
 0x71e   :  { %3907 = vmatprep.subr.bf16.mxu1 %v3813_v22  ;;  %4117 = vmatprep.subr.bf16.mxu0 %v3815_v62 }
 0x71f   :  { %v14939_v37 = vpop.f32.mrf.mxu0 }
 0x720   :  { %v3798_v18 = vpack.c.bf16 %v14939_v37, %v14929_v50  ;;  %v12951_v50 = vld [vmem:[#allocation5 + $0x724] ss:$24 sps:$4 sm:$0xff]  }
 0x721   :  { %v14947_v46 = vpop.f32.mrf.mxu0  ;;  %3908 = vmatpush1.bf16.msra.mxu1 %v3812_v32  ;;  %4118 = vmatpush1.bf16.msra.mxu0 %v3814_v28  ;;  %v12925_v28 = vld [vmem:[#allocation3 + $0xd8] sm:$0xff]  }
 0x722   :  { %3909 = vmatprep.subr.bf16.mxu1 %v3807_v6  ;;  %4119 = vmatprep.subr.bf16.mxu0 %v3809_v5  ;;  %v12926_v6 = vld [vmem:[#allocation3 + $0x118] sm:$0xff]   ;;  %v3799_v58 = vpack.c.bf16 %v14947_v46, %v14933_v60  ;;  %v12936_v60 = vld [vmem:[#allocation3 + $0x148] sm:$0xff]  }
 0x723   :  { %v14953_v38 = vpop.f32.mrf.mxu0  ;;  %v12948_v46 = vld [vmem:[#allocation5 + $0x75c] ss:$24 sps:$4 sm:$0xff]  }
 0x724   :  { %v12938_v37 = vld [vmem:[#allocation3 + $0x158] sm:$0xff]  }
 0x725   :  { %v14959_v29 = vpop.f32.mrf.mxu0  ;;  %3910 = vmatpush1.bf16.msra.mxu1 %v3806_v26  ;;  %4120 = vmatpush1.bf16.msra.mxu0 %v3808_v41 }
 0x726   :  { %3911 = vmatprep.subr.bf16.mxu1 %v3801_v34  ;;  %4121 = vmatprep.subr.bf16.mxu0 %v3803_v53  ;;  %v12927_v53 = vld [vmem:[#allocation3 + $0xe0] sm:$0xff]  }
 0x727   :  { %v14965_v16 = vpop.f32.mrf.mxu0 }
 0x728   :  { %v3804_v52 = vpack.c.bf16 %v14965_v16, %v14953_v38  ;;  %v12935_v38 = vld [vmem:[#allocation3 + $0x140] sm:$0xff]   ;;  %v12943_v16 = vld [vmem:[#allocation5 + $0x750] ss:$24 sps:$4 sm:$0xff]  }
 0x729   :  { %v14971_v23 = vpop.f32.mrf.mxu0  ;;  %3912 = vmatpush1.bf16.msra.mxu1 %v3800_v31  ;;  %4122 = vmatpush1.bf16.msra.mxu0 %v3802_v9  ;;  %v12928_v31 = vld [vmem:[#allocation3 + $0x120] sm:$0xff]  }
 0x72a   :  { %3913 = vmatprep.subr.bf16.mxu1 %v3795_v57  ;;  %4123 = vmatprep.subr.bf16.mxu0 %v3797_v8 }
 0x72b   :  { %v14973_v44 = vpop.f32.mrf.mxu0 }
 0x72d   :  { %v14979_v10 = vpop.f32.mrf.mxu0  ;;  %3914 = vmatpush1.bf16.msra.mxu1 %v16901_v14  ;;  %4124 = vmatpush1.bf16.msra.mxu0 %v16904_v35 }
 0x72e   :  { %3915 = vmatprep.subr.bf16.mxu1 %v3789_v19  ;;  %4125 = vmatprep.subr.bf16.mxu0 %v3791_v39 }
 0x72f   :  { %v14987_v61 = vpop.f32.mrf.mxu0 }
 0x731   :  { %v14989_v24 = vpop.f32.mrf.mxu0  ;;  %3916 = vmatpush1.bf16.msra.mxu1 %v16907_v12  ;;  %4126 = vmatpush1.bf16.msra.mxu0 %v16910_v45  ;;  %v12958_v12 = vld [vmem:[#allocation5 + $0x6f8] ss:$24 sps:$4 sm:$0xff]  }
 0x732   :  { %v3811_v35 = vpack.c.bf16 %v14989_v24, %v14979_v10  ;;  %v12933_v10 = vld [vmem:[#allocation3 + $0xf8] sm:$0xff]  }
 0x733   :  { %v14997_v21 = vpop.f32.mrf.mxu0  ;;  %v12934_v24 = vld [vmem:[#allocation3 + $0x138] sm:$0xff]  }
 0x734   :  { %3934 = vmatmul.mubr.bf16.vlgmr.msra.gmra.mxu1 %v12919_v3  ;;  %4144 = vmatmul.mubr.bf16.vlgmr.msra.gmra.mxu0 %v12920_v27  ;;  %v3810_v3 = vpack.c.bf16 %v14987_v61, %v14973_v44  ;;  %v3805_v27 = vpack.c.bf16 %v14971_v23, %v14959_v29  ;;  %v3793_v29 = vpack.c.bf16 %v14927_v56, %v14921_v48  ;;  %v12937_v48 = vld [vmem:[#allocation3 + $0x150] sm:$0xff]   ;;  %v12961_v45 = vld [vmem:[#allocation5 + $0x6c0] ss:$24 sps:$4 sm:$0xff]  }
 0x735   :  { %v3751_v33 = vpop.f32.mrf.mxu0  ;;  %3943 = vmatprep.mubr.bf16.mxu1 %v16911_v7  ;;  %4153 = vmatprep.mubr.bf16.mxu0 %v16911_v7  ;;  %v12945_v56 = vld [vmem:[#allocation5 + $0x754] ss:$24 sps:$4 sm:$0xff]   ;;  %v12946_v23 = vld [vmem:[#allocation5 + $0x758] ss:$24 sps:$4 sm:$0xff]  }
 0x736   :  { %5251 = vmatprep.subr.bf16.mxu0 %v12945_v56  ;;  %v12960_v44 = vld [vmem:[#allocation5 + $0x6fc] ss:$24 sps:$4 sm:$0xff]   ;;  %v12955_v61 = vld [vmem:[#allocation5 + $0x6f0] ss:$24 sps:$4 sm:$0xff]  }
 0x737   :  { %v3753_v54 = vpop.f32.mrf.mxu0  ;;  %5252 = vmatpush1.bf16.msra.mxu0 %v12943_v16  ;;  %v13027_v56 = vld [vmem:[#allocation5 + $0x7b0] ss:$24 sps:$4 sm:$0xff]   ;;  %v13035_v16 = vld [vmem:[#allocation5 + $0x784] ss:$24 sps:$4 sm:$0xff]  }
 0x738   :  { %v3816_v14 = vpack.c.bf16 %v3753_v54, %v14997_v21  ;;  %5253 = vmatprep.subr.bf16.mxu0 %v12951_v50  ;;  %v12964_v21 = vld [vmem:[#allocation5 + $0x6c8] ss:$24 sps:$4 sm:$0xff]   ;;  %v12969_v54 = vld [vmem:[#allocation5 + $0x694] ss:$24 sps:$4 sm:$0xff]  }
 0x739   :  { %v3755_v36 = vpop.f32.mrf.mxu0  ;;  %v13033_v50 = vld [vmem:[#allocation5 + $0x780] ss:$24 sps:$4 sm:$0xff]  }
 0x73a   :  { %v3817_v40 = vpack.c.bf16 %v3755_v36, %v3751_v33  ;;  %v12939_v33 = vld [vmem:[#allocation3 + $0x160] sm:$0xff]   ;;  %v12970_v36 = vld [vmem:[#allocation5 + $0x698] ss:$24 sps:$4 sm:$0xff]  }
 0x73b   :  { %v3759_v0 = vpop.f32.mrf.mxu0  ;;  %5254 = vmatpush1.bf16.msra.mxu0 %v12949_v30  ;;  %v13041_v30 = vld [vmem:[#allocation5 + $0x764] ss:$24 sps:$4 sm:$0xff]  }
 0x73c   :  { %3944 = vmatmul.mubr.bf16.gmra.mxu1 %v12921_v42  ;;  %4154 = vmatmul.mubr.bf16.gmra.mxu0 %v12922_v47  ;;  %v12972_v42 = vld [vmem:[#allocation5 + $0x69c] ss:$24 sps:$4 sm:$0xff]   ;;  %v12967_v47 = vld [vmem:[#allocation5 + $0x690] ss:$24 sps:$4 sm:$0xff]  }
 0x73d   :  { %v3761_v25 = vpop.f32.mrf.mxu0  ;;  %3953 = vmatprep.mubr.bf16.mxu1 %v16911_v7  ;;  %4163 = vmatprep.mubr.bf16.mxu0 %v16911_v7 }
 0x73f   :  { %v3763_v55 = vpop.f32.mrf.mxu0 }
 0x740   :  { %v3822_v1 = vpack.c.bf16 %v3763_v55, %v3759_v0  ;;  %v12975_v0 = vld [vmem:[#allocation5 + $0x664] ss:$24 sps:$4 sm:$0xff]   ;;  %v12973_v55 = vld [vmem:[#allocation5 + $0x660] ss:$24 sps:$4 sm:$0xff]  }
 0x741   :  { %v3765_v20 = vpop.f32.mrf.mxu0 }
 0x742   :  { %v3823_v39 = vpack.c.bf16 %v3765_v20, %v3761_v25  ;;  %v12978_v25 = vld [vmem:[#allocation5 + $0x66c] ss:$24 sps:$4 sm:$0xff]  }
 0x743   :  { %v3769_v22 = vpop.f32.mrf.mxu0  ;;  %v12981_v20 = vld [vmem:[#allocation5 + $0x634] ss:$24 sps:$4 sm:$0xff]  }
 0x744   :  { %3954 = vmatmul.mubr.bf16.gmra.mxu1 %v12923_v13  ;;  %4164 = vmatmul.mubr.bf16.gmra.mxu0 %v12924_v2  ;;  %v12976_v13 = vld [vmem:[#allocation5 + $0x668] ss:$24 sps:$4 sm:$0xff]  }
 0x745   :  { %v3771_v62 = vpop.f32.mrf.mxu0  ;;  %3963 = vmatprep.mubr.bf16.mxu1 %v16911_v7  ;;  %4173 = vmatprep.mubr.bf16.mxu0 %v16911_v7  ;;  %v12940_v2 = vld [vmem:[#allocation3 + $0x168] sm:$0xff]  }
 0x747   :  { %v3773_v32 = vpop.f32.mrf.mxu0 }
 0x748   :  { %v3828_v19 = vpack.c.bf16 %v3773_v32, %v3769_v22  ;;  %v12984_v22 = vld [vmem:[#allocation5 + $0x63c] ss:$24 sps:$4 sm:$0xff]   ;;  %v12982_v32 = vld [vmem:[#allocation5 + $0x638] ss:$24 sps:$4 sm:$0xff]  }
 0x749   :  { %v3775_v5 = vpop.f32.mrf.mxu0 }
 0x74a   :  { %v3829_v43 = vpack.c.bf16 %v3775_v5, %v3771_v62  ;;  %v12979_v62 = vld [vmem:[#allocation5 + $0x630] ss:$24 sps:$4 sm:$0xff]   ;;  %v12985_v5 = vld [vmem:[#allocation5 + $0x600] ss:$24 sps:$4 sm:$0xff]  }
 0x74b   :  { %v3779_v26 = vpop.f32.mrf.mxu0 }
 0x74c   :  { %3964 = vmatmul.mubr.bf16.gmra.mxu1 %v12925_v28  ;;  %4174 = vmatmul.mubr.bf16.gmra.mxu0 %v12926_v6  ;;  %v12987_v28 = vld [vmem:[#allocation5 + $0x604] ss:$24 sps:$4 sm:$0xff]  }
 0x74d   :  { %v3781_v41 = vpop.f32.mrf.mxu0  ;;  %3973 = vmatprep.mubr.bf16.mxu1 %v16911_v7  ;;  %4183 = vmatprep.mubr.bf16.mxu0 %v16911_v7  ;;  %v12990_v6 = vld [vmem:[#allocation5 + $0x60c] ss:$24 sps:$4 sm:$0xff]  }
 0x74f   :  { %v3783_v34 = vpop.f32.mrf.mxu0 }
 0x750   :  { %v3834_v8 = vpack.c.bf16 %v3783_v34, %v3779_v26  ;;  %v12988_v26 = vld [vmem:[#allocation5 + $0x608] ss:$24 sps:$4 sm:$0xff]   ;;  %v12993_v34 = vld [vmem:[#allocation5 + $0x8d4] ss:$24 sps:$4 sm:$0xff]  }
 0x751   :  { %v3785_v9 = vpop.f32.mrf.mxu0 }
 0x752   :  { %v3835_v57 = vpack.c.bf16 %v3785_v9, %v3781_v41  ;;  %v12941_v41 = vld [vmem:[#allocation3 + $0x170] sm:$0xff]  }
 0x753   :  { %v12994_v9 = vld [vmem:[#allocation5 + $0x8d8] ss:$24 sps:$4 sm:$0xff]  }
 0x754   :  { %3974 = vmatmul.mubr.bf16.gmra.mxu1 %v12927_v53  ;;  %4184 = vmatmul.mubr.bf16.gmra.mxu0 %v12928_v31  ;;  %v12996_v53 = vld [vmem:[#allocation5 + $0x8dc] ss:$24 sps:$4 sm:$0xff]   ;;  %v12991_v31 = vld [vmem:[#allocation5 + $0x8d0] ss:$24 sps:$4 sm:$0xff]  }
 0x755   :  { %4385 = vmatprep.subr.bf16.mxu1 %v3835_v57  ;;  %3983 = vmatprep.mubr.bf16.mxu1 %v16911_v7  ;;  %v12999_v57 = vld [vmem:[#allocation5 + $0x8a4] ss:$24 sps:$4 sm:$0xff]  }
 0x756   :  { %4386 = vmatpush1.bf16.msra.mxu1 %v3834_v8  ;;  %4193 = vmatprep.mubr.bf16.mxu0 %v16911_v7  ;;  %v13002_v8 = vld [vmem:[#allocation5 + $0x8ac] ss:$24 sps:$4 sm:$0xff]  }
 0x757   :  { %4387 = vmatprep.subr.bf16.mxu1 %v3829_v43  ;;  %v12997_v43 = vld [vmem:[#allocation5 + $0x8a0] ss:$24 sps:$4 sm:$0xff]  }
 0x75a   :  { %4388 = vmatpush1.bf16.msra.mxu1 %v3828_v19  ;;  %v13000_v19 = vld [vmem:[#allocation5 + $0x8a8] ss:$24 sps:$4 sm:$0xff]  }
 0x75b   :  { %4389 = vmatprep.subr.bf16.mxu1 %v3823_v39  ;;  %v13008_v39 = vld [vmem:[#allocation5 + $0x87c] ss:$24 sps:$4 sm:$0xff]  }
 0x75c   :  { %3984 = vmatmul.mubr.bf16.gmra.mxu1 %v12929_v59  ;;  %4194 = vmatmul.mubr.bf16.gmra.mxu0 %v12930_v17  ;;  %v12942_v59 = vld [vmem:[#allocation3 + $0x178] sm:$0xff]   ;;  %v13005_v17 = vld [vmem:[#allocation5 + $0x874] ss:$24 sps:$4 sm:$0xff]  }
 0x75d   :  { %3993 = vmatprep.mubr.bf16.mxu1 %v16911_v7  ;;  %4203 = vmatprep.mubr.bf16.mxu0 %v16911_v7 }
 0x75e   :  { %4390 = vmatpush1.bf16.msra.mxu1 %v3822_v1  ;;  %v13003_v1 = vld [vmem:[#allocation5 + $0x870] ss:$24 sps:$4 sm:$0xff]  }
 0x75f   :  { %4391 = vmatprep.subr.bf16.mxu1 %v3817_v40  ;;  %v13006_v40 = vld [vmem:[#allocation5 + $0x878] ss:$24 sps:$4 sm:$0xff]  }
 0x762   :  { %4392 = vmatpush1.bf16.msra.mxu1 %v3816_v14  ;;  %v13011_v14 = vld [vmem:[#allocation5 + $0x844] ss:$24 sps:$4 sm:$0xff]  }
 0x763   :  { %4393 = vmatprep.subr.bf16.mxu1 %v3811_v35  ;;  %v13012_v35 = vld [vmem:[#allocation5 + $0x848] ss:$24 sps:$4 sm:$0xff]  }
 0x764   :  { %3994 = vmatmul.mubr.bf16.gmra.mxu1 %v12931_v11  ;;  %4204 = vmatmul.mubr.bf16.gmra.mxu0 %v12932_v63  ;;  %v13014_v11 = vld [vmem:[#allocation5 + $0x84c] ss:$24 sps:$4 sm:$0xff]   ;;  %v13009_v63 = vld [vmem:[#allocation5 + $0x840] ss:$24 sps:$4 sm:$0xff]  }
 0x765   :  { %4003 = vmatprep.mubr.bf16.mxu1 %v16911_v7  ;;  %4213 = vmatprep.mubr.bf16.mxu0 %v16911_v7 }
 0x766   :  { %4394 = vmatpush1.bf16.msra.mxu1 %v3810_v3  ;;  %v13017_v3 = vld [vmem:[#allocation5 + $0x814] ss:$24 sps:$4 sm:$0xff]  }
 0x767   :  { %4395 = vmatprep.subr.bf16.mxu1 %v3805_v27  ;;  %v13020_v27 = vld [vmem:[#allocation5 + $0x81c] ss:$24 sps:$4 sm:$0xff]  }
 0x76a   :  { %4396 = vmatpush1.bf16.msra.mxu1 %v3804_v52  ;;  %v13015_v52 = vld [vmem:[#allocation5 + $0x810] ss:$24 sps:$4 sm:$0xff]  }
 0x76b   :  { %4397 = vmatprep.subr.bf16.mxu1 %v3799_v58  ;;  %v13026_v58 = vld [vmem:[#allocation5 + $0x7ec] ss:$24 sps:$4 sm:$0xff]  }
 0x76c   :  { %4004 = vmatmul.mubr.bf16.gmra.mxu1 %v12933_v10  ;;  %4214 = vmatmul.mubr.bf16.gmra.mxu0 %v12934_v24  ;;  %v13018_v10 = vld [vmem:[#allocation5 + $0x818] ss:$24 sps:$4 sm:$0xff]   ;;  %v13023_v24 = vld [vmem:[#allocation5 + $0x7e4] ss:$24 sps:$4 sm:$0xff]  }
 0x76d   :  { %4417 = vmatprep.mubr.bf16.mxu1 %v16911_v7 }
 0x76e   :  { %4398 = vmatpush1.bf16.msra.mxu1 %v3798_v18  ;;  %v12957_v18 = vld [vmem:[#allocation5 + $0x6f4] ss:$24 sps:$4 sm:$0xff]  }
 0x76f   :  { %4399 = vmatprep.subr.bf16.mxu1 %v3793_v29  ;;  %5255 = vmatprep.subr.bf16.mxu0 %v12957_v18  ;;  %v13021_v29 = vld [vmem:[#allocation5 + $0x7e0] ss:$24 sps:$4 sm:$0xff]  }
 0x770   :  { %5256 = vmatpush1.bf16.msra.mxu0 %v12955_v61 }
 0x771   :  { %5257 = vmatprep.subr.bf16.mxu0 %v12963_v51 }
 0x772   :  { %4400 = vmatpush1.bf16.msra.mxu1 %v3792_v49  ;;  %v12952_v49 = vld [vmem:[#allocation5 + $0x728] ss:$24 sps:$4 sm:$0xff]  }
 0x773   :  { %5364 = vmatprep.subr.bf16.mxu1 %v12948_v46  ;;  %v13030_v46 = vld [vmem:[#allocation5 + $0x7b8] ss:$24 sps:$4 sm:$0xff]  }
 0x774   :  { %5258 = vmatpush1.bf16.msra.mxu0 %v12961_v45 }
 0x775   :  { %4418 = vmatmul.mubr.bf16.vlgmr.msra.gmra.mxu1 %v12935_v38  ;;  %5259 = vmatprep.subr.bf16.mxu0 %v12969_v54  ;;  %v13024_v38 = vld [vmem:[#allocation5 + $0x7e8] ss:$24 sps:$4 sm:$0xff]  }
 0x776   :  { %4427 = vmatprep.mubr.bf16.mxu1 %v16911_v7  ;;  %5365 = vmatpush1.bf16.msra.mxu1 %v12946_v23  ;;  %v13038_v23 = vld [vmem:[#allocation5 + $0x78c] ss:$24 sps:$4 sm:$0xff]  }
 0x777   :  { %5366 = vmatprep.subr.bf16.mxu1 %v12954_v4  ;;  %v13036_v4 = vld [vmem:[#allocation5 + $0x788] ss:$24 sps:$4 sm:$0xff]  }
 0x778   :  { %5260 = vmatpush1.bf16.msra.mxu0 %v12967_v47 }
 0x779   :  { %5261 = vmatprep.subr.bf16.mxu0 %v12975_v0 }
 0x77a   :  { %5367 = vmatpush1.bf16.msra.mxu1 %v12952_v49 }
 0x77b   :  { %5368 = vmatprep.subr.bf16.mxu1 %v12960_v44 }
 0x77c   :  { %5262 = vmatpush1.bf16.msra.mxu0 %v12973_v55 }
 0x77d   :  { %4428 = vmatmul.mubr.bf16.gmra.mxu1 %v12936_v60  ;;  %5263 = vmatprep.subr.bf16.mxu0 %v12981_v20  ;;  %v13029_v60 = vld [vmem:[#allocation5 + $0x7b4] ss:$24 sps:$4 sm:$0xff]  }
 0x77e   :  { %4437 = vmatprep.mubr.bf16.mxu1 %v16911_v7  ;;  %5369 = vmatpush1.bf16.msra.mxu1 %v12958_v12 }
 0x77f   :  { %5370 = vmatprep.subr.bf16.mxu1 %v12966_v15 }
 0x780   :  { %5264 = vmatpush1.bf16.msra.mxu0 %v12979_v62 }
 0x781   :  { %5265 = vmatprep.subr.bf16.mxu0 %v12987_v28 }
 0x782   :  { %5371 = vmatpush1.bf16.msra.mxu1 %v12964_v21 }
 0x783   :  { %5372 = vmatprep.subr.bf16.mxu1 %v12972_v42 }
 0x784   :  { %5266 = vmatpush1.bf16.msra.mxu0 %v12985_v5 }
 0x785   :  { %4438 = vmatmul.mubr.bf16.gmra.mxu1 %v12937_v48  ;;  %5267 = vmatprep.subr.bf16.mxu0 %v12993_v34  ;;  %v13032_v48 = vld [vmem:[#allocation5 + $0x7bc] ss:$24 sps:$4 sm:$0xff]  }
 0x786   :  { %4447 = vmatprep.mubr.bf16.mxu1 %v16911_v7  ;;  %5373 = vmatpush1.bf16.msra.mxu1 %v12970_v36 }
 0x787   :  { %5374 = vmatprep.subr.bf16.mxu1 %v12978_v25 }
 0x788   :  { %5268 = vmatpush2.bf16.msra.mxu0 %v12991_v31 }
 0x789   :  { %5269 = vmatprep.subr.bf16.mxu0 %v12999_v57 }
 0x78a   :  { %5375 = vmatpush1.bf16.msra.mxu1 %v12976_v13 }
 0x78b   :  { %5376 = vmatprep.subr.bf16.mxu1 %v12984_v22 }
 0x78c   :  { %5270 = vmatpush2.bf16.msra.mxu0 %v12997_v43 }
 0x78d   :  { %4448 = vmatmul.mubr.bf16.gmra.mxu1 %v12938_v37  ;;  %5271 = vmatprep.subr.bf16.mxu0 %v13005_v17 }
 0x78e   :  { %4457 = vmatprep.mubr.bf16.mxu1 %v16911_v7  ;;  %5377 = vmatpush1.bf16.msra.mxu1 %v12982_v32 }
 0x78f   :  { %5378 = vmatprep.subr.bf16.mxu1 %v12990_v6 }
 0x790   :  { %5272 = vmatpush2.bf16.msra.mxu0 %v13003_v1 }
 0x791   :  { %5273 = vmatprep.subr.bf16.mxu0 %v13011_v14 }
 0x792   :  { %5379 = vmatpush1.bf16.msra.mxu1 %v12988_v26 }
 0x793   :  { %5380 = vmatprep.subr.bf16.mxu1 %v12996_v53 }
 0x794   :  { %5274 = vmatpush2.bf16.msra.mxu0 %v13009_v63 }
 0x795   :  { %4458 = vmatmul.mubr.bf16.gmra.mxu1 %v12939_v33  ;;  %5275 = vmatprep.subr.bf16.mxu0 %v13017_v3 }
 0x796   :  { %4467 = vmatprep.mubr.bf16.mxu1 %v16911_v7  ;;  %5381 = vmatpush2.bf16.msra.mxu1 %v12994_v9 }
 0x797   :  { %5382 = vmatprep.subr.bf16.mxu1 %v13002_v8 }
 0x798   :  { %5276 = vmatpush2.bf16.msra.mxu0 %v13015_v52 }
 0x799   :  { %5277 = vmatprep.subr.bf16.mxu0 %v13023_v24 }
 0x79a   :  { %5383 = vmatpush2.bf16.msra.mxu1 %v13000_v19 }
 0x79b   :  { %5384 = vmatprep.subr.bf16.mxu1 %v13008_v39 }
 0x79c   :  { %5278 = vmatpush2.bf16.msra.mxu0 %v13021_v29 }
 0x79d   :  { %4468 = vmatmul.mubr.bf16.gmra.mxu1 %v12940_v2  ;;  %5279 = vmatprep.subr.bf16.mxu0 %v13029_v60 }
 0x79e   :  { %4477 = vmatprep.mubr.bf16.mxu1 %v16911_v7  ;;  %5385 = vmatpush2.bf16.msra.mxu1 %v13006_v40 }
 0x79f   :  { %5386 = vmatprep.subr.bf16.mxu1 %v13014_v11 }
 0x7a0   :  { %5280 = vmatpush2.bf16.msra.mxu0 %v13027_v56 }
 0x7a1   :  { %5281 = vmatprep.subr.bf16.mxu0 %v13035_v16 }
 0x7a2   :  { %5387 = vmatpush2.bf16.msra.mxu1 %v13012_v35 }
 0x7a3   :  { %5388 = vmatprep.subr.bf16.mxu1 %v13020_v27 }
 0x7a4   :  { %5282 = vmatpush2.bf16.msra.mxu0 %v13033_v50 }
 0x7a5   :  { %4478 = vmatmul.mubr.bf16.gmra.mxu1 %v12941_v41  ;;  %5477 = vmatprep.subr.bf16.mxu0 %v13041_v30 }
 0x7a6   :  { %4487 = vmatprep.mubr.bf16.mxu1 %v16911_v7  ;;  %5389 = vmatpush2.bf16.msra.mxu1 %v13018_v10 }
 0x7a7   :  { %5390 = vmatprep.subr.bf16.mxu1 %v13026_v58 }
 0x7aa   :  { %5391 = vmatpush2.bf16.msra.mxu1 %v13024_v38 }
 0x7ab   :  { %5392 = vmatprep.subr.bf16.mxu1 %v13032_v48 }
 0x7ad   :  { %4488 = vmatmul.mubr.bf16.gmra.mxu1 %v12942_v59 }
 0x7ae   :  { %5393 = vmatpush2.bf16.msra.mxu1 %v13030_v46 }
 0x7af   :  { %5394 = vmatprep.subr.bf16.mxu1 %v13038_v23 }
 0x7b2   :  { %5395 = vmatpush2.bf16.msra.mxu1 %v13036_v4 }
 0x7f4   :  { %v3935_v49 = vpop.f32.mrf.mxu1  ;;  %v4145_v37 = vpop.f32.mrf.mxu0 }
 0x7f5   :  { %v4256_v24 = vadd.f32 %v4145_v37, %v3935_v49 }
 0x7f6   :  { %v3937_v18 = vpop.f32.mrf.mxu1  ;;  %v4147_v44 = vpop.f32.mrf.mxu0 }
 0x7f7   :  { %v4257_v38 = vadd.f32 %v4147_v44, %v3937_v18 }
 0x7f8   :  { %v3939_v61 = vpop.f32.mrf.mxu1  ;;  %v4149_v51 = vpop.f32.mrf.mxu0 }
 0x7f9   :  { %v4258_v60 = vadd.f32 %v4149_v51, %v3939_v61 }
 0x7fa   :  { %v3941_v12 = vpop.f32.mrf.mxu1  ;;  %v4151_v21 = vpop.f32.mrf.mxu0 }
 0x7fb   :  { %v4259_v46 = vadd.f32 %v4151_v21, %v3941_v12  ;;  %v13039_v21 = vld [vmem:[#allocation5 + $0x760] ss:$24 sps:$4 sm:$0xff]  }
 0x7fc   :  { %v3945_v15 = vpop.f32.mrf.mxu1  ;;  %v4155_v42 = vpop.f32.mrf.mxu0 }
 0x7fe   :  { %v15040_v45 = vpop.f32.mrf.mxu1  ;;  %v4157_v0 = vpop.f32.mrf.mxu0 }
 0x7ff   :  { %v4261_v44 = vadd.f32 %v4157_v0, %v15040_v45 }
 0x800   :  { %v15042_v33 = vpop.f32.mrf.mxu1  ;;  %v4159_v13 = vpop.f32.mrf.mxu0 }
 0x801   :  { %v4262_v61 = vadd.f32 %v4159_v13, %v15042_v33  ;;  %v13042_v13 = vld [vmem:[#allocation5 + $0x730] ss:$24 sps:$4 sm:$0xff]  }
 0x802   :  { %v15044_v54 = vpop.f32.mrf.mxu1  ;;  %v4161_v22 = vpop.f32.mrf.mxu0 }
 0x804   :  { %v15046_v47 = vpop.f32.mrf.mxu1  ;;  %v15062_v28 = vpop.f32.mrf.mxu0 }
 0x806   :  { %v15048_v36 = vpop.f32.mrf.mxu1  ;;  %v15068_v26 = vpop.f32.mrf.mxu0 }
 0x808   :  { %v15050_v25 = vpop.f32.mrf.mxu1  ;;  %v15074_v53 = vpop.f32.mrf.mxu0 }
 0x80a   :  { %v15052_v55 = vpop.f32.mrf.mxu1  ;;  %v15080_v57 = vpop.f32.mrf.mxu0 }
 0x80c   :  { %v15054_v2 = vpop.f32.mrf.mxu1  ;;  %v15086_v19 = vpop.f32.mrf.mxu0 }
 0x80e   :  { %v15056_v20 = vpop.f32.mrf.mxu1  ;;  %v15092_v39 = vpop.f32.mrf.mxu0 }
 0x810   :  { %v15058_v62 = vpop.f32.mrf.mxu1  ;;  %v15098_v14 = vpop.f32.mrf.mxu0 }
 0x812   :  { %v15060_v32 = vpop.f32.mrf.mxu1  ;;  %v15104_v35 = vpop.f32.mrf.mxu0 }
 0x814   :  { %v15064_v6 = vpop.f32.mrf.mxu1  ;;  %v15110_v52 = vpop.f32.mrf.mxu0 }
 0x816   :  { %v15066_v5 = vpop.f32.mrf.mxu1  ;;  %v15112_v58 = vpop.f32.mrf.mxu0 }
 0x818   :  { %v15070_v41 = vpop.f32.mrf.mxu1  ;;  %v15114_v50 = vpop.f32.mrf.mxu0 }
 0x81a   :  { %v15072_v34 = vpop.f32.mrf.mxu1 }
 0x81c   :  { %v15076_v31 = vpop.f32.mrf.mxu1 }
 0x81e   :  { %v15078_v9 = vpop.f32.mrf.mxu1 }
 0x820   :  { %v15082_v8 = vpop.f32.mrf.mxu1 }
 0x822   :  { %v15084_v43 = vpop.f32.mrf.mxu1 }
 0x824   :  { %v15088_v59 = vpop.f32.mrf.mxu1 }
 0x826   :  { %v15090_v17 = vpop.f32.mrf.mxu1 }
 0x828   :  { %v15094_v1 = vpop.f32.mrf.mxu1 }
 0x82a   :  { %v15096_v40 = vpop.f32.mrf.mxu1 }
 0x82b   :  { %16912 = vst [vmem:[#allocation14_spill] sm:$0xff] %v15096_v40  ;;  %v15118_v40 = vpop.f32.mrf.mxu0 }
 0x82c   :  { %v15100_v11 = vpop.f32.mrf.mxu1 }
 0x82d   :  { %16913 = vst [vmem:[#allocation16_spill] sm:$0xff] %v15100_v11 }
 0x82e   :  { %v15102_v63 = vpop.f32.mrf.mxu1 }
 0x82f   :  { %16914 = vst [vmem:[#allocation18_spill] sm:$0xff] %v15102_v63  ;;  %v4260_v63 = vadd.f32 %v4155_v42, %v3945_v15 }
 0x830   :  { %v15106_v3 = vpop.f32.mrf.mxu1 }
 0x831   :  { %16915 = vst [vmem:[#allocation22_spill] sm:$0xff] %v15106_v3 }
 0x832   :  { %v15108_v27 = vpop.f32.mrf.mxu1 }
 0x833   :  { %16916 = vst [vmem:[#allocation15_spill] sm:$0xff] %v15108_v27 }
 0x835   :  { %v4419_v10 = vpop.f32.mrf.mxu1 }
 0x836   :  { %v4530_v48 = vadd.f32 %v4419_v10, %v4256_v24  ;;  %v13044_v24 = vld [vmem:[#allocation5 + $0x734] ss:$24 sps:$4 sm:$0xff]  }
 0x837   :  { %v4421_v29 = vpop.f32.mrf.mxu1 }
 0x838   :  { %v4531_v16 = vadd.f32 %v4421_v29, %v4257_v38  ;;  %v4626_v30 = vmax.f32 %v4530_v48, 0.0  ;;  %v4263_v29 = vadd.f32 %v4161_v22, %v15044_v54  ;;  %v13047_v54 = vld [vmem:[#allocation5 + $0x704] ss:$24 sps:$4 sm:$0xff]   ;;  %v4264_v22 = vadd.f32 %v15062_v28, %v15046_v47  ;;  %v13050_v47 = vld [vmem:[#allocation5 + $0x6d4] ss:$24 sps:$4 sm:$0xff]  }
 0x839   :  { %v4423_v56 = vpop.f32.mrf.mxu1  ;;  %v4267_v28 = vadd.f32 %v15080_v57, %v15052_v55  ;;  %v13053_v55 = vld [vmem:[#allocation5 + $0x6a4] ss:$24 sps:$4 sm:$0xff]   ;;  %v4268_v57 = vadd.f32 %v15086_v19, %v15054_v2  ;;  %v13056_v2 = vld [vmem:[#allocation5 + $0x674] ss:$24 sps:$4 sm:$0xff]   ;;  %v4271_v19 = vadd.f32 %v15104_v35, %v15060_v32  ;;  %v4272_v35 = vadd.f32 %v15110_v52, %v15064_v6 }
 0x83a   :  { %v4532_v23 = vadd.f32 %v4423_v56, %v4258_v60  ;;  %v4627_v11 = vmax.f32 %v4531_v16, 0.0  ;;  %v4265_v56 = vadd.f32 %v15068_v26, %v15048_v36  ;;  %v13059_v32 = vld [vmem:[#allocation5 + $0x644] ss:$24 sps:$4 sm:$0xff]   ;;  %v13062_v6 = vld [vmem:[#allocation5 + $0x614] ss:$24 sps:$4 sm:$0xff]   ;;  %v4275_v52 = vadd.f32 %v15118_v40, %v15072_v34 }
 0x83b   :  { %v4425_v4 = vpop.f32.mrf.mxu1  ;;  %v13065_v34 = vld [vmem:[#allocation5 + $0x8e4] ss:$24 sps:$4 sm:$0xff]  }
 0x83c   :  { %v4628_v7 = vmax.f32 %v4532_v23, 0.0  ;;  %v4533_v27 = vadd.f32 %v4425_v4, %v4259_v46  ;;  %v4266_v46 = vadd.f32 %v15074_v53, %v15050_v25  ;;  %v13045_v4 = vld [vmem:[#allocation5 + $0x700] ss:$24 sps:$4 sm:$0xff]  }
 0x83d   :  { %v4429_v3 = vpop.f32.mrf.mxu1 }
 0x83e   :  { %v15116_v49 = vpack.c.bf16 %v4628_v7, %v4626_v30  ;;  %v4629_v37 = vmax.f32 %v4533_v27, 0.0  ;;  %v4534_v12 = vadd.f32 %v4429_v3, %v4260_v63  ;;  %v15127_v7 = vpop.f32.mrf.mxu0 }
 0x83f   :  { %v4431_v18 = vpop.f32.mrf.mxu1  ;;  %v4276_v40 = vadd.f32 %v15127_v7, %v15076_v31  ;;  %v13068_v31 = vld [vmem:[#allocation5 + $0x8b4] ss:$24 sps:$4 sm:$0xff]  }
 0x840   :  { %v15122_v51 = vpack.c.bf16 %v4629_v37, %v4627_v11  ;;  %v4535_v15 = vadd.f32 %v4431_v18, %v4261_v44  ;;  %v4630_v45 = vmax.f32 %v4534_v12, 0.0  ;;  %v15135_v60 = vpop.f32.mrf.mxu0 }
 0x841   :  { %v4433_v10 = vpop.f32.mrf.mxu1 }
 0x842   :  { %v4536_v42 = vadd.f32 %v4433_v10, %v4262_v61  ;;  %5283 = vmatprep.mubr.bf16.mxu0 %v15122_v51  ;;  %5396 = vmatprep.mubr.bf16.mxu1 %v15122_v51  ;;  %v4631_v63 = vmax.f32 %v4535_v15, 0.0  ;;  %v15147_v36 = vpop.f32.mrf.mxu0  ;;  %v13048_v61 = vld [vmem:[#allocation5 + $0x6d0] ss:$24 sps:$4 sm:$0xff]  }
 0x843   :  { %v4435_v27 = vpop.f32.mrf.mxu1  ;;  %5284 = vmatmul.mubr.bf16.vlgmr.msra.gmra.mxu0 %v15116_v49  ;;  %5397 = vmatmul.mubr.bf16.vlgmr.msra.gmra.mxu1 %v15116_v49 }
 0x844   :  { %v4632_v33 = vmax.f32 %v4536_v42, 0.0  ;;  %v4537_v0 = vadd.f32 %v4435_v27, %v4263_v29  ;;  %5478 = vmatpush1.bf16.msra.mxu0 %v13039_v21  ;;  %v15155_v29 = vpop.f32.mrf.mxu0  ;;  %v4269_v42 = vadd.f32 %v15092_v39, %v15056_v20  ;;  %v4270_v27 = vadd.f32 %v15098_v14, %v15058_v62 }
 0x845   :  { %v4439_v11 = vpop.f32.mrf.mxu1  ;;  %5479 = vmatprep.subr.bf16.mxu0 %v13044_v24  ;;  %v4279_v7 = vadd.f32 %v15155_v29, %v15084_v43  ;;  %v13071_v43 = vld [vmem:[#allocation5 + $0x884] ss:$24 sps:$4 sm:$0xff]  }
 0x846   :  { %v15133_v3 = vpack.c.bf16 %v4632_v33, %v4630_v45  ;;  %v4633_v38 = vmax.f32 %v4537_v0, 0.0  ;;  %v4538_v16 = vadd.f32 %v4439_v11, %v4264_v22  ;;  %v13051_v0 = vld [vmem:[#allocation5 + $0x6a0] ss:$24 sps:$4 sm:$0xff]   ;;  %v15167_v20 = vpop.f32.mrf.mxu0 }
 0x847   :  { %v4441_v48 = vpop.f32.mrf.mxu1  ;;  %v4280_v29 = vadd.f32 %v15167_v20, %v15088_v59  ;;  %v16917_v59 = vld [vmem:[#allocation14_spill] sm:$0xff] }
 0x848   :  { %5480 = vmatpush1.bf16.msra.mxu0 %v13042_v13  ;;  %v15141_v23 = vpack.c.bf16 %v4633_v38, %v4631_v63  ;;  %v4539_v37 = vadd.f32 %v4441_v48, %v4265_v56  ;;  %v4634_v26 = vmax.f32 %v4538_v16, 0.0  ;;  %v13054_v63 = vld [vmem:[#allocation5 + $0x670] ss:$24 sps:$4 sm:$0xff]   ;;  %v15175_v16 = vpop.f32.mrf.mxu0 }
 0x849   :  { %v4443_v30 = vpop.f32.mrf.mxu1  ;;  %5481 = vmatprep.subr.bf16.mxu0 %v13047_v54 }
 0x84a   :  { %v4540_v18 = vadd.f32 %v4443_v30, %v4266_v46  ;;  %5293 = vmatprep.mubr.bf16.mxu0 %v15141_v23  ;;  %5406 = vmatprep.mubr.bf16.mxu1 %v15141_v23  ;;  %v4635_v21 = vmax.f32 %v4539_v37, 0.0  ;;  %v4273_v30 = vadd.f32 %v15112_v58, %v15066_v5  ;;  %v4209_v5 = vpop.f32.mrf.mxu0 }
 0x84b   :  { %v4445_v25 = vpop.f32.mrf.mxu1  ;;  %5294 = vmatmul.mubr.bf16.gmra.mxu0 %v15133_v3  ;;  %5407 = vmatmul.mubr.bf16.gmra.mxu1 %v15133_v3 }
 0x84c   :  { %v4636_v53 = vmax.f32 %v4540_v18, 0.0  ;;  %v4541_v44 = vadd.f32 %v4445_v25, %v4267_v28  ;;  %5482 = vmatpush1.bf16.msra.mxu0 %v13045_v4  ;;  %v13057_v18 = vld [vmem:[#allocation5 + $0x640] ss:$24 sps:$4 sm:$0xff]  }
 0x84d   :  { %v4449_v12 = vpop.f32.mrf.mxu1  ;;  %5483 = vmatprep.subr.bf16.mxu0 %v13050_v47  ;;  %v4274_v47 = vadd.f32 %v15114_v50, %v15070_v41 }
 0x84e   :  { %v15153_v10 = vpack.c.bf16 %v4636_v53, %v4634_v26  ;;  %v4637_v24 = vmax.f32 %v4541_v44, 0.0  ;;  %v4542_v45 = vadd.f32 %v4449_v12, %v4268_v57 }
 0x84f   :  { %v4451_v15 = vpop.f32.mrf.mxu1 }
 0x850   :  { %5484 = vmatpush1.bf16.msra.mxu0 %v13048_v61  ;;  %v15161_v33 = vpack.c.bf16 %v4637_v24, %v4635_v21  ;;  %v4543_v11 = vadd.f32 %v4451_v15, %v4269_v42  ;;  %v4638_v39 = vmax.f32 %v4542_v45, 0.0  ;;  %v13060_v61 = vld [vmem:[#allocation5 + $0x610] ss:$24 sps:$4 sm:$0xff]   ;;  %v4211_v24 = vpop.f32.mrf.mxu0  ;;  %v4277_v42 = vadd.f32 %v15135_v60, %v15078_v9 }
 0x851   :  { %v4453_v13 = vpop.f32.mrf.mxu1  ;;  %5485 = vmatprep.subr.bf16.mxu0 %v13053_v55  ;;  %v4283_v20 = vadd.f32 %v4211_v24, %v16917_v59 }
 0x852   :  { %v4544_v54 = vadd.f32 %v4453_v13, %v4270_v27  ;;  %5303 = vmatprep.mubr.bf16.mxu0 %v15161_v33  ;;  %5416 = vmatprep.mubr.bf16.mxu1 %v15161_v33  ;;  %v4639_v48 = vmax.f32 %v4543_v11, 0.0  ;;  %v4278_v27 = vadd.f32 %v15147_v36, %v15082_v8  ;;  %v13063_v13 = vld [vmem:[#allocation5 + $0x8e0] ss:$24 sps:$4 sm:$0xff]   ;;  %v4215_v9 = vpop.f32.mrf.mxu0 }
 0x853   :  { %v4455_v62 = vpop.f32.mrf.mxu1  ;;  %5304 = vmatmul.mubr.bf16.gmra.mxu0 %v15153_v10  ;;  %5417 = vmatmul.mubr.bf16.gmra.mxu1 %v15153_v10 }
 0x854   :  { %v4640_v14 = vmax.f32 %v4544_v54, 0.0  ;;  %v4545_v22 = vadd.f32 %v4455_v62, %v4271_v19  ;;  %5486 = vmatpush1.bf16.msra.mxu0 %v13051_v0  ;;  %v13066_v62 = vld [vmem:[#allocation5 + $0x8b0] ss:$24 sps:$4 sm:$0xff]  }
 0x855   :  { %v4459_v38 = vpop.f32.mrf.mxu1  ;;  %5487 = vmatprep.subr.bf16.mxu0 %v13056_v2 }
 0x856   :  { %v15173_v56 = vpack.c.bf16 %v4640_v14, %v4638_v39  ;;  %v4641_v46 = vmax.f32 %v4545_v22, 0.0  ;;  %v4546_v28 = vadd.f32 %v4459_v38, %v4272_v35  ;;  %v4217_v38 = vpop.f32.mrf.mxu0  ;;  %v4281_v35 = vadd.f32 %v15175_v16, %v15090_v17 }
 0x857   :  { %v4461_v4 = vpop.f32.mrf.mxu1 }
 0x858   :  { %5488 = vmatpush1.bf16.msra.mxu0 %v13054_v63  ;;  %v15181_v37 = vpack.c.bf16 %v4641_v46, %v4639_v48  ;;  %v4547_v26 = vadd.f32 %v4461_v4, %v4273_v30  ;;  %v4642_v41 = vmax.f32 %v4546_v28, 0.0  ;;  %v4282_v48 = vadd.f32 %v4209_v5, %v15094_v1  ;;  %v13069_v30 = vld [vmem:[#allocation5 + $0x880] ss:$24 sps:$4 sm:$0xff]   ;;  %v13074_v28 = vld [vmem:[#allocation5 + $0x854] ss:$24 sps:$4 sm:$0xff]  }
 0x859   :  { %v4463_v25 = vpop.f32.mrf.mxu1  ;;  %5489 = vmatprep.subr.bf16.mxu0 %v13059_v32  ;;  %v13077_v5 = vld [vmem:[#allocation5 + $0x824] ss:$24 sps:$4 sm:$0xff]  }
 0x85a   :  { %v4548_v53 = vadd.f32 %v4463_v25, %v4274_v47  ;;  %5313 = vmatprep.mubr.bf16.mxu0 %v15181_v37  ;;  %5426 = vmatprep.mubr.bf16.mxu1 %v15181_v37  ;;  %v4643_v55 = vmax.f32 %v4547_v26, 0.0  ;;  %v13072_v26 = vld [vmem:[#allocation5 + $0x850] ss:$24 sps:$4 sm:$0xff]  }
 0x85b   :  { %v4465_v58 = vpop.f32.mrf.mxu1  ;;  %5314 = vmatmul.mubr.bf16.gmra.mxu0 %v15173_v56  ;;  %5427 = vmatmul.mubr.bf16.gmra.mxu1 %v15173_v56 }
 0x85c   :  { %v4644_v50 = vmax.f32 %v4548_v53, 0.0  ;;  %v4549_v44 = vadd.f32 %v4465_v58, %v4275_v52  ;;  %5490 = vmatpush1.bf16.msra.mxu0 %v13057_v18  ;;  %v16918_v58 = vld [vmem:[#allocation16_spill] sm:$0xff] }
 0x85d   :  { %v4469_v12 = vpop.f32.mrf.mxu1  ;;  %5491 = vmatprep.subr.bf16.mxu0 %v13062_v6  ;;  %v4219_v6 = vpop.f32.mrf.mxu0 }
 0x85e   :  { %v15191_v57 = vpack.c.bf16 %v4644_v50, %v4642_v41  ;;  %v4645_v21 = vmax.f32 %v4549_v44, 0.0  ;;  %v4550_v45 = vadd.f32 %v4469_v12, %v4276_v40  ;;  %v4284_v41 = vadd.f32 %v4215_v9, %v16918_v58  ;;  %v16919_v40 = vld [vmem:[#allocation18_spill] sm:$0xff] }
 0x85f   :  { %v4471_v15 = vpop.f32.mrf.mxu1  ;;  %v4221_v12 = vpop.f32.mrf.mxu0 }
 0x860   :  { %5492 = vmatpush1.bf16.msra.mxu0 %v13060_v61  ;;  %v15197_v0 = vpack.c.bf16 %v4645_v21, %v4643_v55  ;;  %v4551_v19 = vadd.f32 %v4471_v15, %v4277_v42  ;;  %v4646_v8 = vmax.f32 %v4550_v45, 0.0  ;;  %v4285_v55 = vadd.f32 %v4217_v38, %v16919_v40  ;;  %v16920_v21 = vld [vmem:[#allocation22_spill] sm:$0xff] }
 0x861   :  { %v4473_v2 = vpop.f32.mrf.mxu1  ;;  %5493 = vmatprep.subr.bf16.mxu0 %v13065_v34  ;;  %v4286_v24 = vadd.f32 %v4219_v6, %v16920_v21  ;;  %v13084_v38 = vld [vmem:[#allocation5 + $0x790] ss:$24 sps:$4 sm:$0xff]  }
 0x862   :  { %v4552_v11 = vadd.f32 %v4473_v2, %v4278_v27  ;;  %5323 = vmatprep.mubr.bf16.mxu0 %v15197_v0  ;;  %5436 = vmatprep.mubr.bf16.mxu1 %v15197_v0  ;;  %v4647_v14 = vmax.f32 %v4551_v19, 0.0  ;;  %v13075_v27 = vld [vmem:[#allocation5 + $0x820] ss:$24 sps:$4 sm:$0xff]   ;;  %v16921_v2 = vld [vmem:[#allocation15_spill] sm:$0xff] }
 0x863   :  { %v4475_v60 = vpop.f32.mrf.mxu1  ;;  %5324 = vmatmul.mubr.bf16.gmra.mxu0 %v15191_v57  ;;  %5437 = vmatmul.mubr.bf16.gmra.mxu1 %v15191_v57 }
 0x864   :  { %v4648_v36 = vmax.f32 %v4552_v11, 0.0  ;;  %v4553_v54 = vadd.f32 %v4475_v60, %v4279_v7  ;;  %5494 = vmatpush2.bf16.msra.mxu0 %v13063_v13  ;;  %v13080_v13 = vld [vmem:[#allocation5 + $0x7f4] ss:$24 sps:$4 sm:$0xff]  }
 0x865   :  { %v4479_v39 = vpop.f32.mrf.mxu1  ;;  %5495 = vmatprep.subr.bf16.mxu0 %v13068_v31  ;;  %v4287_v31 = vadd.f32 %v4221_v12, %v16921_v2 }
 0x866   :  { %v15207_v22 = vpack.c.bf16 %v4648_v36, %v4646_v8  ;;  %v4649_v63 = vmax.f32 %v4553_v54, 0.0  ;;  %v4554_v46 = vadd.f32 %v4479_v39, %v4280_v29  ;;  %v13078_v36 = vld [vmem:[#allocation5 + $0x7f0] ss:$24 sps:$4 sm:$0xff]   ;;  %v13083_v54 = vld [vmem:[#allocation5 + $0x7c4] ss:$24 sps:$4 sm:$0xff]  }
 0x867   :  { %v4481_v32 = vpop.f32.mrf.mxu1 }
 0x868   :  { %5496 = vmatpush2.bf16.msra.mxu0 %v13066_v62  ;;  %v15212_v4 = vpack.c.bf16 %v4649_v63, %v4647_v14  ;;  %v4555_v18 = vadd.f32 %v4481_v32, %v4281_v35  ;;  %v4650_v1 = vmax.f32 %v4554_v46, 0.0  ;;  %v13081_v14 = vld [vmem:[#allocation5 + $0x7c0] ss:$24 sps:$4 sm:$0xff]   ;;  %v13086_v63 = vld [vmem:[#allocation5 + $0x794] ss:$24 sps:$4 sm:$0xff]   ;;  %v16922_v32 = vmov 0  }
 0x869   :  { %v4483_v47 = vpop.f32.mrf.mxu1  ;;  %5497 = vmatprep.subr.bf16.mxu0 %v13071_v43 }
 0x86a   :  { %v4556_v25 = vadd.f32 %v4483_v47, %v4282_v48  ;;  %5333 = vmatprep.mubr.bf16.mxu0 %v15212_v4  ;;  %5446 = vmatprep.mubr.bf16.mxu1 %v15212_v4  ;;  %v4651_v50 = vmax.f32 %v4555_v18, 0.0 }
 0x86b   :  { %v4485_v17 = vpop.f32.mrf.mxu1  ;;  %5334 = vmatmul.mubr.bf16.gmra.mxu0 %v15207_v22  ;;  %5447 = vmatmul.mubr.bf16.gmra.mxu1 %v15207_v22 }
 0x86c   :  { %v4652_v16 = vmax.f32 %v4556_v25, 0.0  ;;  %v4557_v52 = vadd.f32 %v4485_v17, %v4283_v20  ;;  %5498 = vmatpush2.bf16.msra.mxu0 %v13069_v30 }
 0x86d   :  { %v4489_v53 = vpop.f32.mrf.mxu1  ;;  %5499 = vmatprep.subr.bf16.mxu0 %v13074_v28 }
 0x86e   :  { %v4670_v44 = vpack.c.bf16 %v4652_v16, %v4650_v1  ;;  %v4653_v61 = vmax.f32 %v4557_v52, 0.0  ;;  %v4558_v15 = vadd.f32 %v4489_v53, %v4284_v41 }
 0x86f   :  { %v4491_v34 = vpop.f32.mrf.mxu1 }
 0x870   :  { %5500 = vmatpush2.bf16.msra.mxu0 %v13072_v26  ;;  %v4671_v42 = vpack.c.bf16 %v4653_v61, %v4651_v50  ;;  %v4559_v7 = vadd.f32 %v4491_v34, %v4285_v55  ;;  %v4654_v9 = vmax.f32 %v4558_v15, 0.0 }
 0x871   :  { %v4493_v45 = vpop.f32.mrf.mxu1  ;;  %5501 = vmatprep.subr.bf16.mxu0 %v13077_v5 }
 0x872   :  { %v4560_v19 = vadd.f32 %v4493_v45, %v4286_v24  ;;  %5343 = vmatprep.mubr.bf16.mxu0 %v4671_v42  ;;  %5456 = vmatprep.mubr.bf16.mxu1 %v4671_v42  ;;  %v4655_v62 = vmax.f32 %v4559_v7, 0.0 }
 0x873   :  { %v4495_v11 = vpop.f32.mrf.mxu1  ;;  %5344 = vmatmul.mubr.bf16.gmra.mxu0 %v4670_v44  ;;  %5457 = vmatmul.mubr.bf16.gmra.mxu1 %v4670_v44 }
 0x874   :  { %v4656_v60 = vmax.f32 %v4560_v19, 0.0  ;;  %v4561_v8 = vadd.f32 %v4495_v11, %v4287_v31  ;;  %5502 = vmatpush2.bf16.msra.mxu0 %v13075_v27 }
 0x875   :  { %5503 = vmatprep.subr.bf16.mxu0 %v13080_v13 }
 0x876   :  { %v4672_v39 = vpack.c.bf16 %v4656_v60, %v4654_v9  ;;  %v4657_v43 = vmax.f32 %v4561_v8, 0.0 }
 0x878   :  { %5504 = vmatpush2.bf16.msra.mxu0 %v13078_v36  ;;  %v4673_v29 = vpack.c.bf16 %v4657_v43, %v4655_v62 }
 0x879   :  { %5505 = vmatprep.subr.bf16.mxu0 %v13083_v54 }
 0x87a   :  { %5353 = vmatprep.mubr.bf16.mxu0 %v4673_v29  ;;  %5466 = vmatprep.mubr.bf16.mxu1 %v4673_v29 }
 0x87b   :  { %5354 = vmatmul.mubr.bf16.gmra.mxu0 %v4672_v39  ;;  %5467 = vmatmul.mubr.bf16.gmra.mxu1 %v4672_v39 }
 0x87c   :  { %5506 = vmatpush2.bf16.msra.mxu0 %v13081_v14  ;;  %5509 = vmatprep.mubr.bf16.mxu0 %v15122_v51 }
 0x87d   :  { %5507 = vmatprep.subr.bf16.mxu0 %v13086_v63  ;;  %5735 = vmatprep.mubr.bf16.mxu1 %v16922_v32 }
 0x880   :  { %5508 = vmatpush2.bf16.msra.mxu0 %v13084_v38 }
 0x883   :  { %5510 = vmatmul.mubr.bf16.vlgmr.msra.gmra.mxu0 %v15116_v49 }
 0x884   :  { %5519 = vmatprep.mubr.bf16.mxu0 %v15141_v23 }
 0x88b   :  { %5520 = vmatmul.mubr.bf16.gmra.mxu0 %v15133_v3 }
 0x88c   :  { %5529 = vmatprep.mubr.bf16.mxu0 %v15161_v33 }
 0x893   :  { %5530 = vmatmul.mubr.bf16.gmra.mxu0 %v15153_v10 }
 0x894   :  { %5539 = vmatprep.mubr.bf16.mxu0 %v15181_v37 }
 0x89b   :  { %5540 = vmatmul.mubr.bf16.gmra.mxu0 %v15173_v56 }
 0x89c   :  { %5549 = vmatprep.mubr.bf16.mxu0 %v15197_v0 }
 0x8a3   :  { %5550 = vmatmul.mubr.bf16.gmra.mxu0 %v15191_v57 }
 0x8a4   :  { %5559 = vmatprep.mubr.bf16.mxu0 %v15212_v4 }
 0x8ab   :  { %5560 = vmatmul.mubr.bf16.gmra.mxu0 %v15207_v22 }
 0x8ac   :  { %5569 = vmatprep.mubr.bf16.mxu0 %v4671_v42 }
 0x8b3   :  { %5570 = vmatmul.mubr.bf16.gmra.mxu0 %v4670_v44 }
 0x8b4   :  { %5579 = vmatprep.mubr.bf16.mxu0 %v4673_v29 }
 0x8bb   :  { %5580 = vmatmul.mubr.bf16.gmra.mxu0 %v4672_v39 }
 0x8bc   :  { %5945 = vmatprep.mubr.bf16.mxu0 %v16922_v32 }
 0x903   :  { %v15237_v49 = vpop.f32.mrf.mxu0  ;;  %v15239_v51 = vpop.f32.mrf.mxu1 }
 0x904   :  { %16923 = vst [vmem:[#allocation20_spill] sm:$0xff] %v15237_v49  ;;  %16924 = vst [vmem:[#allocation19_spill] sm:$0xff] %v15239_v51 }
 0x905   :  { %v15241_v3 = vpop.f32.mrf.mxu0  ;;  %v15243_v23 = vpop.f32.mrf.mxu1 }
 0x906   :  { %16925 = vst [vmem:[#allocation13_spill] sm:$0xff] %v15243_v23 }
 0x907   :  { %v15245_v10 = vpop.f32.mrf.mxu0  ;;  %v15247_v33 = vpop.f32.mrf.mxu1 }
 0x908   :  { %16926 = vst [vmem:[#allocation23_spill] sm:$0xff] %v15245_v10  ;;  %16927 = vst [vmem:[#allocation17_spill] sm:$0xff] %v15247_v33 }
 0x909   :  { %v15253_v57 = vpop.f32.mrf.mxu0  ;;  %v15255_v0 = vpop.f32.mrf.mxu1 }
 0x90a   :  { %16928 = vst [vmem:[#allocation21_spill] sm:$0xff] %v15253_v57  ;;  %16929 = vst [vmem:[#allocation14_spill] sm:$0xff] %v15255_v0 }
 0x90b   :  { %v15257_v22 = vpop.f32.mrf.mxu0  ;;  %v15259_v35 = vpop.f32.mrf.mxu1 }
 0x90c   :  { %16930 = vst [vmem:[#allocation16_spill] sm:$0xff] %v15257_v22  ;;  %16931 = vst [vmem:[#allocation18_spill] sm:$0xff] %v15259_v35 }
 0x90d   :  { %v15261_v48 = vpop.f32.mrf.mxu0  ;;  %v15263_v46 = vpop.f32.mrf.mxu1 }
 0x90f   :  { %v15265_v4 = vpop.f32.mrf.mxu0  ;;  %v15267_v30 = vpop.f32.mrf.mxu1 }
 0x910   :  { %16932 = vst [vmem:[#allocation22_spill] sm:$0xff] %v15265_v4  ;;  %16933 = vst [vmem:[#allocation15_spill] sm:$0xff] %v15267_v30 }
 0x911   :  { %v15273_v59 = vpop.f32.mrf.mxu0  ;;  %v15275_v20 = vpop.f32.mrf.mxu1 }
 0x913   :  { %v15277_v18 = vpop.f32.mrf.mxu0  ;;  %v15279_v25 = vpop.f32.mrf.mxu1 }
 0x915   :  { %v15281_v6 = vpop.f32.mrf.mxu0  ;;  %v15283_v17 = vpop.f32.mrf.mxu1 }
 0x917   :  { %v15285_v1 = vpop.f32.mrf.mxu0  ;;  %v15287_v16 = vpop.f32.mrf.mxu1 }
 0x919   :  { %v15289_v52 = vpop.f32.mrf.mxu0  ;;  %v15291_v26 = vpop.f32.mrf.mxu1 }
 0x91b   :  { %v15293_v53 = vpop.f32.mrf.mxu0  ;;  %v15295_v5 = vpop.f32.mrf.mxu1 }
 0x91d   :  { %v15297_v58 = vpop.f32.mrf.mxu0  ;;  %v15299_v41 = vpop.f32.mrf.mxu1 }
 0x91f   :  { %v15301_v50 = vpop.f32.mrf.mxu0  ;;  %v15303_v44 = vpop.f32.mrf.mxu1 }
 0x921   :  { %v15305_v61 = vpop.f32.mrf.mxu0  ;;  %v15307_v12 = vpop.f32.mrf.mxu1 }
 0x923   :  { %v15309_v34 = vpop.f32.mrf.mxu0  ;;  %v15311_v40 = vpop.f32.mrf.mxu1 }
 0x925   :  { %v15313_v55 = vpop.f32.mrf.mxu0  ;;  %v15315_v21 = vpop.f32.mrf.mxu1 }
 0x927   :  { %v15317_v24 = vpop.f32.mrf.mxu0  ;;  %v15319_v15 = vpop.f32.mrf.mxu1 }
 0x929   :  { %v5331_v42 = vpop.f32.mrf.mxu0  ;;  %v5444_v27 = vpop.f32.mrf.mxu1 }
 0x92b   :  { %v5335_v45 = vpop.f32.mrf.mxu0  ;;  %v5448_v13 = vpop.f32.mrf.mxu1 }
 0x92d   :  { %v5337_v2 = vpop.f32.mrf.mxu0  ;;  %v5450_v31 = vpop.f32.mrf.mxu1 }
 0x92f   :  { %v5339_v7 = vpop.f32.mrf.mxu0  ;;  %v5452_v19 = vpop.f32.mrf.mxu1 }
 0x931   :  { %v5341_v11 = vpop.f32.mrf.mxu0  ;;  %v5454_v9 = vpop.f32.mrf.mxu1 }
 0x933   :  { %v5345_v60 = vpop.f32.mrf.mxu0  ;;  %v5458_v8 = vpop.f32.mrf.mxu1 }
 0x935   :  { %v5347_v36 = vpop.f32.mrf.mxu0  ;;  %v5460_v54 = vpop.f32.mrf.mxu1 }
 0x937   :  { %v5349_v62 = vpop.f32.mrf.mxu0  ;;  %v5462_v39 = vpop.f32.mrf.mxu1 }
 0x938   :  { %v5626_v0 = vpack.c.bf16 %v5349_v62, %v5345_v60  ;;  %v5628_v23 = vpack.c.bf16 %v5462_v39, %v5458_v8  ;;  %v16947_v60 = vld [vmem:[#allocation19_spill] sm:$0xff]  ;;  %v16949_v62 = vmov 0  }
 0x939   :  { %v5351_v43 = vpop.f32.mrf.mxu0  ;;  %v5464_v29 = vpop.f32.mrf.mxu1 }
 0x93a   :  { %v5627_v30 = vpack.c.bf16 %v5351_v43, %v5347_v36  ;;  %v5629_v22 = vpack.c.bf16 %v5464_v29, %v5460_v54  ;;  %v13089_v43 = vld [vmem:[#allocation3 + $0x188] sm:$0xff]  }
 0x93b   :  { %v5355_v14 = vpop.f32.mrf.mxu0  ;;  %v5468_v63 = vpop.f32.mrf.mxu1  ;;  %v13090_v29 = vld [vmem:[#allocation3 + $0x1c8] sm:$0xff]  }
 0x93d   :  { %v5357_v38 = vpop.f32.mrf.mxu0  ;;  %v5470_v37 = vpop.f32.mrf.mxu1 }
 0x93f   :  { %v5359_v56 = vpop.f32.mrf.mxu0  ;;  %v5472_v28 = vpop.f32.mrf.mxu1 }
 0x940   :  { %v5632_v49 = vpack.c.bf16 %v5359_v56, %v5355_v14  ;;  %v5634_v10 = vpack.c.bf16 %v5472_v28, %v5468_v63 }
 0x941   :  { %v5361_v47 = vpop.f32.mrf.mxu0  ;;  %v5474_v32 = vpop.f32.mrf.mxu1 }
 0x942   :  { %v5633_v51 = vpack.c.bf16 %v5361_v47, %v5357_v38  ;;  %v5635_v33 = vpack.c.bf16 %v5474_v32, %v5470_v37  ;;  %v5621_v47 = vpack.c.bf16 %v5341_v11, %v5337_v2  ;;  %v5623_v32 = vpack.c.bf16 %v5454_v9, %v5450_v31  ;;  %v13087_v2 = vld [vmem:[#allocation3 + $0x180] sm:$0xff]  }
 0x943   :  { %v15321_v35 = vpop.f32.mrf.mxu0  ;;  %v13088_v31 = vld [vmem:[#allocation3 + $0x1c0] sm:$0xff]  }
 0x944   :  { %5703 = vmatprep.subr.bf16.mxu1 %v5633_v51  ;;  %5913 = vmatprep.subr.bf16.mxu0 %v5635_v33  ;;  %v5620_v51 = vpack.c.bf16 %v5339_v7, %v5335_v45  ;;  %v5615_v33 = vpack.c.bf16 %v5331_v42, %v15313_v55  ;;  %v5609_v45 = vpack.c.bf16 %v15305_v61, %v15297_v58  ;;  %v16943_v7 = vld [vmem:[#allocation23_spill] sm:$0xff]  ;;  %v16946_v9 = vld [vmem:[#allocation17_spill] sm:$0xff] }
 0x945   :  { %v15323_v4 = vpop.f32.mrf.mxu0  ;;  %5704 = vmatpush1.bf16.msra.mxu1 %v5632_v49  ;;  %5914 = vmatpush1.bf16.msra.mxu0 %v5634_v10  ;;  %v5622_v49 = vpack.c.bf16 %v5452_v19, %v5448_v13  ;;  %v5611_v55 = vpack.c.bf16 %v15307_v12, %v15299_v41  ;;  %v5603_v58 = vpack.c.bf16 %v15289_v52, %v15281_v6  ;;  %v16944_v19 = vld [vmem:[#allocation20_spill] sm:$0xff] }
 0x946   :  { %5705 = vmatprep.subr.bf16.mxu1 %v5627_v30  ;;  %5915 = vmatprep.subr.bf16.mxu0 %v5629_v22  ;;  %v5617_v22 = vpack.c.bf16 %v5444_v27, %v15315_v21  ;;  %v5605_v41 = vpack.c.bf16 %v15291_v26, %v15283_v17  ;;  %v5597_v6 = vpack.c.bf16 %v15273_v59, %v15261_v48  ;;  %v16937_v48 = vld [vmem:[#allocation22_spill] sm:$0xff]  ;;  %v16938_v59 = vld [vmem:[#allocation16_spill] sm:$0xff] }
 0x947   :  { %v15325_v57 = vpop.f32.mrf.mxu0  ;;  %v5599_v17 = vpack.c.bf16 %v15275_v20, %v15263_v46  ;;  %v16940_v46 = vld [vmem:[#allocation15_spill] sm:$0xff]  ;;  %v16941_v20 = vld [vmem:[#allocation18_spill] sm:$0xff]  ;;  %v16945_v11 = vpack.c.bf16 %v16943_v7, %v16944_v19  ;;  %v16948_v8 = vpack.c.bf16 %v16946_v9, %v16947_v60  ;;  %v13131_v9 = vld [vmem:[#allocation5 + $0x9c4] ss:$24 sps:$4 sm:$0xff]  }
 0x948   :  { %v5594_v56 = vpack.c.bf16 %v15325_v57, %v15321_v35  ;;  %v16942_v27 = vpack.c.bf16 %v16940_v46, %v16941_v20  ;;  %v13099_v46 = vld [vmem:[#allocation3 + $0x1b0] sm:$0xff]   ;;  %v13122_v57 = vld [vmem:[#allocation5 + $0xa2c] ss:$24 sps:$4 sm:$0xff]   ;;  %v13117_v35 = vld [vmem:[#allocation5 + $0xa20] ss:$24 sps:$4 sm:$0xff]  }
 0x949   :  { %v15329_v37 = vpop.f32.mrf.mxu0  ;;  %5706 = vmatpush1.bf16.msra.mxu1 %v5626_v0  ;;  %5916 = vmatpush1.bf16.msra.mxu0 %v5628_v23  ;;  %v5614_v0 = vpack.c.bf16 %v15317_v24, %v15309_v34  ;;  %v5616_v23 = vpack.c.bf16 %v15319_v15, %v15311_v40  ;;  %v5608_v34 = vpack.c.bf16 %v15301_v50, %v15293_v53  ;;  %v13100_v20 = vld [vmem:[#allocation3 + $0x1f0] sm:$0xff]   ;;  %v13134_v60 = vld [vmem:[#allocation5 + $0x9cc] ss:$24 sps:$4 sm:$0xff]  }
 0x94a   :  { %5707 = vmatprep.subr.bf16.mxu1 %v5621_v47  ;;  %5917 = vmatprep.subr.bf16.mxu0 %v5623_v32  ;;  %v5610_v40 = vpack.c.bf16 %v15303_v44, %v15295_v5  ;;  %v5602_v53 = vpack.c.bf16 %v15285_v1, %v15277_v18  ;;  %v5604_v5 = vpack.c.bf16 %v15287_v16, %v15279_v25  ;;  %v16934_v18 = vld [vmem:[#allocation21_spill] sm:$0xff]  ;;  %v16936_v16 = vld [vmem:[#allocation14_spill] sm:$0xff]  ;;  %v13091_v32 = vld [vmem:[#allocation3 + $0x190] sm:$0xff]  }
 0x94b   :  { %v15331_v10 = vpop.f32.mrf.mxu0  ;;  %v5591_v1 = vpack.c.bf16 %v16934_v18, %v15241_v3  ;;  %v16935_v25 = vld [vmem:[#allocation13_spill] sm:$0xff]  ;;  %v16939_v15 = vpack.c.bf16 %v16937_v48, %v16938_v59 }
 0x94c   :  { %v5593_v44 = vpack.c.bf16 %v16936_v16, %v16935_v25  ;;  %v13097_v25 = vld [vmem:[#allocation3 + $0x1a8] sm:$0xff]  }
 0x94d   :  { %v15335_v30 = vpop.f32.mrf.mxu0  ;;  %5708 = vmatpush1.bf16.msra.mxu1 %v5620_v51  ;;  %5918 = vmatpush1.bf16.msra.mxu0 %v5622_v49  ;;  %v13092_v51 = vld [vmem:[#allocation3 + $0x1d0] sm:$0xff]   ;;  %v13098_v16 = vld [vmem:[#allocation3 + $0x1e8] sm:$0xff]  }
 0x94e   :  { %5709 = vmatprep.subr.bf16.mxu1 %v5615_v33  ;;  %5919 = vmatprep.subr.bf16.mxu0 %v5617_v22 }
 0x94f   :  { %v15341_v28 = vpop.f32.mrf.mxu0 }
 0x950   :  { %v5600_v21 = vpack.c.bf16 %v15341_v28, %v15331_v10  ;;  %v13119_v10 = vld [vmem:[#allocation5 + $0xa24] ss:$24 sps:$4 sm:$0xff]  }
 0x951   :  { %v15349_v42 = vpop.f32.mrf.mxu0  ;;  %5710 = vmatpush1.bf16.msra.mxu1 %v5614_v0  ;;  %5920 = vmatpush1.bf16.msra.mxu0 %v5616_v23  ;;  %v13093_v23 = vld [vmem:[#allocation3 + $0x198] sm:$0xff]  }
 0x952   :  { %5711 = vmatprep.subr.bf16.mxu1 %v5609_v45  ;;  %5921 = vmatprep.subr.bf16.mxu0 %v5611_v55  ;;  %v13094_v45 = vld [vmem:[#allocation3 + $0x1d8] sm:$0xff]   ;;  %v5601_v19 = vpack.c.bf16 %v15349_v42, %v15335_v30  ;;  %v13104_v30 = vld [vmem:[#allocation3 + $0x208] sm:$0xff]  }
 0x953   :  { %v15355_v24 = vpop.f32.mrf.mxu0  ;;  %v13116_v42 = vld [vmem:[#allocation5 + $0xa5c] ss:$24 sps:$4 sm:$0xff]  }
 0x954   :  { %v13106_v28 = vld [vmem:[#allocation3 + $0x218] sm:$0xff]  }
 0x955   :  { %v15361_v61 = vpop.f32.mrf.mxu0  ;;  %5712 = vmatpush1.bf16.msra.mxu1 %v5608_v34  ;;  %5922 = vmatpush1.bf16.msra.mxu0 %v5610_v40 }
 0x956   :  { %5713 = vmatprep.subr.bf16.mxu1 %v5603_v58  ;;  %5923 = vmatprep.subr.bf16.mxu0 %v5605_v41  ;;  %v13095_v41 = vld [vmem:[#allocation3 + $0x1a0] sm:$0xff]  }
 0x957   :  { %v15367_v50 = vpop.f32.mrf.mxu0 }
 0x958   :  { %v5606_v7 = vpack.c.bf16 %v15367_v50, %v15355_v24  ;;  %v13103_v24 = vld [vmem:[#allocation3 + $0x200] sm:$0xff]   ;;  %v13111_v50 = vld [vmem:[#allocation5 + $0xa50] ss:$24 sps:$4 sm:$0xff]  }
 0x959   :  { %v15373_v52 = vpop.f32.mrf.mxu0  ;;  %5714 = vmatpush1.bf16.msra.mxu1 %v5602_v53  ;;  %5924 = vmatpush1.bf16.msra.mxu0 %v5604_v5  ;;  %v13096_v53 = vld [vmem:[#allocation3 + $0x1e0] sm:$0xff]  }
 0x95a   :  { %5715 = vmatprep.subr.bf16.mxu1 %v5597_v6  ;;  %5925 = vmatprep.subr.bf16.mxu0 %v5599_v17 }
 0x95b   :  { %v15375_v26 = vpop.f32.mrf.mxu0 }
 0x95d   :  { %v15381_v12 = vpop.f32.mrf.mxu0  ;;  %5716 = vmatpush1.bf16.msra.mxu1 %v16939_v15  ;;  %5926 = vmatpush1.bf16.msra.mxu0 %v16942_v27 }
 0x95e   :  { %5717 = vmatprep.subr.bf16.mxu1 %v5591_v1  ;;  %5927 = vmatprep.subr.bf16.mxu0 %v5593_v44 }
 0x95f   :  { %v15389_v13 = vpop.f32.mrf.mxu0 }
 0x961   :  { %v15391_v3 = vpop.f32.mrf.mxu0  ;;  %5718 = vmatpush1.bf16.msra.mxu1 %v16945_v11  ;;  %5928 = vmatpush1.bf16.msra.mxu0 %v16948_v8  ;;  %v13126_v11 = vld [vmem:[#allocation5 + $0x9f8] ss:$24 sps:$4 sm:$0xff]  }
 0x962   :  { %v5613_v27 = vpack.c.bf16 %v15391_v3, %v15381_v12  ;;  %v13101_v12 = vld [vmem:[#allocation3 + $0x1b8] sm:$0xff]  }
 0x963   :  { %v15399_v36 = vpop.f32.mrf.mxu0  ;;  %v13102_v3 = vld [vmem:[#allocation3 + $0x1f8] sm:$0xff]  }
 0x964   :  { %5736 = vmatmul.mubr.bf16.vlgmr.msra.gmra.mxu1 %v13087_v2  ;;  %5946 = vmatmul.mubr.bf16.vlgmr.msra.gmra.mxu0 %v13088_v31  ;;  %v5612_v2 = vpack.c.bf16 %v15389_v13, %v15375_v26  ;;  %v5607_v31 = vpack.c.bf16 %v15373_v52, %v15361_v61  ;;  %v5595_v61 = vpack.c.bf16 %v15329_v37, %v15323_v4  ;;  %v13105_v4 = vld [vmem:[#allocation3 + $0x210] sm:$0xff]   ;;  %v13129_v8 = vld [vmem:[#allocation5 + $0x9c0] ss:$24 sps:$4 sm:$0xff]  }
 0x965   :  { %v5553_v54 = vpop.f32.mrf.mxu0  ;;  %5745 = vmatprep.mubr.bf16.mxu1 %v16949_v62  ;;  %5955 = vmatprep.mubr.bf16.mxu0 %v16949_v62  ;;  %v13113_v37 = vld [vmem:[#allocation5 + $0xa54] ss:$24 sps:$4 sm:$0xff]   ;;  %v13114_v52 = vld [vmem:[#allocation5 + $0xa58] ss:$24 sps:$4 sm:$0xff]  }
 0x966   :  { %7053 = vmatprep.subr.bf16.mxu0 %v13113_v37  ;;  %v13128_v26 = vld [vmem:[#allocation5 + $0x9fc] ss:$24 sps:$4 sm:$0xff]   ;;  %v13123_v13 = vld [vmem:[#allocation5 + $0x9f0] ss:$24 sps:$4 sm:$0xff]  }
 0x967   :  { %v5555_v39 = vpop.f32.mrf.mxu0  ;;  %7054 = vmatpush1.bf16.msra.mxu0 %v13111_v50  ;;  %v13195_v37 = vld [vmem:[#allocation5 + $0xab0] ss:$24 sps:$4 sm:$0xff]   ;;  %v13203_v50 = vld [vmem:[#allocation5 + $0xa84] ss:$24 sps:$4 sm:$0xff]  }
 0x968   :  { %v5618_v15 = vpack.c.bf16 %v5555_v39, %v15399_v36  ;;  %7055 = vmatprep.subr.bf16.mxu0 %v13119_v10  ;;  %v13132_v36 = vld [vmem:[#allocation5 + $0x9c8] ss:$24 sps:$4 sm:$0xff]   ;;  %v13137_v39 = vld [vmem:[#allocation5 + $0x994] ss:$24 sps:$4 sm:$0xff]  }
 0x969   :  { %v5557_v14 = vpop.f32.mrf.mxu0  ;;  %v13201_v10 = vld [vmem:[#allocation5 + $0xa80] ss:$24 sps:$4 sm:$0xff]  }
 0x96a   :  { %v5619_v59 = vpack.c.bf16 %v5557_v14, %v5553_v54  ;;  %v13107_v54 = vld [vmem:[#allocation3 + $0x220] sm:$0xff]   ;;  %v13138_v14 = vld [vmem:[#allocation5 + $0x998] ss:$24 sps:$4 sm:$0xff]  }
 0x96b   :  { %v5561_v63 = vpop.f32.mrf.mxu0  ;;  %7056 = vmatpush1.bf16.msra.mxu0 %v13117_v35  ;;  %v13209_v35 = vld [vmem:[#allocation5 + $0xa64] ss:$24 sps:$4 sm:$0xff]  }
 0x96c   :  { %5746 = vmatmul.mubr.bf16.gmra.mxu1 %v13089_v43  ;;  %5956 = vmatmul.mubr.bf16.gmra.mxu0 %v13090_v29  ;;  %v13140_v43 = vld [vmem:[#allocation5 + $0x99c] ss:$24 sps:$4 sm:$0xff]   ;;  %v13135_v29 = vld [vmem:[#allocation5 + $0x990] ss:$24 sps:$4 sm:$0xff]  }
 0x96d   :  { %v5563_v38 = vpop.f32.mrf.mxu0  ;;  %5755 = vmatprep.mubr.bf16.mxu1 %v16949_v62  ;;  %5965 = vmatprep.mubr.bf16.mxu0 %v16949_v62 }
 0x96f   :  { %v5565_v47 = vpop.f32.mrf.mxu0 }
 0x970   :  { %v5624_v48 = vpack.c.bf16 %v5565_v47, %v5561_v63  ;;  %v13143_v63 = vld [vmem:[#allocation5 + $0x964] ss:$24 sps:$4 sm:$0xff]   ;;  %v13141_v47 = vld [vmem:[#allocation5 + $0x960] ss:$24 sps:$4 sm:$0xff]  }
 0x971   :  { %v5567_v49 = vpop.f32.mrf.mxu0 }
 0x972   :  { %v5625_v44 = vpack.c.bf16 %v5567_v49, %v5563_v38  ;;  %v13146_v38 = vld [vmem:[#allocation5 + $0x96c] ss:$24 sps:$4 sm:$0xff]  }
 0x973   :  { %v5571_v33 = vpop.f32.mrf.mxu0  ;;  %v13149_v49 = vld [vmem:[#allocation5 + $0x934] ss:$24 sps:$4 sm:$0xff]  }
 0x974   :  { %5756 = vmatmul.mubr.bf16.gmra.mxu1 %v13091_v32  ;;  %5966 = vmatmul.mubr.bf16.gmra.mxu0 %v13092_v51  ;;  %v13144_v32 = vld [vmem:[#allocation5 + $0x968] ss:$24 sps:$4 sm:$0xff]  }
 0x975   :  { %v5573_v22 = vpop.f32.mrf.mxu0  ;;  %5765 = vmatprep.mubr.bf16.mxu1 %v16949_v62  ;;  %5975 = vmatprep.mubr.bf16.mxu0 %v16949_v62  ;;  %v13108_v51 = vld [vmem:[#allocation3 + $0x228] sm:$0xff]  }
 0x977   :  { %v5575_v0 = vpop.f32.mrf.mxu0 }
 0x978   :  { %v5630_v1 = vpack.c.bf16 %v5575_v0, %v5571_v33  ;;  %v13152_v33 = vld [vmem:[#allocation5 + $0x93c] ss:$24 sps:$4 sm:$0xff]   ;;  %v13150_v0 = vld [vmem:[#allocation5 + $0x938] ss:$24 sps:$4 sm:$0xff]  }
 0x979   :  { %v5577_v55 = vpop.f32.mrf.mxu0 }
 0x97a   :  { %v5631_v18 = vpack.c.bf16 %v5577_v55, %v5573_v22  ;;  %v13147_v22 = vld [vmem:[#allocation5 + $0x930] ss:$24 sps:$4 sm:$0xff]   ;;  %v13153_v55 = vld [vmem:[#allocation5 + $0x900] ss:$24 sps:$4 sm:$0xff]  }
 0x97b   :  { %v5581_v34 = vpop.f32.mrf.mxu0 }
 0x97c   :  { %5766 = vmatmul.mubr.bf16.gmra.mxu1 %v13093_v23  ;;  %5976 = vmatmul.mubr.bf16.gmra.mxu0 %v13094_v45  ;;  %v13155_v23 = vld [vmem:[#allocation5 + $0x904] ss:$24 sps:$4 sm:$0xff]  }
 0x97d   :  { %v5583_v40 = vpop.f32.mrf.mxu0  ;;  %5775 = vmatprep.mubr.bf16.mxu1 %v16949_v62  ;;  %5985 = vmatprep.mubr.bf16.mxu0 %v16949_v62  ;;  %v13158_v45 = vld [vmem:[#allocation5 + $0x90c] ss:$24 sps:$4 sm:$0xff]  }
 0x97f   :  { %v5585_v58 = vpop.f32.mrf.mxu0 }
 0x980   :  { %v5636_v17 = vpack.c.bf16 %v5585_v58, %v5581_v34  ;;  %v13156_v34 = vld [vmem:[#allocation5 + $0x908] ss:$24 sps:$4 sm:$0xff]   ;;  %v13161_v58 = vld [vmem:[#allocation5 + $0xbd4] ss:$24 sps:$4 sm:$0xff]  }
 0x981   :  { %v5587_v5 = vpop.f32.mrf.mxu0 }
 0x982   :  { %v5637_v6 = vpack.c.bf16 %v5587_v5, %v5583_v40  ;;  %v13109_v40 = vld [vmem:[#allocation3 + $0x230] sm:$0xff]  }
 0x983   :  { %v13162_v5 = vld [vmem:[#allocation5 + $0xbd8] ss:$24 sps:$4 sm:$0xff]  }
 0x984   :  { %5776 = vmatmul.mubr.bf16.gmra.mxu1 %v13095_v41  ;;  %5986 = vmatmul.mubr.bf16.gmra.mxu0 %v13096_v53  ;;  %v13164_v41 = vld [vmem:[#allocation5 + $0xbdc] ss:$24 sps:$4 sm:$0xff]   ;;  %v13159_v53 = vld [vmem:[#allocation5 + $0xbd0] ss:$24 sps:$4 sm:$0xff]  }
 0x985   :  { %6187 = vmatprep.subr.bf16.mxu1 %v5637_v6  ;;  %5785 = vmatprep.mubr.bf16.mxu1 %v16949_v62  ;;  %v13167_v6 = vld [vmem:[#allocation5 + $0xba4] ss:$24 sps:$4 sm:$0xff]  }
 0x986   :  { %6188 = vmatpush1.bf16.msra.mxu1 %v5636_v17  ;;  %5995 = vmatprep.mubr.bf16.mxu0 %v16949_v62  ;;  %v13170_v17 = vld [vmem:[#allocation5 + $0xbac] ss:$24 sps:$4 sm:$0xff]  }
 0x987   :  { %6189 = vmatprep.subr.bf16.mxu1 %v5631_v18  ;;  %v13165_v18 = vld [vmem:[#allocation5 + $0xba0] ss:$24 sps:$4 sm:$0xff]  }
 0x98a   :  { %6190 = vmatpush1.bf16.msra.mxu1 %v5630_v1  ;;  %v13168_v1 = vld [vmem:[#allocation5 + $0xba8] ss:$24 sps:$4 sm:$0xff]  }
 0x98b   :  { %6191 = vmatprep.subr.bf16.mxu1 %v5625_v44  ;;  %v13176_v44 = vld [vmem:[#allocation5 + $0xb7c] ss:$24 sps:$4 sm:$0xff]  }
 0x98c   :  { %5786 = vmatmul.mubr.bf16.gmra.mxu1 %v13097_v25  ;;  %5996 = vmatmul.mubr.bf16.gmra.mxu0 %v13098_v16  ;;  %v13110_v25 = vld [vmem:[#allocation3 + $0x238] sm:$0xff]   ;;  %v13173_v16 = vld [vmem:[#allocation5 + $0xb74] ss:$24 sps:$4 sm:$0xff]  }
 0x98d   :  { %5795 = vmatprep.mubr.bf16.mxu1 %v16949_v62  ;;  %6005 = vmatprep.mubr.bf16.mxu0 %v16949_v62 }
 0x98e   :  { %6192 = vmatpush1.bf16.msra.mxu1 %v5624_v48  ;;  %v13171_v48 = vld [vmem:[#allocation5 + $0xb70] ss:$24 sps:$4 sm:$0xff]  }
 0x98f   :  { %6193 = vmatprep.subr.bf16.mxu1 %v5619_v59  ;;  %v13174_v59 = vld [vmem:[#allocation5 + $0xb78] ss:$24 sps:$4 sm:$0xff]  }
 0x992   :  { %6194 = vmatpush1.bf16.msra.mxu1 %v5618_v15  ;;  %v13179_v15 = vld [vmem:[#allocation5 + $0xb44] ss:$24 sps:$4 sm:$0xff]  }
 0x993   :  { %6195 = vmatprep.subr.bf16.mxu1 %v5613_v27  ;;  %v13180_v27 = vld [vmem:[#allocation5 + $0xb48] ss:$24 sps:$4 sm:$0xff]  }
 0x994   :  { %5796 = vmatmul.mubr.bf16.gmra.mxu1 %v13099_v46  ;;  %6006 = vmatmul.mubr.bf16.gmra.mxu0 %v13100_v20  ;;  %v13182_v46 = vld [vmem:[#allocation5 + $0xb4c] ss:$24 sps:$4 sm:$0xff]   ;;  %v13177_v20 = vld [vmem:[#allocation5 + $0xb40] ss:$24 sps:$4 sm:$0xff]  }
 0x995   :  { %5805 = vmatprep.mubr.bf16.mxu1 %v16949_v62  ;;  %6015 = vmatprep.mubr.bf16.mxu0 %v16949_v62 }
 0x996   :  { %6196 = vmatpush1.bf16.msra.mxu1 %v5612_v2  ;;  %v13185_v2 = vld [vmem:[#allocation5 + $0xb14] ss:$24 sps:$4 sm:$0xff]  }
 0x997   :  { %6197 = vmatprep.subr.bf16.mxu1 %v5607_v31  ;;  %v13188_v31 = vld [vmem:[#allocation5 + $0xb1c] ss:$24 sps:$4 sm:$0xff]  }
 0x99a   :  { %6198 = vmatpush1.bf16.msra.mxu1 %v5606_v7  ;;  %v13183_v7 = vld [vmem:[#allocation5 + $0xb10] ss:$24 sps:$4 sm:$0xff]  }
 0x99b   :  { %6199 = vmatprep.subr.bf16.mxu1 %v5601_v19  ;;  %v13194_v19 = vld [vmem:[#allocation5 + $0xaec] ss:$24 sps:$4 sm:$0xff]  }
 0x99c   :  { %5806 = vmatmul.mubr.bf16.gmra.mxu1 %v13101_v12  ;;  %6016 = vmatmul.mubr.bf16.gmra.mxu0 %v13102_v3  ;;  %v13186_v12 = vld [vmem:[#allocation5 + $0xb18] ss:$24 sps:$4 sm:$0xff]   ;;  %v13191_v3 = vld [vmem:[#allocation5 + $0xae4] ss:$24 sps:$4 sm:$0xff]  }
 0x99d   :  { %6219 = vmatprep.mubr.bf16.mxu1 %v16949_v62 }
 0x99e   :  { %6200 = vmatpush1.bf16.msra.mxu1 %v5600_v21  ;;  %v13125_v21 = vld [vmem:[#allocation5 + $0x9f4] ss:$24 sps:$4 sm:$0xff]  }
 0x99f   :  { %6201 = vmatprep.subr.bf16.mxu1 %v5595_v61  ;;  %7057 = vmatprep.subr.bf16.mxu0 %v13125_v21  ;;  %v13189_v61 = vld [vmem:[#allocation5 + $0xae0] ss:$24 sps:$4 sm:$0xff]  }
 0x9a0   :  { %7058 = vmatpush1.bf16.msra.mxu0 %v13123_v13 }
 0x9a1   :  { %7059 = vmatprep.subr.bf16.mxu0 %v13131_v9 }
 0x9a2   :  { %6202 = vmatpush1.bf16.msra.mxu1 %v5594_v56  ;;  %v13120_v56 = vld [vmem:[#allocation5 + $0xa28] ss:$24 sps:$4 sm:$0xff]  }
 0x9a3   :  { %7166 = vmatprep.subr.bf16.mxu1 %v13116_v42  ;;  %v13198_v42 = vld [vmem:[#allocation5 + $0xab8] ss:$24 sps:$4 sm:$0xff]  }
 0x9a4   :  { %7060 = vmatpush1.bf16.msra.mxu0 %v13129_v8 }
 0x9a5   :  { %6220 = vmatmul.mubr.bf16.vlgmr.msra.gmra.mxu1 %v13103_v24  ;;  %7061 = vmatprep.subr.bf16.mxu0 %v13137_v39  ;;  %v13192_v24 = vld [vmem:[#allocation5 + $0xae8] ss:$24 sps:$4 sm:$0xff]  }
 0x9a6   :  { %6229 = vmatprep.mubr.bf16.mxu1 %v16949_v62  ;;  %7167 = vmatpush1.bf16.msra.mxu1 %v13114_v52  ;;  %v13206_v52 = vld [vmem:[#allocation5 + $0xa8c] ss:$24 sps:$4 sm:$0xff]  }
 0x9a7   :  { %7168 = vmatprep.subr.bf16.mxu1 %v13122_v57  ;;  %v13204_v57 = vld [vmem:[#allocation5 + $0xa88] ss:$24 sps:$4 sm:$0xff]  }
 0x9a8   :  { %7062 = vmatpush1.bf16.msra.mxu0 %v13135_v29 }
 0x9a9   :  { %7063 = vmatprep.subr.bf16.mxu0 %v13143_v63 }
 0x9aa   :  { %7169 = vmatpush1.bf16.msra.mxu1 %v13120_v56 }
 0x9ab   :  { %7170 = vmatprep.subr.bf16.mxu1 %v13128_v26 }
 0x9ac   :  { %7064 = vmatpush1.bf16.msra.mxu0 %v13141_v47 }
 0x9ad   :  { %6230 = vmatmul.mubr.bf16.gmra.mxu1 %v13104_v30  ;;  %7065 = vmatprep.subr.bf16.mxu0 %v13149_v49  ;;  %v13197_v30 = vld [vmem:[#allocation5 + $0xab4] ss:$24 sps:$4 sm:$0xff]  }
 0x9ae   :  { %6239 = vmatprep.mubr.bf16.mxu1 %v16949_v62  ;;  %7171 = vmatpush1.bf16.msra.mxu1 %v13126_v11 }
 0x9af   :  { %7172 = vmatprep.subr.bf16.mxu1 %v13134_v60 }
 0x9b0   :  { %7066 = vmatpush1.bf16.msra.mxu0 %v13147_v22 }
 0x9b1   :  { %7067 = vmatprep.subr.bf16.mxu0 %v13155_v23 }
 0x9b2   :  { %7173 = vmatpush1.bf16.msra.mxu1 %v13132_v36 }
 0x9b3   :  { %7174 = vmatprep.subr.bf16.mxu1 %v13140_v43 }
 0x9b4   :  { %7068 = vmatpush1.bf16.msra.mxu0 %v13153_v55 }
 0x9b5   :  { %6240 = vmatmul.mubr.bf16.gmra.mxu1 %v13105_v4  ;;  %7069 = vmatprep.subr.bf16.mxu0 %v13161_v58  ;;  %v13200_v4 = vld [vmem:[#allocation5 + $0xabc] ss:$24 sps:$4 sm:$0xff]  }
 0x9b6   :  { %6249 = vmatprep.mubr.bf16.mxu1 %v16949_v62  ;;  %7175 = vmatpush1.bf16.msra.mxu1 %v13138_v14 }
 0x9b7   :  { %7176 = vmatprep.subr.bf16.mxu1 %v13146_v38 }
 0x9b8   :  { %7070 = vmatpush2.bf16.msra.mxu0 %v13159_v53 }
 0x9b9   :  { %7071 = vmatprep.subr.bf16.mxu0 %v13167_v6 }
 0x9ba   :  { %7177 = vmatpush1.bf16.msra.mxu1 %v13144_v32 }
 0x9bb   :  { %7178 = vmatprep.subr.bf16.mxu1 %v13152_v33 }
 0x9bc   :  { %7072 = vmatpush2.bf16.msra.mxu0 %v13165_v18 }
 0x9bd   :  { %6250 = vmatmul.mubr.bf16.gmra.mxu1 %v13106_v28  ;;  %7073 = vmatprep.subr.bf16.mxu0 %v13173_v16 }
 0x9be   :  { %6259 = vmatprep.mubr.bf16.mxu1 %v16949_v62  ;;  %7179 = vmatpush1.bf16.msra.mxu1 %v13150_v0 }
 0x9bf   :  { %7180 = vmatprep.subr.bf16.mxu1 %v13158_v45 }
 0x9c0   :  { %7074 = vmatpush2.bf16.msra.mxu0 %v13171_v48 }
 0x9c1   :  { %7075 = vmatprep.subr.bf16.mxu0 %v13179_v15 }
 0x9c2   :  { %7181 = vmatpush1.bf16.msra.mxu1 %v13156_v34 }
 0x9c3   :  { %7182 = vmatprep.subr.bf16.mxu1 %v13164_v41 }
 0x9c4   :  { %7076 = vmatpush2.bf16.msra.mxu0 %v13177_v20 }
 0x9c5   :  { %6260 = vmatmul.mubr.bf16.gmra.mxu1 %v13107_v54  ;;  %7077 = vmatprep.subr.bf16.mxu0 %v13185_v2 }
 0x9c6   :  { %6269 = vmatprep.mubr.bf16.mxu1 %v16949_v62  ;;  %7183 = vmatpush2.bf16.msra.mxu1 %v13162_v5 }
 0x9c7   :  { %7184 = vmatprep.subr.bf16.mxu1 %v13170_v17 }
 0x9c8   :  { %7078 = vmatpush2.bf16.msra.mxu0 %v13183_v7 }
 0x9c9   :  { %7079 = vmatprep.subr.bf16.mxu0 %v13191_v3 }
 0x9ca   :  { %7185 = vmatpush2.bf16.msra.mxu1 %v13168_v1 }
 0x9cb   :  { %7186 = vmatprep.subr.bf16.mxu1 %v13176_v44 }
 0x9cc   :  { %7080 = vmatpush2.bf16.msra.mxu0 %v13189_v61 }
 0x9cd   :  { %6270 = vmatmul.mubr.bf16.gmra.mxu1 %v13108_v51  ;;  %7081 = vmatprep.subr.bf16.mxu0 %v13197_v30 }
 0x9ce   :  { %6279 = vmatprep.mubr.bf16.mxu1 %v16949_v62  ;;  %7187 = vmatpush2.bf16.msra.mxu1 %v13174_v59 }
 0x9cf   :  { %7188 = vmatprep.subr.bf16.mxu1 %v13182_v46 }
 0x9d0   :  { %7082 = vmatpush2.bf16.msra.mxu0 %v13195_v37 }
 0x9d1   :  { %7083 = vmatprep.subr.bf16.mxu0 %v13203_v50 }
 0x9d2   :  { %7189 = vmatpush2.bf16.msra.mxu1 %v13180_v27 }
 0x9d3   :  { %7190 = vmatprep.subr.bf16.mxu1 %v13188_v31 }
 0x9d4   :  { %7084 = vmatpush2.bf16.msra.mxu0 %v13201_v10 }
 0x9d5   :  { %6280 = vmatmul.mubr.bf16.gmra.mxu1 %v13109_v40  ;;  %7279 = vmatprep.subr.bf16.mxu0 %v13209_v35 }
 0x9d6   :  { %6289 = vmatprep.mubr.bf16.mxu1 %v16949_v62  ;;  %7191 = vmatpush2.bf16.msra.mxu1 %v13186_v12 }
 0x9d7   :  { %7192 = vmatprep.subr.bf16.mxu1 %v13194_v19 }
 0x9da   :  { %7193 = vmatpush2.bf16.msra.mxu1 %v13192_v24 }
 0x9db   :  { %7194 = vmatprep.subr.bf16.mxu1 %v13200_v4 }
 0x9dd   :  { %6290 = vmatmul.mubr.bf16.gmra.mxu1 %v13110_v25 }
 0x9de   :  { %7195 = vmatpush2.bf16.msra.mxu1 %v13198_v42 }
 0x9df   :  { %7196 = vmatprep.subr.bf16.mxu1 %v13206_v52 }
 0x9e2   :  { %7197 = vmatpush2.bf16.msra.mxu1 %v13204_v57 }
 0xa24   :  { %v5737_v56 = vpop.f32.mrf.mxu1  ;;  %v5947_v28 = vpop.f32.mrf.mxu0 }
 0xa25   :  { %v6058_v3 = vadd.f32 %v5947_v28, %v5737_v56 }
 0xa26   :  { %v5739_v21 = vpop.f32.mrf.mxu1  ;;  %v5949_v26 = vpop.f32.mrf.mxu0 }
 0xa27   :  { %v6059_v24 = vadd.f32 %v5949_v26, %v5739_v21 }
 0xa28   :  { %v5741_v13 = vpop.f32.mrf.mxu1  ;;  %v5951_v9 = vpop.f32.mrf.mxu0 }
 0xa29   :  { %v6060_v30 = vadd.f32 %v5951_v9, %v5741_v13 }
 0xa2a   :  { %v5743_v11 = vpop.f32.mrf.mxu1  ;;  %v5953_v36 = vpop.f32.mrf.mxu0 }
 0xa2b   :  { %v6061_v42 = vadd.f32 %v5953_v36, %v5743_v11  ;;  %v13207_v36 = vld [vmem:[#allocation5 + $0xa60] ss:$24 sps:$4 sm:$0xff]  }
 0xa2c   :  { %v5747_v60 = vpop.f32.mrf.mxu1  ;;  %v5957_v43 = vpop.f32.mrf.mxu0 }
 0xa2e   :  { %v15442_v8 = vpop.f32.mrf.mxu1  ;;  %v5959_v63 = vpop.f32.mrf.mxu0 }
 0xa2f   :  { %v6063_v26 = vadd.f32 %v5959_v63, %v15442_v8 }
 0xa30   :  { %v15444_v54 = vpop.f32.mrf.mxu1  ;;  %v5961_v32 = vpop.f32.mrf.mxu0 }
 0xa31   :  { %v6064_v13 = vadd.f32 %v5961_v32, %v15444_v54  ;;  %v13210_v32 = vld [vmem:[#allocation5 + $0xa30] ss:$24 sps:$4 sm:$0xff]  }
 0xa32   :  { %v15446_v39 = vpop.f32.mrf.mxu1  ;;  %v5963_v33 = vpop.f32.mrf.mxu0 }
 0xa34   :  { %v15448_v29 = vpop.f32.mrf.mxu1  ;;  %v15464_v23 = vpop.f32.mrf.mxu0 }
 0xa36   :  { %v15450_v14 = vpop.f32.mrf.mxu1  ;;  %v15470_v34 = vpop.f32.mrf.mxu0 }
 0xa38   :  { %v15452_v38 = vpop.f32.mrf.mxu1  ;;  %v15476_v41 = vpop.f32.mrf.mxu0 }
 0xa3a   :  { %v15454_v47 = vpop.f32.mrf.mxu1  ;;  %v15482_v6 = vpop.f32.mrf.mxu0 }
 0xa3c   :  { %v15456_v51 = vpop.f32.mrf.mxu1  ;;  %v15488_v1 = vpop.f32.mrf.mxu0 }
 0xa3e   :  { %v15458_v49 = vpop.f32.mrf.mxu1  ;;  %v15494_v44 = vpop.f32.mrf.mxu0 }
 0xa40   :  { %v15460_v22 = vpop.f32.mrf.mxu1  ;;  %v15500_v15 = vpop.f32.mrf.mxu0 }
 0xa42   :  { %v15462_v0 = vpop.f32.mrf.mxu1  ;;  %v15506_v27 = vpop.f32.mrf.mxu0 }
 0xa44   :  { %v15466_v45 = vpop.f32.mrf.mxu1  ;;  %v15512_v7 = vpop.f32.mrf.mxu0 }
 0xa46   :  { %v15468_v55 = vpop.f32.mrf.mxu1  ;;  %v15514_v19 = vpop.f32.mrf.mxu0 }
 0xa48   :  { %v15472_v40 = vpop.f32.mrf.mxu1  ;;  %v15516_v10 = vpop.f32.mrf.mxu0 }
 0xa4a   :  { %v15474_v58 = vpop.f32.mrf.mxu1 }
 0xa4c   :  { %v15478_v53 = vpop.f32.mrf.mxu1 }
 0xa4e   :  { %v15480_v5 = vpop.f32.mrf.mxu1 }
 0xa50   :  { %v15484_v17 = vpop.f32.mrf.mxu1 }
 0xa52   :  { %v15486_v18 = vpop.f32.mrf.mxu1 }
 0xa54   :  { %v15490_v25 = vpop.f32.mrf.mxu1 }
 0xa56   :  { %v15492_v16 = vpop.f32.mrf.mxu1 }
 0xa58   :  { %v15496_v48 = vpop.f32.mrf.mxu1 }
 0xa5a   :  { %v15498_v59 = vpop.f32.mrf.mxu1 }
 0xa5b   :  { %16950 = vst [vmem:[#allocation21_spill] sm:$0xff] %v15498_v59  ;;  %v15520_v59 = vpop.f32.mrf.mxu0 }
 0xa5c   :  { %v15502_v46 = vpop.f32.mrf.mxu1 }
 0xa5d   :  { %16951 = vst [vmem:[#allocation13_spill] sm:$0xff] %v15502_v46 }
 0xa5e   :  { %v15504_v20 = vpop.f32.mrf.mxu1 }
 0xa5f   :  { %16952 = vst [vmem:[#allocation14_spill] sm:$0xff] %v15504_v20  ;;  %v6062_v20 = vadd.f32 %v5957_v43, %v5747_v60 }
 0xa60   :  { %v15508_v2 = vpop.f32.mrf.mxu1 }
 0xa61   :  { %16953 = vst [vmem:[#allocation22_spill] sm:$0xff] %v15508_v2 }
 0xa62   :  { %v15510_v31 = vpop.f32.mrf.mxu1 }
 0xa63   :  { %16954 = vst [vmem:[#allocation16_spill] sm:$0xff] %v15510_v31 }
 0xa65   :  { %v6221_v12 = vpop.f32.mrf.mxu1 }
 0xa66   :  { %v6332_v4 = vadd.f32 %v6221_v12, %v6058_v3  ;;  %v13212_v3 = vld [vmem:[#allocation5 + $0xa34] ss:$24 sps:$4 sm:$0xff]  }
 0xa67   :  { %v6223_v61 = vpop.f32.mrf.mxu1 }
 0xa68   :  { %v6333_v50 = vadd.f32 %v6223_v61, %v6059_v24  ;;  %v6428_v35 = vmax.f32 %v6332_v4, 0.0  ;;  %v6065_v61 = vadd.f32 %v5963_v33, %v15446_v39  ;;  %v13215_v39 = vld [vmem:[#allocation5 + $0xa04] ss:$24 sps:$4 sm:$0xff]   ;;  %v6066_v33 = vadd.f32 %v15464_v23, %v15448_v29  ;;  %v13218_v29 = vld [vmem:[#allocation5 + $0x9d4] ss:$24 sps:$4 sm:$0xff]  }
 0xa69   :  { %v6225_v37 = vpop.f32.mrf.mxu1  ;;  %v6069_v23 = vadd.f32 %v15482_v6, %v15454_v47  ;;  %v13221_v47 = vld [vmem:[#allocation5 + $0x9a4] ss:$24 sps:$4 sm:$0xff]   ;;  %v6070_v6 = vadd.f32 %v15488_v1, %v15456_v51  ;;  %v13224_v51 = vld [vmem:[#allocation5 + $0x974] ss:$24 sps:$4 sm:$0xff]   ;;  %v6073_v1 = vadd.f32 %v15506_v27, %v15462_v0  ;;  %v6074_v27 = vadd.f32 %v15512_v7, %v15466_v45 }
 0xa6a   :  { %v6334_v52 = vadd.f32 %v6225_v37, %v6060_v30  ;;  %v6429_v46 = vmax.f32 %v6333_v50, 0.0  ;;  %v6067_v37 = vadd.f32 %v15470_v34, %v15450_v14  ;;  %v13227_v0 = vld [vmem:[#allocation5 + $0x944] ss:$24 sps:$4 sm:$0xff]   ;;  %v13230_v45 = vld [vmem:[#allocation5 + $0x914] ss:$24 sps:$4 sm:$0xff]   ;;  %v6077_v7 = vadd.f32 %v15520_v59, %v15474_v58 }
 0xa6b   :  { %v6227_v57 = vpop.f32.mrf.mxu1  ;;  %v13233_v58 = vld [vmem:[#allocation5 + $0xbe4] ss:$24 sps:$4 sm:$0xff]  }
 0xa6c   :  { %v6430_v62 = vmax.f32 %v6334_v52, 0.0  ;;  %v6335_v31 = vadd.f32 %v6227_v57, %v6061_v42  ;;  %v6068_v42 = vadd.f32 %v15476_v41, %v15452_v38  ;;  %v13213_v57 = vld [vmem:[#allocation5 + $0xa00] ss:$24 sps:$4 sm:$0xff]  }
 0xa6d   :  { %v6231_v2 = vpop.f32.mrf.mxu1 }
 0xa6e   :  { %v15518_v56 = vpack.c.bf16 %v6430_v62, %v6428_v35  ;;  %v6431_v28 = vmax.f32 %v6335_v31, 0.0  ;;  %v6336_v11 = vadd.f32 %v6231_v2, %v6062_v20  ;;  %v15529_v62 = vpop.f32.mrf.mxu0 }
 0xa6f   :  { %v6233_v21 = vpop.f32.mrf.mxu1  ;;  %v6078_v59 = vadd.f32 %v15529_v62, %v15478_v53  ;;  %v13236_v53 = vld [vmem:[#allocation5 + $0xbb4] ss:$24 sps:$4 sm:$0xff]  }
 0xa70   :  { %v15524_v9 = vpack.c.bf16 %v6431_v28, %v6429_v46  ;;  %v6337_v60 = vadd.f32 %v6233_v21, %v6063_v26  ;;  %v6432_v8 = vmax.f32 %v6336_v11, 0.0  ;;  %v15537_v30 = vpop.f32.mrf.mxu0 }
 0xa71   :  { %v6235_v12 = vpop.f32.mrf.mxu1 }
 0xa72   :  { %v6338_v43 = vadd.f32 %v6235_v12, %v6064_v13  ;;  %7085 = vmatprep.mubr.bf16.mxu0 %v15524_v9  ;;  %7198 = vmatprep.mubr.bf16.mxu1 %v15524_v9  ;;  %v6433_v20 = vmax.f32 %v6337_v60, 0.0  ;;  %v15549_v14 = vpop.f32.mrf.mxu0  ;;  %v13216_v13 = vld [vmem:[#allocation5 + $0x9d0] ss:$24 sps:$4 sm:$0xff]  }
 0xa73   :  { %v6237_v31 = vpop.f32.mrf.mxu1  ;;  %7086 = vmatmul.mubr.bf16.vlgmr.msra.gmra.mxu0 %v15518_v56  ;;  %7199 = vmatmul.mubr.bf16.vlgmr.msra.gmra.mxu1 %v15518_v56 }
 0xa74   :  { %v6434_v54 = vmax.f32 %v6338_v43, 0.0  ;;  %v6339_v63 = vadd.f32 %v6237_v31, %v6065_v61  ;;  %7280 = vmatpush1.bf16.msra.mxu0 %v13207_v36  ;;  %v15557_v61 = vpop.f32.mrf.mxu0  ;;  %v6071_v43 = vadd.f32 %v15494_v44, %v15458_v49  ;;  %v6072_v31 = vadd.f32 %v15500_v15, %v15460_v22 }
 0xa75   :  { %v6241_v46 = vpop.f32.mrf.mxu1  ;;  %7281 = vmatprep.subr.bf16.mxu0 %v13212_v3  ;;  %v6081_v62 = vadd.f32 %v15557_v61, %v15486_v18  ;;  %v13239_v18 = vld [vmem:[#allocation5 + $0xb84] ss:$24 sps:$4 sm:$0xff]  }
 0xa76   :  { %v15535_v2 = vpack.c.bf16 %v6434_v54, %v6432_v8  ;;  %v6435_v24 = vmax.f32 %v6339_v63, 0.0  ;;  %v6340_v50 = vadd.f32 %v6241_v46, %v6066_v33  ;;  %v13219_v63 = vld [vmem:[#allocation5 + $0x9a0] ss:$24 sps:$4 sm:$0xff]   ;;  %v15569_v49 = vpop.f32.mrf.mxu0 }
 0xa77   :  { %v6243_v4 = vpop.f32.mrf.mxu1  ;;  %v6082_v61 = vadd.f32 %v15569_v49, %v15490_v25  ;;  %v16955_v25 = vld [vmem:[#allocation21_spill] sm:$0xff] }
 0xa78   :  { %7282 = vmatpush1.bf16.msra.mxu0 %v13210_v32  ;;  %v15543_v52 = vpack.c.bf16 %v6435_v24, %v6433_v20  ;;  %v6341_v28 = vadd.f32 %v6243_v4, %v6067_v37  ;;  %v6436_v34 = vmax.f32 %v6340_v50, 0.0  ;;  %v13222_v20 = vld [vmem:[#allocation5 + $0x970] ss:$24 sps:$4 sm:$0xff]   ;;  %v15577_v50 = vpop.f32.mrf.mxu0 }
 0xa79   :  { %v6245_v35 = vpop.f32.mrf.mxu1  ;;  %7283 = vmatprep.subr.bf16.mxu0 %v13215_v39 }
 0xa7a   :  { %v6342_v21 = vadd.f32 %v6245_v35, %v6068_v42  ;;  %7095 = vmatprep.mubr.bf16.mxu0 %v15543_v52  ;;  %7208 = vmatprep.mubr.bf16.mxu1 %v15543_v52  ;;  %v6437_v36 = vmax.f32 %v6341_v28, 0.0  ;;  %v6075_v35 = vadd.f32 %v15514_v19, %v15468_v55  ;;  %v6011_v55 = vpop.f32.mrf.mxu0 }
 0xa7b   :  { %v6247_v38 = vpop.f32.mrf.mxu1  ;;  %7096 = vmatmul.mubr.bf16.gmra.mxu0 %v15535_v2  ;;  %7209 = vmatmul.mubr.bf16.gmra.mxu1 %v15535_v2 }
 0xa7c   :  { %v6438_v41 = vmax.f32 %v6342_v21, 0.0  ;;  %v6343_v26 = vadd.f32 %v6247_v38, %v6069_v23  ;;  %7284 = vmatpush1.bf16.msra.mxu0 %v13213_v57  ;;  %v13225_v21 = vld [vmem:[#allocation5 + $0x940] ss:$24 sps:$4 sm:$0xff]  }
 0xa7d   :  { %v6251_v11 = vpop.f32.mrf.mxu1  ;;  %7285 = vmatprep.subr.bf16.mxu0 %v13218_v29  ;;  %v6076_v29 = vadd.f32 %v15516_v10, %v15472_v40 }
 0xa7e   :  { %v15555_v12 = vpack.c.bf16 %v6438_v41, %v6436_v34  ;;  %v6439_v3 = vmax.f32 %v6343_v26, 0.0  ;;  %v6344_v8 = vadd.f32 %v6251_v11, %v6070_v6 }
 0xa7f   :  { %v6253_v60 = vpop.f32.mrf.mxu1 }
 0xa80   :  { %7286 = vmatpush1.bf16.msra.mxu0 %v13216_v13  ;;  %v15563_v54 = vpack.c.bf16 %v6439_v3, %v6437_v36  ;;  %v6345_v46 = vadd.f32 %v6253_v60, %v6071_v43  ;;  %v6440_v44 = vmax.f32 %v6344_v8, 0.0  ;;  %v13228_v13 = vld [vmem:[#allocation5 + $0x910] ss:$24 sps:$4 sm:$0xff]   ;;  %v6013_v3 = vpop.f32.mrf.mxu0  ;;  %v6079_v43 = vadd.f32 %v15537_v30, %v15480_v5 }
 0xa81   :  { %v6255_v32 = vpop.f32.mrf.mxu1  ;;  %7287 = vmatprep.subr.bf16.mxu0 %v13221_v47  ;;  %v6085_v49 = vadd.f32 %v6013_v3, %v16955_v25 }
 0xa82   :  { %v6346_v39 = vadd.f32 %v6255_v32, %v6072_v31  ;;  %7105 = vmatprep.mubr.bf16.mxu0 %v15563_v54  ;;  %7218 = vmatprep.mubr.bf16.mxu1 %v15563_v54  ;;  %v6441_v4 = vmax.f32 %v6345_v46, 0.0  ;;  %v6080_v31 = vadd.f32 %v15549_v14, %v15484_v17  ;;  %v13231_v32 = vld [vmem:[#allocation5 + $0xbe0] ss:$24 sps:$4 sm:$0xff]   ;;  %v6017_v5 = vpop.f32.mrf.mxu0 }
 0xa83   :  { %v6257_v22 = vpop.f32.mrf.mxu1  ;;  %7106 = vmatmul.mubr.bf16.gmra.mxu0 %v15555_v12  ;;  %7219 = vmatmul.mubr.bf16.gmra.mxu1 %v15555_v12 }
 0xa84   :  { %v6442_v15 = vmax.f32 %v6346_v39, 0.0  ;;  %v6347_v33 = vadd.f32 %v6257_v22, %v6073_v1  ;;  %7288 = vmatpush1.bf16.msra.mxu0 %v13219_v63  ;;  %v13234_v22 = vld [vmem:[#allocation5 + $0xbb0] ss:$24 sps:$4 sm:$0xff]  }
 0xa85   :  { %v6261_v24 = vpop.f32.mrf.mxu1  ;;  %7289 = vmatprep.subr.bf16.mxu0 %v13224_v51 }
 0xa86   :  { %v15575_v37 = vpack.c.bf16 %v6442_v15, %v6440_v44  ;;  %v6443_v42 = vmax.f32 %v6347_v33, 0.0  ;;  %v6348_v23 = vadd.f32 %v6261_v24, %v6074_v27  ;;  %v6019_v24 = vpop.f32.mrf.mxu0  ;;  %v6083_v27 = vadd.f32 %v15577_v50, %v15492_v16 }
 0xa87   :  { %v6263_v57 = vpop.f32.mrf.mxu1 }
 0xa88   :  { %7290 = vmatpush1.bf16.msra.mxu0 %v13222_v20  ;;  %v15583_v28 = vpack.c.bf16 %v6443_v42, %v6441_v4  ;;  %v6349_v34 = vadd.f32 %v6263_v57, %v6075_v35  ;;  %v6444_v40 = vmax.f32 %v6348_v23, 0.0  ;;  %v6084_v4 = vadd.f32 %v6011_v55, %v15496_v48  ;;  %v13237_v35 = vld [vmem:[#allocation5 + $0xb80] ss:$24 sps:$4 sm:$0xff]   ;;  %v13242_v23 = vld [vmem:[#allocation5 + $0xb54] ss:$24 sps:$4 sm:$0xff]  }
 0xa89   :  { %v6265_v38 = vpop.f32.mrf.mxu1  ;;  %7291 = vmatprep.subr.bf16.mxu0 %v13227_v0  ;;  %v13245_v55 = vld [vmem:[#allocation5 + $0xb24] ss:$24 sps:$4 sm:$0xff]  }
 0xa8a   :  { %v6350_v41 = vadd.f32 %v6265_v38, %v6076_v29  ;;  %7115 = vmatprep.mubr.bf16.mxu0 %v15583_v28  ;;  %7228 = vmatprep.mubr.bf16.mxu1 %v15583_v28  ;;  %v6445_v47 = vmax.f32 %v6349_v34, 0.0  ;;  %v13240_v34 = vld [vmem:[#allocation5 + $0xb50] ss:$24 sps:$4 sm:$0xff]  }
 0xa8b   :  { %v6267_v19 = vpop.f32.mrf.mxu1  ;;  %7116 = vmatmul.mubr.bf16.gmra.mxu0 %v15575_v37  ;;  %7229 = vmatmul.mubr.bf16.gmra.mxu1 %v15575_v37 }
 0xa8c   :  { %v6446_v10 = vmax.f32 %v6350_v41, 0.0  ;;  %v6351_v26 = vadd.f32 %v6267_v19, %v6077_v7  ;;  %7292 = vmatpush1.bf16.msra.mxu0 %v13225_v21  ;;  %v16956_v19 = vld [vmem:[#allocation13_spill] sm:$0xff] }
 0xa8d   :  { %v6271_v11 = vpop.f32.mrf.mxu1  ;;  %7293 = vmatprep.subr.bf16.mxu0 %v13230_v45  ;;  %v6021_v45 = vpop.f32.mrf.mxu0 }
 0xa8e   :  { %v15593_v6 = vpack.c.bf16 %v6446_v10, %v6444_v40  ;;  %v6447_v36 = vmax.f32 %v6351_v26, 0.0  ;;  %v6352_v8 = vadd.f32 %v6271_v11, %v6078_v59  ;;  %v6086_v40 = vadd.f32 %v6017_v5, %v16956_v19  ;;  %v16957_v59 = vld [vmem:[#allocation14_spill] sm:$0xff] }
 0xa8f   :  { %v6273_v60 = vpop.f32.mrf.mxu1  ;;  %v6023_v11 = vpop.f32.mrf.mxu0 }
 0xa90   :  { %7294 = vmatpush1.bf16.msra.mxu0 %v13228_v13  ;;  %v15599_v63 = vpack.c.bf16 %v6447_v36, %v6445_v47  ;;  %v6353_v1 = vadd.f32 %v6273_v60, %v6079_v43  ;;  %v6448_v17 = vmax.f32 %v6352_v8, 0.0  ;;  %v6087_v47 = vadd.f32 %v6019_v24, %v16957_v59  ;;  %v16958_v36 = vld [vmem:[#allocation22_spill] sm:$0xff] }
 0xa91   :  { %v6275_v51 = vpop.f32.mrf.mxu1  ;;  %7295 = vmatprep.subr.bf16.mxu0 %v13233_v58  ;;  %v6088_v3 = vadd.f32 %v6021_v45, %v16958_v36  ;;  %v13252_v24 = vld [vmem:[#allocation5 + $0xa90] ss:$24 sps:$4 sm:$0xff]  }
 0xa92   :  { %v6354_v46 = vadd.f32 %v6275_v51, %v6080_v31  ;;  %7125 = vmatprep.mubr.bf16.mxu0 %v15599_v63  ;;  %7238 = vmatprep.mubr.bf16.mxu1 %v15599_v63  ;;  %v6449_v15 = vmax.f32 %v6353_v1, 0.0  ;;  %v13243_v31 = vld [vmem:[#allocation5 + $0xb20] ss:$24 sps:$4 sm:$0xff]  }
 0xa93   :  { %v6277_v30 = vpop.f32.mrf.mxu1  ;;  %7126 = vmatmul.mubr.bf16.gmra.mxu0 %v15593_v6  ;;  %7239 = vmatmul.mubr.bf16.gmra.mxu1 %v15593_v6  ;;  %v16959_v51 = vld [vmem:[#allocation16_spill] sm:$0xff] }
 0xa94   :  { %v6450_v14 = vmax.f32 %v6354_v46, 0.0  ;;  %v6355_v39 = vadd.f32 %v6277_v30, %v6081_v62  ;;  %7296 = vmatpush2.bf16.msra.mxu0 %v13231_v32  ;;  %v13248_v32 = vld [vmem:[#allocation5 + $0xaf4] ss:$24 sps:$4 sm:$0xff]  }
 0xa95   :  { %v6281_v44 = vpop.f32.mrf.mxu1  ;;  %7297 = vmatprep.subr.bf16.mxu0 %v13236_v53  ;;  %v6089_v53 = vadd.f32 %v6023_v11, %v16959_v51 }
 0xa96   :  { %v15609_v33 = vpack.c.bf16 %v6450_v14, %v6448_v17  ;;  %v6451_v20 = vmax.f32 %v6355_v39, 0.0  ;;  %v6356_v42 = vadd.f32 %v6281_v44, %v6082_v61  ;;  %v13246_v14 = vld [vmem:[#allocation5 + $0xaf0] ss:$24 sps:$4 sm:$0xff]   ;;  %v13251_v39 = vld [vmem:[#allocation5 + $0xac4] ss:$24 sps:$4 sm:$0xff]  }
 0xa97   :  { %v6283_v0 = vpop.f32.mrf.mxu1 }
 0xa98   :  { %7298 = vmatpush2.bf16.msra.mxu0 %v13234_v22  ;;  %v15614_v57 = vpack.c.bf16 %v6451_v20, %v6449_v15  ;;  %v6357_v21 = vadd.f32 %v6283_v0, %v6083_v27  ;;  %v6452_v48 = vmax.f32 %v6356_v42, 0.0  ;;  %v13249_v15 = vld [vmem:[#allocation5 + $0xac0] ss:$24 sps:$4 sm:$0xff]   ;;  %v13254_v20 = vld [vmem:[#allocation5 + $0xa94] ss:$24 sps:$4 sm:$0xff]   ;;  %v16960_v0 = vmov 0  }
 0xa99   :  { %v6285_v29 = vpop.f32.mrf.mxu1  ;;  %7299 = vmatprep.subr.bf16.mxu0 %v13239_v18 }
 0xa9a   :  { %v6358_v38 = vadd.f32 %v6285_v29, %v6084_v4  ;;  %7135 = vmatprep.mubr.bf16.mxu0 %v15614_v57  ;;  %7248 = vmatprep.mubr.bf16.mxu1 %v15614_v57  ;;  %v6453_v10 = vmax.f32 %v6357_v21, 0.0 }
 0xa9b   :  { %v6287_v16 = vpop.f32.mrf.mxu1  ;;  %7136 = vmatmul.mubr.bf16.gmra.mxu0 %v15609_v33  ;;  %7249 = vmatmul.mubr.bf16.gmra.mxu1 %v15609_v33 }
 0xa9c   :  { %v6454_v50 = vmax.f32 %v6358_v38, 0.0  ;;  %v6359_v7 = vadd.f32 %v6287_v16, %v6085_v49  ;;  %7300 = vmatpush2.bf16.msra.mxu0 %v13237_v35 }
 0xa9d   :  { %v6291_v41 = vpop.f32.mrf.mxu1  ;;  %7301 = vmatprep.subr.bf16.mxu0 %v13242_v23 }
 0xa9e   :  { %v6472_v26 = vpack.c.bf16 %v6454_v50, %v6452_v48  ;;  %v6455_v13 = vmax.f32 %v6359_v7, 0.0  ;;  %v6360_v60 = vadd.f32 %v6291_v41, %v6086_v40 }
 0xa9f   :  { %v6293_v58 = vpop.f32.mrf.mxu1 }
 0xaa0   :  { %7302 = vmatpush2.bf16.msra.mxu0 %v13240_v34  ;;  %v6473_v43 = vpack.c.bf16 %v6455_v13, %v6453_v10  ;;  %v6361_v62 = vadd.f32 %v6293_v58, %v6087_v47  ;;  %v6456_v5 = vmax.f32 %v6360_v60, 0.0 }
 0xaa1   :  { %v6295_v8 = vpop.f32.mrf.mxu1  ;;  %7303 = vmatprep.subr.bf16.mxu0 %v13245_v55 }
 0xaa2   :  { %v6362_v1 = vadd.f32 %v6295_v8, %v6088_v3  ;;  %7145 = vmatprep.mubr.bf16.mxu0 %v6473_v43  ;;  %7258 = vmatprep.mubr.bf16.mxu1 %v6473_v43  ;;  %v6457_v22 = vmax.f32 %v6361_v62, 0.0 }
 0xaa3   :  { %v6297_v46 = vpop.f32.mrf.mxu1  ;;  %7146 = vmatmul.mubr.bf16.gmra.mxu0 %v6472_v26  ;;  %7259 = vmatmul.mubr.bf16.gmra.mxu1 %v6472_v26 }
 0xaa4   :  { %v6458_v30 = vmax.f32 %v6362_v1, 0.0  ;;  %v6363_v17 = vadd.f32 %v6297_v46, %v6089_v53  ;;  %7304 = vmatpush2.bf16.msra.mxu0 %v13243_v31 }
 0xaa5   :  { %7305 = vmatprep.subr.bf16.mxu0 %v13248_v32 }
 0xaa6   :  { %v6474_v44 = vpack.c.bf16 %v6458_v30, %v6456_v5  ;;  %v6459_v18 = vmax.f32 %v6363_v17, 0.0 }
 0xaa8   :  { %7306 = vmatpush2.bf16.msra.mxu0 %v13246_v14  ;;  %v6475_v61 = vpack.c.bf16 %v6459_v18, %v6457_v22 }
 0xaa9   :  { %7307 = vmatprep.subr.bf16.mxu0 %v13251_v39 }
 0xaaa   :  { %7155 = vmatprep.mubr.bf16.mxu0 %v6475_v61  ;;  %7268 = vmatprep.mubr.bf16.mxu1 %v6475_v61 }
 0xaab   :  { %7156 = vmatmul.mubr.bf16.gmra.mxu0 %v6474_v44  ;;  %7269 = vmatmul.mubr.bf16.gmra.mxu1 %v6474_v44 }
 0xaac   :  { %7308 = vmatpush2.bf16.msra.mxu0 %v13249_v15  ;;  %7311 = vmatprep.mubr.bf16.mxu0 %v15524_v9 }
 0xaad   :  { %7309 = vmatprep.subr.bf16.mxu0 %v13254_v20  ;;  %7537 = vmatprep.mubr.bf16.mxu1 %v16960_v0 }
 0xab0   :  { %7310 = vmatpush2.bf16.msra.mxu0 %v13252_v24 }
 0xab3   :  { %7312 = vmatmul.mubr.bf16.vlgmr.msra.gmra.mxu0 %v15518_v56 }
 0xab4   :  { %7321 = vmatprep.mubr.bf16.mxu0 %v15543_v52 }
 0xabb   :  { %7322 = vmatmul.mubr.bf16.gmra.mxu0 %v15535_v2 }
 0xabc   :  { %7331 = vmatprep.mubr.bf16.mxu0 %v15563_v54 }
 0xac3   :  { %7332 = vmatmul.mubr.bf16.gmra.mxu0 %v15555_v12 }
 0xac4   :  { %7341 = vmatprep.mubr.bf16.mxu0 %v15583_v28 }
 0xacb   :  { %7342 = vmatmul.mubr.bf16.gmra.mxu0 %v15575_v37 }
 0xacc   :  { %7351 = vmatprep.mubr.bf16.mxu0 %v15599_v63 }
 0xad3   :  { %7352 = vmatmul.mubr.bf16.gmra.mxu0 %v15593_v6 }
 0xad4   :  { %7361 = vmatprep.mubr.bf16.mxu0 %v15614_v57 }
 0xadb   :  { %7362 = vmatmul.mubr.bf16.gmra.mxu0 %v15609_v33 }
 0xadc   :  { %7371 = vmatprep.mubr.bf16.mxu0 %v6473_v43 }
 0xae3   :  { %7372 = vmatmul.mubr.bf16.gmra.mxu0 %v6472_v26 }
 0xae4   :  { %7381 = vmatprep.mubr.bf16.mxu0 %v6475_v61 }
 0xaeb   :  { %7382 = vmatmul.mubr.bf16.gmra.mxu0 %v6474_v44 }
 0xaec   :  { %7747 = vmatprep.mubr.bf16.mxu0 %v16960_v0 }
 0xb33   :  { %v15639_v56 = vpop.f32.mrf.mxu0  ;;  %v15641_v9 = vpop.f32.mrf.mxu1 }
 0xb34   :  { %16961 = vst [vmem:[#allocation15_spill] sm:$0xff] %v15639_v56  ;;  %16962 = vst [vmem:[#allocation18_spill] sm:$0xff] %v15641_v9 }
 0xb35   :  { %v15643_v2 = vpop.f32.mrf.mxu0  ;;  %v15645_v52 = vpop.f32.mrf.mxu1 }
 0xb36   :  { %16963 = vst [vmem:[#allocation23_spill] sm:$0xff] %v15645_v52 }
 0xb37   :  { %v15647_v12 = vpop.f32.mrf.mxu0  ;;  %v15649_v54 = vpop.f32.mrf.mxu1 }
 0xb38   :  { %16964 = vst [vmem:[#allocation20_spill] sm:$0xff] %v15647_v12  ;;  %16965 = vst [vmem:[#allocation17_spill] sm:$0xff] %v15649_v54 }
 0xb39   :  { %v15655_v6 = vpop.f32.mrf.mxu0  ;;  %v15657_v63 = vpop.f32.mrf.mxu1 }
 0xb3a   :  { %16966 = vst [vmem:[#allocation19_spill] sm:$0xff] %v15655_v6  ;;  %16967 = vst [vmem:[#allocation21_spill] sm:$0xff] %v15657_v63 }
 0xb3b   :  { %v15659_v33 = vpop.f32.mrf.mxu0  ;;  %v15661_v27 = vpop.f32.mrf.mxu1 }
 0xb3c   :  { %16968 = vst [vmem:[#allocation13_spill] sm:$0xff] %v15659_v33  ;;  %16969 = vst [vmem:[#allocation14_spill] sm:$0xff] %v15661_v27 }
 0xb3d   :  { %v15663_v4 = vpop.f32.mrf.mxu0  ;;  %v15665_v42 = vpop.f32.mrf.mxu1 }
 0xb3f   :  { %v15667_v57 = vpop.f32.mrf.mxu0  ;;  %v15669_v35 = vpop.f32.mrf.mxu1 }
 0xb40   :  { %16970 = vst [vmem:[#allocation22_spill] sm:$0xff] %v15667_v57  ;;  %16971 = vst [vmem:[#allocation16_spill] sm:$0xff] %v15669_v35 }
 0xb41   :  { %v15675_v25 = vpop.f32.mrf.mxu0  ;;  %v15677_v49 = vpop.f32.mrf.mxu1 }
 0xb43   :  { %v15679_v21 = vpop.f32.mrf.mxu0  ;;  %v15681_v38 = vpop.f32.mrf.mxu1 }
 0xb45   :  { %v15683_v45 = vpop.f32.mrf.mxu0  ;;  %v15685_v16 = vpop.f32.mrf.mxu1 }
 0xb47   :  { %v15687_v48 = vpop.f32.mrf.mxu0  ;;  %v15689_v50 = vpop.f32.mrf.mxu1 }
 0xb49   :  { %v15691_v7 = vpop.f32.mrf.mxu0  ;;  %v15693_v34 = vpop.f32.mrf.mxu1 }
 0xb4b   :  { %v15695_v41 = vpop.f32.mrf.mxu0  ;;  %v15697_v55 = vpop.f32.mrf.mxu1 }
 0xb4d   :  { %v15699_v19 = vpop.f32.mrf.mxu0  ;;  %v15701_v40 = vpop.f32.mrf.mxu1 }
 0xb4f   :  { %v15703_v10 = vpop.f32.mrf.mxu0  ;;  %v15705_v26 = vpop.f32.mrf.mxu1 }
 0xb51   :  { %v15707_v13 = vpop.f32.mrf.mxu0  ;;  %v15709_v11 = vpop.f32.mrf.mxu1 }
 0xb53   :  { %v15711_v58 = vpop.f32.mrf.mxu0  ;;  %v15713_v59 = vpop.f32.mrf.mxu1 }
 0xb55   :  { %v15715_v47 = vpop.f32.mrf.mxu0  ;;  %v15717_v36 = vpop.f32.mrf.mxu1 }
 0xb57   :  { %v15719_v3 = vpop.f32.mrf.mxu0  ;;  %v15721_v60 = vpop.f32.mrf.mxu1 }
 0xb59   :  { %v7133_v43 = vpop.f32.mrf.mxu0  ;;  %v7246_v31 = vpop.f32.mrf.mxu1 }
 0xb5b   :  { %v7137_v8 = vpop.f32.mrf.mxu0  ;;  %v7250_v32 = vpop.f32.mrf.mxu1 }
 0xb5d   :  { %v7139_v51 = vpop.f32.mrf.mxu0  ;;  %v7252_v53 = vpop.f32.mrf.mxu1 }
 0xb5f   :  { %v7141_v62 = vpop.f32.mrf.mxu0  ;;  %v7254_v1 = vpop.f32.mrf.mxu1 }
 0xb61   :  { %v7143_v46 = vpop.f32.mrf.mxu0  ;;  %v7256_v5 = vpop.f32.mrf.mxu1 }
 0xb63   :  { %v7147_v30 = vpop.f32.mrf.mxu0  ;;  %v7260_v17 = vpop.f32.mrf.mxu1 }
 0xb65   :  { %v7149_v14 = vpop.f32.mrf.mxu0  ;;  %v7262_v39 = vpop.f32.mrf.mxu1 }
 0xb67   :  { %v7151_v22 = vpop.f32.mrf.mxu0  ;;  %v7264_v44 = vpop.f32.mrf.mxu1 }
 0xb68   :  { %v7428_v63 = vpack.c.bf16 %v7151_v22, %v7147_v30  ;;  %v7430_v52 = vpack.c.bf16 %v7264_v44, %v7260_v17  ;;  %v16985_v30 = vld [vmem:[#allocation18_spill] sm:$0xff]  ;;  %v16987_v22 = vmov 0  }
 0xb69   :  { %v7153_v18 = vpop.f32.mrf.mxu0  ;;  %v7266_v61 = vpop.f32.mrf.mxu1 }
 0xb6a   :  { %v7429_v35 = vpack.c.bf16 %v7153_v18, %v7149_v14  ;;  %v7431_v33 = vpack.c.bf16 %v7266_v61, %v7262_v39  ;;  %v13257_v18 = vld [vmem:[#allocation3 + $0x248] sm:$0xff]  }
 0xb6b   :  { %v7157_v15 = vpop.f32.mrf.mxu0  ;;  %v7270_v20 = vpop.f32.mrf.mxu1  ;;  %v13258_v61 = vld [vmem:[#allocation3 + $0x288] sm:$0xff]  }
 0xb6d   :  { %v7159_v24 = vpop.f32.mrf.mxu0  ;;  %v7272_v28 = vpop.f32.mrf.mxu1 }
 0xb6f   :  { %v7161_v37 = vpop.f32.mrf.mxu0  ;;  %v7274_v23 = vpop.f32.mrf.mxu1 }
 0xb70   :  { %v7434_v56 = vpack.c.bf16 %v7161_v37, %v7157_v15  ;;  %v7436_v12 = vpack.c.bf16 %v7274_v23, %v7270_v20 }
 0xb71   :  { %v7163_v29 = vpop.f32.mrf.mxu0  ;;  %v7276_v0 = vpop.f32.mrf.mxu1 }
 0xb72   :  { %v7435_v9 = vpack.c.bf16 %v7163_v29, %v7159_v24  ;;  %v7437_v54 = vpack.c.bf16 %v7276_v0, %v7272_v28  ;;  %v7423_v29 = vpack.c.bf16 %v7143_v46, %v7139_v51  ;;  %v7425_v0 = vpack.c.bf16 %v7256_v5, %v7252_v53  ;;  %v13255_v51 = vld [vmem:[#allocation3 + $0x240] sm:$0xff]  }
 0xb73   :  { %v15723_v27 = vpop.f32.mrf.mxu0  ;;  %v13256_v53 = vld [vmem:[#allocation3 + $0x280] sm:$0xff]  }
 0xb74   :  { %7505 = vmatprep.subr.bf16.mxu1 %v7435_v9  ;;  %7715 = vmatprep.subr.bf16.mxu0 %v7437_v54  ;;  %v7422_v9 = vpack.c.bf16 %v7141_v62, %v7137_v8  ;;  %v7417_v54 = vpack.c.bf16 %v7133_v43, %v15715_v47  ;;  %v7411_v8 = vpack.c.bf16 %v15707_v13, %v15699_v19  ;;  %v16981_v62 = vld [vmem:[#allocation20_spill] sm:$0xff]  ;;  %v16984_v5 = vld [vmem:[#allocation17_spill] sm:$0xff] }
 0xb75   :  { %v15725_v57 = vpop.f32.mrf.mxu0  ;;  %7506 = vmatpush1.bf16.msra.mxu1 %v7434_v56  ;;  %7716 = vmatpush1.bf16.msra.mxu0 %v7436_v12  ;;  %v7424_v56 = vpack.c.bf16 %v7254_v1, %v7250_v32  ;;  %v7413_v47 = vpack.c.bf16 %v15709_v11, %v15701_v40  ;;  %v7405_v19 = vpack.c.bf16 %v15691_v7, %v15683_v45  ;;  %v16982_v1 = vld [vmem:[#allocation15_spill] sm:$0xff] }
 0xb76   :  { %7507 = vmatprep.subr.bf16.mxu1 %v7429_v35  ;;  %7717 = vmatprep.subr.bf16.mxu0 %v7431_v33  ;;  %v7419_v33 = vpack.c.bf16 %v7246_v31, %v15717_v36  ;;  %v7407_v40 = vpack.c.bf16 %v15693_v34, %v15685_v16  ;;  %v7399_v45 = vpack.c.bf16 %v15675_v25, %v15663_v4  ;;  %v16975_v4 = vld [vmem:[#allocation22_spill] sm:$0xff]  ;;  %v16976_v25 = vld [vmem:[#allocation13_spill] sm:$0xff] }
 0xb77   :  { %v15727_v6 = vpop.f32.mrf.mxu0  ;;  %v7401_v16 = vpack.c.bf16 %v15677_v49, %v15665_v42  ;;  %v16978_v42 = vld [vmem:[#allocation16_spill] sm:$0xff]  ;;  %v16979_v49 = vld [vmem:[#allocation14_spill] sm:$0xff]  ;;  %v16983_v46 = vpack.c.bf16 %v16981_v62, %v16982_v1  ;;  %v16986_v17 = vpack.c.bf16 %v16984_v5, %v16985_v30 }
 0xb78   :  { %v7396_v37 = vpack.c.bf16 %v15727_v6, %v15723_v27  ;;  %v16980_v31 = vpack.c.bf16 %v16978_v42, %v16979_v49  ;;  %v13267_v42 = vld [vmem:[#allocation3 + $0x270] sm:$0xff]   ;;  %v13290_v6 = vld [vmem:[#allocation5 + $0xd2c] ss:$24 sps:$4 sm:$0xff]   ;;  %v13285_v27 = vld [vmem:[#allocation5 + $0xd20] ss:$24 sps:$4 sm:$0xff]  }
 0xb79   :  { %v15731_v28 = vpop.f32.mrf.mxu0  ;;  %7508 = vmatpush1.bf16.msra.mxu1 %v7428_v63  ;;  %7718 = vmatpush1.bf16.msra.mxu0 %v7430_v52  ;;  %v7416_v63 = vpack.c.bf16 %v15719_v3, %v15711_v58  ;;  %v7418_v52 = vpack.c.bf16 %v15721_v60, %v15713_v59  ;;  %v7410_v58 = vpack.c.bf16 %v15703_v10, %v15695_v41  ;;  %v13268_v49 = vld [vmem:[#allocation3 + $0x2b0] sm:$0xff]   ;;  %v13299_v5 = vld [vmem:[#allocation5 + $0xcc4] ss:$24 sps:$4 sm:$0xff]  }
 0xb7a   :  { %7509 = vmatprep.subr.bf16.mxu1 %v7423_v29  ;;  %7719 = vmatprep.subr.bf16.mxu0 %v7425_v0  ;;  %v7412_v59 = vpack.c.bf16 %v15705_v26, %v15697_v55  ;;  %v7404_v41 = vpack.c.bf16 %v15687_v48, %v15679_v21  ;;  %v7406_v55 = vpack.c.bf16 %v15689_v50, %v15681_v38  ;;  %v16972_v21 = vld [vmem:[#allocation19_spill] sm:$0xff]  ;;  %v16974_v50 = vld [vmem:[#allocation21_spill] sm:$0xff] }
 0xb7b   :  { %v15733_v12 = vpop.f32.mrf.mxu0  ;;  %v7393_v48 = vpack.c.bf16 %v16972_v21, %v15643_v2  ;;  %v16973_v38 = vld [vmem:[#allocation23_spill] sm:$0xff]  ;;  %v16977_v60 = vpack.c.bf16 %v16975_v4, %v16976_v25  ;;  %v13302_v30 = vld [vmem:[#allocation5 + $0xccc] ss:$24 sps:$4 sm:$0xff]  }
 0xb7c   :  { %v7395_v26 = vpack.c.bf16 %v16974_v50, %v16973_v38  ;;  %v13259_v0 = vld [vmem:[#allocation3 + $0x250] sm:$0xff]   ;;  %v13265_v38 = vld [vmem:[#allocation3 + $0x268] sm:$0xff]  }
 0xb7d   :  { %v15737_v35 = vpop.f32.mrf.mxu0  ;;  %7510 = vmatpush1.bf16.msra.mxu1 %v7422_v9  ;;  %7720 = vmatpush1.bf16.msra.mxu0 %v7424_v56  ;;  %v13260_v9 = vld [vmem:[#allocation3 + $0x290] sm:$0xff]   ;;  %v13266_v50 = vld [vmem:[#allocation3 + $0x2a8] sm:$0xff]  }
 0xb7e   :  { %7511 = vmatprep.subr.bf16.mxu1 %v7417_v54  ;;  %7721 = vmatprep.subr.bf16.mxu0 %v7419_v33 }
 0xb7f   :  { %v15743_v23 = vpop.f32.mrf.mxu0 }
 0xb80   :  { %v7402_v36 = vpack.c.bf16 %v15743_v23, %v15733_v12  ;;  %v13287_v12 = vld [vmem:[#allocation5 + $0xd24] ss:$24 sps:$4 sm:$0xff]  }
 0xb81   :  { %v15751_v43 = vpop.f32.mrf.mxu0  ;;  %7512 = vmatpush1.bf16.msra.mxu1 %v7416_v63  ;;  %7722 = vmatpush1.bf16.msra.mxu0 %v7418_v52  ;;  %v13261_v52 = vld [vmem:[#allocation3 + $0x258] sm:$0xff]  }
 0xb82   :  { %7513 = vmatprep.subr.bf16.mxu1 %v7411_v8  ;;  %7723 = vmatprep.subr.bf16.mxu0 %v7413_v47  ;;  %v13262_v8 = vld [vmem:[#allocation3 + $0x298] sm:$0xff]   ;;  %v7403_v1 = vpack.c.bf16 %v15751_v43, %v15737_v35  ;;  %v13272_v35 = vld [vmem:[#allocation3 + $0x2c8] sm:$0xff]  }
 0xb83   :  { %v15757_v3 = vpop.f32.mrf.mxu0  ;;  %v13284_v43 = vld [vmem:[#allocation5 + $0xd5c] ss:$24 sps:$4 sm:$0xff]  }
 0xb84   :  { %v13274_v23 = vld [vmem:[#allocation3 + $0x2d8] sm:$0xff]  }
 0xb85   :  { %v15763_v13 = vpop.f32.mrf.mxu0  ;;  %7514 = vmatpush1.bf16.msra.mxu1 %v7410_v58  ;;  %7724 = vmatpush1.bf16.msra.mxu0 %v7412_v59 }
 0xb86   :  { %7515 = vmatprep.subr.bf16.mxu1 %v7405_v19  ;;  %7725 = vmatprep.subr.bf16.mxu0 %v7407_v40  ;;  %v13263_v40 = vld [vmem:[#allocation3 + $0x260] sm:$0xff]  }
 0xb87   :  { %v15769_v10 = vpop.f32.mrf.mxu0 }
 0xb88   :  { %v7408_v62 = vpack.c.bf16 %v15769_v10, %v15757_v3  ;;  %v13271_v3 = vld [vmem:[#allocation3 + $0x2c0] sm:$0xff]   ;;  %v13279_v10 = vld [vmem:[#allocation5 + $0xd50] ss:$24 sps:$4 sm:$0xff]  }
 0xb89   :  { %v15775_v7 = vpop.f32.mrf.mxu0  ;;  %7516 = vmatpush1.bf16.msra.mxu1 %v7404_v41  ;;  %7726 = vmatpush1.bf16.msra.mxu0 %v7406_v55  ;;  %v13264_v41 = vld [vmem:[#allocation3 + $0x2a0] sm:$0xff]  }
 0xb8a   :  { %7517 = vmatprep.subr.bf16.mxu1 %v7399_v45  ;;  %7727 = vmatprep.subr.bf16.mxu0 %v7401_v16 }
 0xb8b   :  { %v15777_v34 = vpop.f32.mrf.mxu0 }
 0xb8d   :  { %v15783_v11 = vpop.f32.mrf.mxu0  ;;  %7518 = vmatpush1.bf16.msra.mxu1 %v16977_v60  ;;  %7728 = vmatpush1.bf16.msra.mxu0 %v16980_v31 }
 0xb8e   :  { %7519 = vmatprep.subr.bf16.mxu1 %v7393_v48  ;;  %7729 = vmatprep.subr.bf16.mxu0 %v7395_v26 }
 0xb8f   :  { %v15791_v32 = vpop.f32.mrf.mxu0 }
 0xb91   :  { %v15793_v2 = vpop.f32.mrf.mxu0  ;;  %7520 = vmatpush1.bf16.msra.mxu1 %v16983_v46  ;;  %7730 = vmatpush1.bf16.msra.mxu0 %v16986_v17  ;;  %v13294_v46 = vld [vmem:[#allocation5 + $0xcf8] ss:$24 sps:$4 sm:$0xff]  }
 0xb92   :  { %v7415_v31 = vpack.c.bf16 %v15793_v2, %v15783_v11  ;;  %v13269_v11 = vld [vmem:[#allocation3 + $0x278] sm:$0xff]  }
 0xb93   :  { %v15801_v14 = vpop.f32.mrf.mxu0  ;;  %v13270_v2 = vld [vmem:[#allocation3 + $0x2b8] sm:$0xff]  }
 0xb94   :  { %7538 = vmatmul.mubr.bf16.vlgmr.msra.gmra.mxu1 %v13255_v51  ;;  %7748 = vmatmul.mubr.bf16.vlgmr.msra.gmra.mxu0 %v13256_v53  ;;  %v7414_v51 = vpack.c.bf16 %v15791_v32, %v15777_v34  ;;  %v7409_v53 = vpack.c.bf16 %v15775_v7, %v15763_v13  ;;  %v7397_v13 = vpack.c.bf16 %v15731_v28, %v15725_v57  ;;  %v13273_v57 = vld [vmem:[#allocation3 + $0x2d0] sm:$0xff]   ;;  %v13297_v17 = vld [vmem:[#allocation5 + $0xcc0] ss:$24 sps:$4 sm:$0xff]  }
 0xb95   :  { %v7355_v39 = vpop.f32.mrf.mxu0  ;;  %7547 = vmatprep.mubr.bf16.mxu1 %v16987_v22  ;;  %7757 = vmatprep.mubr.bf16.mxu0 %v16987_v22  ;;  %v13281_v28 = vld [vmem:[#allocation5 + $0xd54] ss:$24 sps:$4 sm:$0xff]   ;;  %v13282_v7 = vld [vmem:[#allocation5 + $0xd58] ss:$24 sps:$4 sm:$0xff]  }
 0xb96   :  { %8855 = vmatprep.subr.bf16.mxu0 %v13281_v28  ;;  %v13296_v34 = vld [vmem:[#allocation5 + $0xcfc] ss:$24 sps:$4 sm:$0xff]   ;;  %v13291_v32 = vld [vmem:[#allocation5 + $0xcf0] ss:$24 sps:$4 sm:$0xff]  }
 0xb97   :  { %v7357_v44 = vpop.f32.mrf.mxu0  ;;  %8856 = vmatpush1.bf16.msra.mxu0 %v13279_v10  ;;  %v13363_v28 = vld [vmem:[#allocation5 + $0xdb0] ss:$24 sps:$4 sm:$0xff]   ;;  %v13371_v10 = vld [vmem:[#allocation5 + $0xd84] ss:$24 sps:$4 sm:$0xff]  }
 0xb98   :  { %v7420_v60 = vpack.c.bf16 %v7357_v44, %v15801_v14  ;;  %8857 = vmatprep.subr.bf16.mxu0 %v13287_v12  ;;  %v13300_v14 = vld [vmem:[#allocation5 + $0xcc8] ss:$24 sps:$4 sm:$0xff]   ;;  %v13305_v44 = vld [vmem:[#allocation5 + $0xc94] ss:$24 sps:$4 sm:$0xff]  }
 0xb99   :  { %v7359_v15 = vpop.f32.mrf.mxu0  ;;  %v13369_v12 = vld [vmem:[#allocation5 + $0xd80] ss:$24 sps:$4 sm:$0xff]  }
 0xb9a   :  { %v7421_v25 = vpack.c.bf16 %v7359_v15, %v7355_v39  ;;  %v13275_v39 = vld [vmem:[#allocation3 + $0x2e0] sm:$0xff]   ;;  %v13306_v15 = vld [vmem:[#allocation5 + $0xc98] ss:$24 sps:$4 sm:$0xff]  }
 0xb9b   :  { %v7363_v20 = vpop.f32.mrf.mxu0  ;;  %8858 = vmatpush1.bf16.msra.mxu0 %v13285_v27  ;;  %v13377_v27 = vld [vmem:[#allocation5 + $0xd64] ss:$24 sps:$4 sm:$0xff]  }
 0xb9c   :  { %7548 = vmatmul.mubr.bf16.gmra.mxu1 %v13257_v18  ;;  %7758 = vmatmul.mubr.bf16.gmra.mxu0 %v13258_v61  ;;  %v13308_v18 = vld [vmem:[#allocation5 + $0xc9c] ss:$24 sps:$4 sm:$0xff]   ;;  %v13303_v61 = vld [vmem:[#allocation5 + $0xc90] ss:$24 sps:$4 sm:$0xff]  }
 0xb9d   :  { %v7365_v24 = vpop.f32.mrf.mxu0  ;;  %7557 = vmatprep.mubr.bf16.mxu1 %v16987_v22  ;;  %7767 = vmatprep.mubr.bf16.mxu0 %v16987_v22 }
 0xb9f   :  { %v7367_v29 = vpop.f32.mrf.mxu0 }
 0xba0   :  { %v7426_v4 = vpack.c.bf16 %v7367_v29, %v7363_v20  ;;  %v13311_v20 = vld [vmem:[#allocation5 + $0xc64] ss:$24 sps:$4 sm:$0xff]   ;;  %v13309_v29 = vld [vmem:[#allocation5 + $0xc60] ss:$24 sps:$4 sm:$0xff]  }
 0xba1   :  { %v7369_v56 = vpop.f32.mrf.mxu0 }
 0xba2   :  { %v7427_v26 = vpack.c.bf16 %v7369_v56, %v7365_v24  ;;  %v13314_v24 = vld [vmem:[#allocation5 + $0xc6c] ss:$24 sps:$4 sm:$0xff]  }
 0xba3   :  { %v7373_v54 = vpop.f32.mrf.mxu0  ;;  %v13317_v56 = vld [vmem:[#allocation5 + $0xc34] ss:$24 sps:$4 sm:$0xff]  }
 0xba4   :  { %7558 = vmatmul.mubr.bf16.gmra.mxu1 %v13259_v0  ;;  %7768 = vmatmul.mubr.bf16.gmra.mxu0 %v13260_v9  ;;  %v13312_v0 = vld [vmem:[#allocation5 + $0xc68] ss:$24 sps:$4 sm:$0xff]  }
 0xba5   :  { %v7375_v33 = vpop.f32.mrf.mxu0  ;;  %7567 = vmatprep.mubr.bf16.mxu1 %v16987_v22  ;;  %7777 = vmatprep.mubr.bf16.mxu0 %v16987_v22  ;;  %v13276_v9 = vld [vmem:[#allocation3 + $0x2e8] sm:$0xff]  }
 0xba7   :  { %v7377_v63 = vpop.f32.mrf.mxu0 }
 0xba8   :  { %v7432_v48 = vpack.c.bf16 %v7377_v63, %v7373_v54  ;;  %v13320_v54 = vld [vmem:[#allocation5 + $0xc3c] ss:$24 sps:$4 sm:$0xff]   ;;  %v13318_v63 = vld [vmem:[#allocation5 + $0xc38] ss:$24 sps:$4 sm:$0xff]  }
 0xba9   :  { %v7379_v47 = vpop.f32.mrf.mxu0 }
 0xbaa   :  { %v7433_v21 = vpack.c.bf16 %v7379_v47, %v7375_v33  ;;  %v13315_v33 = vld [vmem:[#allocation5 + $0xc30] ss:$24 sps:$4 sm:$0xff]   ;;  %v13321_v47 = vld [vmem:[#allocation5 + $0xc00] ss:$24 sps:$4 sm:$0xff]  }
 0xbab   :  { %v7383_v58 = vpop.f32.mrf.mxu0 }
 0xbac   :  { %7568 = vmatmul.mubr.bf16.gmra.mxu1 %v13261_v52  ;;  %7778 = vmatmul.mubr.bf16.gmra.mxu0 %v13262_v8  ;;  %v13323_v52 = vld [vmem:[#allocation5 + $0xc04] ss:$24 sps:$4 sm:$0xff]  }
 0xbad   :  { %v7385_v59 = vpop.f32.mrf.mxu0  ;;  %7577 = vmatprep.mubr.bf16.mxu1 %v16987_v22  ;;  %7787 = vmatprep.mubr.bf16.mxu0 %v16987_v22  ;;  %v13326_v8 = vld [vmem:[#allocation5 + $0xc0c] ss:$24 sps:$4 sm:$0xff]  }
 0xbaf   :  { %v7387_v19 = vpop.f32.mrf.mxu0 }
 0xbb0   :  { %v7438_v16 = vpack.c.bf16 %v7387_v19, %v7383_v58  ;;  %v13324_v58 = vld [vmem:[#allocation5 + $0xc08] ss:$24 sps:$4 sm:$0xff]   ;;  %v13329_v19 = vld [vmem:[#allocation5 + $0xed4] ss:$24 sps:$4 sm:$0xff]  }
 0xbb1   :  { %v7389_v55 = vpop.f32.mrf.mxu0 }
 0xbb2   :  { %v7439_v45 = vpack.c.bf16 %v7389_v55, %v7385_v59  ;;  %v13277_v59 = vld [vmem:[#allocation3 + $0x2f0] sm:$0xff]  }
 0xbb3   :  { %v13330_v55 = vld [vmem:[#allocation5 + $0xed8] ss:$24 sps:$4 sm:$0xff]  }
 0xbb4   :  { %7578 = vmatmul.mubr.bf16.gmra.mxu1 %v13263_v40  ;;  %7788 = vmatmul.mubr.bf16.gmra.mxu0 %v13264_v41  ;;  %v13332_v40 = vld [vmem:[#allocation5 + $0xedc] ss:$24 sps:$4 sm:$0xff]   ;;  %v13327_v41 = vld [vmem:[#allocation5 + $0xed0] ss:$24 sps:$4 sm:$0xff]  }
 0xbb5   :  { %7989 = vmatprep.subr.bf16.mxu1 %v7439_v45  ;;  %7587 = vmatprep.mubr.bf16.mxu1 %v16987_v22  ;;  %v13335_v45 = vld [vmem:[#allocation5 + $0xea4] ss:$24 sps:$4 sm:$0xff]  }
 0xbb6   :  { %7990 = vmatpush1.bf16.msra.mxu1 %v7438_v16  ;;  %7797 = vmatprep.mubr.bf16.mxu0 %v16987_v22  ;;  %v13338_v16 = vld [vmem:[#allocation5 + $0xeac] ss:$24 sps:$4 sm:$0xff]  }
 0xbb7   :  { %7991 = vmatprep.subr.bf16.mxu1 %v7433_v21  ;;  %v13333_v21 = vld [vmem:[#allocation5 + $0xea0] ss:$24 sps:$4 sm:$0xff]  }
 0xbba   :  { %7992 = vmatpush1.bf16.msra.mxu1 %v7432_v48  ;;  %v13336_v48 = vld [vmem:[#allocation5 + $0xea8] ss:$24 sps:$4 sm:$0xff]  }
 0xbbb   :  { %7993 = vmatprep.subr.bf16.mxu1 %v7427_v26  ;;  %v13344_v26 = vld [vmem:[#allocation5 + $0xe7c] ss:$24 sps:$4 sm:$0xff]  }
 0xbbc   :  { %7588 = vmatmul.mubr.bf16.gmra.mxu1 %v13265_v38  ;;  %7798 = vmatmul.mubr.bf16.gmra.mxu0 %v13266_v50  ;;  %v13278_v38 = vld [vmem:[#allocation3 + $0x2f8] sm:$0xff]   ;;  %v13341_v50 = vld [vmem:[#allocation5 + $0xe74] ss:$24 sps:$4 sm:$0xff]  }
 0xbbd   :  { %7597 = vmatprep.mubr.bf16.mxu1 %v16987_v22  ;;  %7807 = vmatprep.mubr.bf16.mxu0 %v16987_v22 }
 0xbbe   :  { %7994 = vmatpush1.bf16.msra.mxu1 %v7426_v4  ;;  %v13339_v4 = vld [vmem:[#allocation5 + $0xe70] ss:$24 sps:$4 sm:$0xff]  }
 0xbbf   :  { %7995 = vmatprep.subr.bf16.mxu1 %v7421_v25  ;;  %v13342_v25 = vld [vmem:[#allocation5 + $0xe78] ss:$24 sps:$4 sm:$0xff]  }
 0xbc2   :  { %7996 = vmatpush1.bf16.msra.mxu1 %v7420_v60  ;;  %v13347_v60 = vld [vmem:[#allocation5 + $0xe44] ss:$24 sps:$4 sm:$0xff]  }
 0xbc3   :  { %7997 = vmatprep.subr.bf16.mxu1 %v7415_v31  ;;  %v13348_v31 = vld [vmem:[#allocation5 + $0xe48] ss:$24 sps:$4 sm:$0xff]  }
 0xbc4   :  { %7598 = vmatmul.mubr.bf16.gmra.mxu1 %v13267_v42  ;;  %7808 = vmatmul.mubr.bf16.gmra.mxu0 %v13268_v49  ;;  %v13350_v42 = vld [vmem:[#allocation5 + $0xe4c] ss:$24 sps:$4 sm:$0xff]   ;;  %v13345_v49 = vld [vmem:[#allocation5 + $0xe40] ss:$24 sps:$4 sm:$0xff]  }
 0xbc5   :  { %7607 = vmatprep.mubr.bf16.mxu1 %v16987_v22  ;;  %7817 = vmatprep.mubr.bf16.mxu0 %v16987_v22 }
 0xbc6   :  { %7998 = vmatpush1.bf16.msra.mxu1 %v7414_v51  ;;  %v13353_v51 = vld [vmem:[#allocation5 + $0xe14] ss:$24 sps:$4 sm:$0xff]  }
 0xbc7   :  { %7999 = vmatprep.subr.bf16.mxu1 %v7409_v53  ;;  %v13356_v53 = vld [vmem:[#allocation5 + $0xe1c] ss:$24 sps:$4 sm:$0xff]  }
 0xbca   :  { %8000 = vmatpush1.bf16.msra.mxu1 %v7408_v62  ;;  %v13351_v62 = vld [vmem:[#allocation5 + $0xe10] ss:$24 sps:$4 sm:$0xff]  }
 0xbcb   :  { %8001 = vmatprep.subr.bf16.mxu1 %v7403_v1  ;;  %v13362_v1 = vld [vmem:[#allocation5 + $0xdec] ss:$24 sps:$4 sm:$0xff]  }
 0xbcc   :  { %7608 = vmatmul.mubr.bf16.gmra.mxu1 %v13269_v11  ;;  %7818 = vmatmul.mubr.bf16.gmra.mxu0 %v13270_v2  ;;  %v13354_v11 = vld [vmem:[#allocation5 + $0xe18] ss:$24 sps:$4 sm:$0xff]   ;;  %v13359_v2 = vld [vmem:[#allocation5 + $0xde4] ss:$24 sps:$4 sm:$0xff]  }
 0xbcd   :  { %8021 = vmatprep.mubr.bf16.mxu1 %v16987_v22 }
 0xbce   :  { %8002 = vmatpush1.bf16.msra.mxu1 %v7402_v36  ;;  %v13293_v36 = vld [vmem:[#allocation5 + $0xcf4] ss:$24 sps:$4 sm:$0xff]  }
 0xbcf   :  { %8003 = vmatprep.subr.bf16.mxu1 %v7397_v13  ;;  %8859 = vmatprep.subr.bf16.mxu0 %v13293_v36  ;;  %v13357_v13 = vld [vmem:[#allocation5 + $0xde0] ss:$24 sps:$4 sm:$0xff]  }
 0xbd0   :  { %8860 = vmatpush1.bf16.msra.mxu0 %v13291_v32 }
 0xbd1   :  { %8861 = vmatprep.subr.bf16.mxu0 %v13299_v5 }
 0xbd2   :  { %8004 = vmatpush1.bf16.msra.mxu1 %v7396_v37  ;;  %v13288_v37 = vld [vmem:[#allocation5 + $0xd28] ss:$24 sps:$4 sm:$0xff]  }
 0xbd3   :  { %8968 = vmatprep.subr.bf16.mxu1 %v13284_v43  ;;  %v13366_v43 = vld [vmem:[#allocation5 + $0xdb8] ss:$24 sps:$4 sm:$0xff]  }
 0xbd4   :  { %8862 = vmatpush1.bf16.msra.mxu0 %v13297_v17 }
 0xbd5   :  { %8022 = vmatmul.mubr.bf16.vlgmr.msra.gmra.mxu1 %v13271_v3  ;;  %8863 = vmatprep.subr.bf16.mxu0 %v13305_v44  ;;  %v13360_v3 = vld [vmem:[#allocation5 + $0xde8] ss:$24 sps:$4 sm:$0xff]  }
 0xbd6   :  { %8031 = vmatprep.mubr.bf16.mxu1 %v16987_v22  ;;  %8969 = vmatpush1.bf16.msra.mxu1 %v13282_v7  ;;  %v13374_v7 = vld [vmem:[#allocation5 + $0xd8c] ss:$24 sps:$4 sm:$0xff]  }
 0xbd7   :  { %8970 = vmatprep.subr.bf16.mxu1 %v13290_v6  ;;  %v13372_v6 = vld [vmem:[#allocation5 + $0xd88] ss:$24 sps:$4 sm:$0xff]  }
 0xbd8   :  { %8864 = vmatpush1.bf16.msra.mxu0 %v13303_v61 }
 0xbd9   :  { %8865 = vmatprep.subr.bf16.mxu0 %v13311_v20 }
 0xbda   :  { %8971 = vmatpush1.bf16.msra.mxu1 %v13288_v37 }
 0xbdb   :  { %8972 = vmatprep.subr.bf16.mxu1 %v13296_v34 }
 0xbdc   :  { %8866 = vmatpush1.bf16.msra.mxu0 %v13309_v29 }
 0xbdd   :  { %8032 = vmatmul.mubr.bf16.gmra.mxu1 %v13272_v35  ;;  %8867 = vmatprep.subr.bf16.mxu0 %v13317_v56  ;;  %v13365_v35 = vld [vmem:[#allocation5 + $0xdb4] ss:$24 sps:$4 sm:$0xff]  }
 0xbde   :  { %8041 = vmatprep.mubr.bf16.mxu1 %v16987_v22  ;;  %8973 = vmatpush1.bf16.msra.mxu1 %v13294_v46 }
 0xbdf   :  { %8974 = vmatprep.subr.bf16.mxu1 %v13302_v30 }
 0xbe0   :  { %8868 = vmatpush1.bf16.msra.mxu0 %v13315_v33 }
 0xbe1   :  { %8869 = vmatprep.subr.bf16.mxu0 %v13323_v52 }
 0xbe2   :  { %8975 = vmatpush1.bf16.msra.mxu1 %v13300_v14 }
 0xbe3   :  { %8976 = vmatprep.subr.bf16.mxu1 %v13308_v18 }
 0xbe4   :  { %8870 = vmatpush1.bf16.msra.mxu0 %v13321_v47 }
 0xbe5   :  { %8042 = vmatmul.mubr.bf16.gmra.mxu1 %v13273_v57  ;;  %8871 = vmatprep.subr.bf16.mxu0 %v13329_v19  ;;  %v13368_v57 = vld [vmem:[#allocation5 + $0xdbc] ss:$24 sps:$4 sm:$0xff]  }
 0xbe6   :  { %8051 = vmatprep.mubr.bf16.mxu1 %v16987_v22  ;;  %8977 = vmatpush1.bf16.msra.mxu1 %v13306_v15 }
 0xbe7   :  { %8978 = vmatprep.subr.bf16.mxu1 %v13314_v24 }
 0xbe8   :  { %8872 = vmatpush2.bf16.msra.mxu0 %v13327_v41 }
 0xbe9   :  { %8873 = vmatprep.subr.bf16.mxu0 %v13335_v45 }
 0xbea   :  { %8979 = vmatpush1.bf16.msra.mxu1 %v13312_v0 }
 0xbeb   :  { %8980 = vmatprep.subr.bf16.mxu1 %v13320_v54 }
 0xbec   :  { %8874 = vmatpush2.bf16.msra.mxu0 %v13333_v21 }
 0xbed   :  { %8052 = vmatmul.mubr.bf16.gmra.mxu1 %v13274_v23  ;;  %8875 = vmatprep.subr.bf16.mxu0 %v13341_v50 }
 0xbee   :  { %8061 = vmatprep.mubr.bf16.mxu1 %v16987_v22  ;;  %8981 = vmatpush1.bf16.msra.mxu1 %v13318_v63 }
 0xbef   :  { %8982 = vmatprep.subr.bf16.mxu1 %v13326_v8 }
 0xbf0   :  { %8876 = vmatpush2.bf16.msra.mxu0 %v13339_v4 }
 0xbf1   :  { %8877 = vmatprep.subr.bf16.mxu0 %v13347_v60 }
 0xbf2   :  { %8983 = vmatpush1.bf16.msra.mxu1 %v13324_v58 }
 0xbf3   :  { %8984 = vmatprep.subr.bf16.mxu1 %v13332_v40 }
 0xbf4   :  { %8878 = vmatpush2.bf16.msra.mxu0 %v13345_v49 }
 0xbf5   :  { %8062 = vmatmul.mubr.bf16.gmra.mxu1 %v13275_v39  ;;  %8879 = vmatprep.subr.bf16.mxu0 %v13353_v51 }
 0xbf6   :  { %8071 = vmatprep.mubr.bf16.mxu1 %v16987_v22  ;;  %8985 = vmatpush2.bf16.msra.mxu1 %v13330_v55 }
 0xbf7   :  { %8986 = vmatprep.subr.bf16.mxu1 %v13338_v16 }
 0xbf8   :  { %8880 = vmatpush2.bf16.msra.mxu0 %v13351_v62 }
 0xbf9   :  { %8881 = vmatprep.subr.bf16.mxu0 %v13359_v2 }
 0xbfa   :  { %8987 = vmatpush2.bf16.msra.mxu1 %v13336_v48 }
 0xbfb   :  { %8988 = vmatprep.subr.bf16.mxu1 %v13344_v26 }
 0xbfc   :  { %8882 = vmatpush2.bf16.msra.mxu0 %v13357_v13 }
 0xbfd   :  { %8072 = vmatmul.mubr.bf16.gmra.mxu1 %v13276_v9  ;;  %8883 = vmatprep.subr.bf16.mxu0 %v13365_v35 }
 0xbfe   :  { %8081 = vmatprep.mubr.bf16.mxu1 %v16987_v22  ;;  %8989 = vmatpush2.bf16.msra.mxu1 %v13342_v25 }
 0xbff   :  { %8990 = vmatprep.subr.bf16.mxu1 %v13350_v42 }
 0xc00   :  { %8884 = vmatpush2.bf16.msra.mxu0 %v13363_v28 }
 0xc01   :  { %8885 = vmatprep.subr.bf16.mxu0 %v13371_v10 }
 0xc02   :  { %8991 = vmatpush2.bf16.msra.mxu1 %v13348_v31 }
 0xc03   :  { %8992 = vmatprep.subr.bf16.mxu1 %v13356_v53 }
 0xc04   :  { %8886 = vmatpush2.bf16.msra.mxu0 %v13369_v12 }
 0xc05   :  { %8082 = vmatmul.mubr.bf16.gmra.mxu1 %v13277_v59  ;;  %9081 = vmatprep.subr.bf16.mxu0 %v13377_v27 }
 0xc06   :  { %8091 = vmatprep.mubr.bf16.mxu1 %v16987_v22  ;;  %8993 = vmatpush2.bf16.msra.mxu1 %v13354_v11 }
 0xc07   :  { %8994 = vmatprep.subr.bf16.mxu1 %v13362_v1 }
 0xc0a   :  { %8995 = vmatpush2.bf16.msra.mxu1 %v13360_v3 }
 0xc0b   :  { %8996 = vmatprep.subr.bf16.mxu1 %v13368_v57 }
 0xc0d   :  { %8092 = vmatmul.mubr.bf16.gmra.mxu1 %v13278_v38 }
 0xc0e   :  { %8997 = vmatpush2.bf16.msra.mxu1 %v13366_v43 }
 0xc0f   :  { %8998 = vmatprep.subr.bf16.mxu1 %v13374_v7 }
 0xc12   :  { %8999 = vmatpush2.bf16.msra.mxu1 %v13372_v6 }
 0xc54   :  { %v7539_v37 = vpop.f32.mrf.mxu1  ;;  %v7749_v23 = vpop.f32.mrf.mxu0 }
 0xc55   :  { %v7860_v2 = vadd.f32 %v7749_v23, %v7539_v37 }
 0xc56   :  { %v7541_v36 = vpop.f32.mrf.mxu1  ;;  %v7751_v34 = vpop.f32.mrf.mxu0 }
 0xc57   :  { %v7861_v3 = vadd.f32 %v7751_v34, %v7541_v36 }
 0xc58   :  { %v7543_v32 = vpop.f32.mrf.mxu1  ;;  %v7753_v5 = vpop.f32.mrf.mxu0 }
 0xc59   :  { %v7862_v35 = vadd.f32 %v7753_v5, %v7543_v32 }
 0xc5a   :  { %v7545_v46 = vpop.f32.mrf.mxu1  ;;  %v7755_v14 = vpop.f32.mrf.mxu0 }
 0xc5b   :  { %v7863_v43 = vadd.f32 %v7755_v14, %v7545_v46  ;;  %v13375_v14 = vld [vmem:[#allocation5 + $0xd60] ss:$24 sps:$4 sm:$0xff]  }
 0xc5c   :  { %v7549_v30 = vpop.f32.mrf.mxu1  ;;  %v7759_v18 = vpop.f32.mrf.mxu0 }
 0xc5e   :  { %v15844_v17 = vpop.f32.mrf.mxu1  ;;  %v7761_v20 = vpop.f32.mrf.mxu0 }
 0xc5f   :  { %v7865_v34 = vadd.f32 %v7761_v20, %v15844_v17 }
 0xc60   :  { %v15846_v39 = vpop.f32.mrf.mxu1  ;;  %v7763_v0 = vpop.f32.mrf.mxu0 }
 0xc61   :  { %v7866_v32 = vadd.f32 %v7763_v0, %v15846_v39  ;;  %v13378_v0 = vld [vmem:[#allocation5 + $0xd30] ss:$24 sps:$4 sm:$0xff]  }
 0xc62   :  { %v15848_v44 = vpop.f32.mrf.mxu1  ;;  %v7765_v54 = vpop.f32.mrf.mxu0 }
 0xc64   :  { %v15850_v61 = vpop.f32.mrf.mxu1  ;;  %v15866_v52 = vpop.f32.mrf.mxu0 }
 0xc66   :  { %v15852_v15 = vpop.f32.mrf.mxu1  ;;  %v15872_v58 = vpop.f32.mrf.mxu0 }
 0xc68   :  { %v15854_v24 = vpop.f32.mrf.mxu1  ;;  %v15878_v40 = vpop.f32.mrf.mxu0 }
 0xc6a   :  { %v15856_v29 = vpop.f32.mrf.mxu1  ;;  %v15884_v45 = vpop.f32.mrf.mxu0 }
 0xc6c   :  { %v15858_v9 = vpop.f32.mrf.mxu1  ;;  %v15890_v48 = vpop.f32.mrf.mxu0 }
 0xc6e   :  { %v15860_v56 = vpop.f32.mrf.mxu1  ;;  %v15896_v26 = vpop.f32.mrf.mxu0 }
 0xc70   :  { %v15862_v33 = vpop.f32.mrf.mxu1  ;;  %v15902_v60 = vpop.f32.mrf.mxu0 }
 0xc72   :  { %v15864_v63 = vpop.f32.mrf.mxu1  ;;  %v15908_v31 = vpop.f32.mrf.mxu0 }
 0xc74   :  { %v15868_v8 = vpop.f32.mrf.mxu1  ;;  %v15914_v62 = vpop.f32.mrf.mxu0 }
 0xc76   :  { %v15870_v47 = vpop.f32.mrf.mxu1  ;;  %v15916_v1 = vpop.f32.mrf.mxu0 }
 0xc78   :  { %v15874_v59 = vpop.f32.mrf.mxu1  ;;  %v15918_v12 = vpop.f32.mrf.mxu0 }
 0xc7a   :  { %v15876_v19 = vpop.f32.mrf.mxu1 }
 0xc7c   :  { %v15880_v41 = vpop.f32.mrf.mxu1 }
 0xc7e   :  { %v15882_v55 = vpop.f32.mrf.mxu1 }
 0xc80   :  { %v15886_v16 = vpop.f32.mrf.mxu1 }
 0xc82   :  { %v15888_v21 = vpop.f32.mrf.mxu1 }
 0xc84   :  { %v15892_v38 = vpop.f32.mrf.mxu1 }
 0xc86   :  { %v15894_v50 = vpop.f32.mrf.mxu1 }
 0xc88   :  { %v15898_v4 = vpop.f32.mrf.mxu1 }
 0xc8a   :  { %v15900_v25 = vpop.f32.mrf.mxu1 }
 0xc8b   :  { %16988 = vst [vmem:[#allocation19_spill] sm:$0xff] %v15900_v25  ;;  %v15922_v25 = vpop.f32.mrf.mxu0 }
 0xc8c   :  { %v15904_v42 = vpop.f32.mrf.mxu1 }
 0xc8d   :  { %16989 = vst [vmem:[#allocation23_spill] sm:$0xff] %v15904_v42 }
 0xc8e   :  { %v15906_v49 = vpop.f32.mrf.mxu1 }
 0xc8f   :  { %16990 = vst [vmem:[#allocation21_spill] sm:$0xff] %v15906_v49  ;;  %v7864_v49 = vadd.f32 %v7759_v18, %v7549_v30 }
 0xc90   :  { %v15910_v51 = vpop.f32.mrf.mxu1 }
 0xc91   :  { %16991 = vst [vmem:[#allocation22_spill] sm:$0xff] %v15910_v51 }
 0xc92   :  { %v15912_v53 = vpop.f32.mrf.mxu1 }
 0xc93   :  { %16992 = vst [vmem:[#allocation13_spill] sm:$0xff] %v15912_v53 }
 0xc95   :  { %v8023_v11 = vpop.f32.mrf.mxu1 }
 0xc96   :  { %v8134_v57 = vadd.f32 %v8023_v11, %v7860_v2  ;;  %v13380_v2 = vld [vmem:[#allocation5 + $0xd34] ss:$24 sps:$4 sm:$0xff]  }
 0xc97   :  { %v8025_v13 = vpop.f32.mrf.mxu1 }
 0xc98   :  { %v8135_v10 = vadd.f32 %v8025_v13, %v7861_v3  ;;  %v8230_v27 = vmax.f32 %v8134_v57, 0.0  ;;  %v7867_v13 = vadd.f32 %v7765_v54, %v15848_v44  ;;  %v13383_v44 = vld [vmem:[#allocation5 + $0xd04] ss:$24 sps:$4 sm:$0xff]   ;;  %v7868_v54 = vadd.f32 %v15866_v52, %v15850_v61  ;;  %v13386_v61 = vld [vmem:[#allocation5 + $0xcd4] ss:$24 sps:$4 sm:$0xff]  }
 0xc99   :  { %v8027_v28 = vpop.f32.mrf.mxu1  ;;  %v7871_v52 = vadd.f32 %v15884_v45, %v15856_v29  ;;  %v13389_v29 = vld [vmem:[#allocation5 + $0xca4] ss:$24 sps:$4 sm:$0xff]   ;;  %v7872_v45 = vadd.f32 %v15890_v48, %v15858_v9  ;;  %v13392_v9 = vld [vmem:[#allocation5 + $0xc74] ss:$24 sps:$4 sm:$0xff]   ;;  %v7875_v48 = vadd.f32 %v15908_v31, %v15864_v63  ;;  %v7876_v31 = vadd.f32 %v15914_v62, %v15868_v8 }
 0xc9a   :  { %v8136_v7 = vadd.f32 %v8027_v28, %v7862_v35  ;;  %v8231_v42 = vmax.f32 %v8135_v10, 0.0  ;;  %v7869_v28 = vadd.f32 %v15872_v58, %v15852_v15  ;;  %v13395_v63 = vld [vmem:[#allocation5 + $0xc44] ss:$24 sps:$4 sm:$0xff]   ;;  %v13398_v8 = vld [vmem:[#allocation5 + $0xc14] ss:$24 sps:$4 sm:$0xff]   ;;  %v7879_v62 = vadd.f32 %v15922_v25, %v15876_v19 }
 0xc9b   :  { %v8029_v6 = vpop.f32.mrf.mxu1  ;;  %v13401_v19 = vld [vmem:[#allocation5 + $0xee4] ss:$24 sps:$4 sm:$0xff]  }
 0xc9c   :  { %v8232_v22 = vmax.f32 %v8136_v7, 0.0  ;;  %v8137_v53 = vadd.f32 %v8029_v6, %v7863_v43  ;;  %v7870_v43 = vadd.f32 %v15878_v40, %v15854_v24  ;;  %v13381_v6 = vld [vmem:[#allocation5 + $0xd00] ss:$24 sps:$4 sm:$0xff]  }
 0xc9d   :  { %v8033_v51 = vpop.f32.mrf.mxu1 }
 0xc9e   :  { %v15920_v37 = vpack.c.bf16 %v8232_v22, %v8230_v27  ;;  %v8233_v23 = vmax.f32 %v8137_v53, 0.0  ;;  %v8138_v46 = vadd.f32 %v8033_v51, %v7864_v49  ;;  %v15931_v22 = vpop.f32.mrf.mxu0 }
 0xc9f   :  { %v8035_v36 = vpop.f32.mrf.mxu1  ;;  %v7880_v25 = vadd.f32 %v15931_v22, %v15880_v41  ;;  %v13404_v41 = vld [vmem:[#allocation5 + $0xeb4] ss:$24 sps:$4 sm:$0xff]  }
 0xca0   :  { %v15926_v5 = vpack.c.bf16 %v8233_v23, %v8231_v42  ;;  %v8139_v30 = vadd.f32 %v8035_v36, %v7865_v34  ;;  %v8234_v17 = vmax.f32 %v8138_v46, 0.0  ;;  %v15939_v35 = vpop.f32.mrf.mxu0 }
 0xca1   :  { %v8037_v11 = vpop.f32.mrf.mxu1 }
 0xca2   :  { %v8140_v18 = vadd.f32 %v8037_v11, %v7866_v32  ;;  %8887 = vmatprep.mubr.bf16.mxu0 %v15926_v5  ;;  %9000 = vmatprep.mubr.bf16.mxu1 %v15926_v5  ;;  %v8235_v49 = vmax.f32 %v8139_v30, 0.0  ;;  %v15951_v15 = vpop.f32.mrf.mxu0  ;;  %v13384_v32 = vld [vmem:[#allocation5 + $0xcd0] ss:$24 sps:$4 sm:$0xff]  }
 0xca3   :  { %v8039_v53 = vpop.f32.mrf.mxu1  ;;  %8888 = vmatmul.mubr.bf16.vlgmr.msra.gmra.mxu0 %v15920_v37  ;;  %9001 = vmatmul.mubr.bf16.vlgmr.msra.gmra.mxu1 %v15920_v37 }
 0xca4   :  { %v8236_v39 = vmax.f32 %v8140_v18, 0.0  ;;  %v8141_v20 = vadd.f32 %v8039_v53, %v7867_v13  ;;  %9082 = vmatpush1.bf16.msra.mxu0 %v13375_v14  ;;  %v15959_v13 = vpop.f32.mrf.mxu0  ;;  %v7873_v18 = vadd.f32 %v15896_v26, %v15860_v56  ;;  %v7874_v53 = vadd.f32 %v15902_v60, %v15862_v33 }
 0xca5   :  { %v8043_v42 = vpop.f32.mrf.mxu1  ;;  %9083 = vmatprep.subr.bf16.mxu0 %v13380_v2  ;;  %v7883_v22 = vadd.f32 %v15959_v13, %v15888_v21  ;;  %v13407_v21 = vld [vmem:[#allocation5 + $0xe84] ss:$24 sps:$4 sm:$0xff]  }
 0xca6   :  { %v15937_v51 = vpack.c.bf16 %v8236_v39, %v8234_v17  ;;  %v8237_v3 = vmax.f32 %v8141_v20, 0.0  ;;  %v8142_v10 = vadd.f32 %v8043_v42, %v7868_v54  ;;  %v13387_v20 = vld [vmem:[#allocation5 + $0xca0] ss:$24 sps:$4 sm:$0xff]   ;;  %v15971_v56 = vpop.f32.mrf.mxu0 }
 0xca7   :  { %v8045_v57 = vpop.f32.mrf.mxu1  ;;  %v7884_v13 = vadd.f32 %v15971_v56, %v15892_v38  ;;  %v16993_v38 = vld [vmem:[#allocation19_spill] sm:$0xff] }
 0xca8   :  { %9084 = vmatpush1.bf16.msra.mxu0 %v13378_v0  ;;  %v15945_v7 = vpack.c.bf16 %v8237_v3, %v8235_v49  ;;  %v8143_v23 = vadd.f32 %v8045_v57, %v7869_v28  ;;  %v8238_v58 = vmax.f32 %v8142_v10, 0.0  ;;  %v13390_v49 = vld [vmem:[#allocation5 + $0xc70] ss:$24 sps:$4 sm:$0xff]   ;;  %v15979_v10 = vpop.f32.mrf.mxu0 }
 0xca9   :  { %v8047_v27 = vpop.f32.mrf.mxu1  ;;  %9085 = vmatprep.subr.bf16.mxu0 %v13383_v44 }
 0xcaa   :  { %v8144_v36 = vadd.f32 %v8047_v27, %v7870_v43  ;;  %8897 = vmatprep.mubr.bf16.mxu0 %v15945_v7  ;;  %9010 = vmatprep.mubr.bf16.mxu1 %v15945_v7  ;;  %v8239_v14 = vmax.f32 %v8143_v23, 0.0  ;;  %v7877_v27 = vadd.f32 %v15916_v1, %v15870_v47  ;;  %v7813_v47 = vpop.f32.mrf.mxu0 }
 0xcab   :  { %v8049_v24 = vpop.f32.mrf.mxu1  ;;  %8898 = vmatmul.mubr.bf16.gmra.mxu0 %v15937_v51  ;;  %9011 = vmatmul.mubr.bf16.gmra.mxu1 %v15937_v51 }
 0xcac   :  { %v8240_v40 = vmax.f32 %v8144_v36, 0.0  ;;  %v8145_v34 = vadd.f32 %v8049_v24, %v7871_v52  ;;  %9086 = vmatpush1.bf16.msra.mxu0 %v13381_v6  ;;  %v13393_v36 = vld [vmem:[#allocation5 + $0xc40] ss:$24 sps:$4 sm:$0xff]  }
 0xcad   :  { %v8053_v46 = vpop.f32.mrf.mxu1  ;;  %9087 = vmatprep.subr.bf16.mxu0 %v13386_v61  ;;  %v7878_v61 = vadd.f32 %v15918_v12, %v15874_v59 }
 0xcae   :  { %v15957_v11 = vpack.c.bf16 %v8240_v40, %v8238_v58  ;;  %v8241_v2 = vmax.f32 %v8145_v34, 0.0  ;;  %v8146_v17 = vadd.f32 %v8053_v46, %v7872_v45 }
 0xcaf   :  { %v8055_v30 = vpop.f32.mrf.mxu1 }
 0xcb0   :  { %9088 = vmatpush1.bf16.msra.mxu0 %v13384_v32  ;;  %v15965_v39 = vpack.c.bf16 %v8241_v2, %v8239_v14  ;;  %v8147_v42 = vadd.f32 %v8055_v30, %v7873_v18  ;;  %v8242_v26 = vmax.f32 %v8146_v17, 0.0  ;;  %v13396_v32 = vld [vmem:[#allocation5 + $0xc10] ss:$24 sps:$4 sm:$0xff]   ;;  %v7815_v2 = vpop.f32.mrf.mxu0  ;;  %v7881_v18 = vadd.f32 %v15939_v35, %v15882_v55 }
 0xcb1   :  { %v8057_v0 = vpop.f32.mrf.mxu1  ;;  %9089 = vmatprep.subr.bf16.mxu0 %v13389_v29  ;;  %v7887_v56 = vadd.f32 %v7815_v2, %v16993_v38 }
 0xcb2   :  { %v8148_v44 = vadd.f32 %v8057_v0, %v7874_v53  ;;  %8907 = vmatprep.mubr.bf16.mxu0 %v15965_v39  ;;  %9020 = vmatprep.mubr.bf16.mxu1 %v15965_v39  ;;  %v8243_v57 = vmax.f32 %v8147_v42, 0.0  ;;  %v7882_v53 = vadd.f32 %v15951_v15, %v15886_v16  ;;  %v13399_v0 = vld [vmem:[#allocation5 + $0xee0] ss:$24 sps:$4 sm:$0xff]   ;;  %v7819_v55 = vpop.f32.mrf.mxu0 }
 0xcb3   :  { %v8059_v33 = vpop.f32.mrf.mxu1  ;;  %8908 = vmatmul.mubr.bf16.gmra.mxu0 %v15957_v11  ;;  %9021 = vmatmul.mubr.bf16.gmra.mxu1 %v15957_v11 }
 0xcb4   :  { %v8244_v60 = vmax.f32 %v8148_v44, 0.0  ;;  %v8149_v54 = vadd.f32 %v8059_v33, %v7875_v48  ;;  %9090 = vmatpush1.bf16.msra.mxu0 %v13387_v20  ;;  %v13402_v33 = vld [vmem:[#allocation5 + $0xeb0] ss:$24 sps:$4 sm:$0xff]  }
 0xcb5   :  { %v8063_v3 = vpop.f32.mrf.mxu1  ;;  %9091 = vmatprep.subr.bf16.mxu0 %v13392_v9 }
 0xcb6   :  { %v15977_v28 = vpack.c.bf16 %v8244_v60, %v8242_v26  ;;  %v8245_v43 = vmax.f32 %v8149_v54, 0.0  ;;  %v8150_v52 = vadd.f32 %v8063_v3, %v7876_v31  ;;  %v7821_v3 = vpop.f32.mrf.mxu0  ;;  %v7885_v31 = vadd.f32 %v15979_v10, %v15894_v50 }
 0xcb7   :  { %v8065_v6 = vpop.f32.mrf.mxu1 }
 0xcb8   :  { %9092 = vmatpush1.bf16.msra.mxu0 %v13390_v49  ;;  %v15985_v23 = vpack.c.bf16 %v8245_v43, %v8243_v57  ;;  %v8151_v58 = vadd.f32 %v8065_v6, %v7877_v27  ;;  %v8246_v59 = vmax.f32 %v8150_v52, 0.0  ;;  %v7886_v57 = vadd.f32 %v7813_v47, %v15898_v4  ;;  %v13405_v27 = vld [vmem:[#allocation5 + $0xe80] ss:$24 sps:$4 sm:$0xff]   ;;  %v13410_v52 = vld [vmem:[#allocation5 + $0xe54] ss:$24 sps:$4 sm:$0xff]  }
 0xcb9   :  { %v8067_v24 = vpop.f32.mrf.mxu1  ;;  %9093 = vmatprep.subr.bf16.mxu0 %v13395_v63  ;;  %v13413_v47 = vld [vmem:[#allocation5 + $0xe24] ss:$24 sps:$4 sm:$0xff]  }
 0xcba   :  { %v8152_v40 = vadd.f32 %v8067_v24, %v7878_v61  ;;  %8917 = vmatprep.mubr.bf16.mxu0 %v15985_v23  ;;  %9030 = vmatprep.mubr.bf16.mxu1 %v15985_v23  ;;  %v8247_v29 = vmax.f32 %v8151_v58, 0.0  ;;  %v13408_v58 = vld [vmem:[#allocation5 + $0xe50] ss:$24 sps:$4 sm:$0xff]  }
 0xcbb   :  { %v8069_v1 = vpop.f32.mrf.mxu1  ;;  %8918 = vmatmul.mubr.bf16.gmra.mxu0 %v15977_v28  ;;  %9031 = vmatmul.mubr.bf16.gmra.mxu1 %v15977_v28 }
 0xcbc   :  { %v8248_v12 = vmax.f32 %v8152_v40, 0.0  ;;  %v8153_v34 = vadd.f32 %v8069_v1, %v7879_v62  ;;  %9094 = vmatpush1.bf16.msra.mxu0 %v13393_v36  ;;  %v16994_v1 = vld [vmem:[#allocation23_spill] sm:$0xff] }
 0xcbd   :  { %v8073_v46 = vpop.f32.mrf.mxu1  ;;  %9095 = vmatprep.subr.bf16.mxu0 %v13398_v8  ;;  %v7823_v8 = vpop.f32.mrf.mxu0 }
 0xcbe   :  { %v15995_v45 = vpack.c.bf16 %v8248_v12, %v8246_v59  ;;  %v8249_v14 = vmax.f32 %v8153_v34, 0.0  ;;  %v8154_v17 = vadd.f32 %v8073_v46, %v7880_v25  ;;  %v7888_v59 = vadd.f32 %v7819_v55, %v16994_v1  ;;  %v16995_v25 = vld [vmem:[#allocation21_spill] sm:$0xff] }
 0xcbf   :  { %v8075_v30 = vpop.f32.mrf.mxu1  ;;  %v7825_v46 = vpop.f32.mrf.mxu0 }
 0xcc0   :  { %9096 = vmatpush1.bf16.msra.mxu0 %v13396_v32  ;;  %v16001_v20 = vpack.c.bf16 %v8249_v14, %v8247_v29  ;;  %v8155_v48 = vadd.f32 %v8075_v30, %v7881_v18  ;;  %v8250_v16 = vmax.f32 %v8154_v17, 0.0  ;;  %v7889_v29 = vadd.f32 %v7821_v3, %v16995_v25  ;;  %v16996_v14 = vld [vmem:[#allocation22_spill] sm:$0xff] }
 0xcc1   :  { %v8077_v9 = vpop.f32.mrf.mxu1  ;;  %9097 = vmatprep.subr.bf16.mxu0 %v13401_v19  ;;  %v7890_v2 = vadd.f32 %v7823_v8, %v16996_v14  ;;  %v13420_v3 = vld [vmem:[#allocation5 + $0xd90] ss:$24 sps:$4 sm:$0xff]  }
 0xcc2   :  { %v8156_v42 = vadd.f32 %v8077_v9, %v7882_v53  ;;  %8927 = vmatprep.mubr.bf16.mxu0 %v16001_v20  ;;  %9040 = vmatprep.mubr.bf16.mxu1 %v16001_v20  ;;  %v8251_v60 = vmax.f32 %v8155_v48, 0.0  ;;  %v13411_v53 = vld [vmem:[#allocation5 + $0xe20] ss:$24 sps:$4 sm:$0xff]  }
 0xcc3   :  { %v8079_v35 = vpop.f32.mrf.mxu1  ;;  %8928 = vmatmul.mubr.bf16.gmra.mxu0 %v15995_v45  ;;  %9041 = vmatmul.mubr.bf16.gmra.mxu1 %v15995_v45  ;;  %v16997_v9 = vld [vmem:[#allocation13_spill] sm:$0xff] }
 0xcc4   :  { %v8252_v15 = vmax.f32 %v8156_v42, 0.0  ;;  %v8157_v44 = vadd.f32 %v8079_v35, %v7883_v22  ;;  %9098 = vmatpush2.bf16.msra.mxu0 %v13399_v0  ;;  %v13416_v0 = vld [vmem:[#allocation5 + $0xdf4] ss:$24 sps:$4 sm:$0xff]  }
 0xcc5   :  { %v8083_v26 = vpop.f32.mrf.mxu1  ;;  %9099 = vmatprep.subr.bf16.mxu0 %v13404_v41  ;;  %v7891_v41 = vadd.f32 %v7825_v46, %v16997_v9 }
 0xcc6   :  { %v16011_v54 = vpack.c.bf16 %v8252_v15, %v8250_v16  ;;  %v8253_v49 = vmax.f32 %v8157_v44, 0.0  ;;  %v8158_v43 = vadd.f32 %v8083_v26, %v7884_v13  ;;  %v13414_v15 = vld [vmem:[#allocation5 + $0xdf0] ss:$24 sps:$4 sm:$0xff]   ;;  %v13419_v44 = vld [vmem:[#allocation5 + $0xdc4] ss:$24 sps:$4 sm:$0xff]  }
 0xcc7   :  { %v8085_v63 = vpop.f32.mrf.mxu1 }
 0xcc8   :  { %9100 = vmatpush2.bf16.msra.mxu0 %v13402_v33  ;;  %v16016_v6 = vpack.c.bf16 %v8253_v49, %v8251_v60  ;;  %v8159_v36 = vadd.f32 %v8085_v63, %v7885_v31  ;;  %v8254_v4 = vmax.f32 %v8158_v43, 0.0  ;;  %v13417_v60 = vld [vmem:[#allocation5 + $0xdc0] ss:$24 sps:$4 sm:$0xff]   ;;  %v13422_v49 = vld [vmem:[#allocation5 + $0xd94] ss:$24 sps:$4 sm:$0xff]   ;;  %v16998_v63 = vmov 0  }
 0xcc9   :  { %v8087_v61 = vpop.f32.mrf.mxu1  ;;  %9101 = vmatprep.subr.bf16.mxu0 %v13407_v21 }
 0xcca   :  { %v8160_v24 = vadd.f32 %v8087_v61, %v7886_v57  ;;  %8937 = vmatprep.mubr.bf16.mxu0 %v16016_v6  ;;  %9050 = vmatprep.mubr.bf16.mxu1 %v16016_v6  ;;  %v8255_v12 = vmax.f32 %v8159_v36, 0.0 }
 0xccb   :  { %v8089_v50 = vpop.f32.mrf.mxu1  ;;  %8938 = vmatmul.mubr.bf16.gmra.mxu0 %v16011_v54  ;;  %9051 = vmatmul.mubr.bf16.gmra.mxu1 %v16011_v54 }
 0xccc   :  { %v8256_v10 = vmax.f32 %v8160_v24, 0.0  ;;  %v8161_v62 = vadd.f32 %v8089_v50, %v7887_v56  ;;  %9102 = vmatpush2.bf16.msra.mxu0 %v13405_v27 }
 0xccd   :  { %v8093_v40 = vpop.f32.mrf.mxu1  ;;  %9103 = vmatprep.subr.bf16.mxu0 %v13410_v52 }
 0xcce   :  { %v8274_v34 = vpack.c.bf16 %v8256_v10, %v8254_v4  ;;  %v8257_v32 = vmax.f32 %v8161_v62, 0.0  ;;  %v8162_v30 = vadd.f32 %v8093_v40, %v7888_v59 }
 0xccf   :  { %v8095_v19 = vpop.f32.mrf.mxu1 }
 0xcd0   :  { %9104 = vmatpush2.bf16.msra.mxu0 %v13408_v58  ;;  %v8275_v18 = vpack.c.bf16 %v8257_v32, %v8255_v12  ;;  %v8163_v22 = vadd.f32 %v8095_v19, %v7889_v29  ;;  %v8258_v55 = vmax.f32 %v8162_v30, 0.0 }
 0xcd1   :  { %v8097_v17 = vpop.f32.mrf.mxu1  ;;  %9105 = vmatprep.subr.bf16.mxu0 %v13413_v47 }
 0xcd2   :  { %v8164_v48 = vadd.f32 %v8097_v17, %v7890_v2  ;;  %8947 = vmatprep.mubr.bf16.mxu0 %v8275_v18  ;;  %9060 = vmatprep.mubr.bf16.mxu1 %v8275_v18  ;;  %v8259_v33 = vmax.f32 %v8163_v22, 0.0 }
 0xcd3   :  { %v8099_v42 = vpop.f32.mrf.mxu1  ;;  %8948 = vmatmul.mubr.bf16.gmra.mxu0 %v8274_v34  ;;  %9061 = vmatmul.mubr.bf16.gmra.mxu1 %v8274_v34 }
 0xcd4   :  { %v8260_v35 = vmax.f32 %v8164_v48, 0.0  ;;  %v8165_v16 = vadd.f32 %v8099_v42, %v7891_v41  ;;  %9106 = vmatpush2.bf16.msra.mxu0 %v13411_v53 }
 0xcd5   :  { %9107 = vmatprep.subr.bf16.mxu0 %v13416_v0 }
 0xcd6   :  { %v8276_v26 = vpack.c.bf16 %v8260_v35, %v8258_v55  ;;  %v8261_v21 = vmax.f32 %v8165_v16, 0.0 }
 0xcd8   :  { %9108 = vmatpush2.bf16.msra.mxu0 %v13414_v15  ;;  %v8277_v13 = vpack.c.bf16 %v8261_v21, %v8259_v33 }
 0xcd9   :  { %9109 = vmatprep.subr.bf16.mxu0 %v13419_v44 }
 0xcda   :  { %8957 = vmatprep.mubr.bf16.mxu0 %v8277_v13  ;;  %9070 = vmatprep.mubr.bf16.mxu1 %v8277_v13 }
 0xcdb   :  { %8958 = vmatmul.mubr.bf16.gmra.mxu0 %v8276_v26  ;;  %9071 = vmatmul.mubr.bf16.gmra.mxu1 %v8276_v26 }
 0xcdc   :  { %9110 = vmatpush2.bf16.msra.mxu0 %v13417_v60  ;;  %9113 = vmatprep.mubr.bf16.mxu0 %v15926_v5 }
 0xcdd   :  { %9111 = vmatprep.subr.bf16.mxu0 %v13422_v49  ;;  %9339 = vmatprep.mubr.bf16.mxu1 %v16998_v63 }
 0xce0   :  { %9112 = vmatpush2.bf16.msra.mxu0 %v13420_v3 }
 0xce3   :  { %9114 = vmatmul.mubr.bf16.vlgmr.msra.gmra.mxu0 %v15920_v37 }
 0xce4   :  { %9123 = vmatprep.mubr.bf16.mxu0 %v15945_v7 }
 0xceb   :  { %9124 = vmatmul.mubr.bf16.gmra.mxu0 %v15937_v51 }
 0xcec   :  { %9133 = vmatprep.mubr.bf16.mxu0 %v15965_v39 }
 0xcf3   :  { %9134 = vmatmul.mubr.bf16.gmra.mxu0 %v15957_v11 }
 0xcf4   :  { %9143 = vmatprep.mubr.bf16.mxu0 %v15985_v23 }
 0xcfb   :  { %9144 = vmatmul.mubr.bf16.gmra.mxu0 %v15977_v28 }
 0xcfc   :  { %9153 = vmatprep.mubr.bf16.mxu0 %v16001_v20 }
 0xd03   :  { %9154 = vmatmul.mubr.bf16.gmra.mxu0 %v15995_v45 }
 0xd04   :  { %9163 = vmatprep.mubr.bf16.mxu0 %v16016_v6 }
 0xd0b   :  { %9164 = vmatmul.mubr.bf16.gmra.mxu0 %v16011_v54 }
 0xd0c   :  { %9173 = vmatprep.mubr.bf16.mxu0 %v8275_v18 }
 0xd13   :  { %9174 = vmatmul.mubr.bf16.gmra.mxu0 %v8274_v34 }
 0xd14   :  { %9183 = vmatprep.mubr.bf16.mxu0 %v8277_v13 }
 0xd1b   :  { %9184 = vmatmul.mubr.bf16.gmra.mxu0 %v8276_v26 }
 0xd1c   :  { %9549 = vmatprep.mubr.bf16.mxu0 %v16998_v63 }
 0xd63   :  { %v16041_v37 = vpop.f32.mrf.mxu0  ;;  %v16043_v5 = vpop.f32.mrf.mxu1 }
 0xd64   :  { %16999 = vst [vmem:[#allocation16_spill] sm:$0xff] %v16041_v37  ;;  %17000 = vst [vmem:[#allocation14_spill] sm:$0xff] %v16043_v5 }
 0xd65   :  { %v16045_v51 = vpop.f32.mrf.mxu0  ;;  %v16047_v7 = vpop.f32.mrf.mxu1 }
 0xd66   :  { %17001 = vst [vmem:[#allocation20_spill] sm:$0xff] %v16047_v7 }
 0xd67   :  { %v16049_v11 = vpop.f32.mrf.mxu0  ;;  %v16051_v39 = vpop.f32.mrf.mxu1 }
 0xd68   :  { %17002 = vst [vmem:[#allocation15_spill] sm:$0xff] %v16049_v11  ;;  %17003 = vst [vmem:[#allocation17_spill] sm:$0xff] %v16051_v39 }
 0xd69   :  { %v16057_v45 = vpop.f32.mrf.mxu0  ;;  %v16059_v20 = vpop.f32.mrf.mxu1 }
 0xd6a   :  { %17004 = vst [vmem:[#allocation18_spill] sm:$0xff] %v16057_v45  ;;  %17005 = vst [vmem:[#allocation19_spill] sm:$0xff] %v16059_v20 }
 0xd6b   :  { %v16061_v54 = vpop.f32.mrf.mxu0  ;;  %v16063_v31 = vpop.f32.mrf.mxu1 }
 0xd6c   :  { %17006 = vst [vmem:[#allocation23_spill] sm:$0xff] %v16061_v54  ;;  %17007 = vst [vmem:[#allocation21_spill] sm:$0xff] %v16063_v31 }
 0xd6d   :  { %v16065_v57 = vpop.f32.mrf.mxu0  ;;  %v16067_v43 = vpop.f32.mrf.mxu1 }
 0xd6f   :  { %v16069_v6 = vpop.f32.mrf.mxu0  ;;  %v16071_v27 = vpop.f32.mrf.mxu1 }
 0xd70   :  { %17008 = vst [vmem:[#allocation22_spill] sm:$0xff] %v16069_v6  ;;  %17009 = vst [vmem:[#allocation13_spill] sm:$0xff] %v16071_v27 }
 0xd71   :  { %v16077_v38 = vpop.f32.mrf.mxu0  ;;  %v16079_v56 = vpop.f32.mrf.mxu1 }
 0xd73   :  { %v16081_v36 = vpop.f32.mrf.mxu0  ;;  %v16083_v24 = vpop.f32.mrf.mxu1 }
 0xd75   :  { %v16085_v8 = vpop.f32.mrf.mxu0  ;;  %v16087_v50 = vpop.f32.mrf.mxu1 }
 0xd77   :  { %v16089_v4 = vpop.f32.mrf.mxu0  ;;  %v16091_v10 = vpop.f32.mrf.mxu1 }
 0xd79   :  { %v16093_v62 = vpop.f32.mrf.mxu0  ;;  %v16095_v58 = vpop.f32.mrf.mxu1 }
 0xd7b   :  { %v16097_v40 = vpop.f32.mrf.mxu0  ;;  %v16099_v47 = vpop.f32.mrf.mxu1 }
 0xd7d   :  { %v16101_v1 = vpop.f32.mrf.mxu0  ;;  %v16103_v59 = vpop.f32.mrf.mxu1 }
 0xd7f   :  { %v16105_v12 = vpop.f32.mrf.mxu0  ;;  %v16107_v34 = vpop.f32.mrf.mxu1 }
 0xd81   :  { %v16109_v32 = vpop.f32.mrf.mxu0  ;;  %v16111_v46 = vpop.f32.mrf.mxu1 }
 0xd83   :  { %v16113_v19 = vpop.f32.mrf.mxu0  ;;  %v16115_v25 = vpop.f32.mrf.mxu1 }
 0xd85   :  { %v16117_v29 = vpop.f32.mrf.mxu0  ;;  %v16119_v14 = vpop.f32.mrf.mxu1 }
 0xd87   :  { %v16121_v2 = vpop.f32.mrf.mxu0  ;;  %v16123_v30 = vpop.f32.mrf.mxu1 }
 0xd89   :  { %v8935_v18 = vpop.f32.mrf.mxu0  ;;  %v9048_v53 = vpop.f32.mrf.mxu1 }
 0xd8b   :  { %v8939_v17 = vpop.f32.mrf.mxu0  ;;  %v9052_v0 = vpop.f32.mrf.mxu1 }
 0xd8d   :  { %v8941_v9 = vpop.f32.mrf.mxu0  ;;  %v9054_v41 = vpop.f32.mrf.mxu1 }
 0xd8f   :  { %v8943_v22 = vpop.f32.mrf.mxu0  ;;  %v9056_v48 = vpop.f32.mrf.mxu1 }
 0xd91   :  { %v8945_v42 = vpop.f32.mrf.mxu0  ;;  %v9058_v55 = vpop.f32.mrf.mxu1 }
 0xd93   :  { %v8949_v35 = vpop.f32.mrf.mxu0  ;;  %v9062_v16 = vpop.f32.mrf.mxu1 }
 0xd95   :  { %v8951_v15 = vpop.f32.mrf.mxu0  ;;  %v9064_v44 = vpop.f32.mrf.mxu1 }
 0xd97   :  { %v8953_v33 = vpop.f32.mrf.mxu0  ;;  %v9066_v26 = vpop.f32.mrf.mxu1 }
 0xd98   :  { %v9230_v20 = vpack.c.bf16 %v8953_v33, %v8949_v35  ;;  %v9232_v7 = vpack.c.bf16 %v9066_v26, %v9062_v16  ;;  %v17023_v35 = vld [vmem:[#allocation14_spill] sm:$0xff]  ;;  %v17025_v33 = vmov 0  }
 0xd99   :  { %v8955_v21 = vpop.f32.mrf.mxu0  ;;  %v9068_v13 = vpop.f32.mrf.mxu1 }
 0xd9a   :  { %v9231_v27 = vpack.c.bf16 %v8955_v21, %v8951_v15  ;;  %v9233_v54 = vpack.c.bf16 %v9068_v13, %v9064_v44  ;;  %v13425_v21 = vld [vmem:[#allocation3 + $0x308] sm:$0xff]  }
 0xd9b   :  { %v8959_v60 = vpop.f32.mrf.mxu0  ;;  %v9072_v49 = vpop.f32.mrf.mxu1  ;;  %v13426_v13 = vld [vmem:[#allocation3 + $0x348] sm:$0xff]  }
 0xd9d   :  { %v8961_v3 = vpop.f32.mrf.mxu0  ;;  %v9074_v23 = vpop.f32.mrf.mxu1 }
 0xd9f   :  { %v8963_v28 = vpop.f32.mrf.mxu0  ;;  %v9076_v52 = vpop.f32.mrf.mxu1 }
 0xda0   :  { %v9236_v37 = vpack.c.bf16 %v8963_v28, %v8959_v60  ;;  %v9238_v11 = vpack.c.bf16 %v9076_v52, %v9072_v49 }
 0xda1   :  { %v8965_v61 = vpop.f32.mrf.mxu0  ;;  %v9078_v63 = vpop.f32.mrf.mxu1 }
 0xda2   :  { %v9237_v5 = vpack.c.bf16 %v8965_v61, %v8961_v3  ;;  %v9239_v39 = vpack.c.bf16 %v9078_v63, %v9074_v23  ;;  %v9225_v61 = vpack.c.bf16 %v8945_v42, %v8941_v9  ;;  %v9227_v63 = vpack.c.bf16 %v9058_v55, %v9054_v41  ;;  %v13423_v9 = vld [vmem:[#allocation3 + $0x300] sm:$0xff]  }
 0xda3   :  { %v16125_v31 = vpop.f32.mrf.mxu0  ;;  %v13424_v41 = vld [vmem:[#allocation3 + $0x340] sm:$0xff]  }
 0xda4   :  { %9307 = vmatprep.subr.bf16.mxu1 %v9237_v5  ;;  %9517 = vmatprep.subr.bf16.mxu0 %v9239_v39  ;;  %v9224_v5 = vpack.c.bf16 %v8943_v22, %v8939_v17  ;;  %v9219_v39 = vpack.c.bf16 %v8935_v18, %v16117_v29  ;;  %v9213_v17 = vpack.c.bf16 %v16109_v32, %v16101_v1  ;;  %v17019_v22 = vld [vmem:[#allocation15_spill] sm:$0xff]  ;;  %v17022_v55 = vld [vmem:[#allocation17_spill] sm:$0xff] }
 0xda5   :  { %v16127_v6 = vpop.f32.mrf.mxu0  ;;  %9308 = vmatpush1.bf16.msra.mxu1 %v9236_v37  ;;  %9518 = vmatpush1.bf16.msra.mxu0 %v9238_v11  ;;  %v9226_v37 = vpack.c.bf16 %v9056_v48, %v9052_v0  ;;  %v9215_v29 = vpack.c.bf16 %v16111_v46, %v16103_v59  ;;  %v9207_v1 = vpack.c.bf16 %v16093_v62, %v16085_v8  ;;  %v17020_v48 = vld [vmem:[#allocation16_spill] sm:$0xff] }
 0xda6   :  { %9309 = vmatprep.subr.bf16.mxu1 %v9231_v27  ;;  %9519 = vmatprep.subr.bf16.mxu0 %v9233_v54  ;;  %v9221_v54 = vpack.c.bf16 %v9048_v53, %v16119_v14  ;;  %v9209_v59 = vpack.c.bf16 %v16095_v58, %v16087_v50  ;;  %v9201_v8 = vpack.c.bf16 %v16077_v38, %v16065_v57  ;;  %v17013_v57 = vld [vmem:[#allocation22_spill] sm:$0xff]  ;;  %v17014_v38 = vld [vmem:[#allocation23_spill] sm:$0xff] }
 0xda7   :  { %v16129_v45 = vpop.f32.mrf.mxu0  ;;  %v9203_v50 = vpack.c.bf16 %v16079_v56, %v16067_v43  ;;  %v17016_v43 = vld [vmem:[#allocation13_spill] sm:$0xff]  ;;  %v17021_v42 = vpack.c.bf16 %v17019_v22, %v17020_v48  ;;  %v17024_v16 = vpack.c.bf16 %v17022_v55, %v17023_v35 }
 0xda8   :  { %v9198_v28 = vpack.c.bf16 %v16129_v45, %v16125_v31  ;;  %v17017_v56 = vld [vmem:[#allocation21_spill] sm:$0xff] }
 0xda9   :  { %v16133_v23 = vpop.f32.mrf.mxu0  ;;  %9310 = vmatpush1.bf16.msra.mxu1 %v9230_v20  ;;  %9520 = vmatpush1.bf16.msra.mxu0 %v9232_v7  ;;  %v9218_v20 = vpack.c.bf16 %v16121_v2, %v16113_v19  ;;  %v9220_v7 = vpack.c.bf16 %v16123_v30, %v16115_v25  ;;  %v9212_v19 = vpack.c.bf16 %v16105_v12, %v16097_v40  ;;  %v13458_v45 = vld [vmem:[#allocation5 + $0x102c] ss:$24 sps:$4 sm:$0xff]   ;;  %v13453_v31 = vld [vmem:[#allocation5 + $0x1020] ss:$24 sps:$4 sm:$0xff]  }
 0xdaa   :  { %9311 = vmatprep.subr.bf16.mxu1 %v9225_v61  ;;  %9521 = vmatprep.subr.bf16.mxu0 %v9227_v63  ;;  %v9214_v25 = vpack.c.bf16 %v16107_v34, %v16099_v47  ;;  %v9206_v40 = vpack.c.bf16 %v16089_v4, %v16081_v36  ;;  %v9208_v47 = vpack.c.bf16 %v16091_v10, %v16083_v24  ;;  %v17010_v36 = vld [vmem:[#allocation18_spill] sm:$0xff]  ;;  %v17011_v24 = vld [vmem:[#allocation20_spill] sm:$0xff]  ;;  %v17012_v10 = vld [vmem:[#allocation19_spill] sm:$0xff] }
 0xdab   :  { %v16135_v11 = vpop.f32.mrf.mxu0  ;;  %v9195_v4 = vpack.c.bf16 %v17010_v36, %v16045_v51  ;;  %v9197_v34 = vpack.c.bf16 %v17012_v10, %v17011_v24  ;;  %v17015_v30 = vpack.c.bf16 %v17013_v57, %v17014_v38  ;;  %v17018_v53 = vpack.c.bf16 %v17016_v43, %v17017_v56  ;;  %v13427_v63 = vld [vmem:[#allocation3 + $0x310] sm:$0xff]   ;;  %v13433_v24 = vld [vmem:[#allocation3 + $0x328] sm:$0xff]   ;;  %v13467_v55 = vld [vmem:[#allocation5 + $0xfc4] ss:$24 sps:$4 sm:$0xff]  }
 0xdac   :  { %v13434_v10 = vld [vmem:[#allocation3 + $0x368] sm:$0xff]   ;;  %v13435_v43 = vld [vmem:[#allocation3 + $0x330] sm:$0xff]  }
 0xdad   :  { %v16139_v27 = vpop.f32.mrf.mxu0  ;;  %9312 = vmatpush1.bf16.msra.mxu1 %v9224_v5  ;;  %9522 = vmatpush1.bf16.msra.mxu0 %v9226_v37  ;;  %v13428_v5 = vld [vmem:[#allocation3 + $0x350] sm:$0xff]   ;;  %v13470_v35 = vld [vmem:[#allocation5 + $0xfcc] ss:$24 sps:$4 sm:$0xff]  }
 0xdae   :  { %9313 = vmatprep.subr.bf16.mxu1 %v9219_v39  ;;  %9523 = vmatprep.subr.bf16.mxu0 %v9221_v54  ;;  %v13436_v56 = vld [vmem:[#allocation3 + $0x370] sm:$0xff]  }
 0xdaf   :  { %v16145_v52 = vpop.f32.mrf.mxu0 }
 0xdb0   :  { %v9204_v14 = vpack.c.bf16 %v16145_v52, %v16135_v11  ;;  %v13455_v11 = vld [vmem:[#allocation5 + $0x1024] ss:$24 sps:$4 sm:$0xff]  }
 0xdb1   :  { %v16153_v18 = vpop.f32.mrf.mxu0  ;;  %9314 = vmatpush1.bf16.msra.mxu1 %v9218_v20  ;;  %9524 = vmatpush1.bf16.msra.mxu0 %v9220_v7  ;;  %v13429_v7 = vld [vmem:[#allocation3 + $0x318] sm:$0xff]  }
 0xdb2   :  { %9315 = vmatprep.subr.bf16.mxu1 %v9213_v17  ;;  %9525 = vmatprep.subr.bf16.mxu0 %v9215_v29  ;;  %v13430_v17 = vld [vmem:[#allocation3 + $0x358] sm:$0xff]   ;;  %v9205_v48 = vpack.c.bf16 %v16153_v18, %v16139_v27  ;;  %v13440_v27 = vld [vmem:[#allocation3 + $0x388] sm:$0xff]  }
 0xdb3   :  { %v16159_v2 = vpop.f32.mrf.mxu0  ;;  %v13452_v18 = vld [vmem:[#allocation5 + $0x105c] ss:$24 sps:$4 sm:$0xff]  }
 0xdb4   :  { %v13442_v52 = vld [vmem:[#allocation3 + $0x398] sm:$0xff]  }
 0xdb5   :  { %v16165_v32 = vpop.f32.mrf.mxu0  ;;  %9316 = vmatpush1.bf16.msra.mxu1 %v9212_v19  ;;  %9526 = vmatpush1.bf16.msra.mxu0 %v9214_v25 }
 0xdb6   :  { %9317 = vmatprep.subr.bf16.mxu1 %v9207_v1  ;;  %9527 = vmatprep.subr.bf16.mxu0 %v9209_v59  ;;  %v13431_v59 = vld [vmem:[#allocation3 + $0x320] sm:$0xff]  }
 0xdb7   :  { %v16171_v12 = vpop.f32.mrf.mxu0 }
 0xdb8   :  { %v9210_v22 = vpack.c.bf16 %v16171_v12, %v16159_v2  ;;  %v13439_v2 = vld [vmem:[#allocation3 + $0x380] sm:$0xff]   ;;  %v13447_v12 = vld [vmem:[#allocation5 + $0x1050] ss:$24 sps:$4 sm:$0xff]  }
 0xdb9   :  { %v16177_v62 = vpop.f32.mrf.mxu0  ;;  %9318 = vmatpush1.bf16.msra.mxu1 %v9206_v40  ;;  %9528 = vmatpush1.bf16.msra.mxu0 %v9208_v47  ;;  %v13432_v40 = vld [vmem:[#allocation3 + $0x360] sm:$0xff]  }
 0xdba   :  { %9319 = vmatprep.subr.bf16.mxu1 %v9201_v8  ;;  %9529 = vmatprep.subr.bf16.mxu0 %v9203_v50 }
 0xdbb   :  { %v16179_v58 = vpop.f32.mrf.mxu0 }
 0xdbd   :  { %v16185_v46 = vpop.f32.mrf.mxu0  ;;  %9320 = vmatpush1.bf16.msra.mxu1 %v17015_v30  ;;  %9530 = vmatpush1.bf16.msra.mxu0 %v17018_v53 }
 0xdbe   :  { %9321 = vmatprep.subr.bf16.mxu1 %v9195_v4  ;;  %9531 = vmatprep.subr.bf16.mxu0 %v9197_v34 }
 0xdbf   :  { %v16193_v0 = vpop.f32.mrf.mxu0 }
 0xdc1   :  { %v16195_v51 = vpop.f32.mrf.mxu0  ;;  %9322 = vmatpush1.bf16.msra.mxu1 %v17021_v42  ;;  %9532 = vmatpush1.bf16.msra.mxu0 %v17024_v16  ;;  %v13462_v42 = vld [vmem:[#allocation5 + $0xff8] ss:$24 sps:$4 sm:$0xff]  }
 0xdc2   :  { %v9217_v53 = vpack.c.bf16 %v16195_v51, %v16185_v46  ;;  %v13437_v46 = vld [vmem:[#allocation3 + $0x338] sm:$0xff]  }
 0xdc3   :  { %v16203_v15 = vpop.f32.mrf.mxu0  ;;  %v13438_v51 = vld [vmem:[#allocation3 + $0x378] sm:$0xff]  }
 0xdc4   :  { %9340 = vmatmul.mubr.bf16.vlgmr.msra.gmra.mxu1 %v13423_v9  ;;  %9550 = vmatmul.mubr.bf16.vlgmr.msra.gmra.mxu0 %v13424_v41  ;;  %v9216_v9 = vpack.c.bf16 %v16193_v0, %v16179_v58  ;;  %v9211_v41 = vpack.c.bf16 %v16177_v62, %v16165_v32  ;;  %v9199_v32 = vpack.c.bf16 %v16133_v23, %v16127_v6  ;;  %v13441_v6 = vld [vmem:[#allocation3 + $0x390] sm:$0xff]   ;;  %v13465_v16 = vld [vmem:[#allocation5 + $0xfc0] ss:$24 sps:$4 sm:$0xff]  }
 0xdc5   :  { %v9157_v44 = vpop.f32.mrf.mxu0  ;;  %9349 = vmatprep.mubr.bf16.mxu1 %v17025_v33  ;;  %9559 = vmatprep.mubr.bf16.mxu0 %v17025_v33  ;;  %v13449_v23 = vld [vmem:[#allocation5 + $0x1054] ss:$24 sps:$4 sm:$0xff]   ;;  %v13450_v62 = vld [vmem:[#allocation5 + $0x1058] ss:$24 sps:$4 sm:$0xff]  }
 0xdc6   :  { %10657 = vmatprep.subr.bf16.mxu0 %v13449_v23  ;;  %v13464_v58 = vld [vmem:[#allocation5 + $0xffc] ss:$24 sps:$4 sm:$0xff]   ;;  %v13459_v0 = vld [vmem:[#allocation5 + $0xff0] ss:$24 sps:$4 sm:$0xff]  }
 0xdc7   :  { %v9159_v26 = vpop.f32.mrf.mxu0  ;;  %10658 = vmatpush1.bf16.msra.mxu0 %v13447_v12  ;;  %v13531_v23 = vld [vmem:[#allocation5 + $0x10b0] ss:$24 sps:$4 sm:$0xff]   ;;  %v13539_v12 = vld [vmem:[#allocation5 + $0x1084] ss:$24 sps:$4 sm:$0xff]  }
 0xdc8   :  { %v9222_v30 = vpack.c.bf16 %v9159_v26, %v16203_v15  ;;  %10659 = vmatprep.subr.bf16.mxu0 %v13455_v11  ;;  %v13468_v15 = vld [vmem:[#allocation5 + $0xfc8] ss:$24 sps:$4 sm:$0xff]   ;;  %v13473_v26 = vld [vmem:[#allocation5 + $0xf94] ss:$24 sps:$4 sm:$0xff]  }
 0xdc9   :  { %v9161_v60 = vpop.f32.mrf.mxu0  ;;  %v13537_v11 = vld [vmem:[#allocation5 + $0x1080] ss:$24 sps:$4 sm:$0xff]  }
 0xdca   :  { %v9223_v38 = vpack.c.bf16 %v9161_v60, %v9157_v44  ;;  %v13443_v44 = vld [vmem:[#allocation3 + $0x3a0] sm:$0xff]   ;;  %v13474_v60 = vld [vmem:[#allocation5 + $0xf98] ss:$24 sps:$4 sm:$0xff]  }
 0xdcb   :  { %v9165_v49 = vpop.f32.mrf.mxu0  ;;  %10660 = vmatpush1.bf16.msra.mxu0 %v13453_v31  ;;  %v13545_v31 = vld [vmem:[#allocation5 + $0x1064] ss:$24 sps:$4 sm:$0xff]  }
 0xdcc   :  { %9350 = vmatmul.mubr.bf16.gmra.mxu1 %v13425_v21  ;;  %9560 = vmatmul.mubr.bf16.gmra.mxu0 %v13426_v13  ;;  %v13476_v21 = vld [vmem:[#allocation5 + $0xf9c] ss:$24 sps:$4 sm:$0xff]   ;;  %v13471_v13 = vld [vmem:[#allocation5 + $0xf90] ss:$24 sps:$4 sm:$0xff]  }
 0xdcd   :  { %v9167_v3 = vpop.f32.mrf.mxu0  ;;  %9359 = vmatprep.mubr.bf16.mxu1 %v17025_v33  ;;  %9569 = vmatprep.mubr.bf16.mxu0 %v17025_v33 }
 0xdcf   :  { %v9169_v61 = vpop.f32.mrf.mxu0 }
 0xdd0   :  { %v9228_v57 = vpack.c.bf16 %v9169_v61, %v9165_v49  ;;  %v13479_v49 = vld [vmem:[#allocation5 + $0xf64] ss:$24 sps:$4 sm:$0xff]   ;;  %v13477_v61 = vld [vmem:[#allocation5 + $0xf60] ss:$24 sps:$4 sm:$0xff]  }
 0xdd1   :  { %v9171_v37 = vpop.f32.mrf.mxu0 }
 0xdd2   :  { %v9229_v34 = vpack.c.bf16 %v9171_v37, %v9167_v3  ;;  %v13482_v3 = vld [vmem:[#allocation5 + $0xf6c] ss:$24 sps:$4 sm:$0xff]  }
 0xdd3   :  { %v9175_v39 = vpop.f32.mrf.mxu0  ;;  %v13485_v37 = vld [vmem:[#allocation5 + $0xf34] ss:$24 sps:$4 sm:$0xff]  }
 0xdd4   :  { %9360 = vmatmul.mubr.bf16.gmra.mxu1 %v13427_v63  ;;  %9570 = vmatmul.mubr.bf16.gmra.mxu0 %v13428_v5  ;;  %v13480_v63 = vld [vmem:[#allocation5 + $0xf68] ss:$24 sps:$4 sm:$0xff]  }
 0xdd5   :  { %v9177_v54 = vpop.f32.mrf.mxu0  ;;  %9369 = vmatprep.mubr.bf16.mxu1 %v17025_v33  ;;  %9579 = vmatprep.mubr.bf16.mxu0 %v17025_v33  ;;  %v13444_v5 = vld [vmem:[#allocation3 + $0x3a8] sm:$0xff]  }
 0xdd7   :  { %v9179_v20 = vpop.f32.mrf.mxu0 }
 0xdd8   :  { %v9234_v4 = vpack.c.bf16 %v9179_v20, %v9175_v39  ;;  %v13488_v39 = vld [vmem:[#allocation5 + $0xf3c] ss:$24 sps:$4 sm:$0xff]   ;;  %v13486_v20 = vld [vmem:[#allocation5 + $0xf38] ss:$24 sps:$4 sm:$0xff]  }
 0xdd9   :  { %v9181_v29 = vpop.f32.mrf.mxu0 }
 0xdda   :  { %v9235_v36 = vpack.c.bf16 %v9181_v29, %v9177_v54  ;;  %v13483_v54 = vld [vmem:[#allocation5 + $0xf30] ss:$24 sps:$4 sm:$0xff]   ;;  %v13489_v29 = vld [vmem:[#allocation5 + $0xf00] ss:$24 sps:$4 sm:$0xff]  }
 0xddb   :  { %v9185_v19 = vpop.f32.mrf.mxu0 }
 0xddc   :  { %9370 = vmatmul.mubr.bf16.gmra.mxu1 %v13429_v7  ;;  %9580 = vmatmul.mubr.bf16.gmra.mxu0 %v13430_v17  ;;  %v13491_v7 = vld [vmem:[#allocation5 + $0xf04] ss:$24 sps:$4 sm:$0xff]  }
 0xddd   :  { %v9187_v25 = vpop.f32.mrf.mxu0  ;;  %9379 = vmatprep.mubr.bf16.mxu1 %v17025_v33  ;;  %9589 = vmatprep.mubr.bf16.mxu0 %v17025_v33  ;;  %v13494_v17 = vld [vmem:[#allocation5 + $0xf0c] ss:$24 sps:$4 sm:$0xff]  }
 0xddf   :  { %v9189_v1 = vpop.f32.mrf.mxu0 }
 0xde0   :  { %v9240_v50 = vpack.c.bf16 %v9189_v1, %v9185_v19  ;;  %v13492_v19 = vld [vmem:[#allocation5 + $0xf08] ss:$24 sps:$4 sm:$0xff]   ;;  %v13497_v1 = vld [vmem:[#allocation5 + $0x11d4] ss:$24 sps:$4 sm:$0xff]  }
 0xde1   :  { %v9191_v47 = vpop.f32.mrf.mxu0 }
 0xde2   :  { %v9241_v8 = vpack.c.bf16 %v9191_v47, %v9187_v25  ;;  %v13445_v25 = vld [vmem:[#allocation3 + $0x3b0] sm:$0xff]  }
 0xde3   :  { %v13498_v47 = vld [vmem:[#allocation5 + $0x11d8] ss:$24 sps:$4 sm:$0xff]  }
 0xde4   :  { %9380 = vmatmul.mubr.bf16.gmra.mxu1 %v13431_v59  ;;  %9590 = vmatmul.mubr.bf16.gmra.mxu0 %v13432_v40  ;;  %v13500_v59 = vld [vmem:[#allocation5 + $0x11dc] ss:$24 sps:$4 sm:$0xff]   ;;  %v13495_v40 = vld [vmem:[#allocation5 + $0x11d0] ss:$24 sps:$4 sm:$0xff]  }
 0xde5   :  { %9791 = vmatprep.subr.bf16.mxu1 %v9241_v8  ;;  %9389 = vmatprep.mubr.bf16.mxu1 %v17025_v33  ;;  %v13503_v8 = vld [vmem:[#allocation5 + $0x11a4] ss:$24 sps:$4 sm:$0xff]  }
 0xde6   :  { %9792 = vmatpush1.bf16.msra.mxu1 %v9240_v50  ;;  %9599 = vmatprep.mubr.bf16.mxu0 %v17025_v33  ;;  %v13506_v50 = vld [vmem:[#allocation5 + $0x11ac] ss:$24 sps:$4 sm:$0xff]  }
 0xde7   :  { %9793 = vmatprep.subr.bf16.mxu1 %v9235_v36  ;;  %v13501_v36 = vld [vmem:[#allocation5 + $0x11a0] ss:$24 sps:$4 sm:$0xff]  }
 0xdea   :  { %9794 = vmatpush1.bf16.msra.mxu1 %v9234_v4  ;;  %v13504_v4 = vld [vmem:[#allocation5 + $0x11a8] ss:$24 sps:$4 sm:$0xff]  }
 0xdeb   :  { %9795 = vmatprep.subr.bf16.mxu1 %v9229_v34  ;;  %v13512_v34 = vld [vmem:[#allocation5 + $0x117c] ss:$24 sps:$4 sm:$0xff]  }
 0xdec   :  { %9390 = vmatmul.mubr.bf16.gmra.mxu1 %v13433_v24  ;;  %9600 = vmatmul.mubr.bf16.gmra.mxu0 %v13434_v10  ;;  %v13446_v24 = vld [vmem:[#allocation3 + $0x3b8] sm:$0xff]   ;;  %v13509_v10 = vld [vmem:[#allocation5 + $0x1174] ss:$24 sps:$4 sm:$0xff]  }
 0xded   :  { %9399 = vmatprep.mubr.bf16.mxu1 %v17025_v33  ;;  %9609 = vmatprep.mubr.bf16.mxu0 %v17025_v33 }
 0xdee   :  { %9796 = vmatpush1.bf16.msra.mxu1 %v9228_v57  ;;  %v13507_v57 = vld [vmem:[#allocation5 + $0x1170] ss:$24 sps:$4 sm:$0xff]  }
 0xdef   :  { %9797 = vmatprep.subr.bf16.mxu1 %v9223_v38  ;;  %v13510_v38 = vld [vmem:[#allocation5 + $0x1178] ss:$24 sps:$4 sm:$0xff]  }
 0xdf2   :  { %9798 = vmatpush1.bf16.msra.mxu1 %v9222_v30  ;;  %v13515_v30 = vld [vmem:[#allocation5 + $0x1144] ss:$24 sps:$4 sm:$0xff]  }
 0xdf3   :  { %9799 = vmatprep.subr.bf16.mxu1 %v9217_v53  ;;  %v13516_v53 = vld [vmem:[#allocation5 + $0x1148] ss:$24 sps:$4 sm:$0xff]  }
 0xdf4   :  { %9400 = vmatmul.mubr.bf16.gmra.mxu1 %v13435_v43  ;;  %9610 = vmatmul.mubr.bf16.gmra.mxu0 %v13436_v56  ;;  %v13518_v43 = vld [vmem:[#allocation5 + $0x114c] ss:$24 sps:$4 sm:$0xff]   ;;  %v13513_v56 = vld [vmem:[#allocation5 + $0x1140] ss:$24 sps:$4 sm:$0xff]  }
 0xdf5   :  { %9409 = vmatprep.mubr.bf16.mxu1 %v17025_v33  ;;  %9619 = vmatprep.mubr.bf16.mxu0 %v17025_v33 }
 0xdf6   :  { %9800 = vmatpush1.bf16.msra.mxu1 %v9216_v9  ;;  %v13521_v9 = vld [vmem:[#allocation5 + $0x1114] ss:$24 sps:$4 sm:$0xff]  }
 0xdf7   :  { %9801 = vmatprep.subr.bf16.mxu1 %v9211_v41  ;;  %v13524_v41 = vld [vmem:[#allocation5 + $0x111c] ss:$24 sps:$4 sm:$0xff]  }
 0xdfa   :  { %9802 = vmatpush1.bf16.msra.mxu1 %v9210_v22  ;;  %v13519_v22 = vld [vmem:[#allocation5 + $0x1110] ss:$24 sps:$4 sm:$0xff]  }
 0xdfb   :  { %9803 = vmatprep.subr.bf16.mxu1 %v9205_v48  ;;  %v13530_v48 = vld [vmem:[#allocation5 + $0x10ec] ss:$24 sps:$4 sm:$0xff]  }
 0xdfc   :  { %9410 = vmatmul.mubr.bf16.gmra.mxu1 %v13437_v46  ;;  %9620 = vmatmul.mubr.bf16.gmra.mxu0 %v13438_v51  ;;  %v13522_v46 = vld [vmem:[#allocation5 + $0x1118] ss:$24 sps:$4 sm:$0xff]   ;;  %v13527_v51 = vld [vmem:[#allocation5 + $0x10e4] ss:$24 sps:$4 sm:$0xff]  }
 0xdfd   :  { %9823 = vmatprep.mubr.bf16.mxu1 %v17025_v33 }
 0xdfe   :  { %9804 = vmatpush1.bf16.msra.mxu1 %v9204_v14  ;;  %v13461_v14 = vld [vmem:[#allocation5 + $0xff4] ss:$24 sps:$4 sm:$0xff]  }
 0xdff   :  { %9805 = vmatprep.subr.bf16.mxu1 %v9199_v32  ;;  %10661 = vmatprep.subr.bf16.mxu0 %v13461_v14  ;;  %v13525_v32 = vld [vmem:[#allocation5 + $0x10e0] ss:$24 sps:$4 sm:$0xff]  }
 0xe00   :  { %10662 = vmatpush1.bf16.msra.mxu0 %v13459_v0 }
 0xe01   :  { %10663 = vmatprep.subr.bf16.mxu0 %v13467_v55 }
 0xe02   :  { %9806 = vmatpush1.bf16.msra.mxu1 %v9198_v28  ;;  %v13456_v28 = vld [vmem:[#allocation5 + $0x1028] ss:$24 sps:$4 sm:$0xff]  }
 0xe03   :  { %10770 = vmatprep.subr.bf16.mxu1 %v13452_v18  ;;  %v13534_v18 = vld [vmem:[#allocation5 + $0x10b8] ss:$24 sps:$4 sm:$0xff]  }
 0xe04   :  { %10664 = vmatpush1.bf16.msra.mxu0 %v13465_v16 }
 0xe05   :  { %9824 = vmatmul.mubr.bf16.vlgmr.msra.gmra.mxu1 %v13439_v2  ;;  %10665 = vmatprep.subr.bf16.mxu0 %v13473_v26  ;;  %v13528_v2 = vld [vmem:[#allocation5 + $0x10e8] ss:$24 sps:$4 sm:$0xff]  }
 0xe06   :  { %9833 = vmatprep.mubr.bf16.mxu1 %v17025_v33  ;;  %10771 = vmatpush1.bf16.msra.mxu1 %v13450_v62  ;;  %v13542_v62 = vld [vmem:[#allocation5 + $0x108c] ss:$24 sps:$4 sm:$0xff]  }
 0xe07   :  { %10772 = vmatprep.subr.bf16.mxu1 %v13458_v45  ;;  %v13540_v45 = vld [vmem:[#allocation5 + $0x1088] ss:$24 sps:$4 sm:$0xff]  }
 0xe08   :  { %10666 = vmatpush1.bf16.msra.mxu0 %v13471_v13 }
 0xe09   :  { %10667 = vmatprep.subr.bf16.mxu0 %v13479_v49 }
 0xe0a   :  { %10773 = vmatpush1.bf16.msra.mxu1 %v13456_v28 }
 0xe0b   :  { %10774 = vmatprep.subr.bf16.mxu1 %v13464_v58 }
 0xe0c   :  { %10668 = vmatpush1.bf16.msra.mxu0 %v13477_v61 }
 0xe0d   :  { %9834 = vmatmul.mubr.bf16.gmra.mxu1 %v13440_v27  ;;  %10669 = vmatprep.subr.bf16.mxu0 %v13485_v37  ;;  %v13533_v27 = vld [vmem:[#allocation5 + $0x10b4] ss:$24 sps:$4 sm:$0xff]  }
 0xe0e   :  { %9843 = vmatprep.mubr.bf16.mxu1 %v17025_v33  ;;  %10775 = vmatpush1.bf16.msra.mxu1 %v13462_v42 }
 0xe0f   :  { %10776 = vmatprep.subr.bf16.mxu1 %v13470_v35 }
 0xe10   :  { %10670 = vmatpush1.bf16.msra.mxu0 %v13483_v54 }
 0xe11   :  { %10671 = vmatprep.subr.bf16.mxu0 %v13491_v7 }
 0xe12   :  { %10777 = vmatpush1.bf16.msra.mxu1 %v13468_v15 }
 0xe13   :  { %10778 = vmatprep.subr.bf16.mxu1 %v13476_v21 }
 0xe14   :  { %10672 = vmatpush1.bf16.msra.mxu0 %v13489_v29 }
 0xe15   :  { %9844 = vmatmul.mubr.bf16.gmra.mxu1 %v13441_v6  ;;  %10673 = vmatprep.subr.bf16.mxu0 %v13497_v1  ;;  %v13536_v6 = vld [vmem:[#allocation5 + $0x10bc] ss:$24 sps:$4 sm:$0xff]  }
 0xe16   :  { %9853 = vmatprep.mubr.bf16.mxu1 %v17025_v33  ;;  %10779 = vmatpush1.bf16.msra.mxu1 %v13474_v60 }
 0xe17   :  { %10780 = vmatprep.subr.bf16.mxu1 %v13482_v3 }
 0xe18   :  { %10674 = vmatpush2.bf16.msra.mxu0 %v13495_v40 }
 0xe19   :  { %10675 = vmatprep.subr.bf16.mxu0 %v13503_v8 }
 0xe1a   :  { %10781 = vmatpush1.bf16.msra.mxu1 %v13480_v63 }
 0xe1b   :  { %10782 = vmatprep.subr.bf16.mxu1 %v13488_v39 }
 0xe1c   :  { %10676 = vmatpush2.bf16.msra.mxu0 %v13501_v36 }
 0xe1d   :  { %9854 = vmatmul.mubr.bf16.gmra.mxu1 %v13442_v52  ;;  %10677 = vmatprep.subr.bf16.mxu0 %v13509_v10 }
 0xe1e   :  { %9863 = vmatprep.mubr.bf16.mxu1 %v17025_v33  ;;  %10783 = vmatpush1.bf16.msra.mxu1 %v13486_v20 }
 0xe1f   :  { %10784 = vmatprep.subr.bf16.mxu1 %v13494_v17 }
 0xe20   :  { %10678 = vmatpush2.bf16.msra.mxu0 %v13507_v57 }
 0xe21   :  { %10679 = vmatprep.subr.bf16.mxu0 %v13515_v30 }
 0xe22   :  { %10785 = vmatpush1.bf16.msra.mxu1 %v13492_v19 }
 0xe23   :  { %10786 = vmatprep.subr.bf16.mxu1 %v13500_v59 }
 0xe24   :  { %10680 = vmatpush2.bf16.msra.mxu0 %v13513_v56 }
 0xe25   :  { %9864 = vmatmul.mubr.bf16.gmra.mxu1 %v13443_v44  ;;  %10681 = vmatprep.subr.bf16.mxu0 %v13521_v9 }
 0xe26   :  { %9873 = vmatprep.mubr.bf16.mxu1 %v17025_v33  ;;  %10787 = vmatpush2.bf16.msra.mxu1 %v13498_v47 }
 0xe27   :  { %10788 = vmatprep.subr.bf16.mxu1 %v13506_v50 }
 0xe28   :  { %10682 = vmatpush2.bf16.msra.mxu0 %v13519_v22 }
 0xe29   :  { %10683 = vmatprep.subr.bf16.mxu0 %v13527_v51 }
 0xe2a   :  { %10789 = vmatpush2.bf16.msra.mxu1 %v13504_v4 }
 0xe2b   :  { %10790 = vmatprep.subr.bf16.mxu1 %v13512_v34 }
 0xe2c   :  { %10684 = vmatpush2.bf16.msra.mxu0 %v13525_v32 }
 0xe2d   :  { %9874 = vmatmul.mubr.bf16.gmra.mxu1 %v13444_v5  ;;  %10685 = vmatprep.subr.bf16.mxu0 %v13533_v27 }
 0xe2e   :  { %9883 = vmatprep.mubr.bf16.mxu1 %v17025_v33  ;;  %10791 = vmatpush2.bf16.msra.mxu1 %v13510_v38 }
 0xe2f   :  { %10792 = vmatprep.subr.bf16.mxu1 %v13518_v43 }
 0xe30   :  { %10686 = vmatpush2.bf16.msra.mxu0 %v13531_v23 }
 0xe31   :  { %10687 = vmatprep.subr.bf16.mxu0 %v13539_v12 }
 0xe32   :  { %10793 = vmatpush2.bf16.msra.mxu1 %v13516_v53 }
 0xe33   :  { %10794 = vmatprep.subr.bf16.mxu1 %v13524_v41 }
 0xe34   :  { %10688 = vmatpush2.bf16.msra.mxu0 %v13537_v11 }
 0xe35   :  { %9884 = vmatmul.mubr.bf16.gmra.mxu1 %v13445_v25  ;;  %10883 = vmatprep.subr.bf16.mxu0 %v13545_v31 }
 0xe36   :  { %9893 = vmatprep.mubr.bf16.mxu1 %v17025_v33  ;;  %10795 = vmatpush2.bf16.msra.mxu1 %v13522_v46 }
 0xe37   :  { %10796 = vmatprep.subr.bf16.mxu1 %v13530_v48 }
 0xe3a   :  { %10797 = vmatpush2.bf16.msra.mxu1 %v13528_v2 }
 0xe3b   :  { %10798 = vmatprep.subr.bf16.mxu1 %v13536_v6 }
 0xe3d   :  { %9894 = vmatmul.mubr.bf16.gmra.mxu1 %v13446_v24 }
 0xe3e   :  { %10799 = vmatpush2.bf16.msra.mxu1 %v13534_v18 }
 0xe3f   :  { %10800 = vmatprep.subr.bf16.mxu1 %v13542_v62 }
 0xe42   :  { %10801 = vmatpush2.bf16.msra.mxu1 %v13540_v45 }
 0xe84   :  { %v9341_v28 = vpop.f32.mrf.mxu1  ;;  %v9551_v52 = vpop.f32.mrf.mxu0 }
 0xe85   :  { %v9662_v51 = vadd.f32 %v9551_v52, %v9341_v28 }
 0xe86   :  { %v9343_v14 = vpop.f32.mrf.mxu1  ;;  %v9553_v58 = vpop.f32.mrf.mxu0 }
 0xe87   :  { %v9663_v2 = vadd.f32 %v9553_v58, %v9343_v14 }
 0xe88   :  { %v9345_v0 = vpop.f32.mrf.mxu1  ;;  %v9555_v55 = vpop.f32.mrf.mxu0 }
 0xe89   :  { %v9664_v27 = vadd.f32 %v9555_v55, %v9345_v0 }
 0xe8a   :  { %v9347_v42 = vpop.f32.mrf.mxu1  ;;  %v9557_v15 = vpop.f32.mrf.mxu0 }
 0xe8b   :  { %v9665_v18 = vadd.f32 %v9557_v15, %v9347_v42  ;;  %v13543_v15 = vld [vmem:[#allocation5 + $0x1060] ss:$24 sps:$4 sm:$0xff]  }
 0xe8c   :  { %v9351_v35 = vpop.f32.mrf.mxu1  ;;  %v9561_v21 = vpop.f32.mrf.mxu0 }
 0xe8e   :  { %v16246_v16 = vpop.f32.mrf.mxu1  ;;  %v9563_v49 = vpop.f32.mrf.mxu0 }
 0xe8f   :  { %v9667_v58 = vadd.f32 %v9563_v49, %v16246_v16 }
 0xe90   :  { %v16248_v44 = vpop.f32.mrf.mxu1  ;;  %v9565_v63 = vpop.f32.mrf.mxu0 }
 0xe91   :  { %v9668_v0 = vadd.f32 %v9565_v63, %v16248_v44  ;;  %v13546_v63 = vld [vmem:[#allocation5 + $0x1030] ss:$24 sps:$4 sm:$0xff]  }
 0xe92   :  { %v16250_v26 = vpop.f32.mrf.mxu1  ;;  %v9567_v39 = vpop.f32.mrf.mxu0 }
 0xe94   :  { %v16252_v13 = vpop.f32.mrf.mxu1  ;;  %v16268_v7 = vpop.f32.mrf.mxu0 }
 0xe96   :  { %v16254_v60 = vpop.f32.mrf.mxu1  ;;  %v16274_v19 = vpop.f32.mrf.mxu0 }
 0xe98   :  { %v16256_v3 = vpop.f32.mrf.mxu1  ;;  %v16280_v59 = vpop.f32.mrf.mxu0 }
 0xe9a   :  { %v16258_v61 = vpop.f32.mrf.mxu1  ;;  %v16286_v8 = vpop.f32.mrf.mxu0 }
 0xe9c   :  { %v16260_v5 = vpop.f32.mrf.mxu1  ;;  %v16292_v4 = vpop.f32.mrf.mxu0 }
 0xe9e   :  { %v16262_v37 = vpop.f32.mrf.mxu1  ;;  %v16298_v34 = vpop.f32.mrf.mxu0 }
 0xea0   :  { %v16264_v54 = vpop.f32.mrf.mxu1  ;;  %v16304_v30 = vpop.f32.mrf.mxu0 }
 0xea2   :  { %v16266_v20 = vpop.f32.mrf.mxu1  ;;  %v16310_v53 = vpop.f32.mrf.mxu0 }
 0xea4   :  { %v16270_v17 = vpop.f32.mrf.mxu1  ;;  %v16316_v22 = vpop.f32.mrf.mxu0 }
 0xea6   :  { %v16272_v29 = vpop.f32.mrf.mxu1  ;;  %v16318_v48 = vpop.f32.mrf.mxu0 }
 0xea8   :  { %v16276_v25 = vpop.f32.mrf.mxu1  ;;  %v16320_v11 = vpop.f32.mrf.mxu0 }
 0xeaa   :  { %v16278_v1 = vpop.f32.mrf.mxu1 }
 0xeac   :  { %v16282_v40 = vpop.f32.mrf.mxu1 }
 0xeae   :  { %v16284_v47 = vpop.f32.mrf.mxu1 }
 0xeb0   :  { %v16288_v50 = vpop.f32.mrf.mxu1 }
 0xeb2   :  { %v16290_v36 = vpop.f32.mrf.mxu1 }
 0xeb4   :  { %v16294_v24 = vpop.f32.mrf.mxu1 }
 0xeb6   :  { %v16296_v10 = vpop.f32.mrf.mxu1 }
 0xeb8   :  { %v16300_v57 = vpop.f32.mrf.mxu1 }
 0xeba   :  { %v16302_v38 = vpop.f32.mrf.mxu1 }
 0xebb   :  { %17026 = vst [vmem:[#allocation18_spill] sm:$0xff] %v16302_v38  ;;  %v16324_v38 = vpop.f32.mrf.mxu0 }
 0xebc   :  { %v16306_v43 = vpop.f32.mrf.mxu1 }
 0xebd   :  { %17027 = vst [vmem:[#allocation20_spill] sm:$0xff] %v16306_v43 }
 0xebe   :  { %v16308_v56 = vpop.f32.mrf.mxu1 }
 0xebf   :  { %17028 = vst [vmem:[#allocation19_spill] sm:$0xff] %v16308_v56  ;;  %v9666_v56 = vadd.f32 %v9561_v21, %v9351_v35 }
 0xec0   :  { %v16312_v9 = vpop.f32.mrf.mxu1 }
 0xec1   :  { %17029 = vst [vmem:[#allocation22_spill] sm:$0xff] %v16312_v9 }
 0xec2   :  { %v16314_v41 = vpop.f32.mrf.mxu1 }
 0xec3   :  { %17030 = vst [vmem:[#allocation23_spill] sm:$0xff] %v16314_v41 }
 0xec5   :  { %v9825_v46 = vpop.f32.mrf.mxu1 }
 0xec6   :  { %v9936_v6 = vadd.f32 %v9825_v46, %v9662_v51  ;;  %v13548_v51 = vld [vmem:[#allocation5 + $0x1034] ss:$24 sps:$4 sm:$0xff]  }
 0xec7   :  { %v9827_v32 = vpop.f32.mrf.mxu1 }
 0xec8   :  { %v9937_v12 = vadd.f32 %v9827_v32, %v9663_v2  ;;  %v10032_v31 = vmax.f32 %v9936_v6, 0.0  ;;  %v9669_v32 = vadd.f32 %v9567_v39, %v16250_v26  ;;  %v13551_v26 = vld [vmem:[#allocation5 + $0x1004] ss:$24 sps:$4 sm:$0xff]   ;;  %v9670_v39 = vadd.f32 %v16268_v7, %v16252_v13  ;;  %v13554_v13 = vld [vmem:[#allocation5 + $0xfd4] ss:$24 sps:$4 sm:$0xff]  }
 0xec9   :  { %v9829_v23 = vpop.f32.mrf.mxu1  ;;  %v9673_v7 = vadd.f32 %v16286_v8, %v16258_v61  ;;  %v13557_v61 = vld [vmem:[#allocation5 + $0xfa4] ss:$24 sps:$4 sm:$0xff]   ;;  %v9674_v8 = vadd.f32 %v16292_v4, %v16260_v5  ;;  %v13560_v5 = vld [vmem:[#allocation5 + $0xf74] ss:$24 sps:$4 sm:$0xff]   ;;  %v9677_v4 = vadd.f32 %v16310_v53, %v16266_v20  ;;  %v9678_v53 = vadd.f32 %v16316_v22, %v16270_v17 }
 0xeca   :  { %v9938_v62 = vadd.f32 %v9829_v23, %v9664_v27  ;;  %v10033_v43 = vmax.f32 %v9937_v12, 0.0  ;;  %v9671_v23 = vadd.f32 %v16274_v19, %v16254_v60  ;;  %v13563_v20 = vld [vmem:[#allocation5 + $0xf44] ss:$24 sps:$4 sm:$0xff]   ;;  %v13566_v17 = vld [vmem:[#allocation5 + $0xf14] ss:$24 sps:$4 sm:$0xff]   ;;  %v9681_v22 = vadd.f32 %v16324_v38, %v16278_v1 }
 0xecb   :  { %v9831_v45 = vpop.f32.mrf.mxu1  ;;  %v13569_v1 = vld [vmem:[#allocation5 + $0x11e4] ss:$24 sps:$4 sm:$0xff]  }
 0xecc   :  { %v10034_v33 = vmax.f32 %v9938_v62, 0.0  ;;  %v9939_v41 = vadd.f32 %v9831_v45, %v9665_v18  ;;  %v9672_v18 = vadd.f32 %v16280_v59, %v16256_v3  ;;  %v13549_v45 = vld [vmem:[#allocation5 + $0x1000] ss:$24 sps:$4 sm:$0xff]  }
 0xecd   :  { %v9835_v9 = vpop.f32.mrf.mxu1 }
 0xece   :  { %v16322_v28 = vpack.c.bf16 %v10034_v33, %v10032_v31  ;;  %v10035_v52 = vmax.f32 %v9939_v41, 0.0  ;;  %v9940_v42 = vadd.f32 %v9835_v9, %v9666_v56  ;;  %v16333_v33 = vpop.f32.mrf.mxu0 }
 0xecf   :  { %v9837_v14 = vpop.f32.mrf.mxu1  ;;  %v9682_v38 = vadd.f32 %v16333_v33, %v16282_v40  ;;  %v13572_v40 = vld [vmem:[#allocation5 + $0x11b4] ss:$24 sps:$4 sm:$0xff]  }
 0xed0   :  { %v16328_v55 = vpack.c.bf16 %v10035_v52, %v10033_v43  ;;  %v9941_v35 = vadd.f32 %v9837_v14, %v9667_v58  ;;  %v10036_v16 = vmax.f32 %v9940_v42, 0.0  ;;  %v16341_v27 = vpop.f32.mrf.mxu0 }
 0xed1   :  { %v9839_v46 = vpop.f32.mrf.mxu1 }
 0xed2   :  { %v9942_v21 = vadd.f32 %v9839_v46, %v9668_v0  ;;  %10689 = vmatprep.mubr.bf16.mxu0 %v16328_v55  ;;  %10802 = vmatprep.mubr.bf16.mxu1 %v16328_v55  ;;  %v10037_v56 = vmax.f32 %v9941_v35, 0.0  ;;  %v16353_v60 = vpop.f32.mrf.mxu0  ;;  %v13552_v0 = vld [vmem:[#allocation5 + $0xfd0] ss:$24 sps:$4 sm:$0xff]  }
 0xed3   :  { %v9841_v41 = vpop.f32.mrf.mxu1  ;;  %10690 = vmatmul.mubr.bf16.vlgmr.msra.gmra.mxu0 %v16322_v28  ;;  %10803 = vmatmul.mubr.bf16.vlgmr.msra.gmra.mxu1 %v16322_v28 }
 0xed4   :  { %v10038_v44 = vmax.f32 %v9942_v21, 0.0  ;;  %v9943_v49 = vadd.f32 %v9841_v41, %v9669_v32  ;;  %10884 = vmatpush1.bf16.msra.mxu0 %v13543_v15  ;;  %v16361_v32 = vpop.f32.mrf.mxu0  ;;  %v9675_v21 = vadd.f32 %v16298_v34, %v16262_v37  ;;  %v9676_v41 = vadd.f32 %v16304_v30, %v16264_v54 }
 0xed5   :  { %v9845_v43 = vpop.f32.mrf.mxu1  ;;  %10885 = vmatprep.subr.bf16.mxu0 %v13548_v51  ;;  %v9685_v33 = vadd.f32 %v16361_v32, %v16290_v36  ;;  %v13575_v36 = vld [vmem:[#allocation5 + $0x1184] ss:$24 sps:$4 sm:$0xff]  }
 0xed6   :  { %v16339_v9 = vpack.c.bf16 %v10038_v44, %v10036_v16  ;;  %v10039_v2 = vmax.f32 %v9943_v49, 0.0  ;;  %v9944_v12 = vadd.f32 %v9845_v43, %v9670_v39  ;;  %v13555_v49 = vld [vmem:[#allocation5 + $0xfa0] ss:$24 sps:$4 sm:$0xff]   ;;  %v16373_v37 = vpop.f32.mrf.mxu0 }
 0xed7   :  { %v9847_v6 = vpop.f32.mrf.mxu1  ;;  %v9686_v32 = vadd.f32 %v16373_v37, %v16294_v24  ;;  %v17031_v24 = vld [vmem:[#allocation18_spill] sm:$0xff] }
 0xed8   :  { %10886 = vmatpush1.bf16.msra.mxu0 %v13546_v63  ;;  %v16347_v62 = vpack.c.bf16 %v10039_v2, %v10037_v56  ;;  %v9945_v52 = vadd.f32 %v9847_v6, %v9671_v23  ;;  %v10040_v19 = vmax.f32 %v9944_v12, 0.0  ;;  %v13558_v56 = vld [vmem:[#allocation5 + $0xf70] ss:$24 sps:$4 sm:$0xff]   ;;  %v16381_v12 = vpop.f32.mrf.mxu0 }
 0xed9   :  { %v9849_v31 = vpop.f32.mrf.mxu1  ;;  %10887 = vmatprep.subr.bf16.mxu0 %v13551_v26 }
 0xeda   :  { %v9946_v14 = vadd.f32 %v9849_v31, %v9672_v18  ;;  %10699 = vmatprep.mubr.bf16.mxu0 %v16347_v62  ;;  %10812 = vmatprep.mubr.bf16.mxu1 %v16347_v62  ;;  %v10041_v15 = vmax.f32 %v9945_v52, 0.0  ;;  %v9679_v31 = vadd.f32 %v16318_v48, %v16272_v29  ;;  %v9615_v29 = vpop.f32.mrf.mxu0 }
 0xedb   :  { %v9851_v3 = vpop.f32.mrf.mxu1  ;;  %10700 = vmatmul.mubr.bf16.gmra.mxu0 %v16339_v9  ;;  %10813 = vmatmul.mubr.bf16.gmra.mxu1 %v16339_v9 }
 0xedc   :  { %v10042_v59 = vmax.f32 %v9946_v14, 0.0  ;;  %v9947_v58 = vadd.f32 %v9851_v3, %v9673_v7  ;;  %10888 = vmatpush1.bf16.msra.mxu0 %v13549_v45  ;;  %v13561_v14 = vld [vmem:[#allocation5 + $0xf40] ss:$24 sps:$4 sm:$0xff]  }
 0xedd   :  { %v9855_v42 = vpop.f32.mrf.mxu1  ;;  %10889 = vmatprep.subr.bf16.mxu0 %v13554_v13  ;;  %v9680_v13 = vadd.f32 %v16320_v11, %v16276_v25 }
 0xede   :  { %v16359_v46 = vpack.c.bf16 %v10042_v59, %v10040_v19  ;;  %v10043_v51 = vmax.f32 %v9947_v58, 0.0  ;;  %v9948_v44 = vadd.f32 %v9855_v42, %v9674_v8 }
 0xedf   :  { %v9857_v35 = vpop.f32.mrf.mxu1 }
 0xee0   :  { %v16367_v16 = vpack.c.bf16 %v10043_v51, %v10041_v15  ;;  %10890 = vmatpush1.bf16.msra.mxu0 %v13552_v0  ;;  %v9949_v43 = vadd.f32 %v9857_v35, %v9675_v21  ;;  %v10044_v34 = vmax.f32 %v9948_v44, 0.0  ;;  %v13564_v0 = vld [vmem:[#allocation5 + $0xf10] ss:$24 sps:$4 sm:$0xff]   ;;  %v9617_v51 = vpop.f32.mrf.mxu0  ;;  %v9683_v21 = vadd.f32 %v16341_v27, %v16284_v47 }
 0xee1   :  { %v9859_v63 = vpop.f32.mrf.mxu1  ;;  %10891 = vmatprep.subr.bf16.mxu0 %v13557_v61  ;;  %v9689_v37 = vadd.f32 %v9617_v51, %v17031_v24 }
 0xee2   :  { %v9950_v26 = vadd.f32 %v9859_v63, %v9676_v41  ;;  %10709 = vmatprep.mubr.bf16.mxu0 %v16367_v16  ;;  %10822 = vmatprep.mubr.bf16.mxu1 %v16367_v16  ;;  %v10045_v6 = vmax.f32 %v9949_v43, 0.0  ;;  %v9684_v41 = vadd.f32 %v16353_v60, %v16288_v50  ;;  %v13567_v63 = vld [vmem:[#allocation5 + $0x11e0] ss:$24 sps:$4 sm:$0xff]   ;;  %v9621_v47 = vpop.f32.mrf.mxu0 }
 0xee3   :  { %v9861_v54 = vpop.f32.mrf.mxu1  ;;  %10710 = vmatmul.mubr.bf16.gmra.mxu0 %v16359_v46  ;;  %10823 = vmatmul.mubr.bf16.gmra.mxu1 %v16359_v46 }
 0xee4   :  { %v10046_v30 = vmax.f32 %v9950_v26, 0.0  ;;  %v9951_v39 = vadd.f32 %v9861_v54, %v9677_v4  ;;  %10892 = vmatpush1.bf16.msra.mxu0 %v13555_v49  ;;  %v13570_v54 = vld [vmem:[#allocation5 + $0x11b0] ss:$24 sps:$4 sm:$0xff]  }
 0xee5   :  { %v9865_v2 = vpop.f32.mrf.mxu1  ;;  %10893 = vmatprep.subr.bf16.mxu0 %v13560_v5 }
 0xee6   :  { %v16379_v23 = vpack.c.bf16 %v10046_v30, %v10044_v34  ;;  %v10047_v18 = vmax.f32 %v9951_v39, 0.0  ;;  %v9952_v52 = vadd.f32 %v9865_v2, %v9678_v53  ;;  %v9623_v2 = vpop.f32.mrf.mxu0  ;;  %v9687_v53 = vadd.f32 %v16381_v12, %v16296_v10 }
 0xee7   :  { %v9867_v45 = vpop.f32.mrf.mxu1 }
 0xee8   :  { %v16387_v7 = vpack.c.bf16 %v10047_v18, %v10045_v6  ;;  %10894 = vmatpush1.bf16.msra.mxu0 %v13558_v56  ;;  %v9953_v19 = vadd.f32 %v9867_v45, %v9679_v31  ;;  %v10048_v25 = vmax.f32 %v9952_v52, 0.0  ;;  %v9688_v6 = vadd.f32 %v9615_v29, %v16300_v57  ;;  %v13573_v31 = vld [vmem:[#allocation5 + $0x1180] ss:$24 sps:$4 sm:$0xff]   ;;  %v13578_v52 = vld [vmem:[#allocation5 + $0x1154] ss:$24 sps:$4 sm:$0xff]  }
 0xee9   :  { %v9869_v3 = vpop.f32.mrf.mxu1  ;;  %10895 = vmatprep.subr.bf16.mxu0 %v13563_v20  ;;  %v13581_v29 = vld [vmem:[#allocation5 + $0x1124] ss:$24 sps:$4 sm:$0xff]  }
 0xeea   :  { %v9954_v59 = vadd.f32 %v9869_v3, %v9680_v13  ;;  %10719 = vmatprep.mubr.bf16.mxu0 %v16387_v7  ;;  %10832 = vmatprep.mubr.bf16.mxu1 %v16387_v7  ;;  %v10049_v61 = vmax.f32 %v9953_v19, 0.0  ;;  %v13576_v19 = vld [vmem:[#allocation5 + $0x1150] ss:$24 sps:$4 sm:$0xff]  }
 0xeeb   :  { %v9871_v48 = vpop.f32.mrf.mxu1  ;;  %10720 = vmatmul.mubr.bf16.gmra.mxu0 %v16379_v23  ;;  %10833 = vmatmul.mubr.bf16.gmra.mxu1 %v16379_v23 }
 0xeec   :  { %v10050_v11 = vmax.f32 %v9954_v59, 0.0  ;;  %v9955_v58 = vadd.f32 %v9871_v48, %v9681_v22  ;;  %10896 = vmatpush1.bf16.msra.mxu0 %v13561_v14  ;;  %v17032_v48 = vld [vmem:[#allocation20_spill] sm:$0xff] }
 0xeed   :  { %v9875_v42 = vpop.f32.mrf.mxu1  ;;  %10897 = vmatprep.subr.bf16.mxu0 %v13566_v17  ;;  %v9625_v17 = vpop.f32.mrf.mxu0 }
 0xeee   :  { %v16397_v8 = vpack.c.bf16 %v10050_v11, %v10048_v25  ;;  %v10051_v15 = vmax.f32 %v9955_v58, 0.0  ;;  %v9956_v49 = vadd.f32 %v9875_v42, %v9682_v38  ;;  %v9690_v25 = vadd.f32 %v9621_v47, %v17032_v48  ;;  %v17033_v38 = vld [vmem:[#allocation19_spill] sm:$0xff] }
 0xeef   :  { %v9877_v35 = vpop.f32.mrf.mxu1  ;;  %v9627_v42 = vpop.f32.mrf.mxu0 }
 0xef0   :  { %v16403_v44 = vpack.c.bf16 %v10051_v15, %v10049_v61  ;;  %10898 = vmatpush1.bf16.msra.mxu0 %v13564_v0  ;;  %v9957_v4 = vadd.f32 %v9877_v35, %v9683_v21  ;;  %v10052_v50 = vmax.f32 %v9956_v49, 0.0  ;;  %v9691_v61 = vadd.f32 %v9623_v2, %v17033_v38  ;;  %v17034_v15 = vld [vmem:[#allocation22_spill] sm:$0xff] }
 0xef1   :  { %v9879_v5 = vpop.f32.mrf.mxu1  ;;  %10899 = vmatprep.subr.bf16.mxu0 %v13569_v1  ;;  %v9692_v51 = vadd.f32 %v9625_v17, %v17034_v15  ;;  %v13588_v2 = vld [vmem:[#allocation5 + $0x1090] ss:$24 sps:$4 sm:$0xff]  }
 0xef2   :  { %v9958_v43 = vadd.f32 %v9879_v5, %v9684_v41  ;;  %10729 = vmatprep.mubr.bf16.mxu0 %v16403_v44  ;;  %10842 = vmatprep.mubr.bf16.mxu1 %v16403_v44  ;;  %v10053_v30 = vmax.f32 %v9957_v4, 0.0  ;;  %v13579_v41 = vld [vmem:[#allocation5 + $0x1120] ss:$24 sps:$4 sm:$0xff]   ;;  %v17035_v5 = vld [vmem:[#allocation23_spill] sm:$0xff] }
 0xef3   :  { %v9881_v27 = vpop.f32.mrf.mxu1  ;;  %10730 = vmatmul.mubr.bf16.gmra.mxu0 %v16397_v8  ;;  %10843 = vmatmul.mubr.bf16.gmra.mxu1 %v16397_v8 }
 0xef4   :  { %v10054_v60 = vmax.f32 %v9958_v43, 0.0  ;;  %v9959_v26 = vadd.f32 %v9881_v27, %v9685_v33  ;;  %10900 = vmatpush2.bf16.msra.mxu0 %v13567_v63  ;;  %v13584_v63 = vld [vmem:[#allocation5 + $0x10f4] ss:$24 sps:$4 sm:$0xff]  }
 0xef5   :  { %v9885_v34 = vpop.f32.mrf.mxu1  ;;  %10901 = vmatprep.subr.bf16.mxu0 %v13572_v40  ;;  %v9693_v40 = vadd.f32 %v9627_v42, %v17035_v5 }
 0xef6   :  { %v16413_v39 = vpack.c.bf16 %v10054_v60, %v10052_v50  ;;  %v10055_v56 = vmax.f32 %v9959_v26, 0.0  ;;  %v9960_v45 = vadd.f32 %v9885_v34, %v9686_v32  ;;  %v13582_v60 = vld [vmem:[#allocation5 + $0x10f0] ss:$24 sps:$4 sm:$0xff]   ;;  %v13587_v26 = vld [vmem:[#allocation5 + $0x10c4] ss:$24 sps:$4 sm:$0xff]  }
 0xef7   :  { %v9887_v20 = vpop.f32.mrf.mxu1 }
 0xef8   :  { %v16418_v18 = vpack.c.bf16 %v10055_v56, %v10053_v30  ;;  %10902 = vmatpush2.bf16.msra.mxu0 %v13570_v54  ;;  %v9961_v14 = vadd.f32 %v9887_v20, %v9687_v53  ;;  %v10056_v57 = vmax.f32 %v9960_v45, 0.0  ;;  %v13585_v30 = vld [vmem:[#allocation5 + $0x10c0] ss:$24 sps:$4 sm:$0xff]   ;;  %v13590_v56 = vld [vmem:[#allocation5 + $0x1094] ss:$24 sps:$4 sm:$0xff]   ;;  %v17036_v20 = vmov 0  }
 0xef9   :  { %v9889_v13 = vpop.f32.mrf.mxu1  ;;  %10903 = vmatprep.subr.bf16.mxu0 %v13575_v36 }
 0xefa   :  { %v9962_v3 = vadd.f32 %v9889_v13, %v9688_v6  ;;  %10739 = vmatprep.mubr.bf16.mxu0 %v16418_v18  ;;  %10852 = vmatprep.mubr.bf16.mxu1 %v16418_v18  ;;  %v10057_v11 = vmax.f32 %v9961_v14, 0.0 }
 0xefb   :  { %v9891_v10 = vpop.f32.mrf.mxu1  ;;  %10740 = vmatmul.mubr.bf16.gmra.mxu0 %v16413_v39  ;;  %10853 = vmatmul.mubr.bf16.gmra.mxu1 %v16413_v39 }
 0xefc   :  { %v10058_v12 = vmax.f32 %v9962_v3, 0.0  ;;  %v9963_v22 = vadd.f32 %v9891_v10, %v9689_v37  ;;  %10904 = vmatpush2.bf16.msra.mxu0 %v13573_v31 }
 0xefd   :  { %v9895_v59 = vpop.f32.mrf.mxu1  ;;  %10905 = vmatprep.subr.bf16.mxu0 %v13578_v52 }
 0xefe   :  { %v10076_v58 = vpack.c.bf16 %v10058_v12, %v10056_v57  ;;  %v10059_v0 = vmax.f32 %v9963_v22, 0.0  ;;  %v9964_v21 = vadd.f32 %v9895_v59, %v9690_v25 }
 0xeff   :  { %v9897_v1 = vpop.f32.mrf.mxu1 }
 0xf00   :  { %v10077_v35 = vpack.c.bf16 %v10059_v0, %v10057_v11  ;;  %10906 = vmatpush2.bf16.msra.mxu0 %v13576_v19  ;;  %v9965_v33 = vadd.f32 %v9897_v1, %v9691_v61  ;;  %v10060_v47 = vmax.f32 %v9964_v21, 0.0 }
 0xf01   :  { %v9899_v49 = vpop.f32.mrf.mxu1  ;;  %10907 = vmatprep.subr.bf16.mxu0 %v13581_v29 }
 0xf02   :  { %v9966_v4 = vadd.f32 %v9899_v49, %v9692_v51  ;;  %10749 = vmatprep.mubr.bf16.mxu0 %v10077_v35  ;;  %10862 = vmatprep.mubr.bf16.mxu1 %v10077_v35  ;;  %v10061_v54 = vmax.f32 %v9965_v33, 0.0 }
 0xf03   :  { %v9901_v43 = vpop.f32.mrf.mxu1  ;;  %10750 = vmatmul.mubr.bf16.gmra.mxu0 %v10076_v58  ;;  %10863 = vmatmul.mubr.bf16.gmra.mxu1 %v10076_v58 }
 0xf04   :  { %v10062_v27 = vmax.f32 %v9966_v4, 0.0  ;;  %v9967_v50 = vadd.f32 %v9901_v43, %v9693_v40  ;;  %10908 = vmatpush2.bf16.msra.mxu0 %v13579_v41 }
 0xf05   :  { %10909 = vmatprep.subr.bf16.mxu0 %v13584_v63 }
 0xf06   :  { %v10078_v34 = vpack.c.bf16 %v10062_v27, %v10060_v47  ;;  %v10063_v36 = vmax.f32 %v9967_v50, 0.0 }
 0xf08   :  { %v10079_v32 = vpack.c.bf16 %v10063_v36, %v10061_v54  ;;  %10910 = vmatpush2.bf16.msra.mxu0 %v13582_v60 }
 0xf09   :  { %10911 = vmatprep.subr.bf16.mxu0 %v13587_v26 }
 0xf0a   :  { %10759 = vmatprep.mubr.bf16.mxu0 %v10079_v32  ;;  %10872 = vmatprep.mubr.bf16.mxu1 %v10079_v32 }
 0xf0b   :  { %10760 = vmatmul.mubr.bf16.gmra.mxu0 %v10078_v34  ;;  %10873 = vmatmul.mubr.bf16.gmra.mxu1 %v10078_v34 }
 0xf0c   :  { %10912 = vmatpush2.bf16.msra.mxu0 %v13585_v30  ;;  %10915 = vmatprep.mubr.bf16.mxu0 %v16328_v55 }
 0xf0d   :  { %10913 = vmatprep.subr.bf16.mxu0 %v13590_v56  ;;  %11141 = vmatprep.mubr.bf16.mxu1 %v17036_v20 }
 0xf10   :  { %10914 = vmatpush2.bf16.msra.mxu0 %v13588_v2 }
 0xf13   :  { %10916 = vmatmul.mubr.bf16.vlgmr.msra.gmra.mxu0 %v16322_v28 }
 0xf14   :  { %10925 = vmatprep.mubr.bf16.mxu0 %v16347_v62 }
 0xf1b   :  { %10926 = vmatmul.mubr.bf16.gmra.mxu0 %v16339_v9 }
 0xf1c   :  { %10935 = vmatprep.mubr.bf16.mxu0 %v16367_v16 }
 0xf23   :  { %10936 = vmatmul.mubr.bf16.gmra.mxu0 %v16359_v46 }
 0xf24   :  { %10945 = vmatprep.mubr.bf16.mxu0 %v16387_v7 }
 0xf2b   :  { %10946 = vmatmul.mubr.bf16.gmra.mxu0 %v16379_v23 }
 0xf2c   :  { %10955 = vmatprep.mubr.bf16.mxu0 %v16403_v44 }
 0xf33   :  { %10956 = vmatmul.mubr.bf16.gmra.mxu0 %v16397_v8 }
 0xf34   :  { %10965 = vmatprep.mubr.bf16.mxu0 %v16418_v18 }
 0xf3b   :  { %10966 = vmatmul.mubr.bf16.gmra.mxu0 %v16413_v39 }
 0xf3c   :  { %10975 = vmatprep.mubr.bf16.mxu0 %v10077_v35 }
 0xf43   :  { %10976 = vmatmul.mubr.bf16.gmra.mxu0 %v10076_v58 }
 0xf44   :  { %10985 = vmatprep.mubr.bf16.mxu0 %v10079_v32 }
 0xf4b   :  { %10986 = vmatmul.mubr.bf16.gmra.mxu0 %v10078_v34 }
 0xf4c   :  { %11351 = vmatprep.mubr.bf16.mxu0 %v17036_v20 }
 0xf93   :  { %v16443_v28 = vpop.f32.mrf.mxu0  ;;  %v16445_v55 = vpop.f32.mrf.mxu1 }
 0xf94   :  { %17037 = vst [vmem:[#allocation13_spill] sm:$0xff] %v16443_v28  ;;  %17038 = vst [vmem:[#allocation21_spill] sm:$0xff] %v16445_v55 }
 0xf95   :  { %v16447_v9 = vpop.f32.mrf.mxu0  ;;  %v16449_v62 = vpop.f32.mrf.mxu1 }
 0xf96   :  { %17039 = vst [vmem:[#allocation15_spill] sm:$0xff] %v16447_v9  ;;  %17040 = vst [vmem:[#allocation16_spill] sm:$0xff] %v16449_v62 }
 0xf97   :  { %v16451_v46 = vpop.f32.mrf.mxu0  ;;  %v16453_v16 = vpop.f32.mrf.mxu1 }
 0xf98   :  { %17041 = vst [vmem:[#allocation17_spill] sm:$0xff] %v16451_v46  ;;  %17042 = vst [vmem:[#allocation14_spill] sm:$0xff] %v16453_v16 }
 0xf99   :  { %v16459_v8 = vpop.f32.mrf.mxu0  ;;  %v16461_v44 = vpop.f32.mrf.mxu1 }
 0xf9a   :  { %17043 = vst [vmem:[#allocation18_spill] sm:$0xff] %v16459_v8  ;;  %17044 = vst [vmem:[#allocation20_spill] sm:$0xff] %v16461_v44 }
 0xf9b   :  { %v16467_v6 = vpop.f32.mrf.mxu0  ;;  %v16469_v18 = vpop.f32.mrf.mxu1 }
 0xf9c   :  { %17045 = vst [vmem:[#allocation19_spill] sm:$0xff] %v16467_v6  ;;  %17046 = vst [vmem:[#allocation22_spill] sm:$0xff] %v16469_v18 }
 0xf9d   :  { %v16471_v45 = vpop.f32.mrf.mxu0  ;;  %v16473_v31 = vpop.f32.mrf.mxu1 }
 0xf9e   :  { %17047 = vst [vmem:[#allocation23_spill] sm:$0xff] %v16473_v31 }
 0xf9f   :  { %v16475_v13 = vpop.f32.mrf.mxu0  ;;  %v16477_v52 = vpop.f32.mrf.mxu1 }
 0xfa0   :  { %17048 = vst [vmem:[#allocation24_spill] sm:$0xff] %v16475_v13  ;;  %17049 = vst [vmem:[#allocation25_spill] sm:$0xff] %v16477_v52 }
 0xfa1   :  { %v16483_v14 = vpop.f32.mrf.mxu0  ;;  %v16485_v3 = vpop.f32.mrf.mxu1 }
 0xfa2   :  { %17050 = vst [vmem:[#allocation26_spill] sm:$0xff] %v16485_v3 }
 0xfa3   :  { %v16491_v57 = vpop.f32.mrf.mxu0  ;;  %v16493_v12 = vpop.f32.mrf.mxu1 }
 0xfa5   :  { %v16495_v22 = vpop.f32.mrf.mxu0  ;;  %v16497_v19 = vpop.f32.mrf.mxu1 }
 0xfa7   :  { %v16499_v59 = vpop.f32.mrf.mxu0  ;;  %v16501_v29 = vpop.f32.mrf.mxu1 }
 0xfa9   :  { %v16503_v48 = vpop.f32.mrf.mxu0  ;;  %v16505_v25 = vpop.f32.mrf.mxu1 }
 0xfab   :  { %v16507_v11 = vpop.f32.mrf.mxu0  ;;  %v16509_v58 = vpop.f32.mrf.mxu1 }
 0xfad   :  { %v16511_v0 = vpop.f32.mrf.mxu0  ;;  %v16513_v42 = vpop.f32.mrf.mxu1 }
 0xfaf   :  { %v16515_v1 = vpop.f32.mrf.mxu0  ;;  %v16517_v38 = vpop.f32.mrf.mxu1 }
 0xfb1   :  { %v16519_v61 = vpop.f32.mrf.mxu0  ;;  %v16521_v15 = vpop.f32.mrf.mxu1 }
 0xfb3   :  { %v16523_v51 = vpop.f32.mrf.mxu0  ;;  %v16525_v35 = vpop.f32.mrf.mxu1 }
 0xfb5   :  { %v16527_v21 = vpop.f32.mrf.mxu0  ;;  %v16529_v41 = vpop.f32.mrf.mxu1 }
 0xfb7   :  { %v16531_v49 = vpop.f32.mrf.mxu0  ;;  %v16533_v63 = vpop.f32.mrf.mxu1 }
 0xfb9   :  { %v10737_v5 = vpop.f32.mrf.mxu0  ;;  %v10850_v40 = vpop.f32.mrf.mxu1 }
 0xfbb   :  { %v10741_v33 = vpop.f32.mrf.mxu0  ;;  %v10854_v4 = vpop.f32.mrf.mxu1 }
 0xfbd   :  { %v10743_v43 = vpop.f32.mrf.mxu0  ;;  %v10856_v47 = vpop.f32.mrf.mxu1 }
 0xfbf   :  { %v10745_v27 = vpop.f32.mrf.mxu0  ;;  %v10858_v50 = vpop.f32.mrf.mxu1 }
 0xfc1   :  { %v10747_v60 = vpop.f32.mrf.mxu0  ;;  %v10860_v26 = vpop.f32.mrf.mxu1 }
 0xfc2   :  { %v11027_v13 = vpack.c.bf16 %v10747_v60, %v10743_v43  ;;  %v11029_v31 = vpack.c.bf16 %v10860_v26, %v10856_v47  ;;  %v17070_v47 = vld [vmem:[#allocation14_spill] sm:$0xff] }
 0xfc3   :  { %v10751_v54 = vpop.f32.mrf.mxu0  ;;  %v10864_v34 = vpop.f32.mrf.mxu1 }
 0xfc5   :  { %v10753_v36 = vpop.f32.mrf.mxu0  ;;  %v10866_v32 = vpop.f32.mrf.mxu1 }
 0xfc7   :  { %v10755_v30 = vpop.f32.mrf.mxu0  ;;  %v10868_v56 = vpop.f32.mrf.mxu1 }
 0xfc8   :  { %v11032_v18 = vpack.c.bf16 %v10755_v30, %v10751_v54  ;;  %v11034_v52 = vpack.c.bf16 %v10868_v56, %v10864_v34  ;;  %v17073_v54 = vmov 0  }
 0xfc9   :  { %v10757_v2 = vpop.f32.mrf.mxu0  ;;  %v10870_v7 = vpop.f32.mrf.mxu1 }
 0xfca   :  { %v11033_v44 = vpack.c.bf16 %v10757_v2, %v10753_v36  ;;  %v11035_v9 = vpack.c.bf16 %v10870_v7, %v10866_v32  ;;  %v13593_v36 = vld [vmem:[#allocation3 + $0x3c8] sm:$0xff]  }
 0xfcb   :  { %v10761_v23 = vpop.f32.mrf.mxu0  ;;  %v10874_v53 = vpop.f32.mrf.mxu1  ;;  %v13594_v32 = vld [vmem:[#allocation3 + $0x408] sm:$0xff]  }
 0xfcd   :  { %v10763_v39 = vpop.f32.mrf.mxu0  ;;  %v10876_v37 = vpop.f32.mrf.mxu1 }
 0xfcf   :  { %v10765_v24 = vpop.f32.mrf.mxu0  ;;  %v10878_v10 = vpop.f32.mrf.mxu1 }
 0xfd0   :  { %v11038_v28 = vpack.c.bf16 %v10765_v24, %v10761_v23  ;;  %v11040_v46 = vpack.c.bf16 %v10878_v10, %v10874_v53  ;;  %v11017_v53 = vpack.c.bf16 %v16521_v15, %v16513_v42 }
 0xfd1   :  { %v10767_v17 = vpop.f32.mrf.mxu0  ;;  %v10880_v20 = vpop.f32.mrf.mxu1 }
 0xfd2   :  { %v11039_v55 = vpack.c.bf16 %v10767_v17, %v10763_v39  ;;  %v11041_v16 = vpack.c.bf16 %v10880_v20, %v10876_v37  ;;  %v11015_v39 = vpack.c.bf16 %v16519_v61, %v16511_v0  ;;  %v11009_v37 = vpack.c.bf16 %v16503_v48, %v16495_v22  ;;  %v17053_v48 = vld [vmem:[#allocation23_spill] sm:$0xff]  ;;  %v17059_v61 = vld [vmem:[#allocation22_spill] sm:$0xff] }
 0xfd3   :  { %v10917_v62 = vpop.f32.mrf.mxu0  ;;  %v11011_v17 = vpack.c.bf16 %v16505_v25, %v16497_v19  ;;  %v17051_v22 = vpack.c.bf16 %v16483_v14, %v16471_v45  ;;  %v17052_v19 = vld [vmem:[#allocation26_spill] sm:$0xff]  ;;  %v17064_v14 = vld [vmem:[#allocation20_spill] sm:$0xff] }
 0xfd4   :  { %11109 = vmatprep.subr.bf16.mxu1 %v11039_v55  ;;  %11319 = vmatprep.subr.bf16.mxu0 %v11041_v16  ;;  %v11026_v55 = vpack.c.bf16 %v10745_v27, %v10741_v33  ;;  %v11028_v16 = vpack.c.bf16 %v10858_v50, %v10854_v4  ;;  %v17054_v25 = vpack.c.bf16 %v17052_v19, %v17053_v48  ;;  %v17067_v33 = vld [vmem:[#allocation17_spill] sm:$0xff]  ;;  %v13601_v19 = vld [vmem:[#allocation3 + $0x3e8] sm:$0xff]  }
 0xfd5   :  { %v10919_v8 = vpop.f32.mrf.mxu0  ;;  %11110 = vmatpush1.bf16.msra.mxu1 %v11038_v28  ;;  %11320 = vmatpush1.bf16.msra.mxu0 %v11040_v46  ;;  %v11021_v46 = vpack.c.bf16 %v10737_v5, %v16527_v21  ;;  %v17065_v21 = vld [vmem:[#allocation16_spill] sm:$0xff]  ;;  %v13592_v5 = vld [vmem:[#allocation3 + $0x400] sm:$0xff]   ;;  %v13602_v48 = vld [vmem:[#allocation3 + $0x428] sm:$0xff]  }
 0xfd6   :  { %11111 = vmatprep.subr.bf16.mxu1 %v11033_v44  ;;  %11321 = vmatprep.subr.bf16.mxu0 %v11035_v9  ;;  %v11023_v9 = vpack.c.bf16 %v10850_v40, %v16529_v41  ;;  %v17066_v41 = vpack.c.bf16 %v17064_v14, %v17065_v21  ;;  %v17068_v4 = vld [vmem:[#allocation13_spill] sm:$0xff]  ;;  %v13606_v14 = vld [vmem:[#allocation3 + $0x438] sm:$0xff]  }
 0xfd7   :  { %v10921_v6 = vpop.f32.mrf.mxu0  ;;  %v17069_v43 = vpack.c.bf16 %v17067_v33, %v17068_v4  ;;  %v17071_v27 = vld [vmem:[#allocation21_spill] sm:$0xff] }
 0xfd8   :  { %v16535_v3 = vpack.c.bf16 %v10921_v6, %v10917_v62  ;;  %v11020_v62 = vpack.c.bf16 %v16531_v49, %v16523_v51  ;;  %v17061_v51 = vld [vmem:[#allocation18_spill] sm:$0xff]  ;;  %v17072_v50 = vpack.c.bf16 %v17070_v47, %v17071_v27 }
 0xfd9   :  { %v10923_v20 = vpop.f32.mrf.mxu0  ;;  %11112 = vmatpush1.bf16.msra.mxu1 %v11032_v18  ;;  %11322 = vmatpush1.bf16.msra.mxu0 %v11034_v52  ;;  %v11016_v52 = vpack.c.bf16 %v16517_v38, %v16509_v58  ;;  %v11010_v58 = vpack.c.bf16 %v16501_v29, %v16493_v12  ;;  %v17056_v12 = vld [vmem:[#allocation19_spill] sm:$0xff]  ;;  %v17058_v38 = vld [vmem:[#allocation25_spill] sm:$0xff] }
 0xfda   :  { %v16537_v23 = vpack.c.bf16 %v10923_v20, %v10919_v8  ;;  %11113 = vmatprep.subr.bf16.mxu1 %v11027_v13  ;;  %11323 = vmatprep.subr.bf16.mxu0 %v11029_v31  ;;  %v11022_v8 = vpack.c.bf16 %v16533_v63, %v16525_v35  ;;  %v11014_v13 = vpack.c.bf16 %v16515_v1, %v16507_v11  ;;  %v17062_v35 = vld [vmem:[#allocation15_spill] sm:$0xff]  ;;  %v13591_v63 = vld [vmem:[#allocation3 + $0x3c0] sm:$0xff]  }
 0xfdb   :  { %v10927_v28 = vpop.f32.mrf.mxu0  ;;  %v11008_v11 = vpack.c.bf16 %v16499_v59, %v16491_v57  ;;  %v17055_v59 = vld [vmem:[#allocation24_spill] sm:$0xff]  ;;  %v17060_v15 = vpack.c.bf16 %v17058_v38, %v17059_v61  ;;  %v17063_v45 = vpack.c.bf16 %v17061_v51, %v17062_v35  ;;  %v13603_v38 = vld [vmem:[#allocation3 + $0x3f0] sm:$0xff]  }
 0xfdc   :  { %v17057_v29 = vpack.c.bf16 %v17055_v59, %v17056_v12  ;;  %v13604_v61 = vld [vmem:[#allocation3 + $0x430] sm:$0xff]  }
 0xfdd   :  { %v10929_v7 = vpop.f32.mrf.mxu0  ;;  %11114 = vmatpush1.bf16.msra.mxu1 %v11026_v55  ;;  %11324 = vmatpush1.bf16.msra.mxu0 %v11028_v16  ;;  %v13595_v55 = vld [vmem:[#allocation3 + $0x3d0] sm:$0xff]  }
 0xfde   :  { %11115 = vmatprep.subr.bf16.mxu1 %v11021_v46  ;;  %11325 = vmatprep.subr.bf16.mxu0 %v11023_v9  ;;  %v13596_v16 = vld [vmem:[#allocation3 + $0x410] sm:$0xff]  }
 0xfdf   :  { %v10931_v44 = vpop.f32.mrf.mxu0 }
 0xfe0   :  { %v16549_v6 = vpack.c.bf16 %v10931_v44, %v10927_v28 }
 0xfe1   :  { %v10933_v18 = vpop.f32.mrf.mxu0  ;;  %11116 = vmatpush1.bf16.msra.mxu1 %v11020_v62  ;;  %11326 = vmatpush1.bf16.msra.mxu0 %v11022_v8  ;;  %v13597_v62 = vld [vmem:[#allocation3 + $0x3d8] sm:$0xff]  }
 0xfe2   :  { %v16551_v31 = vpack.c.bf16 %v10933_v18, %v10929_v7  ;;  %11117 = vmatprep.subr.bf16.mxu1 %v11015_v39  ;;  %11327 = vmatprep.subr.bf16.mxu0 %v11017_v53  ;;  %v13598_v8 = vld [vmem:[#allocation3 + $0x418] sm:$0xff]  }
 0xfe3   :  { %v16557_v24 = vpop.f32.mrf.mxu0 }
 0xfe5   :  { %v16563_v10 = vpop.f32.mrf.mxu0  ;;  %11118 = vmatpush1.bf16.msra.mxu1 %v11014_v13  ;;  %11328 = vmatpush1.bf16.msra.mxu0 %v11016_v52  ;;  %v13599_v13 = vld [vmem:[#allocation3 + $0x3e0] sm:$0xff]  }
 0xfe6   :  { %11119 = vmatprep.subr.bf16.mxu1 %v11009_v37  ;;  %11329 = vmatprep.subr.bf16.mxu0 %v11011_v17  ;;  %v13600_v52 = vld [vmem:[#allocation3 + $0x420] sm:$0xff]  }
 0xfe7   :  { %v16569_v0 = vpop.f32.mrf.mxu0 }
 0xfe9   :  { %v16571_v42 = vpop.f32.mrf.mxu0  ;;  %11120 = vmatpush1.bf16.msra.mxu1 %v11008_v11  ;;  %11330 = vmatpush1.bf16.msra.mxu0 %v11010_v58 }
 0xfea   :  { %11121 = vmatprep.subr.bf16.mxu1 %v17051_v22  ;;  %11331 = vmatprep.subr.bf16.mxu0 %v17054_v25  ;;  %v11013_v35 = vpack.c.bf16 %v16571_v42, %v16563_v10  ;;  %v13608_v10 = vld [vmem:[#allocation3 + $0x450] sm:$0xff]   ;;  %v13614_v42 = vld [vmem:[#allocation3 + $0x478] sm:$0xff]  }
 0xfeb   :  { %v16579_v1 = vpop.f32.mrf.mxu0 }
 0xfed   :  { %v16581_v57 = vpop.f32.mrf.mxu0  ;;  %11122 = vmatpush1.bf16.msra.mxu1 %v17057_v29  ;;  %11332 = vmatpush1.bf16.msra.mxu0 %v17060_v15 }
 0xfee   :  { %11123 = vmatprep.subr.bf16.mxu1 %v17063_v45  ;;  %11333 = vmatprep.subr.bf16.mxu0 %v17066_v41  ;;  %v13605_v45 = vld [vmem:[#allocation3 + $0x3f8] sm:$0xff]  }
 0xfef   :  { %v16595_v49 = vpop.f32.mrf.mxu0 }
 0xff0   :  { %v11018_v51 = vpack.c.bf16 %v16595_v49, %v16579_v1 }
 0xff1   :  { %v16597_v40 = vpop.f32.mrf.mxu0  ;;  %11124 = vmatpush1.bf16.msra.mxu1 %v17069_v43  ;;  %11334 = vmatpush1.bf16.msra.mxu0 %v17072_v50 }
 0xff2   :  { %v11019_v15 = vpack.c.bf16 %v16597_v40, %v16581_v57  ;;  %v11012_v57 = vpack.c.bf16 %v16569_v0, %v16557_v24  ;;  %v13607_v24 = vld [vmem:[#allocation3 + $0x440] sm:$0xff]   ;;  %v13610_v0 = vld [vmem:[#allocation3 + $0x458] sm:$0xff]  }
 0xff3   :  { %v16605_v60 = vpop.f32.mrf.mxu0 }
 0xff4   :  { %11142 = vmatmul.mubr.bf16.vlgmr.msra.gmra.mxu1 %v13591_v63  ;;  %11352 = vmatmul.mubr.bf16.vlgmr.msra.gmra.mxu0 %v13592_v5 }
 0xff5   :  { %v10959_v26 = vpop.f32.mrf.mxu0  ;;  %11151 = vmatprep.mubr.bf16.mxu1 %v17073_v54  ;;  %11361 = vmatprep.mubr.bf16.mxu0 %v17073_v54 }
 0xff7   :  { %v16609_v34 = vpop.f32.mrf.mxu0 }
 0xff8   :  { %v11024_v29 = vpack.c.bf16 %v16609_v34, %v16605_v60 }
 0xff9   :  { %v10963_v30 = vpop.f32.mrf.mxu0 }
 0xffa   :  { %v11025_v12 = vpack.c.bf16 %v10963_v30, %v10959_v26 }
 0xffb   :  { %v10967_v56 = vpop.f32.mrf.mxu0 }
 0xffc   :  { %11152 = vmatmul.mubr.bf16.gmra.mxu1 %v13593_v36  ;;  %11362 = vmatmul.mubr.bf16.gmra.mxu0 %v13594_v32 }
 0xffd   :  { %v10969_v2 = vpop.f32.mrf.mxu0  ;;  %11161 = vmatprep.mubr.bf16.mxu1 %v17073_v54  ;;  %11371 = vmatprep.mubr.bf16.mxu0 %v17073_v54 }
 0xfff   :  { %v10971_v20 = vpop.f32.mrf.mxu0 }
0x1000   :  { %v11030_v59 = vpack.c.bf16 %v10971_v20, %v10967_v56 }
0x1001   :  { %v10973_v28 = vpop.f32.mrf.mxu0 }
0x1002   :  { %v11031_v25 = vpack.c.bf16 %v10973_v28, %v10969_v2 }
0x1003   :  { %v10977_v46 = vpop.f32.mrf.mxu0 }
0x1004   :  { %11162 = vmatmul.mubr.bf16.gmra.mxu1 %v13595_v55  ;;  %11372 = vmatmul.mubr.bf16.gmra.mxu0 %v13596_v16 }
0x1005   :  { %v10979_v9 = vpop.f32.mrf.mxu0  ;;  %11171 = vmatprep.mubr.bf16.mxu1 %v17073_v54  ;;  %11381 = vmatprep.mubr.bf16.mxu0 %v17073_v54 }
0x1007   :  { %v10981_v7 = vpop.f32.mrf.mxu0 }
0x1008   :  { %v11036_v22 = vpack.c.bf16 %v10981_v7, %v10977_v46 }
0x1009   :  { %v10983_v44 = vpop.f32.mrf.mxu0 }
0x100a   :  { %v11037_v58 = vpack.c.bf16 %v10983_v44, %v10979_v9 }
0x100b   :  { %v10987_v39 = vpop.f32.mrf.mxu0 }
0x100c   :  { %11172 = vmatmul.mubr.bf16.gmra.mxu1 %v13597_v62  ;;  %11382 = vmatmul.mubr.bf16.gmra.mxu0 %v13598_v8 }
0x100d   :  { %v10989_v53 = vpop.f32.mrf.mxu0  ;;  %11181 = vmatprep.mubr.bf16.mxu1 %v17073_v54  ;;  %11391 = vmatprep.mubr.bf16.mxu0 %v17073_v54 }
0x100f   :  { %v10991_v18 = vpop.f32.mrf.mxu0 }
0x1010   :  { %v11042_v11 = vpack.c.bf16 %v10991_v18, %v10987_v39 }
0x1011   :  { %v10993_v37 = vpop.f32.mrf.mxu0 }
0x1012   :  { %v11043_v17 = vpack.c.bf16 %v10993_v37, %v10989_v53 }
0x1014   :  { %11182 = vmatmul.mubr.bf16.gmra.mxu1 %v13599_v13  ;;  %11392 = vmatmul.mubr.bf16.gmra.mxu0 %v13600_v52 }
0x1015   :  { %11593 = vmatprep.subr.bf16.mxu0 %v11043_v17  ;;  %12577 = vmatprep.subr.bf16.mxu1 %v11043_v17 }
0x1016   :  { %11594 = vmatpush1.bf16.msra.mxu0 %v11042_v11  ;;  %12585 = vmatpush1.bf16.msra.mxu1 %v11042_v11 }
0x1017   :  { %11595 = vmatprep.subr.bf16.mxu0 %v11037_v58  ;;  %12578 = vmatprep.subr.bf16.mxu1 %v11037_v58 }
0x1018   :  { %11191 = vmatprep.mubr.bf16.mxu1 %v17073_v54  ;;  %11401 = vmatprep.mubr.bf16.mxu0 %v17073_v54 }
0x101a   :  { %11596 = vmatpush1.bf16.msra.mxu0 %v11036_v22  ;;  %12586 = vmatpush1.bf16.msra.mxu1 %v11036_v22 }
0x101b   :  { %11597 = vmatprep.subr.bf16.mxu0 %v11031_v25  ;;  %12579 = vmatprep.subr.bf16.mxu1 %v11031_v25 }
0x101c   :  { %11192 = vmatmul.mubr.bf16.gmra.mxu1 %v13601_v19  ;;  %11402 = vmatmul.mubr.bf16.gmra.mxu0 %v13602_v48 }
0x101d   :  { %11201 = vmatprep.mubr.bf16.mxu1 %v17073_v54  ;;  %11411 = vmatprep.mubr.bf16.mxu0 %v17073_v54 }
0x101e   :  { %11598 = vmatpush1.bf16.msra.mxu0 %v11030_v59  ;;  %12587 = vmatpush1.bf16.msra.mxu1 %v11030_v59 }
0x101f   :  { %11599 = vmatprep.subr.bf16.mxu0 %v11025_v12  ;;  %12580 = vmatprep.subr.bf16.mxu1 %v11025_v12 }
0x1022   :  { %11600 = vmatpush1.bf16.msra.mxu0 %v11024_v29  ;;  %12588 = vmatpush1.bf16.msra.mxu1 %v11024_v29 }
0x1023   :  { %11601 = vmatprep.subr.bf16.mxu0 %v11019_v15  ;;  %12581 = vmatprep.subr.bf16.mxu1 %v11019_v15 }
0x1024   :  { %11202 = vmatmul.mubr.bf16.gmra.mxu1 %v13603_v38  ;;  %11412 = vmatmul.mubr.bf16.gmra.mxu0 %v13604_v61 }
0x1025   :  { %11211 = vmatprep.mubr.bf16.mxu1 %v17073_v54  ;;  %11421 = vmatprep.mubr.bf16.mxu0 %v17073_v54 }
0x1026   :  { %11602 = vmatpush1.bf16.msra.mxu0 %v11018_v51  ;;  %12589 = vmatpush1.bf16.msra.mxu1 %v11018_v51 }
0x1027   :  { %11603 = vmatprep.subr.bf16.mxu0 %v11013_v35  ;;  %12582 = vmatprep.subr.bf16.mxu1 %v11013_v35 }
0x102a   :  { %11604 = vmatpush1.bf16.msra.mxu0 %v11012_v57  ;;  %12590 = vmatpush1.bf16.msra.mxu1 %v11012_v57 }
0x102b   :  { %11605 = vmatprep.subr.bf16.mxu0 %v16551_v31  ;;  %12583 = vmatprep.subr.bf16.mxu1 %v16551_v31  ;;  %v13609_v31 = vld [vmem:[#allocation3 + $0x448] sm:$0xff]  }
0x102c   :  { %11212 = vmatmul.mubr.bf16.gmra.mxu1 %v13605_v45  ;;  %11422 = vmatmul.mubr.bf16.gmra.mxu0 %v13606_v14 }
0x102d   :  { %11625 = vmatprep.mubr.bf16.mxu0 %v17073_v54  ;;  %11645 = vmatprep.mubr.bf16.mxu1 %v17073_v54 }
0x102e   :  { %11606 = vmatpush1.bf16.msra.mxu0 %v16549_v6  ;;  %12591 = vmatpush1.bf16.msra.mxu1 %v16549_v6  ;;  %v13611_v6 = vld [vmem:[#allocation3 + $0x460] sm:$0xff]  }
0x102f   :  { %11607 = vmatprep.subr.bf16.mxu0 %v16537_v23  ;;  %12584 = vmatprep.subr.bf16.mxu1 %v16537_v23  ;;  %v13612_v23 = vld [vmem:[#allocation3 + $0x468] sm:$0xff]  }
0x1032   :  { %11608 = vmatpush1.bf16.msra.mxu0 %v16535_v3  ;;  %12592 = vmatpush1.bf16.msra.mxu1 %v16535_v3  ;;  %v13613_v3 = vld [vmem:[#allocation3 + $0x470] sm:$0xff]  }
0x1035   :  { %11626 = vmatmul.mubr.bf16.vlgmr.msra.gmra.mxu0 %v13607_v24  ;;  %11646 = vmatmul.mubr.bf16.vlgmr.msra.gmra.mxu1 %v13608_v10 }
0x1036   :  { %11635 = vmatprep.mubr.bf16.mxu0 %v17073_v54  ;;  %11655 = vmatprep.mubr.bf16.mxu1 %v17073_v54 }
0x103d   :  { %11636 = vmatmul.mubr.bf16.gmra.mxu0 %v13609_v31  ;;  %11656 = vmatmul.mubr.bf16.gmra.mxu1 %v13610_v0 }
0x103e   :  { %11665 = vmatprep.mubr.bf16.mxu1 %v17073_v54 }
0x1045   :  { %11666 = vmatmul.mubr.bf16.gmra.mxu1 %v13611_v6 }
0x1046   :  { %11675 = vmatprep.mubr.bf16.mxu1 %v17073_v54 }
0x104d   :  { %11676 = vmatmul.mubr.bf16.gmra.mxu1 %v13612_v23 }
0x104e   :  { %11685 = vmatprep.mubr.bf16.mxu1 %v17073_v54 }
0x1055   :  { %11686 = vmatmul.mubr.bf16.gmra.mxu1 %v13613_v3 }
0x1056   :  { %11695 = vmatprep.mubr.bf16.mxu1 %v17073_v54 }
0x105d   :  { %11696 = vmatmul.mubr.bf16.gmra.mxu1 %v13614_v42 }
0x10b4   :  { %v16649_v1 = vpop.f32.mrf.mxu1  ;;  %v16651_v21 = vpop.f32.mrf.mxu0 }
0x10b6   :  { %v11145_v41 = vpop.f32.mrf.mxu1  ;;  %v11355_v49 = vpop.f32.mrf.mxu0 }
0x10b7   :  { %v11464_v41 = vadd.f32 %v16651_v21, %v16649_v1 }
0x10b8   :  { %v16653_v63 = vpop.f32.mrf.mxu1  ;;  %v16655_v5 = vpop.f32.mrf.mxu0 }
0x10ba   :  { %v11149_v40 = vpop.f32.mrf.mxu1  ;;  %v11359_v33 = vpop.f32.mrf.mxu0 }
0x10bc   :  { %v16657_v4 = vpop.f32.mrf.mxu1  ;;  %v16659_v43 = vpop.f32.mrf.mxu0 }
0x10be   :  { %v11155_v47 = vpop.f32.mrf.mxu1  ;;  %v11365_v27 = vpop.f32.mrf.mxu0 }
0x10c0   :  { %v16661_v50 = vpop.f32.mrf.mxu1  ;;  %v16663_v60 = vpop.f32.mrf.mxu0 }
0x10c2   :  { %v11159_v26 = vpop.f32.mrf.mxu1  ;;  %v11369_v54 = vpop.f32.mrf.mxu0 }
0x10c4   :  { %v11163_v34 = vpop.f32.mrf.mxu1  ;;  %v11373_v36 = vpop.f32.mrf.mxu0 }
0x10c5   :  { %v11472_v49 = vadd.f32 %v11373_v36, %v11163_v34 }
0x10c6   :  { %v11165_v32 = vpop.f32.mrf.mxu1  ;;  %v11375_v30 = vpop.f32.mrf.mxu0 }
0x10c7   :  { %v11466_v32 = vadd.f32 %v16655_v5, %v16653_v63  ;;  %v11468_v63 = vadd.f32 %v16659_v43, %v16657_v4  ;;  %v11470_v4 = vadd.f32 %v16663_v60, %v16661_v50 }
0x10c8   :  { %v11167_v56 = vpop.f32.mrf.mxu1  ;;  %v11377_v2 = vpop.f32.mrf.mxu0 }
0x10c9   :  { %v11474_v30 = vadd.f32 %v11377_v2, %v11167_v56 }
0x10ca   :  { %v11169_v20 = vpop.f32.mrf.mxu1  ;;  %v11379_v55 = vpop.f32.mrf.mxu0 }
0x10cc   :  { %v11173_v16 = vpop.f32.mrf.mxu1  ;;  %v11383_v28 = vpop.f32.mrf.mxu0 }
0x10cd   :  { %v11476_v5 = vadd.f32 %v11383_v28, %v11173_v16 }
0x10ce   :  { %v11175_v46 = vpop.f32.mrf.mxu1  ;;  %v11385_v9 = vpop.f32.mrf.mxu0 }
0x10d0   :  { %v16665_v7 = vpop.f32.mrf.mxu1  ;;  %v16667_v62 = vpop.f32.mrf.mxu0 }
0x10d1   :  { %v11478_v43 = vadd.f32 %v16667_v62, %v16665_v7 }
0x10d2   :  { %v11179_v8 = vpop.f32.mrf.mxu1  ;;  %v11389_v44 = vpop.f32.mrf.mxu0 }
0x10d4   :  { %v16669_v39 = vpop.f32.mrf.mxu1  ;;  %v16671_v53 = vpop.f32.mrf.mxu0 }
0x10d5   :  { %v11480_v50 = vadd.f32 %v16671_v53, %v16669_v39 }
0x10d6   :  { %v11185_v18 = vpop.f32.mrf.mxu1  ;;  %v11395_v13 = vpop.f32.mrf.mxu0 }
0x10d8   :  { %v16673_v52 = vpop.f32.mrf.mxu1  ;;  %v16675_v37 = vpop.f32.mrf.mxu0 }
0x10da   :  { %v11189_v17 = vpop.f32.mrf.mxu1  ;;  %v11399_v11 = vpop.f32.mrf.mxu0 }
0x10dc   :  { %v16677_v58 = vpop.f32.mrf.mxu1  ;;  %v16679_v22 = vpop.f32.mrf.mxu0 }
0x10de   :  { %v11195_v19 = vpop.f32.mrf.mxu1  ;;  %v11405_v48 = vpop.f32.mrf.mxu0 }
0x10e0   :  { %v16681_v25 = vpop.f32.mrf.mxu1  ;;  %v16683_v59 = vpop.f32.mrf.mxu0 }
0x10e2   :  { %v11199_v12 = vpop.f32.mrf.mxu1  ;;  %v11409_v29 = vpop.f32.mrf.mxu0 }
0x10e4   :  { %v16685_v38 = vpop.f32.mrf.mxu1  ;;  %v16687_v61 = vpop.f32.mrf.mxu0 }
0x10e6   :  { %v11205_v15 = vpop.f32.mrf.mxu1  ;;  %v11415_v51 = vpop.f32.mrf.mxu0 }
0x10e8   :  { %v16689_v35 = vpop.f32.mrf.mxu1  ;;  %v16691_v57 = vpop.f32.mrf.mxu0 }
0x10ea   :  { %v11209_v45 = vpop.f32.mrf.mxu1  ;;  %v11419_v14 = vpop.f32.mrf.mxu0 }
0x10ec   :  { %v16693_v24 = vpop.f32.mrf.mxu1  ;;  %v16695_v10 = vpop.f32.mrf.mxu0 }
0x10ee   :  { %v11215_v31 = vpop.f32.mrf.mxu1  ;;  %v11425_v0 = vpop.f32.mrf.mxu0 }
0x10ef   :  { %v11482_v31 = vadd.f32 %v16675_v37, %v16673_v52  ;;  %v11486_v52 = vadd.f32 %v16683_v59, %v16681_v25  ;;  %v11490_v25 = vadd.f32 %v16691_v57, %v16689_v35 }
0x10f0   :  { %v16697_v6 = vpop.f32.mrf.mxu1  ;;  %v16699_v23 = vpop.f32.mrf.mxu0 }
0x10f1   :  { %v11494_v35 = vadd.f32 %v16699_v23, %v16697_v6 }
0x10f2   :  { %v11219_v3 = vpop.f32.mrf.mxu1  ;;  %v11429_v42 = vpop.f32.mrf.mxu0 }
0x10f3   :  { %v11484_v42 = vadd.f32 %v16679_v22, %v16677_v58  ;;  %v11488_v58 = vadd.f32 %v16687_v61, %v16685_v38  ;;  %v11492_v38 = vadd.f32 %v16695_v10, %v16693_v24 }
0x10f5   :  { %v11627_v40 = vpop.f32.mrf.mxu0  ;;  %v11647_v33 = vpop.f32.mrf.mxu1 }
0x10f6   :  { %v11738_v47 = vadd.f32 %v11627_v40, %v11464_v41  ;;  %v11746_v27 = vadd.f32 %v11647_v33, %v11472_v49 }
0x10f7   :  { %v11629_v26 = vpop.f32.mrf.mxu0  ;;  %v11649_v54 = vpop.f32.mrf.mxu1 }
0x10f8   :  { %v11818_v20 = vmax.f32 %v11738_v47, 0.0  ;;  %v11822_v55 = vmax.f32 %v11746_v27, 0.0 }
0x10f9   :  { %v11631_v46 = vpop.f32.mrf.mxu0  ;;  %v11651_v9 = vpop.f32.mrf.mxu1 }
0x10fa   :  { %11834 = vst [vmem:[%s16780_s5] sm:$0xff] %v11818_v20  ;;  %11838 = vst [vmem:[%s16780_s5 + $0x20] sm:$0xff] %v11822_v55  ;;  %v11740_v1 = vadd.f32 %v11631_v46, %v11466_v32  ;;  %v11748_v21 = vadd.f32 %v11651_v9, %v11474_v30 }
0x10fb   :  { %v11633_v34 = vpop.f32.mrf.mxu0  ;;  %v11653_v36 = vpop.f32.mrf.mxu1 }
0x10fc   :  { %v11819_v56 = vmax.f32 %v11740_v1, 0.0  ;;  %v11823_v2 = vmax.f32 %v11748_v21, 0.0 }
0x10fd   :  { %v11637_v8 = vpop.f32.mrf.mxu0  ;;  %v11657_v44 = vpop.f32.mrf.mxu1 }
0x10fe   :  { %11835 = vst [vmem:[%s16780_s5 + $0x8] sm:$0xff] %v11819_v56  ;;  %11839 = vst [vmem:[%s16780_s5 + $0x28] sm:$0xff] %v11823_v2  ;;  %v11742_v18 = vadd.f32 %v11637_v8, %v11468_v63  ;;  %v11750_v13 = vadd.f32 %v11657_v44, %v11476_v5 }
0x10ff   :  { %v11639_v17 = vpop.f32.mrf.mxu0  ;;  %v11659_v11 = vpop.f32.mrf.mxu1 }
0x1100   :  { %v11820_v16 = vmax.f32 %v11742_v18, 0.0  ;;  %v11824_v28 = vmax.f32 %v11750_v13, 0.0 }
0x1101   :  { %v11641_v19 = vpop.f32.mrf.mxu0  ;;  %v11661_v48 = vpop.f32.mrf.mxu1 }
0x1102   :  { %11836 = vst [vmem:[%s16780_s5 + $0x10] sm:$0xff] %v11820_v16  ;;  %11840 = vst [vmem:[%s16780_s5 + $0x30] sm:$0xff] %v11824_v28  ;;  %v11744_v12 = vadd.f32 %v11641_v19, %v11470_v4  ;;  %v11752_v29 = vadd.f32 %v11661_v48, %v11478_v43 }
0x1103   :  { %v11663_v15 = vpop.f32.mrf.mxu1  ;;  %v11643_v51 = vpop.f32.mrf.mxu0 }
0x1104   :  { %v11821_v60 = vmax.f32 %v11744_v12, 0.0  ;;  %v11825_v7 = vmax.f32 %v11752_v29, 0.0 }
0x1105   :  { %v11667_v62 = vpop.f32.mrf.mxu1 }
0x1106   :  { %11837 = vst [vmem:[%s16780_s5 + $0x18] sm:$0xff] %v11821_v60  ;;  %11841 = vst [vmem:[%s16780_s5 + $0x38] sm:$0xff] %v11825_v7  ;;  %v11754_v45 = vadd.f32 %v11667_v62, %v11480_v50 }
0x1107   :  { %v11669_v14 = vpop.f32.mrf.mxu1 }
0x1108   :  { %v11826_v0 = vmax.f32 %v11754_v45, 0.0 }
0x1109   :  { %v11671_v3 = vpop.f32.mrf.mxu1 }
0x110a   :  { %11842 = vst [vmem:[%s16780_s5 + $0x40] sm:$0xff] %v11826_v0  ;;  %v11756_v39 = vadd.f32 %v11671_v3, %v11482_v31 }
0x110b   :  { %v11673_v53 = vpop.f32.mrf.mxu1 }
0x110c   :  { %v11827_v41 = vmax.f32 %v11756_v39, 0.0 }
0x110d   :  { %v11677_v49 = vpop.f32.mrf.mxu1 }
0x110e   :  { %11843 = vst [vmem:[%s16780_s5 + $0x48] sm:$0xff] %v11827_v41  ;;  %v11758_v40 = vadd.f32 %v11677_v49, %v11484_v42 }
0x110f   :  { %v11679_v33 = vpop.f32.mrf.mxu1 }
0x1110   :  { %v11828_v37 = vmax.f32 %v11758_v40, 0.0 }
0x1111   :  { %v11681_v47 = vpop.f32.mrf.mxu1 }
0x1112   :  { %11844 = vst [vmem:[%s16780_s5 + $0x50] sm:$0xff] %v11828_v37  ;;  %v11760_v27 = vadd.f32 %v11681_v47, %v11486_v52 }
0x1113   :  { %v11683_v26 = vpop.f32.mrf.mxu1 }
0x1114   :  { %v11829_v22 = vmax.f32 %v11760_v27, 0.0 }
0x1115   :  { %v11687_v54 = vpop.f32.mrf.mxu1 }
0x1116   :  { %11845 = vst [vmem:[%s16780_s5 + $0x58] sm:$0xff] %v11829_v22  ;;  %v11762_v32 = vadd.f32 %v11687_v54, %v11488_v58 }
0x1117   :  { %v11689_v30 = vpop.f32.mrf.mxu1 }
0x1118   :  { %v11830_v59 = vmax.f32 %v11762_v32, 0.0 }
0x1119   :  { %v11691_v20 = vpop.f32.mrf.mxu1 }
0x111a   :  { %11846 = vst [vmem:[%s16780_s5 + $0x60] sm:$0xff] %v11830_v59  ;;  %v11764_v55 = vadd.f32 %v11691_v20, %v11490_v25 }
0x111b   :  { %v11693_v46 = vpop.f32.mrf.mxu1 }
0x111c   :  { %v11831_v61 = vmax.f32 %v11764_v55, 0.0 }
0x111d   :  { %v11697_v9 = vpop.f32.mrf.mxu1 }
0x111e   :  { %11847 = vst [vmem:[%s16780_s5 + $0x68] sm:$0xff] %v11831_v61  ;;  %v11766_v1 = vadd.f32 %v11697_v9, %v11492_v38 }
0x111f   :  { %v11699_v21 = vpop.f32.mrf.mxu1 }
0x1120   :  { %v11832_v57 = vmax.f32 %v11766_v1, 0.0 }
0x1121   :  { %v11701_v34 = vpop.f32.mrf.mxu1 }
0x1122   :  { %11848 = vst [vmem:[%s16780_s5 + $0x70] sm:$0xff] %v11832_v57  ;;  %v11768_v36 = vadd.f32 %v11701_v34, %v11494_v35 }
0x1123   :  { %v11703_v63 = vpop.f32.mrf.mxu1 }
0x1124   :  { %v11833_v24 = vmax.f32 %v11768_v36, 0.0 }
0x1126   :  { %11849 = vst [vmem:[%s16780_s5 + $0x78] sm:$0xff] %v11833_v24 }
0x1127   :  { %11854 = vsyncpa [#allocation4], 1 }
0x1128   :  { %11855 = vsyncpa [#allocation6], 1 }
0x1129   :  { %11856 = vsyncpa [#allocation9], 1 }

</bundles_post_ra>
